<compile_context>
chip_gen: v7x
topology: tpu7x:2x2x1
jax: 0.10.0
libtpu: 0.0.40
codegen_flags: <defaults>
</compile_context>

<pallas_src>
import jax
import jax.numpy as jnp
from jax.experimental import pallas as pl
from jax.experimental.pallas import tpu as pltpu

CIN_PAD = 8  # pad input channels 3 -> 8 (zero weights for the padded channels)


# ------------------------------ fused kernel --------------------------------

def _make_fused_kernel(H, W):
    HW = H * W
    HF = H - 12          # final valid spatial height (4 convs + 2 pools, all 3x3 valid)
    WF = W - 12          # final valid spatial width

    def kernel(x_ref,
               w1_ref, b1_ref, w2_ref, b2_ref,
               w3_ref, b3_ref, w4_ref, b4_ref,
               wl_ref, bl_ref,
               o_ref,
               x_scr, a1_scr, a2_scr, p1_scr, a3_scr, a4_scr, p2_scr):
        # Zero the tail rows (they are read by shifted taps, never written).
        for s in (x_scr, a1_scr, a2_scr, p1_scr, a3_scr, a4_scr, p2_scr):
            tail = s.shape[0] - HW
            s[pl.ds(HW, tail), :] = jnp.zeros((tail, s.shape[1]), s.dtype)
        x_scr[pl.ds(0, HW), :] = x_ref[...]

        # 3x3 valid conv + ReLU as 9 per-tap (HW, Cin) @ (Cin, Cout) matmuls.
        def conv3x3_relu(in_scr, w_ref, b_ref, out_scr):
            cout = w_ref.shape[-1]
            acc = jnp.zeros((HW, cout), jnp.float32)
            for dh in range(3):
                for dw in range(3):
                    shift = dh * W + dw
                    xs = in_scr[pl.ds(shift, HW), :]              # (HW, Cin)
                    acc = acc + jnp.dot(xs, w_ref[dh, dw],
                                        preferred_element_type=jnp.float32)
            out_scr[pl.ds(0, HW), :] = jnp.maximum(acc + b_ref[...], 0.0)

        # 3x3 stride-1 valid maxpool: 9 shifted maxima on the VPU.
        def maxpool3x3(in_scr, out_scr):
            m = in_scr[pl.ds(0, HW), :]
            for dh in range(3):
                for dw in range(3):
                    if dh == 0 and dw == 0:
                        continue
                    shift = dh * W + dw
                    m = jnp.maximum(m, in_scr[pl.ds(shift, HW), :])
            out_scr[pl.ds(0, HW), :] = m

        conv3x3_relu(x_scr, w1_ref, b1_ref, a1_scr)     # feature_extractor1
        conv3x3_relu(a1_scr, w2_ref, b2_ref, a2_scr)    # feature_extractor2 conv
        maxpool3x3(a2_scr, p1_scr)                      # feature_extractor2 pool
        conv3x3_relu(p1_scr, w3_ref, b3_ref, a3_scr)    # feature_extractor3
        conv3x3_relu(a3_scr, w4_ref, b4_ref, a4_scr)    # feature_extractor4 conv
        maxpool3x3(a4_scr, p2_scr)                      # feature_extractor4 pool

        # Flatten (NCHW order folded into wl layout) + Linear on the valid
        # HFxWFx20 region, all VMEM-resident.
        logits = bl_ref[...]                             # (1, n_classes)
        for hh in range(HF):
            for ww in range(WF):
                r = hh * W + ww
                logits = logits + jnp.dot(p2_scr[pl.ds(r, 1), :],   # (1, 20)
                                          wl_ref[hh, ww],           # (20, classes)
                                          preferred_element_type=jnp.float32)
        o_ref[...] = logits

    return kernel


# --------------------------------- forward ----------------------------------

def forward(params, x_nchw):
    N, cin, H, W = x_nchw.shape
    HW = H * W
    # Padded scratch height: tap shifts reach row (HW-1) + 2*W + 2.
    pad_rows = HW + (-(-(2 * W + 2) // 8)) * 8

    w1, b1 = params["conv1"]
    w2, b2 = params["conv2"]
    w3, b3 = params["conv3"]
    w4, b4 = params["conv4"]
    wl, bl = params["fc"]
    n_classes = bl.shape[0]
    c_last = w4.shape[-1]
    HF, WF = H - 12, W - 12

    # ----- wrapper-side prep (fused/folded by XLA) -----
    # NCHW -> flat NHWC, input channels zero-padded to CIN_PAD.
    x = jnp.transpose(x_nchw, (0, 2, 3, 1)).astype(jnp.float32)
    x = jnp.pad(x, ((0, 0), (0, 0), (0, 0), (0, CIN_PAD - cin)))
    x = x.reshape(N, HW, CIN_PAD)
    w1p = jnp.pad(w1, ((0, 0), (0, 0), (0, CIN_PAD - cin), (0, 0)))
    # Fold PyTorch NCHW flatten into the FC weight:
    # W[o, c*HF*WF + h*WF + w] -> wl4[h, w, c, o]
    wl4 = jnp.transpose(wl.reshape(n_classes, c_last, HF, WF), (2, 3, 1, 0))

    kernel = _make_fused_kernel(H, W)

    def full(shape):
        return pl.BlockSpec(tuple(shape), lambda n: (0,) * len(shape))

    out = pl.pallas_call(
        kernel,
        out_shape=jax.ShapeDtypeStruct((N, 1, n_classes), jnp.float32),
        grid=(N,),
        in_specs=[
            pl.BlockSpec((None, HW, CIN_PAD), lambda n: (n, 0, 0)),
            full(w1p.shape), full((1, w1p.shape[-1])),
            full(w2.shape), full((1, w2.shape[-1])),
            full(w3.shape), full((1, w3.shape[-1])),
            full(w4.shape), full((1, w4.shape[-1])),
            full(wl4.shape), full((1, n_classes)),
        ],
        out_specs=pl.BlockSpec((None, 1, n_classes), lambda n: (n, 0, 0)),
        scratch_shapes=[
            pltpu.VMEM((pad_rows, CIN_PAD), jnp.float32),         # padded input
            pltpu.VMEM((pad_rows, w1.shape[-1]), jnp.float32),    # conv1 out
            pltpu.VMEM((pad_rows, w2.shape[-1]), jnp.float32),    # conv2 out
            pltpu.VMEM((pad_rows, w2.shape[-1]), jnp.float32),    # pool1 out
            pltpu.VMEM((pad_rows, w3.shape[-1]), jnp.float32),    # conv3 out
            pltpu.VMEM((pad_rows, w4.shape[-1]), jnp.float32),    # conv4 out
            pltpu.VMEM((pad_rows, w4.shape[-1]), jnp.float32),    # pool2 out
        ],
        compiler_params=pltpu.CompilerParams(dimension_semantics=("parallel",)),
    )(x, w1p, b1.reshape(1, -1), w2, b2.reshape(1, -1),
      w3, b3.reshape(1, -1), w4, b4.reshape(1, -1),
      wl4, bl.reshape(1, -1))
    return out.reshape(N, n_classes)


# ------------------------------ params & reference ---------------------------

def init_params(key, len_classes, flat_features):
    def conv_init(k, cin, cout):
        k1, k2 = jax.random.split(k)
        scale = 1.0 / jnp.sqrt(cin * 9.0)
        w = jax.random.uniform(k1, (3, 3, cin, cout), jnp.float32, -scale, scale)
        b = jax.random.uniform(k2, (cout,), jnp.float32, -scale, scale)
        return w, b

    keys = jax.random.split(key, 5)
    params = {
        "conv1": conv_init(keys[0], 3, 40),
        "conv2": conv_init(keys[1], 40, 50),
        "conv3": conv_init(keys[2], 50, 40),
        "conv4": conv_init(keys[3], 40, 20),
    }
    k1, k2 = jax.random.split(keys[4])
    scale = 1.0 / jnp.sqrt(float(flat_features))
    wl = jax.random.uniform(k1, (len_classes, flat_features), jnp.float32,
                            -scale, scale)               # torch layout (classes, F)
    bl = jax.random.uniform(k2, (len_classes,), jnp.float32, -scale, scale)
    params["fc"] = (wl, bl)
    return params


def reference_forward(params, x_nchw):
    """Pure-JAX NCHW reference mirroring the PyTorch module."""
    def conv(x, wb):
        w, b = wb
        wt = jnp.transpose(w, (3, 2, 0, 1))              # (Cout, Cin, 3, 3)
        y = jax.lax.conv_general_dilated(
            x, wt, window_strides=(1, 1), padding="VALID",
            dimension_numbers=("NCHW", "OIHW", "NCHW"))
        return jax.nn.relu(y + b[None, :, None, None])

    def pool(x):
        return jax.lax.reduce_window(x, -jnp.inf, jax.lax.max,
                                     (1, 1, 3, 3), (1, 1, 1, 1), "VALID")

    x1 = conv(x_nchw, params["conv1"])
    x2 = pool(conv(x1, params["conv2"]))
    x3 = conv(x2, params["conv3"])
    x4 = pool(conv(x3, params["conv4"]))
    xf = x4.reshape(x4.shape[0], -1)                     # NCHW flatten order
    wl, bl = params["fc"]
    return xf @ wl.T + bl


if __name__ == "__main__":
    key = jax.random.PRNGKey(0)
    kx, kp = jax.random.split(key)

    N, H, W = 2, 16, 16
    LEN_CLASSES = 4
    # spatial trace: 16 ->14 ->12 ->pool 10 ->8 ->6 ->pool 4 ; flat = 20*4*4
    FLAT = 20 * (H - 12) * (W - 12)

    x = jax.random.normal(kx, (N, 3, H, W), jnp.float32)
    params = init_params(kp, LEN_CLASSES, FLAT)

    out = jax.block_until_ready(jax.jit(forward)(params, x))
    assert out.shape == (N, LEN_CLASSES) and out.dtype == jnp.float32

    ref = jax.block_until_ready(reference_forward(params, x))
    assert jnp.allclose(out, ref, atol=2e-3, rtol=2e-3), (out, ref)

    print("KERNEL_OK")
</pallas_src>

<mosaic_0001>
module attributes {stable_mosaic.version = 11 : i64} {
  func.func @kernel(%arg0: i32, %arg1: memref<1x256x8xf32, #tpu.memory_space<vmem>>, %arg2: memref<3x3x8x40xf32, #tpu.memory_space<vmem>>, %arg3: memref<1x40xf32, #tpu.memory_space<vmem>>, %arg4: memref<3x3x40x50xf32, #tpu.memory_space<vmem>>, %arg5: memref<1x50xf32, #tpu.memory_space<vmem>>, %arg6: memref<3x3x50x40xf32, #tpu.memory_space<vmem>>, %arg7: memref<1x40xf32, #tpu.memory_space<vmem>>, %arg8: memref<3x3x40x20xf32, #tpu.memory_space<vmem>>, %arg9: memref<1x20xf32, #tpu.memory_space<vmem>>, %arg10: memref<4x4x20x4xf32, #tpu.memory_space<vmem>>, %arg11: memref<1x4xf32, #tpu.memory_space<vmem>>, %arg12: memref<1x1x4xf32, #tpu.memory_space<vmem>>, %arg13: memref<296x8xf32, #tpu.memory_space<vmem>>, %arg14: memref<296x40xf32, #tpu.memory_space<vmem>>, %arg15: memref<296x50xf32, #tpu.memory_space<vmem>>, %arg16: memref<296x50xf32, #tpu.memory_space<vmem>>, %arg17: memref<296x40xf32, #tpu.memory_space<vmem>>, %arg18: memref<296x20xf32, #tpu.memory_space<vmem>>, %arg19: memref<296x20xf32, #tpu.memory_space<vmem>>) attributes {dimension_semantics = [#tpu.dimension_semantics<parallel>], iteration_bounds = array<i64: 2>, scalar_prefetch = 0 : i64, scratch_operands = 7 : i64, tpu.core_type = #tpu.core_type<tc>, window_params = [{transform_indices = @transform_0, window_bounds = array<i64: 1, 256, 8>}, {pipeline_mode = #tpu.pipeline_mode<synchronous>, transform_indices = @transform_1, window_bounds = array<i64: 3, 3, 8, 40>}, {pipeline_mode = #tpu.pipeline_mode<synchronous>, transform_indices = @transform_2, window_bounds = array<i64: 1, 40>}, {pipeline_mode = #tpu.pipeline_mode<synchronous>, transform_indices = @transform_3, window_bounds = array<i64: 3, 3, 40, 50>}, {pipeline_mode = #tpu.pipeline_mode<synchronous>, transform_indices = @transform_4, window_bounds = array<i64: 1, 50>}, {pipeline_mode = #tpu.pipeline_mode<synchronous>, transform_indices = @transform_5, window_bounds = array<i64: 3, 3, 50, 40>}, {pipeline_mode = #tpu.pipeline_mode<synchronous>, transform_indices = @transform_6, window_bounds = array<i64: 1, 40>}, {pipeline_mode = #tpu.pipeline_mode<synchronous>, transform_indices = @transform_7, window_bounds = array<i64: 3, 3, 40, 20>}, {pipeline_mode = #tpu.pipeline_mode<synchronous>, transform_indices = @transform_8, window_bounds = array<i64: 1, 20>}, {pipeline_mode = #tpu.pipeline_mode<synchronous>, transform_indices = @transform_9, window_bounds = array<i64: 4, 4, 20, 4>}, {pipeline_mode = #tpu.pipeline_mode<synchronous>, transform_indices = @transform_10, window_bounds = array<i64: 1, 4>}, {transform_indices = @transform_11, window_bounds = array<i64: 1, 1, 4>}]} {
    %cst = arith.constant 0.000000e+00 : f32
    %0 = vector.broadcast %cst : f32 to vector<40x8xf32>
    %c256 = arith.constant 256 : index
    %c0 = arith.constant 0 : index
    %1 = vector.load %arg13[%c256, %c0] : memref<296x8xf32, #tpu.memory_space<vmem>>, vector<40x8xf32>
    tpu.vector_store %arg13[%c256, %c0], %0 {strides = array<i32>} : memref<296x8xf32, #tpu.memory_space<vmem>>, vector<40x8xf32>,
    %cst_0 = arith.constant 0.000000e+00 : f32
    %2 = vector.broadcast %cst_0 : f32 to vector<40x40xf32>
    %c256_1 = arith.constant 256 : index
    %c0_2 = arith.constant 0 : index
    %3 = vector.load %arg14[%c256_1, %c0_2] : memref<296x40xf32, #tpu.memory_space<vmem>>, vector<40x40xf32>
    tpu.vector_store %arg14[%c256_1, %c0_2], %2 {strides = array<i32>} : memref<296x40xf32, #tpu.memory_space<vmem>>, vector<40x40xf32>,
    %cst_3 = arith.constant 0.000000e+00 : f32
    %4 = vector.broadcast %cst_3 : f32 to vector<40x50xf32>
    %c256_4 = arith.constant 256 : index
    %c0_5 = arith.constant 0 : index
    %5 = vector.load %arg15[%c256_4, %c0_5] : memref<296x50xf32, #tpu.memory_space<vmem>>, vector<40x50xf32>
    tpu.vector_store %arg15[%c256_4, %c0_5], %4 {strides = array<i32>} : memref<296x50xf32, #tpu.memory_space<vmem>>, vector<40x50xf32>,
    %cst_6 = arith.constant 0.000000e+00 : f32
    %6 = vector.broadcast %cst_6 : f32 to vector<40x50xf32>
    %c256_7 = arith.constant 256 : index
    %c0_8 = arith.constant 0 : index
    %7 = vector.load %arg16[%c256_7, %c0_8] : memref<296x50xf32, #tpu.memory_space<vmem>>, vector<40x50xf32>
    tpu.vector_store %arg16[%c256_7, %c0_8], %6 {strides = array<i32>} : memref<296x50xf32, #tpu.memory_space<vmem>>, vector<40x50xf32>,
    %cst_9 = arith.constant 0.000000e+00 : f32
    %8 = vector.broadcast %cst_9 : f32 to vector<40x40xf32>
    %c256_10 = arith.constant 256 : index
    %c0_11 = arith.constant 0 : index
    %9 = vector.load %arg17[%c256_10, %c0_11] : memref<296x40xf32, #tpu.memory_space<vmem>>, vector<40x40xf32>
    tpu.vector_store %arg17[%c256_10, %c0_11], %8 {strides = array<i32>} : memref<296x40xf32, #tpu.memory_space<vmem>>, vector<40x40xf32>,
    %cst_12 = arith.constant 0.000000e+00 : f32
    %10 = vector.broadcast %cst_12 : f32 to vector<40x20xf32>
    %c256_13 = arith.constant 256 : index
    %c0_14 = arith.constant 0 : index
    %11 = vector.load %arg18[%c256_13, %c0_14] : memref<296x20xf32, #tpu.memory_space<vmem>>, vector<40x20xf32>
    tpu.vector_store %arg18[%c256_13, %c0_14], %10 {strides = array<i32>} : memref<296x20xf32, #tpu.memory_space<vmem>>, vector<40x20xf32>,
    %cst_15 = arith.constant 0.000000e+00 : f32
    %12 = vector.broadcast %cst_15 : f32 to vector<40x20xf32>
    %c256_16 = arith.constant 256 : index
    %c0_17 = arith.constant 0 : index
    %13 = vector.load %arg19[%c256_16, %c0_17] : memref<296x20xf32, #tpu.memory_space<vmem>>, vector<40x20xf32>
    tpu.vector_store %arg19[%c256_16, %c0_17], %12 {strides = array<i32>} : memref<296x20xf32, #tpu.memory_space<vmem>>, vector<40x20xf32>,
    %c0_18 = arith.constant 0 : index
    %c0_19 = arith.constant 0 : index
    %c0_20 = arith.constant 0 : index
    %14 = vector.load %arg1[%c0_18, %c0_19, %c0_20] : memref<1x256x8xf32, #tpu.memory_space<vmem>>, vector<1x256x8xf32>
    %15 = vector.shape_cast %14 : vector<1x256x8xf32> to vector<256x8xf32>
    %c0_21 = arith.constant 0 : index
    %c0_22 = arith.constant 0 : index
    %16 = vector.load %arg13[%c0_21, %c0_22] : memref<296x8xf32, #tpu.memory_space<vmem>>, vector<256x8xf32>
    tpu.vector_store %arg13[%c0_21, %c0_22], %15 {strides = array<i32>} : memref<296x8xf32, #tpu.memory_space<vmem>>, vector<256x8xf32>,
    %cst_23 = arith.constant 0.000000e+00 : f32
    %17 = vector.broadcast %cst_23 : f32 to vector<256x40xf32>
    %c0_24 = arith.constant 0 : index
    %c0_25 = arith.constant 0 : index
    %18 = vector.load %arg13[%c0_24, %c0_25] : memref<296x8xf32, #tpu.memory_space<vmem>>, vector<256x8xf32>
    %c0_26 = arith.constant 0 : index
    %c0_27 = arith.constant 0 : index
    %c0_28 = arith.constant 0 : index
    %c0_29 = arith.constant 0 : index
    %19 = vector.load %arg2[%c0_26, %c0_27, %c0_28, %c0_29] : memref<3x3x8x40xf32, #tpu.memory_space<vmem>>, vector<1x1x8x40xf32>
    %20 = vector.shape_cast %19 : vector<1x1x8x40xf32> to vector<8x40xf32>
    %cst_30 = arith.constant dense<0.000000e+00> : vector<256x40xf32>
    %21 = tpu.matmul %18, %20, %cst_30 {dimension_numbers = #tpu.dot_dimension_numbers<[1], [0], [0], [1], [0, 0, 1, 1], [], []>} : vector<256x8xf32>, vector<8x40xf32>, vector<256x40xf32> -> vector<256x40xf32>
    %22 = arith.addf %17, %21 : vector<256x40xf32>
    %c1 = arith.constant 1 : index
    %c0_31 = arith.constant 0 : index
    %23 = vector.load %arg13[%c1, %c0_31] : memref<296x8xf32, #tpu.memory_space<vmem>>, vector<256x8xf32>
    %c0_32 = arith.constant 0 : index
    %c1_33 = arith.constant 1 : index
    %c0_34 = arith.constant 0 : index
    %c0_35 = arith.constant 0 : index
    %24 = vector.load %arg2[%c0_32, %c1_33, %c0_34, %c0_35] : memref<3x3x8x40xf32, #tpu.memory_space<vmem>>, vector<1x1x8x40xf32>
    %25 = vector.shape_cast %24 : vector<1x1x8x40xf32> to vector<8x40xf32>
    %cst_36 = arith.constant dense<0.000000e+00> : vector<256x40xf32>
    %26 = tpu.matmul %23, %25, %cst_36 {dimension_numbers = #tpu.dot_dimension_numbers<[1], [0], [0], [1], [0, 0, 1, 1], [], []>} : vector<256x8xf32>, vector<8x40xf32>, vector<256x40xf32> -> vector<256x40xf32>
    %27 = arith.addf %22, %26 : vector<256x40xf32>
    %c2 = arith.constant 2 : index
    %c0_37 = arith.constant 0 : index
    %28 = vector.load %arg13[%c2, %c0_37] : memref<296x8xf32, #tpu.memory_space<vmem>>, vector<256x8xf32>
    %c0_38 = arith.constant 0 : index
    %c2_39 = arith.constant 2 : index
    %c0_40 = arith.constant 0 : index
    %c0_41 = arith.constant 0 : index
    %29 = vector.load %arg2[%c0_38, %c2_39, %c0_40, %c0_41] : memref<3x3x8x40xf32, #tpu.memory_space<vmem>>, vector<1x1x8x40xf32>
    %30 = vector.shape_cast %29 : vector<1x1x8x40xf32> to vector<8x40xf32>
    %cst_42 = arith.constant dense<0.000000e+00> : vector<256x40xf32>
    %31 = tpu.matmul %28, %30, %cst_42 {dimension_numbers = #tpu.dot_dimension_numbers<[1], [0], [0], [1], [0, 0, 1, 1], [], []>} : vector<256x8xf32>, vector<8x40xf32>, vector<256x40xf32> -> vector<256x40xf32>
    %32 = arith.addf %27, %31 : vector<256x40xf32>
    %c16 = arith.constant 16 : index
    %c0_43 = arith.constant 0 : index
    %33 = vector.load %arg13[%c16, %c0_43] : memref<296x8xf32, #tpu.memory_space<vmem>>, vector<256x8xf32>
    %c1_44 = arith.constant 1 : index
    %c0_45 = arith.constant 0 : index
    %c0_46 = arith.constant 0 : index
    %c0_47 = arith.constant 0 : index
    %34 = vector.load %arg2[%c1_44, %c0_45, %c0_46, %c0_47] : memref<3x3x8x40xf32, #tpu.memory_space<vmem>>, vector<1x1x8x40xf32>
    %35 = vector.shape_cast %34 : vector<1x1x8x40xf32> to vector<8x40xf32>
    %cst_48 = arith.constant dense<0.000000e+00> : vector<256x40xf32>
    %36 = tpu.matmul %33, %35, %cst_48 {dimension_numbers = #tpu.dot_dimension_numbers<[1], [0], [0], [1], [0, 0, 1, 1], [], []>} : vector<256x8xf32>, vector<8x40xf32>, vector<256x40xf32> -> vector<256x40xf32>
    %37 = arith.addf %32, %36 : vector<256x40xf32>
    %c17 = arith.constant 17 : index
    %c0_49 = arith.constant 0 : index
    %38 = vector.load %arg13[%c17, %c0_49] : memref<296x8xf32, #tpu.memory_space<vmem>>, vector<256x8xf32>
    %c1_50 = arith.constant 1 : index
    %c1_51 = arith.constant 1 : index
    %c0_52 = arith.constant 0 : index
    %c0_53 = arith.constant 0 : index
    %39 = vector.load %arg2[%c1_50, %c1_51, %c0_52, %c0_53] : memref<3x3x8x40xf32, #tpu.memory_space<vmem>>, vector<1x1x8x40xf32>
    %40 = vector.shape_cast %39 : vector<1x1x8x40xf32> to vector<8x40xf32>
    %cst_54 = arith.constant dense<0.000000e+00> : vector<256x40xf32>
    %41 = tpu.matmul %38, %40, %cst_54 {dimension_numbers = #tpu.dot_dimension_numbers<[1], [0], [0], [1], [0, 0, 1, 1], [], []>} : vector<256x8xf32>, vector<8x40xf32>, vector<256x40xf32> -> vector<256x40xf32>
    %42 = arith.addf %37, %41 : vector<256x40xf32>
    %c18 = arith.constant 18 : index
    %c0_55 = arith.constant 0 : index
    %43 = vector.load %arg13[%c18, %c0_55] : memref<296x8xf32, #tpu.memory_space<vmem>>, vector<256x8xf32>
    %c1_56 = arith.constant 1 : index
    %c2_57 = arith.constant 2 : index
    %c0_58 = arith.constant 0 : index
    %c0_59 = arith.constant 0 : index
    %44 = vector.load %arg2[%c1_56, %c2_57, %c0_58, %c0_59] : memref<3x3x8x40xf32, #tpu.memory_space<vmem>>, vector<1x1x8x40xf32>
    %45 = vector.shape_cast %44 : vector<1x1x8x40xf32> to vector<8x40xf32>
    %cst_60 = arith.constant dense<0.000000e+00> : vector<256x40xf32>
    %46 = tpu.matmul %43, %45, %cst_60 {dimension_numbers = #tpu.dot_dimension_numbers<[1], [0], [0], [1], [0, 0, 1, 1], [], []>} : vector<256x8xf32>, vector<8x40xf32>, vector<256x40xf32> -> vector<256x40xf32>
    %47 = arith.addf %42, %46 : vector<256x40xf32>
    %c32 = arith.constant 32 : index
    %c0_61 = arith.constant 0 : index
    %48 = vector.load %arg13[%c32, %c0_61] : memref<296x8xf32, #tpu.memory_space<vmem>>, vector<256x8xf32>
    %c2_62 = arith.constant 2 : index
    %c0_63 = arith.constant 0 : index
    %c0_64 = arith.constant 0 : index
    %c0_65 = arith.constant 0 : index
    %49 = vector.load %arg2[%c2_62, %c0_63, %c0_64, %c0_65] : memref<3x3x8x40xf32, #tpu.memory_space<vmem>>, vector<1x1x8x40xf32>
    %50 = vector.shape_cast %49 : vector<1x1x8x40xf32> to vector<8x40xf32>
    %cst_66 = arith.constant dense<0.000000e+00> : vector<256x40xf32>
    %51 = tpu.matmul %48, %50, %cst_66 {dimension_numbers = #tpu.dot_dimension_numbers<[1], [0], [0], [1], [0, 0, 1, 1], [], []>} : vector<256x8xf32>, vector<8x40xf32>, vector<256x40xf32> -> vector<256x40xf32>
    %52 = arith.addf %47, %51 : vector<256x40xf32>
    %c33 = arith.constant 33 : index
    %c0_67 = arith.constant 0 : index
    %53 = vector.load %arg13[%c33, %c0_67] : memref<296x8xf32, #tpu.memory_space<vmem>>, vector<256x8xf32>
    %c2_68 = arith.constant 2 : index
    %c1_69 = arith.constant 1 : index
    %c0_70 = arith.constant 0 : index
    %c0_71 = arith.constant 0 : index
    %54 = vector.load %arg2[%c2_68, %c1_69, %c0_70, %c0_71] : memref<3x3x8x40xf32, #tpu.memory_space<vmem>>, vector<1x1x8x40xf32>
    %55 = vector.shape_cast %54 : vector<1x1x8x40xf32> to vector<8x40xf32>
    %cst_72 = arith.constant dense<0.000000e+00> : vector<256x40xf32>
    %56 = tpu.matmul %53, %55, %cst_72 {dimension_numbers = #tpu.dot_dimension_numbers<[1], [0], [0], [1], [0, 0, 1, 1], [], []>} : vector<256x8xf32>, vector<8x40xf32>, vector<256x40xf32> -> vector<256x40xf32>
    %57 = arith.addf %52, %56 : vector<256x40xf32>
    %c34 = arith.constant 34 : index
    %c0_73 = arith.constant 0 : index
    %58 = vector.load %arg13[%c34, %c0_73] : memref<296x8xf32, #tpu.memory_space<vmem>>, vector<256x8xf32>
    %c2_74 = arith.constant 2 : index
    %c2_75 = arith.constant 2 : index
    %c0_76 = arith.constant 0 : index
    %c0_77 = arith.constant 0 : index
    %59 = vector.load %arg2[%c2_74, %c2_75, %c0_76, %c0_77] : memref<3x3x8x40xf32, #tpu.memory_space<vmem>>, vector<1x1x8x40xf32>
    %60 = vector.shape_cast %59 : vector<1x1x8x40xf32> to vector<8x40xf32>
    %cst_78 = arith.constant dense<0.000000e+00> : vector<256x40xf32>
    %61 = tpu.matmul %58, %60, %cst_78 {dimension_numbers = #tpu.dot_dimension_numbers<[1], [0], [0], [1], [0, 0, 1, 1], [], []>} : vector<256x8xf32>, vector<8x40xf32>, vector<256x40xf32> -> vector<256x40xf32>
    %62 = arith.addf %57, %61 : vector<256x40xf32>
    %c0_79 = arith.constant 0 : index
    %c0_80 = arith.constant 0 : index
    %63 = vector.load %arg3[%c0_79, %c0_80] : memref<1x40xf32, #tpu.memory_space<vmem>>, vector<1x40xf32>
    %64 = vector.broadcast %63 : vector<1x40xf32> to vector<256x40xf32>
    %65 = arith.addf %62, %64 : vector<256x40xf32>
    %cst_81 = arith.constant 0.000000e+00 : f32
    %66 = vector.broadcast %cst_81 : f32 to vector<256x40xf32>
    %67 = arith.maximumf %65, %66 : vector<256x40xf32>
    %c0_82 = arith.constant 0 : index
    %c0_83 = arith.constant 0 : index
    %68 = vector.load %arg14[%c0_82, %c0_83] : memref<296x40xf32, #tpu.memory_space<vmem>>, vector<256x40xf32>
    tpu.vector_store %arg14[%c0_82, %c0_83], %67 {strides = array<i32>} : memref<296x40xf32, #tpu.memory_space<vmem>>, vector<256x40xf32>,
    %cst_84 = arith.constant 0.000000e+00 : f32
    %69 = vector.broadcast %cst_84 : f32 to vector<256x50xf32>
    %c0_85 = arith.constant 0 : index
    %c0_86 = arith.constant 0 : index
    %70 = vector.load %arg14[%c0_85, %c0_86] : memref<296x40xf32, #tpu.memory_space<vmem>>, vector<256x40xf32>
    %c0_87 = arith.constant 0 : index
    %c0_88 = arith.constant 0 : index
    %c0_89 = arith.constant 0 : index
    %c0_90 = arith.constant 0 : index
    %71 = vector.load %arg4[%c0_87, %c0_88, %c0_89, %c0_90] : memref<3x3x40x50xf32, #tpu.memory_space<vmem>>, vector<1x1x40x50xf32>
    %72 = vector.shape_cast %71 : vector<1x1x40x50xf32> to vector<40x50xf32>
    %cst_91 = arith.constant dense<0.000000e+00> : vector<256x50xf32>
    %73 = tpu.matmul %70, %72, %cst_91 {dimension_numbers = #tpu.dot_dimension_numbers<[1], [0], [0], [1], [0, 0, 1, 1], [], []>} : vector<256x40xf32>, vector<40x50xf32>, vector<256x50xf32> -> vector<256x50xf32>
    %74 = arith.addf %69, %73 : vector<256x50xf32>
    %c1_92 = arith.constant 1 : index
    %c0_93 = arith.constant 0 : index
    %75 = vector.load %arg14[%c1_92, %c0_93] : memref<296x40xf32, #tpu.memory_space<vmem>>, vector<256x40xf32>
    %c0_94 = arith.constant 0 : index
    %c1_95 = arith.constant 1 : index
    %c0_96 = arith.constant 0 : index
    %c0_97 = arith.constant 0 : index
    %76 = vector.load %arg4[%c0_94, %c1_95, %c0_96, %c0_97] : memref<3x3x40x50xf32, #tpu.memory_space<vmem>>, vector<1x1x40x50xf32>
    %77 = vector.shape_cast %76 : vector<1x1x40x50xf32> to vector<40x50xf32>
    %cst_98 = arith.constant dense<0.000000e+00> : vector<256x50xf32>
    %78 = tpu.matmul %75, %77, %cst_98 {dimension_numbers = #tpu.dot_dimension_numbers<[1], [0], [0], [1], [0, 0, 1, 1], [], []>} : vector<256x40xf32>, vector<40x50xf32>, vector<256x50xf32> -> vector<256x50xf32>
    %79 = arith.addf %74, %78 : vector<256x50xf32>
    %c2_99 = arith.constant 2 : index
    %c0_100 = arith.constant 0 : index
    %80 = vector.load %arg14[%c2_99, %c0_100] : memref<296x40xf32, #tpu.memory_space<vmem>>, vector<256x40xf32>
    %c0_101 = arith.constant 0 : index
    %c2_102 = arith.constant 2 : index
    %c0_103 = arith.constant 0 : index
    %c0_104 = arith.constant 0 : index
    %81 = vector.load %arg4[%c0_101, %c2_102, %c0_103, %c0_104] : memref<3x3x40x50xf32, #tpu.memory_space<vmem>>, vector<1x1x40x50xf32>
    %82 = vector.shape_cast %81 : vector<1x1x40x50xf32> to vector<40x50xf32>
    %cst_105 = arith.constant dense<0.000000e+00> : vector<256x50xf32>
    %83 = tpu.matmul %80, %82, %cst_105 {dimension_numbers = #tpu.dot_dimension_numbers<[1], [0], [0], [1], [0, 0, 1, 1], [], []>} : vector<256x40xf32>, vector<40x50xf32>, vector<256x50xf32> -> vector<256x50xf32>
    %84 = arith.addf %79, %83 : vector<256x50xf32>
    %c16_106 = arith.constant 16 : index
    %c0_107 = arith.constant 0 : index
    %85 = vector.load %arg14[%c16_106, %c0_107] : memref<296x40xf32, #tpu.memory_space<vmem>>, vector<256x40xf32>
    %c1_108 = arith.constant 1 : index
    %c0_109 = arith.constant 0 : index
    %c0_110 = arith.constant 0 : index
    %c0_111 = arith.constant 0 : index
    %86 = vector.load %arg4[%c1_108, %c0_109, %c0_110, %c0_111] : memref<3x3x40x50xf32, #tpu.memory_space<vmem>>, vector<1x1x40x50xf32>
    %87 = vector.shape_cast %86 : vector<1x1x40x50xf32> to vector<40x50xf32>
    %cst_112 = arith.constant dense<0.000000e+00> : vector<256x50xf32>
    %88 = tpu.matmul %85, %87, %cst_112 {dimension_numbers = #tpu.dot_dimension_numbers<[1], [0], [0], [1], [0, 0, 1, 1], [], []>} : vector<256x40xf32>, vector<40x50xf32>, vector<256x50xf32> -> vector<256x50xf32>
    %89 = arith.addf %84, %88 : vector<256x50xf32>
    %c17_113 = arith.constant 17 : index
    %c0_114 = arith.constant 0 : index
    %90 = vector.load %arg14[%c17_113, %c0_114] : memref<296x40xf32, #tpu.memory_space<vmem>>, vector<256x40xf32>
    %c1_115 = arith.constant 1 : index
    %c1_116 = arith.constant 1 : index
    %c0_117 = arith.constant 0 : index
    %c0_118 = arith.constant 0 : index
    %91 = vector.load %arg4[%c1_115, %c1_116, %c0_117, %c0_118] : memref<3x3x40x50xf32, #tpu.memory_space<vmem>>, vector<1x1x40x50xf32>
    %92 = vector.shape_cast %91 : vector<1x1x40x50xf32> to vector<40x50xf32>
    %cst_119 = arith.constant dense<0.000000e+00> : vector<256x50xf32>
    %93 = tpu.matmul %90, %92, %cst_119 {dimension_numbers = #tpu.dot_dimension_numbers<[1], [0], [0], [1], [0, 0, 1, 1], [], []>} : vector<256x40xf32>, vector<40x50xf32>, vector<256x50xf32> -> vector<256x50xf32>
    %94 = arith.addf %89, %93 : vector<256x50xf32>
    %c18_120 = arith.constant 18 : index
    %c0_121 = arith.constant 0 : index
    %95 = vector.load %arg14[%c18_120, %c0_121] : memref<296x40xf32, #tpu.memory_space<vmem>>, vector<256x40xf32>
    %c1_122 = arith.constant 1 : index
    %c2_123 = arith.constant 2 : index
    %c0_124 = arith.constant 0 : index
    %c0_125 = arith.constant 0 : index
    %96 = vector.load %arg4[%c1_122, %c2_123, %c0_124, %c0_125] : memref<3x3x40x50xf32, #tpu.memory_space<vmem>>, vector<1x1x40x50xf32>
    %97 = vector.shape_cast %96 : vector<1x1x40x50xf32> to vector<40x50xf32>
    %cst_126 = arith.constant dense<0.000000e+00> : vector<256x50xf32>
    %98 = tpu.matmul %95, %97, %cst_126 {dimension_numbers = #tpu.dot_dimension_numbers<[1], [0], [0], [1], [0, 0, 1, 1], [], []>} : vector<256x40xf32>, vector<40x50xf32>, vector<256x50xf32> -> vector<256x50xf32>
    %99 = arith.addf %94, %98 : vector<256x50xf32>
    %c32_127 = arith.constant 32 : index
    %c0_128 = arith.constant 0 : index
    %100 = vector.load %arg14[%c32_127, %c0_128] : memref<296x40xf32, #tpu.memory_space<vmem>>, vector<256x40xf32>
    %c2_129 = arith.constant 2 : index
    %c0_130 = arith.constant 0 : index
    %c0_131 = arith.constant 0 : index
    %c0_132 = arith.constant 0 : index
    %101 = vector.load %arg4[%c2_129, %c0_130, %c0_131, %c0_132] : memref<3x3x40x50xf32, #tpu.memory_space<vmem>>, vector<1x1x40x50xf32>
    %102 = vector.shape_cast %101 : vector<1x1x40x50xf32> to vector<40x50xf32>
    %cst_133 = arith.constant dense<0.000000e+00> : vector<256x50xf32>
    %103 = tpu.matmul %100, %102, %cst_133 {dimension_numbers = #tpu.dot_dimension_numbers<[1], [0], [0], [1], [0, 0, 1, 1], [], []>} : vector<256x40xf32>, vector<40x50xf32>, vector<256x50xf32> -> vector<256x50xf32>
    %104 = arith.addf %99, %103 : vector<256x50xf32>
    %c33_134 = arith.constant 33 : index
    %c0_135 = arith.constant 0 : index
    %105 = vector.load %arg14[%c33_134, %c0_135] : memref<296x40xf32, #tpu.memory_space<vmem>>, vector<256x40xf32>
    %c2_136 = arith.constant 2 : index
    %c1_137 = arith.constant 1 : index
    %c0_138 = arith.constant 0 : index
    %c0_139 = arith.constant 0 : index
    %106 = vector.load %arg4[%c2_136, %c1_137, %c0_138, %c0_139] : memref<3x3x40x50xf32, #tpu.memory_space<vmem>>, vector<1x1x40x50xf32>
    %107 = vector.shape_cast %106 : vector<1x1x40x50xf32> to vector<40x50xf32>
    %cst_140 = arith.constant dense<0.000000e+00> : vector<256x50xf32>
    %108 = tpu.matmul %105, %107, %cst_140 {dimension_numbers = #tpu.dot_dimension_numbers<[1], [0], [0], [1], [0, 0, 1, 1], [], []>} : vector<256x40xf32>, vector<40x50xf32>, vector<256x50xf32> -> vector<256x50xf32>
    %109 = arith.addf %104, %108 : vector<256x50xf32>
    %c34_141 = arith.constant 34 : index
    %c0_142 = arith.constant 0 : index
    %110 = vector.load %arg14[%c34_141, %c0_142] : memref<296x40xf32, #tpu.memory_space<vmem>>, vector<256x40xf32>
    %c2_143 = arith.constant 2 : index
    %c2_144 = arith.constant 2 : index
    %c0_145 = arith.constant 0 : index
    %c0_146 = arith.constant 0 : index
    %111 = vector.load %arg4[%c2_143, %c2_144, %c0_145, %c0_146] : memref<3x3x40x50xf32, #tpu.memory_space<vmem>>, vector<1x1x40x50xf32>
    %112 = vector.shape_cast %111 : vector<1x1x40x50xf32> to vector<40x50xf32>
    %cst_147 = arith.constant dense<0.000000e+00> : vector<256x50xf32>
    %113 = tpu.matmul %110, %112, %cst_147 {dimension_numbers = #tpu.dot_dimension_numbers<[1], [0], [0], [1], [0, 0, 1, 1], [], []>} : vector<256x40xf32>, vector<40x50xf32>, vector<256x50xf32> -> vector<256x50xf32>
    %114 = arith.addf %109, %113 : vector<256x50xf32>
    %c0_148 = arith.constant 0 : index
    %c0_149 = arith.constant 0 : index
    %115 = vector.load %arg5[%c0_148, %c0_149] : memref<1x50xf32, #tpu.memory_space<vmem>>, vector<1x50xf32>
    %116 = vector.broadcast %115 : vector<1x50xf32> to vector<256x50xf32>
    %117 = arith.addf %114, %116 : vector<256x50xf32>
    %cst_150 = arith.constant 0.000000e+00 : f32
    %118 = vector.broadcast %cst_150 : f32 to vector<256x50xf32>
    %119 = arith.maximumf %117, %118 : vector<256x50xf32>
    %c0_151 = arith.constant 0 : index
    %c0_152 = arith.constant 0 : index
    %120 = vector.load %arg15[%c0_151, %c0_152] : memref<296x50xf32, #tpu.memory_space<vmem>>, vector<256x50xf32>
    tpu.vector_store %arg15[%c0_151, %c0_152], %119 {strides = array<i32>} : memref<296x50xf32, #tpu.memory_space<vmem>>, vector<256x50xf32>,
    %c0_153 = arith.constant 0 : index
    %c0_154 = arith.constant 0 : index
    %121 = vector.load %arg15[%c0_153, %c0_154] : memref<296x50xf32, #tpu.memory_space<vmem>>, vector<256x50xf32>
    %c1_155 = arith.constant 1 : index
    %c0_156 = arith.constant 0 : index
    %122 = vector.load %arg15[%c1_155, %c0_156] : memref<296x50xf32, #tpu.memory_space<vmem>>, vector<256x50xf32>
    %123 = arith.maximumf %121, %122 : vector<256x50xf32>
    %c2_157 = arith.constant 2 : index
    %c0_158 = arith.constant 0 : index
    %124 = vector.load %arg15[%c2_157, %c0_158] : memref<296x50xf32, #tpu.memory_space<vmem>>, vector<256x50xf32>
    %125 = arith.maximumf %123, %124 : vector<256x50xf32>
    %c16_159 = arith.constant 16 : index
    %c0_160 = arith.constant 0 : index
    %126 = vector.load %arg15[%c16_159, %c0_160] : memref<296x50xf32, #tpu.memory_space<vmem>>, vector<256x50xf32>
    %127 = arith.maximumf %125, %126 : vector<256x50xf32>
    %c17_161 = arith.constant 17 : index
    %c0_162 = arith.constant 0 : index
    %128 = vector.load %arg15[%c17_161, %c0_162] : memref<296x50xf32, #tpu.memory_space<vmem>>, vector<256x50xf32>
    %129 = arith.maximumf %127, %128 : vector<256x50xf32>
    %c18_163 = arith.constant 18 : index
    %c0_164 = arith.constant 0 : index
    %130 = vector.load %arg15[%c18_163, %c0_164] : memref<296x50xf32, #tpu.memory_space<vmem>>, vector<256x50xf32>
    %131 = arith.maximumf %129, %130 : vector<256x50xf32>
    %c32_165 = arith.constant 32 : index
    %c0_166 = arith.constant 0 : index
    %132 = vector.load %arg15[%c32_165, %c0_166] : memref<296x50xf32, #tpu.memory_space<vmem>>, vector<256x50xf32>
    %133 = arith.maximumf %131, %132 : vector<256x50xf32>
    %c33_167 = arith.constant 33 : index
    %c0_168 = arith.constant 0 : index
    %134 = vector.load %arg15[%c33_167, %c0_168] : memref<296x50xf32, #tpu.memory_space<vmem>>, vector<256x50xf32>
    %135 = arith.maximumf %133, %134 : vector<256x50xf32>
    %c34_169 = arith.constant 34 : index
    %c0_170 = arith.constant 0 : index
    %136 = vector.load %arg15[%c34_169, %c0_170] : memref<296x50xf32, #tpu.memory_space<vmem>>, vector<256x50xf32>
    %137 = arith.maximumf %135, %136 : vector<256x50xf32>
    %c0_171 = arith.constant 0 : index
    %c0_172 = arith.constant 0 : index
    %138 = vector.load %arg16[%c0_171, %c0_172] : memref<296x50xf32, #tpu.memory_space<vmem>>, vector<256x50xf32>
    tpu.vector_store %arg16[%c0_171, %c0_172], %137 {strides = array<i32>} : memref<296x50xf32, #tpu.memory_space<vmem>>, vector<256x50xf32>,
    %cst_173 = arith.constant 0.000000e+00 : f32
    %139 = vector.broadcast %cst_173 : f32 to vector<256x40xf32>
    %c0_174 = arith.constant 0 : index
    %c0_175 = arith.constant 0 : index
    %140 = vector.load %arg16[%c0_174, %c0_175] : memref<296x50xf32, #tpu.memory_space<vmem>>, vector<256x50xf32>
    %c0_176 = arith.constant 0 : index
    %c0_177 = arith.constant 0 : index
    %c0_178 = arith.constant 0 : index
    %c0_179 = arith.constant 0 : index
    %141 = vector.load %arg6[%c0_176, %c0_177, %c0_178, %c0_179] : memref<3x3x50x40xf32, #tpu.memory_space<vmem>>, vector<1x1x50x40xf32>
    %142 = vector.shape_cast %141 : vector<1x1x50x40xf32> to vector<50x40xf32>
    %cst_180 = arith.constant dense<0.000000e+00> : vector<256x40xf32>
    %143 = tpu.matmul %140, %142, %cst_180 {dimension_numbers = #tpu.dot_dimension_numbers<[1], [0], [0], [1], [0, 0, 1, 1], [], []>} : vector<256x50xf32>, vector<50x40xf32>, vector<256x40xf32> -> vector<256x40xf32>
    %144 = arith.addf %139, %143 : vector<256x40xf32>
    %c1_181 = arith.constant 1 : index
    %c0_182 = arith.constant 0 : index
    %145 = vector.load %arg16[%c1_181, %c0_182] : memref<296x50xf32, #tpu.memory_space<vmem>>, vector<256x50xf32>
    %c0_183 = arith.constant 0 : index
    %c1_184 = arith.constant 1 : index
    %c0_185 = arith.constant 0 : index
    %c0_186 = arith.constant 0 : index
    %146 = vector.load %arg6[%c0_183, %c1_184, %c0_185, %c0_186] : memref<3x3x50x40xf32, #tpu.memory_space<vmem>>, vector<1x1x50x40xf32>
    %147 = vector.shape_cast %146 : vector<1x1x50x40xf32> to vector<50x40xf32>
    %cst_187 = arith.constant dense<0.000000e+00> : vector<256x40xf32>
    %148 = tpu.matmul %145, %147, %cst_187 {dimension_numbers = #tpu.dot_dimension_numbers<[1], [0], [0], [1], [0, 0, 1, 1], [], []>} : vector<256x50xf32>, vector<50x40xf32>, vector<256x40xf32> -> vector<256x40xf32>
    %149 = arith.addf %144, %148 : vector<256x40xf32>
    %c2_188 = arith.constant 2 : index
    %c0_189 = arith.constant 0 : index
    %150 = vector.load %arg16[%c2_188, %c0_189] : memref<296x50xf32, #tpu.memory_space<vmem>>, vector<256x50xf32>
    %c0_190 = arith.constant 0 : index
    %c2_191 = arith.constant 2 : index
    %c0_192 = arith.constant 0 : index
    %c0_193 = arith.constant 0 : index
    %151 = vector.load %arg6[%c0_190, %c2_191, %c0_192, %c0_193] : memref<3x3x50x40xf32, #tpu.memory_space<vmem>>, vector<1x1x50x40xf32>
    %152 = vector.shape_cast %151 : vector<1x1x50x40xf32> to vector<50x40xf32>
    %cst_194 = arith.constant dense<0.000000e+00> : vector<256x40xf32>
    %153 = tpu.matmul %150, %152, %cst_194 {dimension_numbers = #tpu.dot_dimension_numbers<[1], [0], [0], [1], [0, 0, 1, 1], [], []>} : vector<256x50xf32>, vector<50x40xf32>, vector<256x40xf32> -> vector<256x40xf32>
    %154 = arith.addf %149, %153 : vector<256x40xf32>
    %c16_195 = arith.constant 16 : index
    %c0_196 = arith.constant 0 : index
    %155 = vector.load %arg16[%c16_195, %c0_196] : memref<296x50xf32, #tpu.memory_space<vmem>>, vector<256x50xf32>
    %c1_197 = arith.constant 1 : index
    %c0_198 = arith.constant 0 : index
    %c0_199 = arith.constant 0 : index
    %c0_200 = arith.constant 0 : index
    %156 = vector.load %arg6[%c1_197, %c0_198, %c0_199, %c0_200] : memref<3x3x50x40xf32, #tpu.memory_space<vmem>>, vector<1x1x50x40xf32>
    %157 = vector.shape_cast %156 : vector<1x1x50x40xf32> to vector<50x40xf32>
    %cst_201 = arith.constant dense<0.000000e+00> : vector<256x40xf32>
    %158 = tpu.matmul %155, %157, %cst_201 {dimension_numbers = #tpu.dot_dimension_numbers<[1], [0], [0], [1], [0, 0, 1, 1], [], []>} : vector<256x50xf32>, vector<50x40xf32>, vector<256x40xf32> -> vector<256x40xf32>
    %159 = arith.addf %154, %158 : vector<256x40xf32>
    %c17_202 = arith.constant 17 : index
    %c0_203 = arith.constant 0 : index
    %160 = vector.load %arg16[%c17_202, %c0_203] : memref<296x50xf32, #tpu.memory_space<vmem>>, vector<256x50xf32>
    %c1_204 = arith.constant 1 : index
    %c1_205 = arith.constant 1 : index
    %c0_206 = arith.constant 0 : index
    %c0_207 = arith.constant 0 : index
    %161 = vector.load %arg6[%c1_204, %c1_205, %c0_206, %c0_207] : memref<3x3x50x40xf32, #tpu.memory_space<vmem>>, vector<1x1x50x40xf32>
    %162 = vector.shape_cast %161 : vector<1x1x50x40xf32> to vector<50x40xf32>
    %cst_208 = arith.constant dense<0.000000e+00> : vector<256x40xf32>
    %163 = tpu.matmul %160, %162, %cst_208 {dimension_numbers = #tpu.dot_dimension_numbers<[1], [0], [0], [1], [0, 0, 1, 1], [], []>} : vector<256x50xf32>, vector<50x40xf32>, vector<256x40xf32> -> vector<256x40xf32>
    %164 = arith.addf %159, %163 : vector<256x40xf32>
    %c18_209 = arith.constant 18 : index
    %c0_210 = arith.constant 0 : index
    %165 = vector.load %arg16[%c18_209, %c0_210] : memref<296x50xf32, #tpu.memory_space<vmem>>, vector<256x50xf32>
    %c1_211 = arith.constant 1 : index
    %c2_212 = arith.constant 2 : index
    %c0_213 = arith.constant 0 : index
    %c0_214 = arith.constant 0 : index
    %166 = vector.load %arg6[%c1_211, %c2_212, %c0_213, %c0_214] : memref<3x3x50x40xf32, #tpu.memory_space<vmem>>, vector<1x1x50x40xf32>
    %167 = vector.shape_cast %166 : vector<1x1x50x40xf32> to vector<50x40xf32>
    %cst_215 = arith.constant dense<0.000000e+00> : vector<256x40xf32>
    %168 = tpu.matmul %165, %167, %cst_215 {dimension_numbers = #tpu.dot_dimension_numbers<[1], [0], [0], [1], [0, 0, 1, 1], [], []>} : vector<256x50xf32>, vector<50x40xf32>, vector<256x40xf32> -> vector<256x40xf32>
    %169 = arith.addf %164, %168 : vector<256x40xf32>
    %c32_216 = arith.constant 32 : index
    %c0_217 = arith.constant 0 : index
    %170 = vector.load %arg16[%c32_216, %c0_217] : memref<296x50xf32, #tpu.memory_space<vmem>>, vector<256x50xf32>
    %c2_218 = arith.constant 2 : index
    %c0_219 = arith.constant 0 : index
    %c0_220 = arith.constant 0 : index
    %c0_221 = arith.constant 0 : index
    %171 = vector.load %arg6[%c2_218, %c0_219, %c0_220, %c0_221] : memref<3x3x50x40xf32, #tpu.memory_space<vmem>>, vector<1x1x50x40xf32>
    %172 = vector.shape_cast %171 : vector<1x1x50x40xf32> to vector<50x40xf32>
    %cst_222 = arith.constant dense<0.000000e+00> : vector<256x40xf32>
    %173 = tpu.matmul %170, %172, %cst_222 {dimension_numbers = #tpu.dot_dimension_numbers<[1], [0], [0], [1], [0, 0, 1, 1], [], []>} : vector<256x50xf32>, vector<50x40xf32>, vector<256x40xf32> -> vector<256x40xf32>
    %174 = arith.addf %169, %173 : vector<256x40xf32>
    %c33_223 = arith.constant 33 : index
    %c0_224 = arith.constant 0 : index
    %175 = vector.load %arg16[%c33_223, %c0_224] : memref<296x50xf32, #tpu.memory_space<vmem>>, vector<256x50xf32>
    %c2_225 = arith.constant 2 : index
    %c1_226 = arith.constant 1 : index
    %c0_227 = arith.constant 0 : index
    %c0_228 = arith.constant 0 : index
    %176 = vector.load %arg6[%c2_225, %c1_226, %c0_227, %c0_228] : memref<3x3x50x40xf32, #tpu.memory_space<vmem>>, vector<1x1x50x40xf32>
    %177 = vector.shape_cast %176 : vector<1x1x50x40xf32> to vector<50x40xf32>
    %cst_229 = arith.constant dense<0.000000e+00> : vector<256x40xf32>
    %178 = tpu.matmul %175, %177, %cst_229 {dimension_numbers = #tpu.dot_dimension_numbers<[1], [0], [0], [1], [0, 0, 1, 1], [], []>} : vector<256x50xf32>, vector<50x40xf32>, vector<256x40xf32> -> vector<256x40xf32>
    %179 = arith.addf %174, %178 : vector<256x40xf32>
    %c34_230 = arith.constant 34 : index
    %c0_231 = arith.constant 0 : index
    %180 = vector.load %arg16[%c34_230, %c0_231] : memref<296x50xf32, #tpu.memory_space<vmem>>, vector<256x50xf32>
    %c2_232 = arith.constant 2 : index
    %c2_233 = arith.constant 2 : index
    %c0_234 = arith.constant 0 : index
    %c0_235 = arith.constant 0 : index
    %181 = vector.load %arg6[%c2_232, %c2_233, %c0_234, %c0_235] : memref<3x3x50x40xf32, #tpu.memory_space<vmem>>, vector<1x1x50x40xf32>
    %182 = vector.shape_cast %181 : vector<1x1x50x40xf32> to vector<50x40xf32>
    %cst_236 = arith.constant dense<0.000000e+00> : vector<256x40xf32>
    %183 = tpu.matmul %180, %182, %cst_236 {dimension_numbers = #tpu.dot_dimension_numbers<[1], [0], [0], [1], [0, 0, 1, 1], [], []>} : vector<256x50xf32>, vector<50x40xf32>, vector<256x40xf32> -> vector<256x40xf32>
    %184 = arith.addf %179, %183 : vector<256x40xf32>
    %c0_237 = arith.constant 0 : index
    %c0_238 = arith.constant 0 : index
    %185 = vector.load %arg7[%c0_237, %c0_238] : memref<1x40xf32, #tpu.memory_space<vmem>>, vector<1x40xf32>
    %186 = vector.broadcast %185 : vector<1x40xf32> to vector<256x40xf32>
    %187 = arith.addf %184, %186 : vector<256x40xf32>
    %cst_239 = arith.constant 0.000000e+00 : f32
    %188 = vector.broadcast %cst_239 : f32 to vector<256x40xf32>
    %189 = arith.maximumf %187, %188 : vector<256x40xf32>
    %c0_240 = arith.constant 0 : index
    %c0_241 = arith.constant 0 : index
    %190 = vector.load %arg17[%c0_240, %c0_241] : memref<296x40xf32, #tpu.memory_space<vmem>>, vector<256x40xf32>
    tpu.vector_store %arg17[%c0_240, %c0_241], %189 {strides = array<i32>} : memref<296x40xf32, #tpu.memory_space<vmem>>, vector<256x40xf32>,
    %cst_242 = arith.constant 0.000000e+00 : f32
    %191 = vector.broadcast %cst_242 : f32 to vector<256x20xf32>
    %c0_243 = arith.constant 0 : index
    %c0_244 = arith.constant 0 : index
    %192 = vector.load %arg17[%c0_243, %c0_244] : memref<296x40xf32, #tpu.memory_space<vmem>>, vector<256x40xf32>
    %c0_245 = arith.constant 0 : index
    %c0_246 = arith.constant 0 : index
    %c0_247 = arith.constant 0 : index
    %c0_248 = arith.constant 0 : index
    %193 = vector.load %arg8[%c0_245, %c0_246, %c0_247, %c0_248] : memref<3x3x40x20xf32, #tpu.memory_space<vmem>>, vector<1x1x40x20xf32>
    %194 = vector.shape_cast %193 : vector<1x1x40x20xf32> to vector<40x20xf32>
    %cst_249 = arith.constant dense<0.000000e+00> : vector<256x20xf32>
    %195 = tpu.matmul %192, %194, %cst_249 {dimension_numbers = #tpu.dot_dimension_numbers<[1], [0], [0], [1], [0, 0, 1, 1], [], []>} : vector<256x40xf32>, vector<40x20xf32>, vector<256x20xf32> -> vector<256x20xf32>
    %196 = arith.addf %191, %195 : vector<256x20xf32>
    %c1_250 = arith.constant 1 : index
    %c0_251 = arith.constant 0 : index
    %197 = vector.load %arg17[%c1_250, %c0_251] : memref<296x40xf32, #tpu.memory_space<vmem>>, vector<256x40xf32>
    %c0_252 = arith.constant 0 : index
    %c1_253 = arith.constant 1 : index
    %c0_254 = arith.constant 0 : index
    %c0_255 = arith.constant 0 : index
    %198 = vector.load %arg8[%c0_252, %c1_253, %c0_254, %c0_255] : memref<3x3x40x20xf32, #tpu.memory_space<vmem>>, vector<1x1x40x20xf32>
    %199 = vector.shape_cast %198 : vector<1x1x40x20xf32> to vector<40x20xf32>
    %cst_256 = arith.constant dense<0.000000e+00> : vector<256x20xf32>
    %200 = tpu.matmul %197, %199, %cst_256 {dimension_numbers = #tpu.dot_dimension_numbers<[1], [0], [0], [1], [0, 0, 1, 1], [], []>} : vector<256x40xf32>, vector<40x20xf32>, vector<256x20xf32> -> vector<256x20xf32>
    %201 = arith.addf %196, %200 : vector<256x20xf32>
    %c2_257 = arith.constant 2 : index
    %c0_258 = arith.constant 0 : index
    %202 = vector.load %arg17[%c2_257, %c0_258] : memref<296x40xf32, #tpu.memory_space<vmem>>, vector<256x40xf32>
    %c0_259 = arith.constant 0 : index
    %c2_260 = arith.constant 2 : index
    %c0_261 = arith.constant 0 : index
    %c0_262 = arith.constant 0 : index
    %203 = vector.load %arg8[%c0_259, %c2_260, %c0_261, %c0_262] : memref<3x3x40x20xf32, #tpu.memory_space<vmem>>, vector<1x1x40x20xf32>
    %204 = vector.shape_cast %203 : vector<1x1x40x20xf32> to vector<40x20xf32>
    %cst_263 = arith.constant dense<0.000000e+00> : vector<256x20xf32>
    %205 = tpu.matmul %202, %204, %cst_263 {dimension_numbers = #tpu.dot_dimension_numbers<[1], [0], [0], [1], [0, 0, 1, 1], [], []>} : vector<256x40xf32>, vector<40x20xf32>, vector<256x20xf32> -> vector<256x20xf32>
    %206 = arith.addf %201, %205 : vector<256x20xf32>
    %c16_264 = arith.constant 16 : index
    %c0_265 = arith.constant 0 : index
    %207 = vector.load %arg17[%c16_264, %c0_265] : memref<296x40xf32, #tpu.memory_space<vmem>>, vector<256x40xf32>
    %c1_266 = arith.constant 1 : index
    %c0_267 = arith.constant 0 : index
    %c0_268 = arith.constant 0 : index
    %c0_269 = arith.constant 0 : index
    %208 = vector.load %arg8[%c1_266, %c0_267, %c0_268, %c0_269] : memref<3x3x40x20xf32, #tpu.memory_space<vmem>>, vector<1x1x40x20xf32>
    %209 = vector.shape_cast %208 : vector<1x1x40x20xf32> to vector<40x20xf32>
    %cst_270 = arith.constant dense<0.000000e+00> : vector<256x20xf32>
    %210 = tpu.matmul %207, %209, %cst_270 {dimension_numbers = #tpu.dot_dimension_numbers<[1], [0], [0], [1], [0, 0, 1, 1], [], []>} : vector<256x40xf32>, vector<40x20xf32>, vector<256x20xf32> -> vector<256x20xf32>
    %211 = arith.addf %206, %210 : vector<256x20xf32>
    %c17_271 = arith.constant 17 : index
    %c0_272 = arith.constant 0 : index
    %212 = vector.load %arg17[%c17_271, %c0_272] : memref<296x40xf32, #tpu.memory_space<vmem>>, vector<256x40xf32>
    %c1_273 = arith.constant 1 : index
    %c1_274 = arith.constant 1 : index
    %c0_275 = arith.constant 0 : index
    %c0_276 = arith.constant 0 : index
    %213 = vector.load %arg8[%c1_273, %c1_274, %c0_275, %c0_276] : memref<3x3x40x20xf32, #tpu.memory_space<vmem>>, vector<1x1x40x20xf32>
    %214 = vector.shape_cast %213 : vector<1x1x40x20xf32> to vector<40x20xf32>
    %cst_277 = arith.constant dense<0.000000e+00> : vector<256x20xf32>
    %215 = tpu.matmul %212, %214, %cst_277 {dimension_numbers = #tpu.dot_dimension_numbers<[1], [0], [0], [1], [0, 0, 1, 1], [], []>} : vector<256x40xf32>, vector<40x20xf32>, vector<256x20xf32> -> vector<256x20xf32>
    %216 = arith.addf %211, %215 : vector<256x20xf32>
    %c18_278 = arith.constant 18 : index
    %c0_279 = arith.constant 0 : index
    %217 = vector.load %arg17[%c18_278, %c0_279] : memref<296x40xf32, #tpu.memory_space<vmem>>, vector<256x40xf32>
    %c1_280 = arith.constant 1 : index
    %c2_281 = arith.constant 2 : index
    %c0_282 = arith.constant 0 : index
    %c0_283 = arith.constant 0 : index
    %218 = vector.load %arg8[%c1_280, %c2_281, %c0_282, %c0_283] : memref<3x3x40x20xf32, #tpu.memory_space<vmem>>, vector<1x1x40x20xf32>
    %219 = vector.shape_cast %218 : vector<1x1x40x20xf32> to vector<40x20xf32>
    %cst_284 = arith.constant dense<0.000000e+00> : vector<256x20xf32>
    %220 = tpu.matmul %217, %219, %cst_284 {dimension_numbers = #tpu.dot_dimension_numbers<[1], [0], [0], [1], [0, 0, 1, 1], [], []>} : vector<256x40xf32>, vector<40x20xf32>, vector<256x20xf32> -> vector<256x20xf32>
    %221 = arith.addf %216, %220 : vector<256x20xf32>
    %c32_285 = arith.constant 32 : index
    %c0_286 = arith.constant 0 : index
    %222 = vector.load %arg17[%c32_285, %c0_286] : memref<296x40xf32, #tpu.memory_space<vmem>>, vector<256x40xf32>
    %c2_287 = arith.constant 2 : index
    %c0_288 = arith.constant 0 : index
    %c0_289 = arith.constant 0 : index
    %c0_290 = arith.constant 0 : index
    %223 = vector.load %arg8[%c2_287, %c0_288, %c0_289, %c0_290] : memref<3x3x40x20xf32, #tpu.memory_space<vmem>>, vector<1x1x40x20xf32>
    %224 = vector.shape_cast %223 : vector<1x1x40x20xf32> to vector<40x20xf32>
    %cst_291 = arith.constant dense<0.000000e+00> : vector<256x20xf32>
    %225 = tpu.matmul %222, %224, %cst_291 {dimension_numbers = #tpu.dot_dimension_numbers<[1], [0], [0], [1], [0, 0, 1, 1], [], []>} : vector<256x40xf32>, vector<40x20xf32>, vector<256x20xf32> -> vector<256x20xf32>
    %226 = arith.addf %221, %225 : vector<256x20xf32>
    %c33_292 = arith.constant 33 : index
    %c0_293 = arith.constant 0 : index
    %227 = vector.load %arg17[%c33_292, %c0_293] : memref<296x40xf32, #tpu.memory_space<vmem>>, vector<256x40xf32>
    %c2_294 = arith.constant 2 : index
    %c1_295 = arith.constant 1 : index
    %c0_296 = arith.constant 0 : index
    %c0_297 = arith.constant 0 : index
    %228 = vector.load %arg8[%c2_294, %c1_295, %c0_296, %c0_297] : memref<3x3x40x20xf32, #tpu.memory_space<vmem>>, vector<1x1x40x20xf32>
    %229 = vector.shape_cast %228 : vector<1x1x40x20xf32> to vector<40x20xf32>
    %cst_298 = arith.constant dense<0.000000e+00> : vector<256x20xf32>
    %230 = tpu.matmul %227, %229, %cst_298 {dimension_numbers = #tpu.dot_dimension_numbers<[1], [0], [0], [1], [0, 0, 1, 1], [], []>} : vector<256x40xf32>, vector<40x20xf32>, vector<256x20xf32> -> vector<256x20xf32>
    %231 = arith.addf %226, %230 : vector<256x20xf32>
    %c34_299 = arith.constant 34 : index
    %c0_300 = arith.constant 0 : index
    %232 = vector.load %arg17[%c34_299, %c0_300] : memref<296x40xf32, #tpu.memory_space<vmem>>, vector<256x40xf32>
    %c2_301 = arith.constant 2 : index
    %c2_302 = arith.constant 2 : index
    %c0_303 = arith.constant 0 : index
    %c0_304 = arith.constant 0 : index
    %233 = vector.load %arg8[%c2_301, %c2_302, %c0_303, %c0_304] : memref<3x3x40x20xf32, #tpu.memory_space<vmem>>, vector<1x1x40x20xf32>
    %234 = vector.shape_cast %233 : vector<1x1x40x20xf32> to vector<40x20xf32>
    %cst_305 = arith.constant dense<0.000000e+00> : vector<256x20xf32>
    %235 = tpu.matmul %232, %234, %cst_305 {dimension_numbers = #tpu.dot_dimension_numbers<[1], [0], [0], [1], [0, 0, 1, 1], [], []>} : vector<256x40xf32>, vector<40x20xf32>, vector<256x20xf32> -> vector<256x20xf32>
    %236 = arith.addf %231, %235 : vector<256x20xf32>
    %c0_306 = arith.constant 0 : index
    %c0_307 = arith.constant 0 : index
    %237 = vector.load %arg9[%c0_306, %c0_307] : memref<1x20xf32, #tpu.memory_space<vmem>>, vector<1x20xf32>
    %238 = vector.broadcast %237 : vector<1x20xf32> to vector<256x20xf32>
    %239 = arith.addf %236, %238 : vector<256x20xf32>
    %cst_308 = arith.constant 0.000000e+00 : f32
    %240 = vector.broadcast %cst_308 : f32 to vector<256x20xf32>
    %241 = arith.maximumf %239, %240 : vector<256x20xf32>
    %c0_309 = arith.constant 0 : index
    %c0_310 = arith.constant 0 : index
    %242 = vector.load %arg18[%c0_309, %c0_310] : memref<296x20xf32, #tpu.memory_space<vmem>>, vector<256x20xf32>
    tpu.vector_store %arg18[%c0_309, %c0_310], %241 {strides = array<i32>} : memref<296x20xf32, #tpu.memory_space<vmem>>, vector<256x20xf32>,
    %c0_311 = arith.constant 0 : index
    %c0_312 = arith.constant 0 : index
    %243 = vector.load %arg18[%c0_311, %c0_312] : memref<296x20xf32, #tpu.memory_space<vmem>>, vector<256x20xf32>
    %c1_313 = arith.constant 1 : index
    %c0_314 = arith.constant 0 : index
    %244 = vector.load %arg18[%c1_313, %c0_314] : memref<296x20xf32, #tpu.memory_space<vmem>>, vector<256x20xf32>
    %245 = arith.maximumf %243, %244 : vector<256x20xf32>
    %c2_315 = arith.constant 2 : index
    %c0_316 = arith.constant 0 : index
    %246 = vector.load %arg18[%c2_315, %c0_316] : memref<296x20xf32, #tpu.memory_space<vmem>>, vector<256x20xf32>
    %247 = arith.maximumf %245, %246 : vector<256x20xf32>
    %c16_317 = arith.constant 16 : index
    %c0_318 = arith.constant 0 : index
    %248 = vector.load %arg18[%c16_317, %c0_318] : memref<296x20xf32, #tpu.memory_space<vmem>>, vector<256x20xf32>
    %249 = arith.maximumf %247, %248 : vector<256x20xf32>
    %c17_319 = arith.constant 17 : index
    %c0_320 = arith.constant 0 : index
    %250 = vector.load %arg18[%c17_319, %c0_320] : memref<296x20xf32, #tpu.memory_space<vmem>>, vector<256x20xf32>
    %251 = arith.maximumf %249, %250 : vector<256x20xf32>
    %c18_321 = arith.constant 18 : index
    %c0_322 = arith.constant 0 : index
    %252 = vector.load %arg18[%c18_321, %c0_322] : memref<296x20xf32, #tpu.memory_space<vmem>>, vector<256x20xf32>
    %253 = arith.maximumf %251, %252 : vector<256x20xf32>
    %c32_323 = arith.constant 32 : index
    %c0_324 = arith.constant 0 : index
    %254 = vector.load %arg18[%c32_323, %c0_324] : memref<296x20xf32, #tpu.memory_space<vmem>>, vector<256x20xf32>
    %255 = arith.maximumf %253, %254 : vector<256x20xf32>
    %c33_325 = arith.constant 33 : index
    %c0_326 = arith.constant 0 : index
    %256 = vector.load %arg18[%c33_325, %c0_326] : memref<296x20xf32, #tpu.memory_space<vmem>>, vector<256x20xf32>
    %257 = arith.maximumf %255, %256 : vector<256x20xf32>
    %c34_327 = arith.constant 34 : index
    %c0_328 = arith.constant 0 : index
    %258 = vector.load %arg18[%c34_327, %c0_328] : memref<296x20xf32, #tpu.memory_space<vmem>>, vector<256x20xf32>
    %259 = arith.maximumf %257, %258 : vector<256x20xf32>
    %c0_329 = arith.constant 0 : index
    %c0_330 = arith.constant 0 : index
    %260 = vector.load %arg19[%c0_329, %c0_330] : memref<296x20xf32, #tpu.memory_space<vmem>>, vector<256x20xf32>
    tpu.vector_store %arg19[%c0_329, %c0_330], %259 {strides = array<i32>} : memref<296x20xf32, #tpu.memory_space<vmem>>, vector<256x20xf32>,
    %c0_331 = arith.constant 0 : index
    %c0_332 = arith.constant 0 : index
    %261 = vector.load %arg11[%c0_331, %c0_332] : memref<1x4xf32, #tpu.memory_space<vmem>>, vector<1x4xf32>
    %c0_333 = arith.constant 0 : index
    %c0_334 = arith.constant 0 : index
    %262 = vector.load %arg19[%c0_333, %c0_334] : memref<296x20xf32, #tpu.memory_space<vmem>>, vector<1x20xf32>
    %c0_335 = arith.constant 0 : index
    %c0_336 = arith.constant 0 : index
    %c0_337 = arith.constant 0 : index
    %c0_338 = arith.constant 0 : index
    %263 = vector.load %arg10[%c0_335, %c0_336, %c0_337, %c0_338] : memref<4x4x20x4xf32, #tpu.memory_space<vmem>>, vector<1x1x20x4xf32>
    %264 = vector.shape_cast %263 : vector<1x1x20x4xf32> to vector<20x4xf32>
    %cst_339 = arith.constant dense<0.000000e+00> : vector<1x4xf32>
    %265 = tpu.matmul %262, %264, %cst_339 {dimension_numbers = #tpu.dot_dimension_numbers<[1], [0], [0], [1], [0, 0, 1, 1], [], []>} : vector<1x20xf32>, vector<20x4xf32>, vector<1x4xf32> -> vector<1x4xf32>
    %266 = arith.addf %261, %265 : vector<1x4xf32>
    %c1_340 = arith.constant 1 : index
    %c0_341 = arith.constant 0 : index
    %267 = vector.load %arg19[%c1_340, %c0_341] : memref<296x20xf32, #tpu.memory_space<vmem>>, vector<1x20xf32>
    %c0_342 = arith.constant 0 : index
    %c1_343 = arith.constant 1 : index
    %c0_344 = arith.constant 0 : index
    %c0_345 = arith.constant 0 : index
    %268 = vector.load %arg10[%c0_342, %c1_343, %c0_344, %c0_345] : memref<4x4x20x4xf32, #tpu.memory_space<vmem>>, vector<1x1x20x4xf32>
    %269 = vector.shape_cast %268 : vector<1x1x20x4xf32> to vector<20x4xf32>
    %cst_346 = arith.constant dense<0.000000e+00> : vector<1x4xf32>
    %270 = tpu.matmul %267, %269, %cst_346 {dimension_numbers = #tpu.dot_dimension_numbers<[1], [0], [0], [1], [0, 0, 1, 1], [], []>} : vector<1x20xf32>, vector<20x4xf32>, vector<1x4xf32> -> vector<1x4xf32>
    %271 = arith.addf %266, %270 : vector<1x4xf32>
    %c2_347 = arith.constant 2 : index
    %c0_348 = arith.constant 0 : index
    %272 = vector.load %arg19[%c2_347, %c0_348] : memref<296x20xf32, #tpu.memory_space<vmem>>, vector<1x20xf32>
    %c0_349 = arith.constant 0 : index
    %c2_350 = arith.constant 2 : index
    %c0_351 = arith.constant 0 : index
    %c0_352 = arith.constant 0 : index
    %273 = vector.load %arg10[%c0_349, %c2_350, %c0_351, %c0_352] : memref<4x4x20x4xf32, #tpu.memory_space<vmem>>, vector<1x1x20x4xf32>
    %274 = vector.shape_cast %273 : vector<1x1x20x4xf32> to vector<20x4xf32>
    %cst_353 = arith.constant dense<0.000000e+00> : vector<1x4xf32>
    %275 = tpu.matmul %272, %274, %cst_353 {dimension_numbers = #tpu.dot_dimension_numbers<[1], [0], [0], [1], [0, 0, 1, 1], [], []>} : vector<1x20xf32>, vector<20x4xf32>, vector<1x4xf32> -> vector<1x4xf32>
    %276 = arith.addf %271, %275 : vector<1x4xf32>
    %c3 = arith.constant 3 : index
    %c0_354 = arith.constant 0 : index
    %277 = vector.load %arg19[%c3, %c0_354] : memref<296x20xf32, #tpu.memory_space<vmem>>, vector<1x20xf32>
    %c0_355 = arith.constant 0 : index
    %c3_356 = arith.constant 3 : index
    %c0_357 = arith.constant 0 : index
    %c0_358 = arith.constant 0 : index
    %278 = vector.load %arg10[%c0_355, %c3_356, %c0_357, %c0_358] : memref<4x4x20x4xf32, #tpu.memory_space<vmem>>, vector<1x1x20x4xf32>
    %279 = vector.shape_cast %278 : vector<1x1x20x4xf32> to vector<20x4xf32>
    %cst_359 = arith.constant dense<0.000000e+00> : vector<1x4xf32>
    %280 = tpu.matmul %277, %279, %cst_359 {dimension_numbers = #tpu.dot_dimension_numbers<[1], [0], [0], [1], [0, 0, 1, 1], [], []>} : vector<1x20xf32>, vector<20x4xf32>, vector<1x4xf32> -> vector<1x4xf32>
    %281 = arith.addf %276, %280 : vector<1x4xf32>
    %c16_360 = arith.constant 16 : index
    %c0_361 = arith.constant 0 : index
    %282 = vector.load %arg19[%c16_360, %c0_361] : memref<296x20xf32, #tpu.memory_space<vmem>>, vector<1x20xf32>
    %c1_362 = arith.constant 1 : index
    %c0_363 = arith.constant 0 : index
    %c0_364 = arith.constant 0 : index
    %c0_365 = arith.constant 0 : index
    %283 = vector.load %arg10[%c1_362, %c0_363, %c0_364, %c0_365] : memref<4x4x20x4xf32, #tpu.memory_space<vmem>>, vector<1x1x20x4xf32>
    %284 = vector.shape_cast %283 : vector<1x1x20x4xf32> to vector<20x4xf32>
    %cst_366 = arith.constant dense<0.000000e+00> : vector<1x4xf32>
    %285 = tpu.matmul %282, %284, %cst_366 {dimension_numbers = #tpu.dot_dimension_numbers<[1], [0], [0], [1], [0, 0, 1, 1], [], []>} : vector<1x20xf32>, vector<20x4xf32>, vector<1x4xf32> -> vector<1x4xf32>
    %286 = arith.addf %281, %285 : vector<1x4xf32>
    %c17_367 = arith.constant 17 : index
    %c0_368 = arith.constant 0 : index
    %287 = vector.load %arg19[%c17_367, %c0_368] : memref<296x20xf32, #tpu.memory_space<vmem>>, vector<1x20xf32>
    %c1_369 = arith.constant 1 : index
    %c1_370 = arith.constant 1 : index
    %c0_371 = arith.constant 0 : index
    %c0_372 = arith.constant 0 : index
    %288 = vector.load %arg10[%c1_369, %c1_370, %c0_371, %c0_372] : memref<4x4x20x4xf32, #tpu.memory_space<vmem>>, vector<1x1x20x4xf32>
    %289 = vector.shape_cast %288 : vector<1x1x20x4xf32> to vector<20x4xf32>
    %cst_373 = arith.constant dense<0.000000e+00> : vector<1x4xf32>
    %290 = tpu.matmul %287, %289, %cst_373 {dimension_numbers = #tpu.dot_dimension_numbers<[1], [0], [0], [1], [0, 0, 1, 1], [], []>} : vector<1x20xf32>, vector<20x4xf32>, vector<1x4xf32> -> vector<1x4xf32>
    %291 = arith.addf %286, %290 : vector<1x4xf32>
    %c18_374 = arith.constant 18 : index
    %c0_375 = arith.constant 0 : index
    %292 = vector.load %arg19[%c18_374, %c0_375] : memref<296x20xf32, #tpu.memory_space<vmem>>, vector<1x20xf32>
    %c1_376 = arith.constant 1 : index
    %c2_377 = arith.constant 2 : index
    %c0_378 = arith.constant 0 : index
    %c0_379 = arith.constant 0 : index
    %293 = vector.load %arg10[%c1_376, %c2_377, %c0_378, %c0_379] : memref<4x4x20x4xf32, #tpu.memory_space<vmem>>, vector<1x1x20x4xf32>
    %294 = vector.shape_cast %293 : vector<1x1x20x4xf32> to vector<20x4xf32>
    %cst_380 = arith.constant dense<0.000000e+00> : vector<1x4xf32>
    %295 = tpu.matmul %292, %294, %cst_380 {dimension_numbers = #tpu.dot_dimension_numbers<[1], [0], [0], [1], [0, 0, 1, 1], [], []>} : vector<1x20xf32>, vector<20x4xf32>, vector<1x4xf32> -> vector<1x4xf32>
    %296 = arith.addf %291, %295 : vector<1x4xf32>
    %c19 = arith.constant 19 : index
    %c0_381 = arith.constant 0 : index
    %297 = vector.load %arg19[%c19, %c0_381] : memref<296x20xf32, #tpu.memory_space<vmem>>, vector<1x20xf32>
    %c1_382 = arith.constant 1 : index
    %c3_383 = arith.constant 3 : index
    %c0_384 = arith.constant 0 : index
    %c0_385 = arith.constant 0 : index
    %298 = vector.load %arg10[%c1_382, %c3_383, %c0_384, %c0_385] : memref<4x4x20x4xf32, #tpu.memory_space<vmem>>, vector<1x1x20x4xf32>
    %299 = vector.shape_cast %298 : vector<1x1x20x4xf32> to vector<20x4xf32>
    %cst_386 = arith.constant dense<0.000000e+00> : vector<1x4xf32>
    %300 = tpu.matmul %297, %299, %cst_386 {dimension_numbers = #tpu.dot_dimension_numbers<[1], [0], [0], [1], [0, 0, 1, 1], [], []>} : vector<1x20xf32>, vector<20x4xf32>, vector<1x4xf32> -> vector<1x4xf32>
    %301 = arith.addf %296, %300 : vector<1x4xf32>
    %c32_387 = arith.constant 32 : index
    %c0_388 = arith.constant 0 : index
    %302 = vector.load %arg19[%c32_387, %c0_388] : memref<296x20xf32, #tpu.memory_space<vmem>>, vector<1x20xf32>
    %c2_389 = arith.constant 2 : index
    %c0_390 = arith.constant 0 : index
    %c0_391 = arith.constant 0 : index
    %c0_392 = arith.constant 0 : index
    %303 = vector.load %arg10[%c2_389, %c0_390, %c0_391, %c0_392] : memref<4x4x20x4xf32, #tpu.memory_space<vmem>>, vector<1x1x20x4xf32>
    %304 = vector.shape_cast %303 : vector<1x1x20x4xf32> to vector<20x4xf32>
    %cst_393 = arith.constant dense<0.000000e+00> : vector<1x4xf32>
    %305 = tpu.matmul %302, %304, %cst_393 {dimension_numbers = #tpu.dot_dimension_numbers<[1], [0], [0], [1], [0, 0, 1, 1], [], []>} : vector<1x20xf32>, vector<20x4xf32>, vector<1x4xf32> -> vector<1x4xf32>
    %306 = arith.addf %301, %305 : vector<1x4xf32>
    %c33_394 = arith.constant 33 : index
    %c0_395 = arith.constant 0 : index
    %307 = vector.load %arg19[%c33_394, %c0_395] : memref<296x20xf32, #tpu.memory_space<vmem>>, vector<1x20xf32>
    %c2_396 = arith.constant 2 : index
    %c1_397 = arith.constant 1 : index
    %c0_398 = arith.constant 0 : index
    %c0_399 = arith.constant 0 : index
    %308 = vector.load %arg10[%c2_396, %c1_397, %c0_398, %c0_399] : memref<4x4x20x4xf32, #tpu.memory_space<vmem>>, vector<1x1x20x4xf32>
    %309 = vector.shape_cast %308 : vector<1x1x20x4xf32> to vector<20x4xf32>
    %cst_400 = arith.constant dense<0.000000e+00> : vector<1x4xf32>
    %310 = tpu.matmul %307, %309, %cst_400 {dimension_numbers = #tpu.dot_dimension_numbers<[1], [0], [0], [1], [0, 0, 1, 1], [], []>} : vector<1x20xf32>, vector<20x4xf32>, vector<1x4xf32> -> vector<1x4xf32>
    %311 = arith.addf %306, %310 : vector<1x4xf32>
    %c34_401 = arith.constant 34 : index
    %c0_402 = arith.constant 0 : index
    %312 = vector.load %arg19[%c34_401, %c0_402] : memref<296x20xf32, #tpu.memory_space<vmem>>, vector<1x20xf32>
    %c2_403 = arith.constant 2 : index
    %c2_404 = arith.constant 2 : index
    %c0_405 = arith.constant 0 : index
    %c0_406 = arith.constant 0 : index
    %313 = vector.load %arg10[%c2_403, %c2_404, %c0_405, %c0_406] : memref<4x4x20x4xf32, #tpu.memory_space<vmem>>, vector<1x1x20x4xf32>
    %314 = vector.shape_cast %313 : vector<1x1x20x4xf32> to vector<20x4xf32>
    %cst_407 = arith.constant dense<0.000000e+00> : vector<1x4xf32>
    %315 = tpu.matmul %312, %314, %cst_407 {dimension_numbers = #tpu.dot_dimension_numbers<[1], [0], [0], [1], [0, 0, 1, 1], [], []>} : vector<1x20xf32>, vector<20x4xf32>, vector<1x4xf32> -> vector<1x4xf32>
    %316 = arith.addf %311, %315 : vector<1x4xf32>
    %c35 = arith.constant 35 : index
    %c0_408 = arith.constant 0 : index
    %317 = vector.load %arg19[%c35, %c0_408] : memref<296x20xf32, #tpu.memory_space<vmem>>, vector<1x20xf32>
    %c2_409 = arith.constant 2 : index
    %c3_410 = arith.constant 3 : index
    %c0_411 = arith.constant 0 : index
    %c0_412 = arith.constant 0 : index
    %318 = vector.load %arg10[%c2_409, %c3_410, %c0_411, %c0_412] : memref<4x4x20x4xf32, #tpu.memory_space<vmem>>, vector<1x1x20x4xf32>
    %319 = vector.shape_cast %318 : vector<1x1x20x4xf32> to vector<20x4xf32>
    %cst_413 = arith.constant dense<0.000000e+00> : vector<1x4xf32>
    %320 = tpu.matmul %317, %319, %cst_413 {dimension_numbers = #tpu.dot_dimension_numbers<[1], [0], [0], [1], [0, 0, 1, 1], [], []>} : vector<1x20xf32>, vector<20x4xf32>, vector<1x4xf32> -> vector<1x4xf32>
    %321 = arith.addf %316, %320 : vector<1x4xf32>
    %c48 = arith.constant 48 : index
    %c0_414 = arith.constant 0 : index
    %322 = vector.load %arg19[%c48, %c0_414] : memref<296x20xf32, #tpu.memory_space<vmem>>, vector<1x20xf32>
    %c3_415 = arith.constant 3 : index
    %c0_416 = arith.constant 0 : index
    %c0_417 = arith.constant 0 : index
    %c0_418 = arith.constant 0 : index
    %323 = vector.load %arg10[%c3_415, %c0_416, %c0_417, %c0_418] : memref<4x4x20x4xf32, #tpu.memory_space<vmem>>, vector<1x1x20x4xf32>
    %324 = vector.shape_cast %323 : vector<1x1x20x4xf32> to vector<20x4xf32>
    %cst_419 = arith.constant dense<0.000000e+00> : vector<1x4xf32>
    %325 = tpu.matmul %322, %324, %cst_419 {dimension_numbers = #tpu.dot_dimension_numbers<[1], [0], [0], [1], [0, 0, 1, 1], [], []>} : vector<1x20xf32>, vector<20x4xf32>, vector<1x4xf32> -> vector<1x4xf32>
    %326 = arith.addf %321, %325 : vector<1x4xf32>
    %c49 = arith.constant 49 : index
    %c0_420 = arith.constant 0 : index
    %327 = vector.load %arg19[%c49, %c0_420] : memref<296x20xf32, #tpu.memory_space<vmem>>, vector<1x20xf32>
    %c3_421 = arith.constant 3 : index
    %c1_422 = arith.constant 1 : index
    %c0_423 = arith.constant 0 : index
    %c0_424 = arith.constant 0 : index
    %328 = vector.load %arg10[%c3_421, %c1_422, %c0_423, %c0_424] : memref<4x4x20x4xf32, #tpu.memory_space<vmem>>, vector<1x1x20x4xf32>
    %329 = vector.shape_cast %328 : vector<1x1x20x4xf32> to vector<20x4xf32>
    %cst_425 = arith.constant dense<0.000000e+00> : vector<1x4xf32>
    %330 = tpu.matmul %327, %329, %cst_425 {dimension_numbers = #tpu.dot_dimension_numbers<[1], [0], [0], [1], [0, 0, 1, 1], [], []>} : vector<1x20xf32>, vector<20x4xf32>, vector<1x4xf32> -> vector<1x4xf32>
    %331 = arith.addf %326, %330 : vector<1x4xf32>
    %c50 = arith.constant 50 : index
    %c0_426 = arith.constant 0 : index
    %332 = vector.load %arg19[%c50, %c0_426] : memref<296x20xf32, #tpu.memory_space<vmem>>, vector<1x20xf32>
    %c3_427 = arith.constant 3 : index
    %c2_428 = arith.constant 2 : index
    %c0_429 = arith.constant 0 : index
    %c0_430 = arith.constant 0 : index
    %333 = vector.load %arg10[%c3_427, %c2_428, %c0_429, %c0_430] : memref<4x4x20x4xf32, #tpu.memory_space<vmem>>, vector<1x1x20x4xf32>
    %334 = vector.shape_cast %333 : vector<1x1x20x4xf32> to vector<20x4xf32>
    %cst_431 = arith.constant dense<0.000000e+00> : vector<1x4xf32>
    %335 = tpu.matmul %332, %334, %cst_431 {dimension_numbers = #tpu.dot_dimension_numbers<[1], [0], [0], [1], [0, 0, 1, 1], [], []>} : vector<1x20xf32>, vector<20x4xf32>, vector<1x4xf32> -> vector<1x4xf32>
    %336 = arith.addf %331, %335 : vector<1x4xf32>
    %c51 = arith.constant 51 : index
    %c0_432 = arith.constant 0 : index
    %337 = vector.load %arg19[%c51, %c0_432] : memref<296x20xf32, #tpu.memory_space<vmem>>, vector<1x20xf32>
    %c3_433 = arith.constant 3 : index
    %c3_434 = arith.constant 3 : index
    %c0_435 = arith.constant 0 : index
    %c0_436 = arith.constant 0 : index
    %338 = vector.load %arg10[%c3_433, %c3_434, %c0_435, %c0_436] : memref<4x4x20x4xf32, #tpu.memory_space<vmem>>, vector<1x1x20x4xf32>
    %339 = vector.shape_cast %338 : vector<1x1x20x4xf32> to vector<20x4xf32>
    %cst_437 = arith.constant dense<0.000000e+00> : vector<1x4xf32>
    %340 = tpu.matmul %337, %339, %cst_437 {dimension_numbers = #tpu.dot_dimension_numbers<[1], [0], [0], [1], [0, 0, 1, 1], [], []>} : vector<1x20xf32>, vector<20x4xf32>, vector<1x4xf32> -> vector<1x4xf32>
    %341 = arith.addf %336, %340 : vector<1x4xf32>
    %c0_438 = arith.constant 0 : index
    %c0_439 = arith.constant 0 : index
    %c0_440 = arith.constant 0 : index
    %342 = vector.load %arg12[%c0_438, %c0_439, %c0_440] : memref<1x1x4xf32, #tpu.memory_space<vmem>>, vector<1x1x4xf32>
    %343 = vector.shape_cast %342 : vector<1x1x4xf32> to vector<1x4xf32>
    %344 = vector.shape_cast %341 : vector<1x4xf32> to vector<1x1x4xf32>
    tpu.vector_store %arg12[%c0_438, %c0_439, %c0_440], %344 {strides = array<i32>} : memref<1x1x4xf32, #tpu.memory_space<vmem>>, vector<1x1x4xf32>,
    return
  }
  func.func @transform_0(%arg0: i32) -> (i32, i32, i32) {
    %c0_i32 = arith.constant 0 : i32
    %c0_i32_0 = arith.constant 0 : i32
    %c0_i32_1 = arith.constant 0 : i32
    return %arg0, %c0_i32, %c0_i32_0 : i32, i32, i32
  }
  func.func @transform_1(%arg0: i32) -> (i32, i32, i32, i32) {
    %c0_i32 = arith.constant 0 : i32
    %c0_i32_0 = arith.constant 0 : i32
    %c0_i32_1 = arith.constant 0 : i32
    %c0_i32_2 = arith.constant 0 : i32
    %c0_i32_3 = arith.constant 0 : i32
    return %c0_i32, %c0_i32_0, %c0_i32_1, %c0_i32_2 : i32, i32, i32, i32
  }
  func.func @transform_2(%arg0: i32) -> (i32, i32) {
    %c0_i32 = arith.constant 0 : i32
    %c0_i32_0 = arith.constant 0 : i32
    %c0_i32_1 = arith.constant 0 : i32
    return %c0_i32, %c0_i32_0 : i32, i32
  }
  func.func @transform_3(%arg0: i32) -> (i32, i32, i32, i32) {
    %c0_i32 = arith.constant 0 : i32
    %c0_i32_0 = arith.constant 0 : i32
    %c0_i32_1 = arith.constant 0 : i32
    %c0_i32_2 = arith.constant 0 : i32
    %c0_i32_3 = arith.constant 0 : i32
    return %c0_i32, %c0_i32_0, %c0_i32_1, %c0_i32_2 : i32, i32, i32, i32
  }
  func.func @transform_4(%arg0: i32) -> (i32, i32) {
    %c0_i32 = arith.constant 0 : i32
    %c0_i32_0 = arith.constant 0 : i32
    %c0_i32_1 = arith.constant 0 : i32
    return %c0_i32, %c0_i32_0 : i32, i32
  }
  func.func @transform_5(%arg0: i32) -> (i32, i32, i32, i32) {
    %c0_i32 = arith.constant 0 : i32
    %c0_i32_0 = arith.constant 0 : i32
    %c0_i32_1 = arith.constant 0 : i32
    %c0_i32_2 = arith.constant 0 : i32
    %c0_i32_3 = arith.constant 0 : i32
    return %c0_i32, %c0_i32_0, %c0_i32_1, %c0_i32_2 : i32, i32, i32, i32
  }
  func.func @transform_6(%arg0: i32) -> (i32, i32) {
    %c0_i32 = arith.constant 0 : i32
    %c0_i32_0 = arith.constant 0 : i32
    %c0_i32_1 = arith.constant 0 : i32
    return %c0_i32, %c0_i32_0 : i32, i32
  }
  func.func @transform_7(%arg0: i32) -> (i32, i32, i32, i32) {
    %c0_i32 = arith.constant 0 : i32
    %c0_i32_0 = arith.constant 0 : i32
    %c0_i32_1 = arith.constant 0 : i32
    %c0_i32_2 = arith.constant 0 : i32
    %c0_i32_3 = arith.constant 0 : i32
    return %c0_i32, %c0_i32_0, %c0_i32_1, %c0_i32_2 : i32, i32, i32, i32
  }
  func.func @transform_8(%arg0: i32) -> (i32, i32) {
    %c0_i32 = arith.constant 0 : i32
    %c0_i32_0 = arith.constant 0 : i32
    %c0_i32_1 = arith.constant 0 : i32
    return %c0_i32, %c0_i32_0 : i32, i32
  }
  func.func @transform_9(%arg0: i32) -> (i32, i32, i32, i32) {
    %c0_i32 = arith.constant 0 : i32
    %c0_i32_0 = arith.constant 0 : i32
    %c0_i32_1 = arith.constant 0 : i32
    %c0_i32_2 = arith.constant 0 : i32
    %c0_i32_3 = arith.constant 0 : i32
    return %c0_i32, %c0_i32_0, %c0_i32_1, %c0_i32_2 : i32, i32, i32, i32
  }
  func.func @transform_10(%arg0: i32) -> (i32, i32) {
    %c0_i32 = arith.constant 0 : i32
    %c0_i32_0 = arith.constant 0 : i32
    %c0_i32_1 = arith.constant 0 : i32
    return %c0_i32, %c0_i32_0 : i32, i32
  }
  func.func @transform_11(%arg0: i32) -> (i32, i32, i32) {
    %c0_i32 = arith.constant 0 : i32
    %c0_i32_0 = arith.constant 0 : i32
    %c0_i32_1 = arith.constant 0 : i32
    return %arg0, %c0_i32, %c0_i32_0 : i32, i32, i32
  }
}

</mosaic_0001>

<bundles_post_ra>
// kernel: forward.1
= control target key start
LH: loop header
LB: loop body
LE: loop exit
PB: predicated region body
PF: predicated region fallthrough
CT: control target
= control target key end

     0   :  { %s27783_s0 = inlined_call_operand.vmem [shape: f32[2,256,8], index: 0, kind: input, shape index: {}]   ;;  %s27784_s1 = inlined_call_operand.vmem [shape: f32[3,3,8,40], index: 1, kind: input, shape index: {}]   ;;  %s27785_s2 = inlined_call_operand.vmem [shape: f32[1,40], index: 2, kind: input, shape index: {}]   ;;  %s27786_s3 = inlined_call_operand.vmem [shape: f32[3,3,40,50], index: 3, kind: input, shape index: {}]   ;;  %s27787_s4 = inlined_call_operand.vmem [shape: f32[1,50], index: 4, kind: input, shape index: {}]   ;;  %s27788_s5 = inlined_call_operand.vmem [shape: f32[3,3,50,40], index: 5, kind: input, shape index: {}]   ;;  %s27789_s6 = inlined_call_operand.vmem [shape: f32[1,40], index: 6, kind: input, shape index: {}]   ;;  %s27790_s7 = inlined_call_operand.vmem [shape: f32[3,3,40,20], index: 7, kind: input, shape index: {}]   ;;  %s27791_s8 = inlined_call_operand.vmem [shape: f32[1,20], index: 8, kind: input, shape index: {}]   ;;  %s27792_s9 = inlined_call_operand.vmem [shape: f32[4,4,20,4], index: 9, kind: input, shape index: {}]   ;;  %s27793_s10 = inlined_call_operand.vmem [shape: f32[1,4], index: 10, kind: input, shape index: {}]   ;;  %s27794_s11 = inlined_call_operand.hbm [shape: f32[2,1,4], index: 11, kind: output, shape index: {}]  }
   0x1   :  { %28040 = sst [smem:[#allocation49_spill]] %s27783_s0 }
   0x2   :  { %16 = vsyncpa [#allocation10], 0 }
   0x3   :  { %18 = vsyncpa [#allocation10 + $0x1], 0  ;;  %s23400_s17 = smov 0   ;;  %s23402_s18 = smov 0  }
   0x4   :  { %s23404_s19 = smov 0   ;;  %s23406_s20 = smov 0  }
   0x5 LB: > { %s23421_s21 = sadd.s32 4294967295, %s23334_s20   ;;  %s16900_s22 = sadd.s32 4294967294, %s23334_s20   ;;  %s23334_s20 = sphi %s23406_s20, %s28345_s20   ;;  %s23330_s19 = sphi %s23404_s19, %s28344_s19   ;;  %s23326_s18 = sphi %s23402_s18, %s28343_s18   ;;  %s23322_s17 = sphi %s23400_s17, %s28342_s17  }
   0x6   : > { %s23425_s23 = sadd.s32 1, %s23334_s20   ;;  %s267_s24 = sadd.s32 1, %s23330_s19 }
   0x7   : > { %s264_s25 = ssub.s32 %s23334_s20, %s23425_s23  ;;  %p277_p0 = scmp.ne.s32.totalorder %s23330_s19, %s23326_s18 }
   0x8   : > { %p265_p1 = scmp.eq.s32.totalorder %s264_s25, 0  ;;  %p278_p2 = scmp.eq.s32.totalorder %s23421_s21, 1 }
   0x9   : > { %p283_p3 = scmp.ne.s32.totalorder %s23326_s18, %s23322_s17  ;;  %p284_p4 = scmp.eq.s32.totalorder %s16900_s22, 1 }
   0xa   : > { %s23436_s26 = scalar_select %p265_p1, %s23330_s19, %s267_s24  }
   0xb   : > { %p23438_p5 = por %p278_p2, %p277_p0  ;;  %p23442_p6 = por %p284_p4, %p283_p3 }
   0xc   : > { %p16903_p7 = scmp.ge.s32.totalorder %s23334_s20, 1  ;;  %p340_p8 = scmp.lt.s32.totalorder %s23334_s20, 3 }
   0xe   : > { %p341_p9 = pnand %p16903_p7, %p340_p8 }
  0x10   : > { %344 = sbr.rel (%p341_p9) target bundleno = 3422 (0xd5e), region = 64 }
  0x17   : > { %v16906_v0 = vld [vmem:[%s27784_s1 + $0x8] sm:$0xff]  ;;  %p379_p10 = scmp.lt.s32.totalorder %s23421_s21, 1  ;;  %vm384_vm0 = vcmask 64512   ;;  %v23455_v1 = vld [vmem:[%s27784_s1] sm:$0xff]  ;;  %v27795_v2 = vmov 0.0   ;;  %s28043_s0 = sld [smem:[#allocation49_spill]] }
  0x18   : > { %19674 = vmatprep.subr.mxu0 %v16906_v0  ;;  %385 = vst.msk [vmem:[#allocation2 + $0x100] sm:$0xff] %vm384_vm0, %v27795_v2  ;;  %386 = vst.msk [vmem:[#allocation2 + $0x108] sm:$0xff] %vm384_vm0, %v27795_v2  ;;  %v23530_v31 = vld [vmem:[%s27784_s1 + $0x10] sm:$0xff]  ;;  %vm390_vm1 = vcmask 326656   ;;  %vm396_vm2 = vcmask 408576   ;;  %vm8136_vm3 = vcmask 1041408  }
  0x19   : > { %387 = vst.msk [vmem:[#allocation2 + $0x110] sm:$0xff] %vm384_vm0, %v27795_v2  ;;  %388 = vst.msk [vmem:[#allocation2 + $0x118] sm:$0xff] %vm384_vm0, %v27795_v2  ;;  %19675 = vmatpush3.msra.mxu0 %v16906_v0  ;;  %s380_s14 = scalar_select %p379_p10, %s23421_s21, 1  ;;  %vm412_vm4 = vcmask 162816   ;;  %vm15525_vm5 = vcmask 1043456   ;;  %vm23338_vm6 = vmmov 0  }
  0x1a   : > { %389 = vst.msk [vmem:[#allocation2 + $0x120] sm:$0xff] %vm384_vm0, %v27795_v2  ;;  %19724 = vmatprep.subr.mxu0 %v23455_v1  ;;  %s377_s13 = sand.u32 1, %s23326_s18   ;;  %s18292_s16 = sshll.u32 %s23421_s21, 4  ;;  %vm16830_vm7 = vcmask 24576  }
  0x1b   : > { %s18295_s15 = sshll.u32 %s380_s14, 8  ;;  %s378_s22 = scalar_lea.vmem [#allocation9], %s377_s13 }
  0x1c   : > { %s27741_s30 = scalar_lea.hbm %s27794_s11, %s18292_s16  ;;  %s16833_s12 = scalar_lea.sflag [#allocation10], %s377_s13 }
  0x1d   : > { %s23472_s24 = scalar_lea.vmem %s28043_s0, %s18295_s15  ;;  %s23339_s21 = smov [#allocation9]  }
  0x1e   : > { %v423_v3 = vld [vmem:[%s23472_s24] sm:$0xff]  ;;  %v424_v4 = vld [vmem:[%s23472_s24 + $0x8] sm:$0xff]  ;;  %v425_v5 = vld [vmem:[%s23472_s24 + $0x10] sm:$0xff]  ;;  %s23276_s15 = sshll.u32 %s23339_s21, 4  ;;  %s23277_s15 = int_to_ptr.vmem [resolvable:$false] %s23276_s15 }
  0x1f   : > { %455 = vst.msk [vmem:[#allocation2] sm:$0xff] %vm384_vm0, %v423_v3  ;;  %456 = vst.msk [vmem:[#allocation2 + $0x8] sm:$0xff] %vm384_vm0, %v424_v4  ;;  %v426_v6 = vld [vmem:[%s23472_s24 + $0x18] sm:$0xff]  ;;  %v427_v7 = vld [vmem:[%s23472_s24 + $0x20] sm:$0xff]  ;;  %s23278_s0 = scalar_lea.vmem %s23277_s15, 32 }
  0x20   : > { %457 = vst.msk [vmem:[#allocation2 + $0x10] sm:$0xff] %vm384_vm0, %v425_v5  ;;  %v428_v8 = vld [vmem:[%s23472_s24 + $0x28] sm:$0xff]  ;;  %458 = vst.msk [vmem:[#allocation2 + $0x18] sm:$0xff] %vm384_vm0, %v426_v6  ;;  %v429_v9 = vld [vmem:[%s23472_s24 + $0x30] sm:$0xff] }
  0x21   : > { %459 = vst.msk [vmem:[#allocation2 + $0x20] sm:$0xff] %vm384_vm0, %v427_v7  ;;  %460 = vst.msk [vmem:[#allocation2 + $0x28] sm:$0xff] %vm384_vm0, %v428_v8  ;;  %v430_v10 = vld [vmem:[%s23472_s24 + $0x38] sm:$0xff]  ;;  %v431_v11 = vld [vmem:[%s23472_s24 + $0x40] sm:$0xff] }
  0x22   : > { %461 = vst.msk [vmem:[#allocation2 + $0x30] sm:$0xff] %vm384_vm0, %v429_v9  ;;  %462 = vst.msk [vmem:[#allocation2 + $0x38] sm:$0xff] %vm384_vm0, %v430_v10  ;;  %v432_v12 = vld [vmem:[%s23472_s24 + $0x48] sm:$0xff]  ;;  %v433_v13 = vld [vmem:[%s23472_s24 + $0x50] sm:$0xff] }
  0x23   : > { %463 = vst.msk [vmem:[#allocation2 + $0x40] sm:$0xff] %vm384_vm0, %v431_v11  ;;  %v434_v14 = vld [vmem:[%s23472_s24 + $0x58] sm:$0xff]  ;;  %464 = vst.msk [vmem:[#allocation2 + $0x48] sm:$0xff] %vm384_vm0, %v432_v12  ;;  %v435_v15 = vld [vmem:[%s23472_s24 + $0x60] sm:$0xff] }
  0x24   : > { %465 = vst.msk [vmem:[#allocation2 + $0x50] sm:$0xff] %vm384_vm0, %v433_v13  ;;  %466 = vst.msk [vmem:[#allocation2 + $0x58] sm:$0xff] %vm384_vm0, %v434_v14  ;;  %v436_v16 = vld [vmem:[%s23472_s24 + $0x68] sm:$0xff]  ;;  %v437_v17 = vld [vmem:[%s23472_s24 + $0x70] sm:$0xff] }
  0x25   : > { %467 = vst.msk [vmem:[#allocation2 + $0x60] sm:$0xff] %vm384_vm0, %v435_v15  ;;  %468 = vst.msk [vmem:[#allocation2 + $0x68] sm:$0xff] %vm384_vm0, %v436_v16  ;;  %v438_v18 = vld [vmem:[%s23472_s24 + $0x78] sm:$0xff]  ;;  %v439_v19 = vld [vmem:[%s23472_s24 + $0x80] sm:$0xff] }
  0x26   : > { %469 = vst.msk [vmem:[#allocation2 + $0x70] sm:$0xff] %vm384_vm0, %v437_v17  ;;  %v440_v20 = vld [vmem:[%s23472_s24 + $0x88] sm:$0xff]  ;;  %470 = vst.msk [vmem:[#allocation2 + $0x78] sm:$0xff] %vm384_vm0, %v438_v18  ;;  %v441_v21 = vld [vmem:[%s23472_s24 + $0x90] sm:$0xff] }
  0x27   : > { %471 = vst.msk [vmem:[#allocation2 + $0x80] sm:$0xff] %vm384_vm0, %v439_v19  ;;  %472 = vst.msk [vmem:[#allocation2 + $0x88] sm:$0xff] %vm384_vm0, %v440_v20  ;;  %v442_v22 = vld [vmem:[%s23472_s24 + $0x98] sm:$0xff]  ;;  %v443_v23 = vld [vmem:[%s23472_s24 + $0xa0] sm:$0xff] }
  0x28   : > { %473 = vst.msk [vmem:[#allocation2 + $0x90] sm:$0xff] %vm384_vm0, %v441_v21  ;;  %474 = vst.msk [vmem:[#allocation2 + $0x98] sm:$0xff] %vm384_vm0, %v442_v22  ;;  %v444_v24 = vld [vmem:[%s23472_s24 + $0xa8] sm:$0xff]  ;;  %v445_v25 = vld [vmem:[%s23472_s24 + $0xb0] sm:$0xff] }
  0x29   : > { %475 = vst.msk [vmem:[#allocation2 + $0xa0] sm:$0xff] %vm384_vm0, %v443_v23  ;;  %v446_v26 = vld [vmem:[%s23472_s24 + $0xb8] sm:$0xff]  ;;  %v520_v27 = vld [vmem:[#allocation2 + $0x1] sm:$0xff]  ;;  %v521_v28 = vld [vmem:[#allocation2 + $0x9] sm:$0xff] }
  0x2a   : > { %476 = vst.msk [vmem:[#allocation2 + $0xa8] sm:$0xff] %vm384_vm0, %v444_v24  ;;  %477 = vst.msk [vmem:[#allocation2 + $0xb0] sm:$0xff] %vm384_vm0, %v445_v25  ;;  %v447_v29 = vld [vmem:[%s23472_s24 + $0xc0] sm:$0xff]  ;;  %19676 = vmatprep.mubr.msk.f32.mxu0 %vm384_vm0, %v520_v27  ;;  %v23524_v30 = vld [vmem:[#allocation2 + $0x11] sm:$0xff] }
  0x2b   : > { %478 = vst.msk [vmem:[#allocation2 + $0xb8] sm:$0xff] %vm384_vm0, %v446_v26  ;;  %479 = vst.msk [vmem:[#allocation2 + $0xc0] sm:$0xff] %vm384_vm0, %v447_v29  ;;  %19677 = vmatmul.mubr.msk.f32.vlgmr.msra.gmra.mrb[0].mxu0 %vm384_vm0, %v521_v28  ;;  %v23536_v32 = vld [vmem:[#allocation2 + $0x19] sm:$0xff]  ;;  %v23538_v33 = vld [vmem:[#allocation2 + $0x21] sm:$0xff] }
  0x2c   : > { %19725 = vmatpush3.msra.mxu0 %v23455_v1  ;;  %19679 = vmatprep.mubr.msk.f32.mxu0 %vm384_vm0, %v23524_v30  ;;  %v23545_v34 = vld [vmem:[#allocation2 + $0x29] sm:$0xff]  ;;  %v23547_v35 = vld [vmem:[#allocation2 + $0x31] sm:$0xff]  ;;  %v451_v39 = vld [vmem:[%s23472_s24 + $0xe0] sm:$0xff] }
  0x2d   : > { %19774 = vmatprep.subr.mxu0 %v23530_v31  ;;  %v448_v36 = vld [vmem:[%s23472_s24 + $0xc8] sm:$0xff]  ;;  %v449_v37 = vld [vmem:[%s23472_s24 + $0xd0] sm:$0xff]  ;;  %v450_v38 = vld [vmem:[%s23472_s24 + $0xd8] sm:$0xff]  ;;  %483 = vst.msk [vmem:[#allocation2 + $0xe0] sm:$0xff] %vm384_vm0, %v451_v39 }
  0x2e   : > { %480 = vst.msk [vmem:[#allocation2 + $0xc8] sm:$0xff] %vm384_vm0, %v448_v36  ;;  %481 = vst.msk [vmem:[#allocation2 + $0xd0] sm:$0xff] %vm384_vm0, %v449_v37  ;;  %v452_v40 = vld [vmem:[%s23472_s24 + $0xe8] sm:$0xff]  ;;  %v453_v41 = vld [vmem:[%s23472_s24 + $0xf0] sm:$0xff] }
  0x2f   : > { %19680 = vmatmul.mubr.msk.f32.gmra.mrb[2].mxu0 %vm384_vm0, %v23536_v32  ;;  %482 = vst.msk [vmem:[#allocation2 + $0xd8] sm:$0xff] %vm384_vm0, %v450_v38  ;;  %484 = vst.msk [vmem:[#allocation2 + $0xe8] sm:$0xff] %vm384_vm0, %v452_v40  ;;  %v454_v42 = vld [vmem:[%s23472_s24 + $0xf8] sm:$0xff]  ;;  %v23569_v44 = vld [vmem:[#allocation2 + $0x41] sm:$0xff]  ;;  %s16845_s24 = sshll.u32 %s378_s22, 4  ;;  %s27743_s24 = int_to_ptr.vmem [resolvable:$true] %s16845_s24 }
  0x30   : > { %19682 = vmatprep.mubr.msk.f32.mxu0 %vm384_vm0, %v23538_v33  ;;  %v23565_v43 = vld [vmem:[#allocation2 + $0x39] sm:$0xff]  ;;  %485 = vst.msk [vmem:[#allocation2 + $0xf0] sm:$0xff] %vm384_vm0, %v453_v41  ;;  %486 = vst.msk [vmem:[#allocation2 + $0xf8] sm:$0xff] %vm384_vm0, %v454_v42  ;;  %v23575_v45 = vld [vmem:[#allocation2 + $0x49] sm:$0xff]  ;;  %s23272_s14 = scalar_lea.vmem %s27743_s24, 16  ;;  %p23279_p0 = scmp.lt.s32.totalorder %s27743_s24, %s23277_s15 }
  0x31   : > { %v23577_v46 = vld [vmem:[#allocation2 + $0x51] sm:$0xff]  ;;  %v23583_v47 = vld [vmem:[#allocation2 + $0x59] sm:$0xff]  ;;  %v23585_v48 = vld [vmem:[#allocation2 + $0x61] sm:$0xff]  ;;  %p23273_p11 = scmp.ne.s32.totalorder %s27743_s24, %s23272_s14  ;;  %p23280_p1 = scmp.lt.s32.totalorder %s23278_s0, %s23272_s14 }
  0x32   : > { %v23591_v49 = vld [vmem:[#allocation2 + $0x69] sm:$0xff]  ;;  %v23593_v50 = vld [vmem:[#allocation2 + $0x71] sm:$0xff]  ;;  %v23599_v51 = vld [vmem:[#allocation2 + $0x79] sm:$0xff] }
  0x33   : > { %19683 = vmatmul.mubr.msk.f32.gmra.mrb[4].mxu0 %vm384_vm0, %v23545_v34  ;;  %v23601_v52 = vld [vmem:[#allocation2 + $0x81] sm:$0xff]  ;;  %v23611_v54 = vld [vmem:[#allocation2 + $0x89] sm:$0xff]  ;;  %v23613_v55 = vld [vmem:[#allocation2 + $0x91] sm:$0xff]  ;;  %p23274_p12 = pnand %p23273_p11, %p23438_p5  ;;  %p23281_p2 = por %p23280_p1, %p23279_p0 }
  0x34   : > { %19685 = vmatprep.mubr.msk.f32.mxu0 %vm384_vm0, %v23547_v35  ;;  %v23603_v53 = vld [vmem:[#allocation2 + $0x62] sm:$0xff]  ;;  %v23619_v56 = vld [vmem:[#allocation2 + $0x99] sm:$0xff]  ;;  %v23629_v59 = vld [vmem:[#allocation2 + $0xb1] sm:$0xff] }
  0x35   : > { %28044 = vst [vmem:[#allocation12_spill] sm:$0xff] %v23603_v53  ;;  %20088 = vmatprep.mubr.msk.f32.mxu1 %vm384_vm0, %v23603_v53  ;;  %v23621_v57 = vld [vmem:[#allocation2 + $0xa1] sm:$0xff]  ;;  %v23627_v58 = vld [vmem:[#allocation2 + $0xa9] sm:$0xff]  ;;  %28046 = vst [vmem:[#allocation14_spill] sm:$0xff] %v23629_v59  ;;  %p23275_p13 = pneg %p23274_p12 }
  0x36   : > { %28045 = vst [vmem:[#allocation13_spill] sm:$0xff] %v23627_v58  ;;  %v23635_v60 = vld [vmem:[#allocation2 + $0xb9] sm:$0xff]  ;;  %v23637_v61 = vld [vmem:[#allocation2 + $0xc1] sm:$0xff]  ;;  %v23643_v62 = vld [vmem:[#allocation2 + $0xc9] sm:$0xff] }
  0x37   : > { %19686 = vmatmul.mubr.msk.f32.gmra.mrb[6].mxu0 %vm384_vm0, %v23565_v43  ;;  %28047 = vst [vmem:[#allocation15_spill] sm:$0xff] %v23635_v60  ;;  %28048 = vst [vmem:[#allocation16_spill] sm:$0xff] %v23637_v61  ;;  %v23645_v63 = vld [vmem:[#allocation2 + $0xd1] sm:$0xff]  ;;  %v23651_v0 = vld [vmem:[#allocation2 + $0xd9] sm:$0xff]  ;;  %p23282_p3 = pnand %p23281_p2, %p23275_p13 }
  0x38   : > { %19688 = vmatprep.mubr.msk.f32.mxu0 %vm384_vm0, %v23569_v44  ;;  %28049 = vst [vmem:[#allocation17_spill] sm:$0xff] %v23643_v62  ;;  %28050 = vst [vmem:[#allocation18_spill] sm:$0xff] %v23645_v63  ;;  %v23653_v1 = vld [vmem:[#allocation2 + $0xe1] sm:$0xff]  ;;  %v23659_v3 = vld [vmem:[#allocation2 + $0xe9] sm:$0xff] }
  0x39   : > { %28051 = vst [vmem:[#allocation19_spill] sm:$0xff] %v23651_v0  ;;  %28052 = vst [vmem:[#allocation20_spill] sm:$0xff] %v23653_v1  ;;  %v23661_v4 = vld [vmem:[#allocation2 + $0xf1] sm:$0xff]  ;;  %v23667_v5 = vld [vmem:[#allocation2 + $0xf9] sm:$0xff] }
  0x3a   : > { %28053 = vst [vmem:[#allocation21_spill] sm:$0xff] %v23659_v3  ;;  %28054 = vst [vmem:[#allocation22_spill] sm:$0xff] %v23661_v4  ;;  %v487_v6 = vld [vmem:[#allocation2] sm:$0xff]  ;;  %v488_v7 = vld [vmem:[#allocation2 + $0x8] sm:$0xff] }
  0x3b   : > { %19689 = vmatmul.mubr.msk.f32.gmra.mrb[8].mxu0 %vm384_vm0, %v23575_v45  ;;  %28055 = vst [vmem:[#allocation23_spill] sm:$0xff] %v23667_v5  ;;  %v23672_v8 = vld [vmem:[#allocation2 + $0x10] sm:$0xff]  ;;  %v23677_v9 = vld [vmem:[%s27784_s1 + $0x18] sm:$0xff]  ;;  %v23685_v11 = vld [vmem:[#allocation2 + $0x20] sm:$0xff] }
  0x3c   : > { %19691 = vmatprep.mubr.msk.f32.mxu0 %vm384_vm0, %v23577_v46  ;;  %v23683_v10 = vld [vmem:[#allocation2 + $0x18] sm:$0xff]  ;;  %v23692_v12 = vld [vmem:[#allocation2 + $0x28] sm:$0xff]  ;;  %v23694_v13 = vld [vmem:[#allocation2 + $0x30] sm:$0xff] }
  0x3d   : > { %v23700_v14 = vld [vmem:[#allocation2 + $0x38] sm:$0xff]  ;;  %v23702_v15 = vld [vmem:[#allocation2 + $0x40] sm:$0xff]  ;;  %v23708_v16 = vld [vmem:[#allocation2 + $0x48] sm:$0xff] }
  0x3e   : > { %v23710_v17 = vld [vmem:[#allocation2 + $0x50] sm:$0xff]  ;;  %v23716_v18 = vld [vmem:[#allocation2 + $0x58] sm:$0xff]  ;;  %v23718_v19 = vld [vmem:[#allocation2 + $0x60] sm:$0xff] }
  0x3f   : > { %19692 = vmatmul.mubr.msk.f32.gmra.mrb[10].mxu0 %vm384_vm0, %v23583_v47  ;;  %v23724_v20 = vld [vmem:[#allocation2 + $0x68] sm:$0xff]  ;;  %v23726_v21 = vld [vmem:[#allocation2 + $0x70] sm:$0xff]  ;;  %v23732_v22 = vld [vmem:[#allocation2 + $0x78] sm:$0xff] }
  0x40   : > { %19694 = vmatprep.mubr.msk.f32.mxu0 %vm384_vm0, %v23585_v48  ;;  %v23734_v23 = vld [vmem:[#allocation2 + $0x80] sm:$0xff]  ;;  %v23740_v24 = vld [vmem:[#allocation2 + $0x88] sm:$0xff]  ;;  %v23742_v25 = vld [vmem:[#allocation2 + $0x90] sm:$0xff] }
  0x41   : > { %v23748_v26 = vld [vmem:[#allocation2 + $0x98] sm:$0xff]  ;;  %v23750_v27 = vld [vmem:[#allocation2 + $0xa0] sm:$0xff]  ;;  %v23756_v28 = vld [vmem:[#allocation2 + $0xa8] sm:$0xff] }
  0x42   : > { %v23758_v29 = vld [vmem:[#allocation2 + $0xb0] sm:$0xff]  ;;  %v23766_v36 = vld [vmem:[#allocation2 + $0xc0] sm:$0xff]  ;;  %v23772_v37 = vld [vmem:[#allocation2 + $0xc8] sm:$0xff] }
  0x43   : > { %19695 = vmatmul.mubr.msk.f32.gmra.mrb[12].mxu0 %vm384_vm0, %v23591_v49  ;;  %v23774_v38 = vld [vmem:[#allocation2 + $0xd0] sm:$0xff]  ;;  %v23780_v39 = vld [vmem:[#allocation2 + $0xd8] sm:$0xff]  ;;  %v23782_v40 = vld [vmem:[#allocation2 + $0xe0] sm:$0xff] }
  0x44   : > { %19697 = vmatprep.mubr.msk.f32.mxu0 %vm384_vm0, %v23593_v50  ;;  %v23788_v41 = vld [vmem:[#allocation2 + $0xe8] sm:$0xff]  ;;  %v23790_v42 = vld [vmem:[#allocation2 + $0xf0] sm:$0xff] }
  0x45   : > { %v1197_v2 = vld [vmem:[#allocation2 + $0xa] sm:$0xff] }
  0x47   : > { %19698 = vmatmul.mubr.msk.f32.gmra.mrb[14].mxu0 %vm384_vm0, %v23599_v51 }
  0x48   : > { %19700 = vmatprep.mubr.msk.f32.mxu0 %vm384_vm0, %v23601_v52 }
  0x4b   : > { %19701 = vmatmul.mubr.msk.f32.gmra.mrb[16].mxu0 %vm384_vm0, %v23611_v54 }
  0x4c   : > { %19703 = vmatprep.mubr.msk.f32.mxu0 %vm384_vm0, %v23613_v55 }
  0x4f   : > { %19704 = vmatmul.mubr.msk.f32.gmra.mrb[18].mxu0 %vm384_vm0, %v23619_v56 }
  0x50   : > { %19706 = vmatprep.mubr.msk.f32.mxu0 %vm384_vm0, %v23621_v57 }
  0x53   : > { %19707 = vmatmul.mubr.msk.f32.gmra.mrb[20].mxu0 %vm384_vm0, %v23627_v58 }
  0x54   : > { %19709 = vmatprep.mubr.msk.f32.mxu0 %vm384_vm0, %v23629_v59 }
  0x57   : > { %19710 = vmatmul.mubr.msk.f32.gmra.mrb[22].mxu0 %vm384_vm0, %v23635_v60 }
  0x58   : > { %19712 = vmatprep.mubr.msk.f32.mxu0 %vm384_vm0, %v23637_v61 }
  0x5b   : > { %19713 = vmatmul.mubr.msk.f32.gmra.mrb[24].mxu0 %vm384_vm0, %v23643_v62 }
  0x5c   : > { %19715 = vmatprep.mubr.msk.f32.mxu0 %vm384_vm0, %v23645_v63 }
  0x5f   : > { %19716 = vmatmul.mubr.msk.f32.gmra.mrb[26].mxu0 %vm384_vm0, %v23651_v0 }
  0x60   : > { %19718 = vmatprep.mubr.msk.f32.mxu0 %vm384_vm0, %v23653_v1  ;;  %v23814_v1 = vld [vmem:[#allocation2 + $0x22] sm:$0xff] }
  0x61   : > { %28058 = vst [vmem:[#allocation26_spill] sm:$0xff] %v23814_v1 }
  0x63   : > { %19719 = vmatmul.mubr.msk.f32.gmra.mrb[28].mxu0 %vm384_vm0, %v23659_v3  ;;  %v23812_v3 = vld [vmem:[#allocation2 + $0x1a] sm:$0xff] }
  0x64   : > { %19721 = vmatprep.mubr.msk.f32.mxu0 %vm384_vm0, %v23661_v4  ;;  %v23806_v4 = vld [vmem:[%s27784_s1 + $0x20] sm:$0xff]  ;;  %28057 = vst [vmem:[#allocation25_spill] sm:$0xff] %v23812_v3 }
  0x67   : > { %19722 = vmatmul.mubr.msk.f32.gmra.mrb[30].mxu0 %vm384_vm0, %v23667_v5  ;;  %v23801_v5 = vld [vmem:[#allocation2 + $0x12] sm:$0xff] }
  0x68   : > { %19726 = vmatprep.mubr.msk.f32.mxu0 %vm384_vm0, %v487_v6  ;;  %v23796_v6 = vld [vmem:[#allocation2 + $0xf8] sm:$0xff]  ;;  %28056 = vst [vmem:[#allocation24_spill] sm:$0xff] %v23801_v5 }
  0x6b   : > { %19727 = vmatmul.mubr.msk.f32.vlgmr.msra.gmra.mrb[0].mxu0 %vm384_vm0, %v488_v7  ;;  %v1196_v7 = vld [vmem:[#allocation2 + $0x2] sm:$0xff] }
  0x6c   : > { %19775 = vmatpush3.msra.mxu0 %v23530_v31  ;;  %19729 = vmatprep.mubr.msk.f32.mxu0 %vm384_vm0, %v23672_v8  ;;  %v23764_v31 = vld [vmem:[#allocation2 + $0xb8] sm:$0xff] }
  0x6d   : > { %19824 = vmatprep.subr.mxu0 %v23677_v9 }
  0x6f   : > { %19730 = vmatmul.mubr.msk.f32.gmra.mrb[2].mxu0 %vm384_vm0, %v23683_v10 }
  0x70   : > { %19732 = vmatprep.mubr.msk.f32.mxu0 %vm384_vm0, %v23685_v11 }
  0x73   : > { %19733 = vmatmul.mubr.msk.f32.gmra.mrb[4].mxu0 %vm384_vm0, %v23692_v12 }
  0x74   : > { %19735 = vmatprep.mubr.msk.f32.mxu0 %vm384_vm0, %v23694_v13 }
  0x77   : > { %19736 = vmatmul.mubr.msk.f32.gmra.mrb[6].mxu0 %vm384_vm0, %v23700_v14 }
  0x78   : > { %19738 = vmatprep.mubr.msk.f32.mxu0 %vm384_vm0, %v23702_v15 }
  0x7b   : > { %19739 = vmatmul.mubr.msk.f32.gmra.mrb[8].mxu0 %vm384_vm0, %v23708_v16 }
  0x7c   : > { %19741 = vmatprep.mubr.msk.f32.mxu0 %vm384_vm0, %v23710_v17 }
  0x7f   : > { %19742 = vmatmul.mubr.msk.f32.gmra.mrb[10].mxu0 %vm384_vm0, %v23716_v18 }
  0x80   : > { %19744 = vmatprep.mubr.msk.f32.mxu0 %vm384_vm0, %v23718_v19 }
  0x83   : > { %19745 = vmatmul.mubr.msk.f32.gmra.mrb[12].mxu0 %vm384_vm0, %v23724_v20 }
  0x84   : > { %19747 = vmatprep.mubr.msk.f32.mxu0 %vm384_vm0, %v23726_v21 }
  0x87   : > { %19748 = vmatmul.mubr.msk.f32.gmra.mrb[14].mxu0 %vm384_vm0, %v23732_v22 }
  0x88   : > { %19750 = vmatprep.mubr.msk.f32.mxu0 %vm384_vm0, %v23734_v23 }
  0x8b   : > { %19751 = vmatmul.mubr.msk.f32.gmra.mrb[16].mxu0 %vm384_vm0, %v23740_v24 }
  0x8c   : > { %19753 = vmatprep.mubr.msk.f32.mxu0 %vm384_vm0, %v23742_v25 }
  0x8f   : > { %19754 = vmatmul.mubr.msk.f32.gmra.mrb[18].mxu0 %vm384_vm0, %v23748_v26 }
  0x90   : > { %19756 = vmatprep.mubr.msk.f32.mxu0 %vm384_vm0, %v23750_v27 }
  0x93   : > { %19757 = vmatmul.mubr.msk.f32.gmra.mrb[20].mxu0 %vm384_vm0, %v23756_v28 }
  0x94   : > { %19759 = vmatprep.mubr.msk.f32.mxu0 %vm384_vm0, %v23758_v29 }
  0x97   : > { %19760 = vmatmul.mubr.msk.f32.gmra.mrb[22].mxu0 %vm384_vm0, %v23764_v31 }
  0x98   : > { %19762 = vmatprep.mubr.msk.f32.mxu0 %vm384_vm0, %v23766_v36 }
  0x9b   : > { %19763 = vmatmul.mubr.msk.f32.gmra.mrb[24].mxu0 %vm384_vm0, %v23772_v37 }
  0x9c   : > { %19765 = vmatprep.mubr.msk.f32.mxu0 %vm384_vm0, %v23774_v38 }
  0x9f   : > { %19766 = vmatmul.mubr.msk.f32.gmra.mrb[26].mxu0 %vm384_vm0, %v23780_v39 }
  0xa0   : > { %19768 = vmatprep.mubr.msk.f32.mxu0 %vm384_vm0, %v23782_v40 }
  0xa3   : > { %19769 = vmatmul.mubr.msk.f32.gmra.mrb[28].mxu0 %vm384_vm0, %v23788_v41 }
  0xa4   : > { %19771 = vmatprep.mubr.msk.f32.mxu0 %vm384_vm0, %v23790_v42 }
  0xa7   : > { %19772 = vmatmul.mubr.msk.f32.gmra.mrb[30].mxu0 %vm384_vm0, %v23796_v6 }
  0xa8   : > { %19776 = vmatprep.mubr.msk.f32.mxu0 %vm384_vm0, %v1196_v7  ;;  %v23821_v7 = vld [vmem:[#allocation2 + $0x2a] sm:$0xff] }
  0xa9   : > { %28059 = vst [vmem:[#allocation27_spill] sm:$0xff] %v23821_v7 }
  0xab   : > { %19777 = vmatmul.mubr.msk.f32.vlgmr.msra.gmra.mrb[0].mxu0 %vm384_vm0, %v1197_v2  ;;  %v23823_v2 = vld [vmem:[#allocation2 + $0x32] sm:$0xff] }
  0xac   : > { %19825 = vmatpush3.msra.mxu0 %v23677_v9  ;;  %19779 = vmatprep.mubr.msk.f32.mxu0 %vm384_vm0, %v23801_v5  ;;  %28060 = vst [vmem:[#allocation28_spill] sm:$0xff] %v23823_v2  ;;  %v23829_v9 = vld [vmem:[#allocation2 + $0x3a] sm:$0xff]  ;;  %v23831_v5 = vld [vmem:[#allocation2 + $0x42] sm:$0xff] }
  0xad   : > { %19874 = vmatprep.subr.mxu0 %v23806_v4  ;;  %28061 = vst [vmem:[#allocation29_spill] sm:$0xff] %v23829_v9  ;;  %28062 = vst [vmem:[#allocation30_spill] sm:$0xff] %v23831_v5 }
  0xaf   : > { %19780 = vmatmul.mubr.msk.f32.gmra.mrb[2].mxu0 %vm384_vm0, %v23812_v3  ;;  %v23839_v3 = vld [vmem:[#allocation2 + $0x52] sm:$0xff] }
  0xb0   : > { %19782 = vmatprep.mubr.msk.f32.mxu0 %vm384_vm0, %v23814_v1  ;;  %v23837_v1 = vld [vmem:[#allocation2 + $0x4a] sm:$0xff]  ;;  %28064 = vst [vmem:[#allocation32_spill] sm:$0xff] %v23839_v3 }
  0xb1   : > { %28063 = vst [vmem:[#allocation31_spill] sm:$0xff] %v23837_v1 }
  0xb3   : > { %19783 = vmatmul.mubr.msk.f32.gmra.mrb[4].mxu0 %vm384_vm0, %v23821_v7  ;;  %v23875_v7 = vld [vmem:[#allocation2 + $0x9a] sm:$0xff] }
  0xb4   : > { %19785 = vmatprep.mubr.msk.f32.mxu0 %vm384_vm0, %v23823_v2  ;;  %v23845_v2 = vld [vmem:[#allocation2 + $0x5a] sm:$0xff]  ;;  %28071 = vst [vmem:[#allocation39_spill] sm:$0xff] %v23875_v7 }
  0xb5   : > { %28065 = vst [vmem:[#allocation33_spill] sm:$0xff] %v23845_v2 }
  0xb7   : > { %19786 = vmatmul.mubr.msk.f32.gmra.mrb[6].mxu0 %vm384_vm0, %v23829_v9  ;;  %v23851_v9 = vld [vmem:[#allocation2 + $0x6a] sm:$0xff] }
  0xb8   : > { %19788 = vmatprep.mubr.msk.f32.mxu0 %vm384_vm0, %v23831_v5  ;;  %v23853_v5 = vld [vmem:[#allocation2 + $0x72] sm:$0xff] }
  0xb9   : > { %28066 = vst [vmem:[#allocation34_spill] sm:$0xff] %v23853_v5 }
  0xbb   : > { %19789 = vmatmul.mubr.msk.f32.gmra.mrb[8].mxu0 %vm384_vm0, %v23837_v1  ;;  %v23859_v1 = vld [vmem:[#allocation2 + $0x7a] sm:$0xff] }
  0xbc   : > { %19791 = vmatprep.mubr.msk.f32.mxu0 %vm384_vm0, %v23839_v3  ;;  %28067 = vst [vmem:[#allocation35_spill] sm:$0xff] %v23859_v1  ;;  %v23861_v3 = vld [vmem:[#allocation2 + $0x82] sm:$0xff] }
  0xbd   : > { %28068 = vst [vmem:[#allocation36_spill] sm:$0xff] %v23861_v3 }
  0xbf   : > { %19792 = vmatmul.mubr.msk.f32.gmra.mrb[10].mxu0 %vm384_vm0, %v23845_v2  ;;  %v23869_v2 = vld [vmem:[#allocation2 + $0x92] sm:$0xff] }
  0xc0   : > { %19794 = vmatprep.mubr.msk.f32.mxu0 %vm384_vm0, %v23603_v53  ;;  %v23867_v53 = vld [vmem:[#allocation2 + $0x8a] sm:$0xff]  ;;  %28070 = vst [vmem:[#allocation38_spill] sm:$0xff] %v23869_v2 }
  0xc1   : > { %28069 = vst [vmem:[#allocation37_spill] sm:$0xff] %v23867_v53 }
  0xc3   : > { %19795 = vmatmul.mubr.msk.f32.gmra.mrb[12].mxu0 %vm384_vm0, %v23851_v9 }
  0xc4   : > { %19797 = vmatprep.mubr.msk.f32.mxu0 %vm384_vm0, %v23853_v5  ;;  %v23877_v5 = vld [vmem:[#allocation2 + $0xa2] sm:$0xff] }
  0xc5   : > { %28072 = vst [vmem:[#allocation40_spill] sm:$0xff] %v23877_v5 }
  0xc7   : > { %19798 = vmatmul.mubr.msk.f32.gmra.mrb[14].mxu0 %vm384_vm0, %v23859_v1  ;;  %v23885_v1 = vld [vmem:[#allocation2 + $0xb2] sm:$0xff] }
  0xc8   : > { %19800 = vmatprep.mubr.msk.f32.mxu0 %vm384_vm0, %v23861_v3  ;;  %v23883_v3 = vld [vmem:[#allocation2 + $0xaa] sm:$0xff]  ;;  %28074 = vst [vmem:[#allocation42_spill] sm:$0xff] %v23885_v1 }
  0xc9   : > { %28073 = vst [vmem:[#allocation41_spill] sm:$0xff] %v23883_v3 }
  0xcb   : > { %19801 = vmatmul.mubr.msk.f32.gmra.mrb[16].mxu0 %vm384_vm0, %v23867_v53  ;;  %v23893_v53 = vld [vmem:[#allocation2 + $0xc2] sm:$0xff] }
  0xcc   : > { %19803 = vmatprep.mubr.msk.f32.mxu0 %vm384_vm0, %v23869_v2  ;;  %v23891_v2 = vld [vmem:[#allocation2 + $0xba] sm:$0xff]  ;;  %28076 = vst [vmem:[#allocation44_spill] sm:$0xff] %v23893_v53 }
  0xcd   : > { %28075 = vst [vmem:[#allocation43_spill] sm:$0xff] %v23891_v2 }
  0xcf   : > { %19804 = vmatmul.mubr.msk.f32.gmra.mrb[18].mxu0 %vm384_vm0, %v23875_v7  ;;  %v23901_v7 = vld [vmem:[#allocation2 + $0xd2] sm:$0xff] }
  0xd0   : > { %19806 = vmatprep.mubr.msk.f32.mxu0 %vm384_vm0, %v23877_v5  ;;  %v23899_v5 = vld [vmem:[#allocation2 + $0xca] sm:$0xff]  ;;  %28077 = vst [vmem:[#allocation45_spill] sm:$0xff] %v23901_v7 }
  0xd3   : > { %19807 = vmatmul.mubr.msk.f32.gmra.mrb[20].mxu0 %vm384_vm0, %v23883_v3  ;;  %v23909_v3 = vld [vmem:[#allocation2 + $0xe2] sm:$0xff] }
  0xd4   : > { %19809 = vmatprep.mubr.msk.f32.mxu0 %vm384_vm0, %v23885_v1  ;;  %v23907_v1 = vld [vmem:[#allocation2 + $0xda] sm:$0xff]  ;;  %28078 = vst [vmem:[#allocation46_spill] sm:$0xff] %v23909_v3 }
  0xd7   : > { %19810 = vmatmul.mubr.msk.f32.gmra.mrb[22].mxu0 %vm384_vm0, %v23891_v2  ;;  %v23917_v2 = vld [vmem:[#allocation2 + $0xf2] sm:$0xff] }
  0xd8   : > { %19812 = vmatprep.mubr.msk.f32.mxu0 %vm384_vm0, %v23893_v53  ;;  %v23915_v53 = vld [vmem:[#allocation2 + $0xea] sm:$0xff] }
  0xdb   : > { %19813 = vmatmul.mubr.msk.f32.gmra.mrb[24].mxu0 %vm384_vm0, %v23899_v5 }
  0xdc   : > { %19815 = vmatprep.mubr.msk.f32.mxu0 %vm384_vm0, %v23901_v7  ;;  %v23923_v7 = vld [vmem:[#allocation2 + $0xfa] sm:$0xff] }
  0xdf   : > { %19816 = vmatmul.mubr.msk.f32.gmra.mrb[26].mxu0 %vm384_vm0, %v23907_v1 }
  0xe0   : > { %19818 = vmatprep.mubr.msk.f32.mxu0 %vm384_vm0, %v23909_v3  ;;  %v17070_v3 = vld [vmem:[%s27784_s1 + $0x28] sm:$0xff] }
  0xe3   : > { %19819 = vmatmul.mubr.msk.f32.gmra.mrb[28].mxu0 %vm384_vm0, %v23915_v53 }
  0xe4   : > { %19821 = vmatprep.mubr.msk.f32.mxu0 %vm384_vm0, %v23917_v2 }
  0xe7   : > { %19822 = vmatmul.mubr.msk.f32.gmra.mrb[30].mxu0 %vm384_vm0, %v23923_v7 }
  0xe8   : > { %19826 = vmatprep.mubr.msk.f32.mxu0 %vm384_vm0, %v23672_v8  ;;  %v23995_v8 = vld [vmem:[#allocation2 + $0x108] sm:$0xff] }
  0xeb   : > { %19827 = vmatmul.mubr.msk.f32.vlgmr.msra.gmra.mrb[0].mxu0 %vm384_vm0, %v23683_v10  ;;  %v17103_v10 = vld [vmem:[%s27784_s1 + $0x30] sm:$0xff] }
  0xec   : > { %19875 = vmatpush3.msra.mxu0 %v23806_v4  ;;  %19829 = vmatprep.mubr.msk.f32.mxu0 %vm384_vm0, %v23685_v11  ;;  %v23989_v4 = vld [vmem:[#allocation2 + $0x100] sm:$0xff] }
  0xed   : > { %19924 = vmatprep.subr.mxu0 %v17070_v3 }
  0xef   : > { %19830 = vmatmul.mubr.msk.f32.gmra.mrb[2].mxu0 %vm384_vm0, %v23692_v12 }
  0xf0   : > { %19832 = vmatprep.mubr.msk.f32.mxu0 %vm384_vm0, %v23694_v13 }
  0xf3   : > { %19833 = vmatmul.mubr.msk.f32.gmra.mrb[4].mxu0 %vm384_vm0, %v23700_v14 }
  0xf4   : > { %19835 = vmatprep.mubr.msk.f32.mxu0 %vm384_vm0, %v23702_v15 }
  0xf7   : > { %19836 = vmatmul.mubr.msk.f32.gmra.mrb[6].mxu0 %vm384_vm0, %v23708_v16 }
  0xf8   : > { %19838 = vmatprep.mubr.msk.f32.mxu0 %vm384_vm0, %v23710_v17 }
  0xfb   : > { %19839 = vmatmul.mubr.msk.f32.gmra.mrb[8].mxu0 %vm384_vm0, %v23716_v18 }
  0xfc   : > { %19841 = vmatprep.mubr.msk.f32.mxu0 %vm384_vm0, %v23718_v19 }
  0xff   : > { %19842 = vmatmul.mubr.msk.f32.gmra.mrb[10].mxu0 %vm384_vm0, %v23724_v20 }
 0x100   : > { %19844 = vmatprep.mubr.msk.f32.mxu0 %vm384_vm0, %v23726_v21 }
 0x103   : > { %19845 = vmatmul.mubr.msk.f32.gmra.mrb[12].mxu0 %vm384_vm0, %v23732_v22 }
 0x104   : > { %19847 = vmatprep.mubr.msk.f32.mxu0 %vm384_vm0, %v23734_v23 }
 0x107   : > { %19848 = vmatmul.mubr.msk.f32.gmra.mrb[14].mxu0 %vm384_vm0, %v23740_v24 }
 0x108   : > { %19850 = vmatprep.mubr.msk.f32.mxu0 %vm384_vm0, %v23742_v25 }
 0x10b   : > { %19851 = vmatmul.mubr.msk.f32.gmra.mrb[16].mxu0 %vm384_vm0, %v23748_v26 }
 0x10c   : > { %19853 = vmatprep.mubr.msk.f32.mxu0 %vm384_vm0, %v23750_v27 }
 0x10f   : > { %19854 = vmatmul.mubr.msk.f32.gmra.mrb[18].mxu0 %vm384_vm0, %v23756_v28 }
 0x110   : > { %19856 = vmatprep.mubr.msk.f32.mxu0 %vm384_vm0, %v23758_v29 }
 0x113   : > { %19857 = vmatmul.mubr.msk.f32.gmra.mrb[20].mxu0 %vm384_vm0, %v23764_v31 }
 0x114   : > { %19859 = vmatprep.mubr.msk.f32.mxu0 %vm384_vm0, %v23766_v36 }
 0x117   : > { %19860 = vmatmul.mubr.msk.f32.gmra.mrb[22].mxu0 %vm384_vm0, %v23772_v37 }
 0x118   : > { %19862 = vmatprep.mubr.msk.f32.mxu0 %vm384_vm0, %v23774_v38 }
 0x11b   : > { %19863 = vmatmul.mubr.msk.f32.gmra.mrb[24].mxu0 %vm384_vm0, %v23780_v39 }
 0x11c   : > { %19865 = vmatprep.mubr.msk.f32.mxu0 %vm384_vm0, %v23782_v40 }
 0x11f   : > { %19866 = vmatmul.mubr.msk.f32.gmra.mrb[26].mxu0 %vm384_vm0, %v23788_v41 }
 0x120   : > { %19868 = vmatprep.mubr.msk.f32.mxu0 %vm384_vm0, %v23790_v42 }
 0x123   : > { %19869 = vmatmul.mubr.msk.f32.gmra.mrb[28].mxu0 %vm384_vm0, %v23796_v6 }
 0x124   : > { %19871 = vmatprep.mubr.msk.f32.mxu0 %vm384_vm0, %v23989_v4 }
 0x127   : > { %19872 = vmatmul.mubr.msk.f32.gmra.mrb[30].mxu0 %vm384_vm0, %v23995_v8 }
 0x128   : > { %19876 = vmatprep.mubr.msk.f32.mxu0 %vm384_vm0, %v23524_v30  ;;  %v28079_v30 = vld [vmem:[#allocation20_spill] sm:$0xff] }
 0x12b   : > { %19877 = vmatmul.mubr.msk.f32.vlgmr.msra.gmra.mrb[0].mxu0 %vm384_vm0, %v23536_v32  ;;  %v28080_v32 = vld [vmem:[#allocation21_spill] sm:$0xff] }
 0x12c   : > { %19925 = vmatpush3.msra.mxu0 %v17070_v3  ;;  %19879 = vmatprep.mubr.msk.f32.mxu0 %vm384_vm0, %v23538_v33  ;;  %v28081_v33 = vld [vmem:[#allocation22_spill] sm:$0xff]  ;;  %v28085_v3 = vld [vmem:[#allocation24_spill] sm:$0xff] }
 0x12d   : > { %19974 = vmatprep.subr.mxu0 %v17103_v10 }
 0x12f   : > { %19880 = vmatmul.mubr.msk.f32.gmra.mrb[2].mxu0 %vm384_vm0, %v23545_v34  ;;  %v24060_v34 = vld [vmem:[#allocation2 + $0x101] sm:$0xff] }
 0x130   : > { %19882 = vmatprep.mubr.msk.f32.mxu0 %vm384_vm0, %v23547_v35  ;;  %28082 = vst [vmem:[#allocation47_spill] sm:$0xff] %v24060_v34  ;;  %v28083_v35 = vld [vmem:[#allocation23_spill] sm:$0xff] }
 0x133   : > { %19883 = vmatmul.mubr.msk.f32.gmra.mrb[4].mxu0 %vm384_vm0, %v23565_v43  ;;  %v24066_v43 = vld [vmem:[#allocation2 + $0x109] sm:$0xff] }
 0x134   : > { %19885 = vmatprep.mubr.msk.f32.mxu0 %vm384_vm0, %v23569_v44  ;;  %28084 = vst [vmem:[#allocation48_spill] sm:$0xff] %v24066_v43 }
 0x137   : > { %19886 = vmatmul.mubr.msk.f32.gmra.mrb[6].mxu0 %vm384_vm0, %v23575_v45 }
 0x138   : > { %19888 = vmatprep.mubr.msk.f32.mxu0 %vm384_vm0, %v23577_v46 }
 0x13b   : > { %19889 = vmatmul.mubr.msk.f32.gmra.mrb[8].mxu0 %vm384_vm0, %v23583_v47 }
 0x13c   : > { %19891 = vmatprep.mubr.msk.f32.mxu0 %vm384_vm0, %v23585_v48 }
 0x13f   : > { %19892 = vmatmul.mubr.msk.f32.gmra.mrb[10].mxu0 %vm384_vm0, %v23591_v49 }
 0x140   : > { %19894 = vmatprep.mubr.msk.f32.mxu0 %vm384_vm0, %v23593_v50 }
 0x143   : > { %19895 = vmatmul.mubr.msk.f32.gmra.mrb[12].mxu0 %vm384_vm0, %v23599_v51 }
 0x144   : > { %19897 = vmatprep.mubr.msk.f32.mxu0 %vm384_vm0, %v23601_v52 }
 0x147   : > { %19898 = vmatmul.mubr.msk.f32.gmra.mrb[14].mxu0 %vm384_vm0, %v23611_v54 }
 0x148   : > { %19900 = vmatprep.mubr.msk.f32.mxu0 %vm384_vm0, %v23613_v55 }
 0x14b   : > { %19901 = vmatmul.mubr.msk.f32.gmra.mrb[16].mxu0 %vm384_vm0, %v23619_v56 }
 0x14c   : > { %19903 = vmatprep.mubr.msk.f32.mxu0 %vm384_vm0, %v23621_v57 }
 0x14f   : > { %19904 = vmatmul.mubr.msk.f32.gmra.mrb[18].mxu0 %vm384_vm0, %v23627_v58  ;;  %v28104_v58 = vld [vmem:[#allocation42_spill] sm:$0xff] }
 0x150   : > { %19906 = vmatprep.mubr.msk.f32.mxu0 %vm384_vm0, %v23629_v59  ;;  %v28102_v59 = vld [vmem:[#allocation41_spill] sm:$0xff] }
 0x153   : > { %19907 = vmatmul.mubr.msk.f32.gmra.mrb[20].mxu0 %vm384_vm0, %v23635_v60  ;;  %v28100_v60 = vld [vmem:[#allocation40_spill] sm:$0xff] }
 0x154   : > { %19909 = vmatprep.mubr.msk.f32.mxu0 %vm384_vm0, %v23637_v61  ;;  %v28098_v61 = vld [vmem:[#allocation39_spill] sm:$0xff] }
 0x157   : > { %19910 = vmatmul.mubr.msk.f32.gmra.mrb[22].mxu0 %vm384_vm0, %v23643_v62  ;;  %v28096_v62 = vld [vmem:[#allocation38_spill] sm:$0xff] }
 0x158   : > { %19912 = vmatprep.mubr.msk.f32.mxu0 %vm384_vm0, %v23645_v63  ;;  %v28095_v63 = vld [vmem:[#allocation30_spill] sm:$0xff] }
 0x15b   : > { %19913 = vmatmul.mubr.msk.f32.gmra.mrb[24].mxu0 %vm384_vm0, %v23651_v0  ;;  %v28091_v0 = vld [vmem:[#allocation28_spill] sm:$0xff] }
 0x15c   : > { %19915 = vmatprep.mubr.msk.f32.mxu0 %vm384_vm0, %v28079_v30  ;;  %v28090_v30 = vld [vmem:[#allocation35_spill] sm:$0xff] }
 0x15f   : > { %19916 = vmatmul.mubr.msk.f32.gmra.mrb[26].mxu0 %vm384_vm0, %v28080_v32  ;;  %v28089_v32 = vld [vmem:[#allocation27_spill] sm:$0xff] }
 0x160   : > { %19918 = vmatprep.mubr.msk.f32.mxu0 %vm384_vm0, %v28081_v33  ;;  %v24075_v33 = vld [vmem:[%s27784_s1 + $0x40] sm:$0xff] }
 0x161   : > { %22170 = vmatprep.subr.mxu1 %v24075_v33 }
 0x162   : > { %22171 = vmatpush3.msra.mxu1 %v24075_v33 }
 0x163   : > { %19919 = vmatmul.mubr.msk.f32.gmra.mrb[28].mxu0 %vm384_vm0, %v28083_v35  ;;  %v24081_v35 = vld [vmem:[%s27784_s1 + $0x38] sm:$0xff]  ;;  %20089 = vmatmul.mubr.msk.f32.vlgmr.msra.gmra.mrb[0].mxu1 %vm384_vm0, %v23851_v9 }
 0x164   : > { %19921 = vmatprep.mubr.msk.f32.mxu0 %vm384_vm0, %v24060_v34  ;;  %v28086_v34 = vld [vmem:[#allocation25_spill] sm:$0xff] }
 0x167   : > { %19922 = vmatmul.mubr.msk.f32.gmra.mrb[30].mxu0 %vm384_vm0, %v24066_v43  ;;  %v28088_v43 = vld [vmem:[#allocation34_spill] sm:$0xff] }
 0x168   : > { %19926 = vmatprep.mubr.msk.f32.mxu0 %vm384_vm0, %v28085_v3  ;;  %v28087_v3 = vld [vmem:[#allocation26_spill] sm:$0xff]  ;;  %20091 = vmatprep.mubr.msk.f32.mxu1 %vm384_vm0, %v28088_v43 }
 0x169   : > { %20092 = vmatmul.mubr.msk.f32.gmra.mrb[2].mxu1 %vm384_vm0, %v28090_v30 }
 0x16b   : > { %19927 = vmatmul.mubr.msk.f32.vlgmr.msra.gmra.mrb[0].mxu0 %vm384_vm0, %v28086_v34  ;;  %v28092_v34 = vld [vmem:[#allocation36_spill] sm:$0xff] }
 0x16c   : > { %19975 = vmatpush3.msra.mxu0 %v17103_v10  ;;  %19929 = vmatprep.mubr.msk.f32.mxu0 %vm384_vm0, %v28087_v3  ;;  %v28093_v10 = vld [vmem:[#allocation29_spill] sm:$0xff] }
 0x16d   : > { %20024 = vmatprep.subr.mxu0 %v24081_v35  ;;  %20094 = vmatprep.mubr.msk.f32.mxu1 %vm384_vm0, %v28092_v34  ;;  %v28094_v3 = vld [vmem:[#allocation37_spill] sm:$0xff] }
 0x16e   : > { %20095 = vmatmul.mubr.msk.f32.gmra.mrb[4].mxu1 %vm384_vm0, %v28094_v3 }
 0x16f   : > { %19930 = vmatmul.mubr.msk.f32.gmra.mrb[2].mxu0 %vm384_vm0, %v28089_v32  ;;  %20097 = vmatprep.mubr.msk.f32.mxu1 %vm384_vm0, %v28096_v62  ;;  %v28097_v32 = vld [vmem:[#allocation31_spill] sm:$0xff] }
 0x170   : > { %19932 = vmatprep.mubr.msk.f32.mxu0 %vm384_vm0, %v28091_v0  ;;  %v28099_v0 = vld [vmem:[#allocation32_spill] sm:$0xff] }
 0x172   : > { %20098 = vmatmul.mubr.msk.f32.gmra.mrb[6].mxu1 %vm384_vm0, %v28098_v61 }
 0x173   : > { %19933 = vmatmul.mubr.msk.f32.gmra.mrb[4].mxu0 %vm384_vm0, %v28093_v10  ;;  %20100 = vmatprep.mubr.msk.f32.mxu1 %vm384_vm0, %v28100_v60  ;;  %v28101_v10 = vld [vmem:[#allocation33_spill] sm:$0xff] }
 0x174   : > { %19935 = vmatprep.mubr.msk.f32.mxu0 %vm384_vm0, %v28095_v63  ;;  %v28103_v63 = vld [vmem:[#allocation12_spill] sm:$0xff] }
 0x176   : > { %20101 = vmatmul.mubr.msk.f32.gmra.mrb[8].mxu1 %vm384_vm0, %v28102_v59 }
 0x177   : > { %19936 = vmatmul.mubr.msk.f32.gmra.mrb[6].mxu0 %vm384_vm0, %v28097_v32  ;;  %20103 = vmatprep.mubr.msk.f32.mxu1 %vm384_vm0, %v28104_v58  ;;  %v28105_v32 = vld [vmem:[#allocation43_spill] sm:$0xff] }
 0x178   : > { %19938 = vmatprep.mubr.msk.f32.mxu0 %vm384_vm0, %v28099_v0  ;;  %v28106_v0 = vld [vmem:[#allocation44_spill] sm:$0xff] }
 0x17a   : > { %20104 = vmatmul.mubr.msk.f32.gmra.mrb[10].mxu1 %vm384_vm0, %v28105_v32 }
 0x17b   : > { %19939 = vmatmul.mubr.msk.f32.gmra.mrb[8].mxu0 %vm384_vm0, %v28101_v10  ;;  %20106 = vmatprep.mubr.msk.f32.mxu1 %vm384_vm0, %v28106_v0 }
 0x17c   : > { %19941 = vmatprep.mubr.msk.f32.mxu0 %vm384_vm0, %v28103_v63  ;;  %v28107_v63 = vld [vmem:[#allocation45_spill] sm:$0xff] }
 0x17e   : > { %20107 = vmatmul.mubr.msk.f32.gmra.mrb[12].mxu1 %vm384_vm0, %v23899_v5 }
 0x17f   : > { %19942 = vmatmul.mubr.msk.f32.gmra.mrb[10].mxu0 %vm384_vm0, %v23851_v9  ;;  %20109 = vmatprep.mubr.msk.f32.mxu1 %vm384_vm0, %v28107_v63  ;;  %v28108_v9 = vld [vmem:[#allocation46_spill] sm:$0xff] }
 0x180   : > { %19944 = vmatprep.mubr.msk.f32.mxu0 %vm384_vm0, %v28088_v43 }
 0x182   : > { %20110 = vmatmul.mubr.msk.f32.gmra.mrb[14].mxu1 %vm384_vm0, %v23907_v1 }
 0x183   : > { %19945 = vmatmul.mubr.msk.f32.gmra.mrb[12].mxu0 %vm384_vm0, %v28090_v30  ;;  %20112 = vmatprep.mubr.msk.f32.mxu1 %vm384_vm0, %v28108_v9  ;;  %v2387_v30 = vld [vmem:[#allocation2 + $0x102] sm:$0xff] }
 0x184   : > { %19947 = vmatprep.mubr.msk.f32.mxu0 %vm384_vm0, %v28092_v34 }
 0x186   : > { %20113 = vmatmul.mubr.msk.f32.gmra.mrb[16].mxu1 %vm384_vm0, %v23915_v53 }
 0x187   : > { %19948 = vmatmul.mubr.msk.f32.gmra.mrb[14].mxu0 %vm384_vm0, %v28094_v3  ;;  %20115 = vmatprep.mubr.msk.f32.mxu1 %vm384_vm0, %v23917_v2 }
 0x188   : > { %19950 = vmatprep.mubr.msk.f32.mxu0 %vm384_vm0, %v28096_v62  ;;  %v3131_v62 = vld [vmem:[#allocation2 + $0x21] sm:$0xff] }
 0x18a   : > { %20116 = vmatmul.mubr.msk.f32.gmra.mrb[18].mxu1 %vm384_vm0, %v23923_v7 }
 0x18b   : > { %19951 = vmatmul.mubr.msk.f32.gmra.mrb[16].mxu0 %vm384_vm0, %v28098_v61  ;;  %20118 = vmatprep.mubr.msk.f32.mxu1 %vm384_vm0, %v2387_v30  ;;  %v2388_v61 = vld [vmem:[#allocation2 + $0x10a] sm:$0xff] }
 0x18c   : > { %19953 = vmatprep.mubr.msk.f32.mxu0 %vm384_vm0, %v28100_v60  ;;  %v2775_v60 = vld [vmem:[#allocation2 + $0x118] sm:$0xff] }
 0x18e   : > { %20119 = vmatmul.mubr.msk.f32.gmra.mrb[20].mxu1 %vm384_vm0, %v2388_v61 }
 0x18f   : > { %19954 = vmatmul.mubr.msk.f32.gmra.mrb[18].mxu0 %vm384_vm0, %v28102_v59  ;;  %v3549_v59 = vld [vmem:[#allocation2 + $0x11a] sm:$0xff] }
 0x190   : > { %19956 = vmatprep.mubr.msk.f32.mxu0 %vm384_vm0, %v28104_v58  ;;  %v3548_v58 = vld [vmem:[#allocation2 + $0x112] sm:$0xff] }
 0x191   : > { %20121 = vmatprep.mubr.msk.f32.mxu1 %vm384_vm0, %v3548_v58 }
 0x192   : > { %20122 = vmatmul.mubr.msk.f32.gmra.mrb[22].mxu1 %vm384_vm0, %v3549_v59 }
 0x193   : > { %19957 = vmatmul.mubr.msk.f32.gmra.mrb[20].mxu0 %vm384_vm0, %v28105_v32 }
 0x194   : > { %19959 = vmatprep.mubr.msk.f32.mxu0 %vm384_vm0, %v28106_v0  ;;  %v3132_v0 = vld [vmem:[#allocation2 + $0x29] sm:$0xff] }
 0x197   : > { %19960 = vmatmul.mubr.msk.f32.gmra.mrb[22].mxu0 %vm384_vm0, %v23899_v5  ;;  %v3134_v5 = vld [vmem:[#allocation2 + $0x39] sm:$0xff] }
 0x198   : > { %19962 = vmatprep.mubr.msk.f32.mxu0 %vm384_vm0, %v28107_v63 }
 0x19b   : > { %19963 = vmatmul.mubr.msk.f32.gmra.mrb[24].mxu0 %vm384_vm0, %v23907_v1  ;;  %v3133_v1 = vld [vmem:[#allocation2 + $0x31] sm:$0xff] }
 0x19c   : > { %19965 = vmatprep.mubr.msk.f32.mxu0 %vm384_vm0, %v28108_v9  ;;  %v17207_v9 = vld [vmem:[%s27786_s3 + $0x48] sm:$0xff] }
 0x19f   : > { %19966 = vmatmul.mubr.msk.f32.gmra.mrb[26].mxu0 %vm384_vm0, %v23915_v53  ;;  %v2774_v53 = vld [vmem:[#allocation2 + $0x110] sm:$0xff] }
 0x1a0   : > { %19968 = vmatprep.mubr.msk.f32.mxu0 %vm384_vm0, %v23917_v2 }
 0x1a3   : > { %19969 = vmatmul.mubr.msk.f32.gmra.mrb[28].mxu0 %vm384_vm0, %v23923_v7 }
 0x1a4   : > { %19971 = vmatprep.mubr.msk.f32.mxu0 %vm384_vm0, %v2387_v30  ;;  %v4040_v30 = vld [vmem:[%s27786_s3] sm:$0xff] }
 0x1a7   : > { %19972 = vmatmul.mubr.msk.f32.gmra.mrb[30].mxu0 %vm384_vm0, %v2388_v61  ;;  %v4041_v61 = vld [vmem:[%s27786_s3 + $0x8] sm:$0xff] }
 0x1a8   : > { %19976 = vmatprep.mubr.msk.f32.mxu0 %vm384_vm0, %v23685_v11  ;;  %v28121_v11 = vld [vmem:[#allocation48_spill] sm:$0xff]  ;;  %v24403_v58 = vpack.c.bf16 %v4041_v61, %v4040_v30 }
 0x1ab   : > { %19977 = vmatmul.mubr.msk.f32.vlgmr.msra.gmra.mrb[0].mxu0 %vm384_vm0, %v23692_v12  ;;  %v3162_v12 = vld [vmem:[#allocation2 + $0x119] sm:$0xff] }
 0x1ac   : > { %20025 = vmatpush3.msra.mxu0 %v24081_v35  ;;  %19979 = vmatprep.mubr.msk.f32.mxu0 %vm384_vm0, %v23694_v13  ;;  %v28122_v13 = vld [vmem:[#allocation26_spill] sm:$0xff]  ;;  %v17206_v35 = vld [vmem:[%s27786_s3 + $0x40] sm:$0xff] }
 0x1ad   : > { %20074 = vmatprep.subr.mxu0 %v24075_v33 }
 0x1af   : > { %19980 = vmatmul.mubr.msk.f32.gmra.mrb[2].mxu0 %vm384_vm0, %v23700_v14  ;;  %v28123_v14 = vld [vmem:[#allocation27_spill] sm:$0xff] }
 0x1b0   : > { %19982 = vmatprep.mubr.msk.f32.mxu0 %vm384_vm0, %v23702_v15  ;;  %v28124_v15 = vld [vmem:[#allocation28_spill] sm:$0xff] }
 0x1b3   : > { %19983 = vmatmul.mubr.msk.f32.gmra.mrb[4].mxu0 %vm384_vm0, %v23708_v16  ;;  %v28125_v16 = vld [vmem:[#allocation29_spill] sm:$0xff] }
 0x1b4   : > { %19985 = vmatprep.mubr.msk.f32.mxu0 %vm384_vm0, %v23710_v17  ;;  %v28126_v17 = vld [vmem:[#allocation30_spill] sm:$0xff] }
 0x1b7   : > { %19986 = vmatmul.mubr.msk.f32.gmra.mrb[6].mxu0 %vm384_vm0, %v23716_v18  ;;  %v28127_v18 = vld [vmem:[#allocation31_spill] sm:$0xff] }
 0x1b8   : > { %19988 = vmatprep.mubr.msk.f32.mxu0 %vm384_vm0, %v23718_v19  ;;  %v28128_v19 = vld [vmem:[#allocation32_spill] sm:$0xff] }
 0x1bb   : > { %19989 = vmatmul.mubr.msk.f32.gmra.mrb[8].mxu0 %vm384_vm0, %v23724_v20 }
 0x1bc   : > { %19991 = vmatprep.mubr.msk.f32.mxu0 %vm384_vm0, %v23726_v21  ;;  %v28129_v21 = vmov 0.0  }
 0x1bd   : > { %391 = vst.msk [vmem:[#allocation3 + $0x100] sm:$0xff] %vm390_vm1, %v28129_v21  ;;  %392 = vst.msk [vmem:[#allocation3 + $0x108] sm:$0xff] %vm390_vm1, %v28129_v21 }
 0x1be   : > { %393 = vst.msk [vmem:[#allocation3 + $0x110] sm:$0xff] %vm390_vm1, %v28129_v21  ;;  %394 = vst.msk [vmem:[#allocation3 + $0x118] sm:$0xff] %vm390_vm1, %v28129_v21 }
 0x1bf   : > { %19992 = vmatmul.mubr.msk.f32.gmra.mrb[10].mxu0 %vm384_vm0, %v23732_v22  ;;  %395 = vst.msk [vmem:[#allocation3 + $0x120] sm:$0xff] %vm390_vm1, %v28129_v21  ;;  %407 = vst.msk [vmem:[#allocation6 + $0x100] sm:$0xff] %vm390_vm1, %v28129_v21 }
 0x1c0   : > { %19994 = vmatprep.mubr.msk.f32.mxu0 %vm384_vm0, %v23734_v23  ;;  %408 = vst.msk [vmem:[#allocation6 + $0x108] sm:$0xff] %vm390_vm1, %v28129_v21  ;;  %409 = vst.msk [vmem:[#allocation6 + $0x110] sm:$0xff] %vm390_vm1, %v28129_v21 }
 0x1c1   : > { %410 = vst.msk [vmem:[#allocation6 + $0x118] sm:$0xff] %vm390_vm1, %v28129_v21  ;;  %411 = vst.msk [vmem:[#allocation6 + $0x120] sm:$0xff] %vm390_vm1, %v28129_v21 }
 0x1c3   : > { %19995 = vmatmul.mubr.msk.f32.gmra.mrb[12].mxu0 %vm384_vm0, %v23740_v24 }
 0x1c4   : > { %19997 = vmatprep.mubr.msk.f32.mxu0 %vm384_vm0, %v23742_v25 }
 0x1c7   : > { %19998 = vmatmul.mubr.msk.f32.gmra.mrb[14].mxu0 %vm384_vm0, %v23748_v26 }
 0x1c8   : > { %20000 = vmatprep.mubr.msk.f32.mxu0 %vm384_vm0, %v23750_v27 }
 0x1cb   : > { %20001 = vmatmul.mubr.msk.f32.gmra.mrb[16].mxu0 %vm384_vm0, %v23756_v28 }
 0x1cc   : > { %20003 = vmatprep.mubr.msk.f32.mxu0 %vm384_vm0, %v23758_v29 }
 0x1cf   : > { %20004 = vmatmul.mubr.msk.f32.gmra.mrb[18].mxu0 %vm384_vm0, %v23764_v31 }
 0x1d0   : > { %20006 = vmatprep.mubr.msk.f32.mxu0 %vm384_vm0, %v23766_v36 }
 0x1d3   : > { %20007 = vmatmul.mubr.msk.f32.gmra.mrb[20].mxu0 %vm384_vm0, %v23772_v37 }
 0x1d4   : > { %20009 = vmatprep.mubr.msk.f32.mxu0 %vm384_vm0, %v23774_v38  ;;  %v17203_v38 = vld [vmem:[%s27786_s3 + $0x28] sm:$0xff] }
 0x1d7   : > { %20010 = vmatmul.mubr.msk.f32.gmra.mrb[22].mxu0 %vm384_vm0, %v23780_v39  ;;  %v17204_v39 = vld [vmem:[%s27786_s3 + $0x30] sm:$0xff] }
 0x1d8   : > { %20012 = vmatprep.mubr.msk.f32.mxu0 %vm384_vm0, %v23782_v40 }
 0x1db   : > { %20013 = vmatmul.mubr.msk.f32.gmra.mrb[24].mxu0 %vm384_vm0, %v23788_v41  ;;  %v21870_v41 = vpack.c.bf16 %v17204_v39, %v17203_v38 }
 0x1dc   : > { %20015 = vmatprep.mubr.msk.f32.mxu0 %vm384_vm0, %v23790_v42 }
 0x1dd   : > { %21871 = vmatprep.subr.bf16.mxu1 %v21870_v41 }
 0x1de   : > { %21873 = vmatpush3.bf16.msra.mxu1 %v21870_v41 }
 0x1df   : > { %20016 = vmatmul.mubr.msk.f32.gmra.mrb[26].mxu0 %vm384_vm0, %v23796_v6 }
 0x1e0   : > { %20018 = vmatprep.mubr.msk.f32.mxu0 %vm384_vm0, %v23989_v4 }
 0x1e3   : > { %20019 = vmatmul.mubr.msk.f32.gmra.mrb[28].mxu0 %vm384_vm0, %v23995_v8 }
 0x1e4   : > { %20021 = vmatprep.mubr.msk.f32.mxu0 %vm384_vm0, %v2774_v53  ;;  %v24409_v53 = vld [vmem:[%s27785_s2] ss:$0 sm:$0xff] }
 0x1e7   : > { %20022 = vmatmul.mubr.msk.f32.gmra.mrb[30].mxu0 %vm384_vm0, %v2775_v60 }
 0x1e8   : > { %20026 = vmatprep.mubr.msk.f32.mxu0 %vm384_vm0, %v3131_v62 }
 0x1eb   : > { %20027 = vmatmul.mubr.msk.f32.vlgmr.msra.gmra.mrb[0].mxu0 %vm384_vm0, %v3132_v0 }
 0x1ec   : > { %20075 = vmatpush3.msra.mxu0 %v24075_v33  ;;  %20029 = vmatprep.mubr.msk.f32.mxu0 %vm384_vm0, %v3133_v1  ;;  %v17205_v33 = vld [vmem:[%s27786_s3 + $0x38] sm:$0xff] }
 0x1ed   : > { %v21874_v3 = vpack.c.bf16 %v17206_v35, %v17205_v33 }
 0x1ef   : > { %20030 = vmatmul.mubr.msk.f32.gmra.mrb[2].mxu0 %vm384_vm0, %v3134_v5  ;;  %21875 = vmatprep.subr.bf16.mxu1 %v21874_v3 }
 0x1f0   : > { %20032 = vmatprep.mubr.msk.f32.mxu0 %vm384_vm0, %v23569_v44  ;;  %v28109_v44 = vld [vmem:[#allocation13_spill] sm:$0xff]  ;;  %21877 = vmatpush3.bf16.msra.mxu1 %v21874_v3 }
 0x1f1   : > { %20132 = vmatprep.subr.mxu1 %v17207_v9 }
 0x1f3   : > { %20033 = vmatmul.mubr.msk.f32.gmra.mrb[4].mxu0 %vm384_vm0, %v23575_v45  ;;  %v28110_v45 = vld [vmem:[#allocation14_spill] sm:$0xff] }
 0x1f4   : > { %20035 = vmatprep.mubr.msk.f32.mxu0 %vm384_vm0, %v23577_v46  ;;  %v28111_v46 = vld [vmem:[#allocation15_spill] sm:$0xff]  ;;  %20133 = vmatpush3.msra.mxu1 %v17207_v9 }
 0x1f5   : > { %21879 = vmatprep.subr.bf16.mxu1 %v24403_v58 }
 0x1f7   : > { %20036 = vmatmul.mubr.msk.f32.gmra.mrb[6].mxu0 %vm384_vm0, %v23583_v47  ;;  %v28112_v47 = vld [vmem:[#allocation16_spill] sm:$0xff] }
 0x1f8   : > { %20038 = vmatprep.mubr.msk.f32.mxu0 %vm384_vm0, %v23585_v48  ;;  %v28113_v48 = vld [vmem:[#allocation17_spill] sm:$0xff] }
 0x1fb   : > { %20039 = vmatmul.mubr.msk.f32.gmra.mrb[8].mxu0 %vm384_vm0, %v23591_v49  ;;  %v28114_v49 = vld [vmem:[#allocation18_spill] sm:$0xff] }
 0x1fc   : > { %20041 = vmatprep.mubr.msk.f32.mxu0 %vm384_vm0, %v23593_v50  ;;  %v28115_v50 = vld [vmem:[#allocation19_spill] sm:$0xff] }
 0x1ff   : > { %20042 = vmatmul.mubr.msk.f32.gmra.mrb[10].mxu0 %vm384_vm0, %v23599_v51  ;;  %v28116_v51 = vld [vmem:[#allocation20_spill] sm:$0xff] }
 0x200   : > { %20044 = vmatprep.mubr.msk.f32.mxu0 %vm384_vm0, %v23601_v52  ;;  %v28117_v52 = vld [vmem:[#allocation21_spill] sm:$0xff] }
 0x203   : > { %20045 = vmatmul.mubr.msk.f32.gmra.mrb[12].mxu0 %vm384_vm0, %v23611_v54  ;;  %v28118_v54 = vld [vmem:[#allocation22_spill] sm:$0xff] }
 0x204   : > { %20047 = vmatprep.mubr.msk.f32.mxu0 %vm384_vm0, %v23613_v55  ;;  %v28119_v55 = vld [vmem:[#allocation23_spill] sm:$0xff] }
 0x207   : > { %20048 = vmatmul.mubr.msk.f32.gmra.mrb[14].mxu0 %vm384_vm0, %v23619_v56  ;;  %v28120_v56 = vld [vmem:[#allocation47_spill] sm:$0xff] }
 0x208   : > { %20050 = vmatprep.mubr.msk.f32.mxu0 %vm384_vm0, %v23621_v57  ;;  %v3161_v57 = vld [vmem:[#allocation2 + $0x111] sm:$0xff] }
 0x20b   : > { %20051 = vmatmul.mubr.msk.f32.gmra.mrb[16].mxu0 %vm384_vm0, %v28109_v44 }
 0x20c   : > { %20053 = vmatprep.mubr.msk.f32.mxu0 %vm384_vm0, %v28110_v45 }
 0x20f   : > { %20054 = vmatmul.mubr.msk.f32.gmra.mrb[18].mxu0 %vm384_vm0, %v28111_v46 }
 0x210   : > { %20056 = vmatprep.mubr.msk.f32.mxu0 %vm384_vm0, %v28112_v47 }
 0x213   : > { %20057 = vmatmul.mubr.msk.f32.gmra.mrb[20].mxu0 %vm384_vm0, %v28113_v48 }
 0x214   : > { %20059 = vmatprep.mubr.msk.f32.mxu0 %vm384_vm0, %v28114_v49 }
 0x217   : > { %20060 = vmatmul.mubr.msk.f32.gmra.mrb[22].mxu0 %vm384_vm0, %v28115_v50 }
 0x218   : > { %20062 = vmatprep.mubr.msk.f32.mxu0 %vm384_vm0, %v28116_v51 }
 0x21b   : > { %20063 = vmatmul.mubr.msk.f32.gmra.mrb[24].mxu0 %vm384_vm0, %v28117_v52 }
 0x21c   : > { %20065 = vmatprep.mubr.msk.f32.mxu0 %vm384_vm0, %v28118_v54 }
 0x21f   : > { %20066 = vmatmul.mubr.msk.f32.gmra.mrb[26].mxu0 %vm384_vm0, %v28119_v55 }
 0x220   : > { %20068 = vmatprep.mubr.msk.f32.mxu0 %vm384_vm0, %v28120_v56 }
 0x223   : > { %20069 = vmatmul.mubr.msk.f32.gmra.mrb[28].mxu0 %vm384_vm0, %v28121_v11 }
 0x224   : > { %20071 = vmatprep.mubr.msk.f32.mxu0 %vm384_vm0, %v3161_v57 }
 0x227   : > { %20072 = vmatmul.mubr.msk.f32.gmra.mrb[30].mxu0 %vm384_vm0, %v3162_v12 }
 0x228   : > { %20076 = vmatprep.mubr.msk.f32.mxu0 %vm384_vm0, %v28122_v13 }
 0x22b   : > { %20077 = vmatmul.mubr.msk.f32.vlgmr.msra.gmra.mrb[0].mxu0 %vm384_vm0, %v28123_v14 }
 0x22c   : > { %20079 = vmatprep.mubr.msk.f32.mxu0 %vm384_vm0, %v28124_v15 }
 0x22f   : > { %20080 = vmatmul.mubr.msk.f32.gmra.mrb[2].mxu0 %vm384_vm0, %v28125_v16 }
 0x230   : > { %20082 = vmatprep.mubr.msk.f32.mxu0 %vm384_vm0, %v28126_v17 }
 0x233   : > { %20083 = vmatmul.mubr.msk.f32.gmra.mrb[4].mxu0 %vm384_vm0, %v28127_v18 }
 0x234   : > { %20085 = vmatprep.mubr.msk.f32.mxu0 %vm384_vm0, %v28128_v19 }
 0x236   : > { %v20090_v20 = vpop.f32.mrb[0].mxu1 }
 0x237   : > { %20086 = vmatmul.mubr.msk.f32.gmra.mrb[6].mxu0 %vm384_vm0, %v28101_v10  ;;  %v3754_v22 = vpop.f32.mrb[1].mxu1 }
 0x23c   : > { %v20093_v23 = vpop.f32.mrb[2].mxu1 }
 0x23d   : > { %v3764_v24 = vpop.f32.mrb[3].mxu1 }
 0x241   : > { %v20096_v25 = vpop.f32.mrb[4].mxu1 }
 0x242   : > { %v3774_v26 = vpop.f32.mrb[5].mxu1 }
 0x245   : > { %v24346_v27 = vpop.f32.mrb[6].mxu1 }
 0x246   : > { %v24348_v28 = vpop.f32.mrb[7].mxu1 }
 0x249   : > { %v24350_v29 = vpop.f32.mrb[8].mxu1 }
 0x24a   : > { %v24352_v31 = vpop.f32.mrb[9].mxu1 }
 0x24d   : > { %v24354_v36 = vpop.f32.mrb[10].mxu1 }
 0x24e   : > { %v24356_v37 = vpop.f32.mrb[11].mxu1 }
 0x251   : > { %v24364_v40 = vpop.f32.mrb[12].mxu1 }
 0x252   : > { %v24366_v42 = vpop.f32.mrb[13].mxu1 }
 0x255   : > { %v24368_v6 = vpop.f32.mrb[14].mxu1 }
 0x256   : > { %v24370_v7 = vpop.f32.mrb[15].mxu1 }
 0x259   : > { %v24372_v2 = vpop.f32.mrb[16].mxu1 }
 0x25a   : > { %v24374_v4 = vpop.f32.mrb[17].mxu1 }
 0x25d   : > { %v24376_v8 = vpop.f32.mrb[18].mxu1 }
 0x25e   : > { %v24378_v32 = vpop.f32.mrb[19].mxu1 }
 0x261   : > { %v24386_v43 = vpop.f32.mrb[20].mxu1 }
 0x262   : > { %v24388_v34 = vpop.f32.mrb[21].mxu1 }
 0x265   : > { %v24390_v10 = vpop.f32.mrb[22].mxu1 }
 0x266   : > { %v24392_v63 = vpop.f32.mrb[23].mxu1 }
 0x2ce   : > { %v20040_v59 = vpop.f32.mrb[8].mxu0 }
 0x2cf   : > { %v22172_v60 = vadd.f32 %v20090_v20, %v20040_v59  ;;  %v3367_v62 = vpop.f32.mrb[9].mxu0 }
 0x2d0   : > { %v22173_v0 = vadd.f32 %v3754_v22, %v3367_v62 }
 0x2d1   : > { %v3921_v1 = vadd.f32 %v22172_v60, %v24409_v53 }
 0x2d2   : > { %v3920_v5 = vadd.f32 %v22173_v0, %v24409_v53  ;;  %v20043_v44 = vpop.f32.mrb[10].mxu0 }
 0x2d3   : > { %v3953_v45 = vmax.f32 %v3921_v1, 0.0  ;;  %v22174_v46 = vadd.f32 %v20093_v23, %v20043_v44  ;;  %v3377_v47 = vpop.f32.mrb[11].mxu0 }
 0x2d4   : > { %v3952_v48 = vmax.f32 %v3920_v5, 0.0  ;;  %v22175_v49 = vadd.f32 %v3764_v24, %v3377_v47 }
 0x2d5   : > { %3985 = vst.msk [vmem:[#allocation3 + $0x48] sm:$0xff] %vm390_vm1, %v3953_v45  ;;  %v3923_v50 = vadd.f32 %v22174_v46, %v24409_v53 }
 0x2d6   : > { %3984 = vst.msk [vmem:[#allocation3 + $0x40] sm:$0xff] %vm390_vm1, %v3952_v48  ;;  %v3922_v51 = vadd.f32 %v22175_v49, %v24409_v53  ;;  %v20046_v52 = vpop.f32.mrb[12].mxu0 }
 0x2d7   : > { %v3955_v54 = vmax.f32 %v3923_v50, 0.0  ;;  %v22176_v55 = vadd.f32 %v20096_v25, %v20046_v52  ;;  %v3387_v56 = vpop.f32.mrb[13].mxu0 }
 0x2d8   : > { %v3954_v57 = vmax.f32 %v3922_v51, 0.0  ;;  %v22177_v11 = vadd.f32 %v3774_v26, %v3387_v56 }
 0x2d9   : > { %3987 = vst.msk [vmem:[#allocation3 + $0x58] sm:$0xff] %vm390_vm1, %v3955_v54  ;;  %v3925_v12 = vadd.f32 %v22176_v55, %v24409_v53 }
 0x2da   : > { %3986 = vst.msk [vmem:[#allocation3 + $0x50] sm:$0xff] %vm390_vm1, %v3954_v57  ;;  %v3924_v13 = vadd.f32 %v22177_v11, %v24409_v53  ;;  %v20049_v14 = vpop.f32.mrb[14].mxu0 }
 0x2db   : > { %v3957_v15 = vmax.f32 %v3925_v12, 0.0  ;;  %v22178_v16 = vadd.f32 %v24346_v27, %v20049_v14  ;;  %v3397_v17 = vpop.f32.mrb[15].mxu0 }
 0x2dc   : > { %v3956_v18 = vmax.f32 %v3924_v13, 0.0  ;;  %v22179_v19 = vadd.f32 %v24348_v28, %v3397_v17 }
 0x2dd   : > { %3989 = vst.msk [vmem:[#allocation3 + $0x68] sm:$0xff] %vm390_vm1, %v3957_v15  ;;  %v3927_v20 = vadd.f32 %v22178_v16, %v24409_v53 }
 0x2de   : > { %3988 = vst.msk [vmem:[#allocation3 + $0x60] sm:$0xff] %vm390_vm1, %v3956_v18  ;;  %v3926_v22 = vadd.f32 %v22179_v19, %v24409_v53  ;;  %v20052_v23 = vpop.f32.mrb[16].mxu0 }
 0x2df   : > { %v3959_v24 = vmax.f32 %v3927_v20, 0.0  ;;  %v22180_v25 = vadd.f32 %v24350_v29, %v20052_v23  ;;  %v3407_v26 = vpop.f32.mrb[17].mxu0 }
 0x2e0   : > { %v3958_v38 = vmax.f32 %v3926_v22, 0.0  ;;  %v22181_v27 = vadd.f32 %v24352_v31, %v3407_v26 }
 0x2e1   : > { %3991 = vst.msk [vmem:[#allocation3 + $0x78] sm:$0xff] %vm390_vm1, %v3959_v24  ;;  %v3929_v28 = vadd.f32 %v22180_v25, %v24409_v53 }
 0x2e2   : > { %3990 = vst.msk [vmem:[#allocation3 + $0x70] sm:$0xff] %vm390_vm1, %v3958_v38  ;;  %v3928_v39 = vadd.f32 %v22181_v27, %v24409_v53  ;;  %v20055_v41 = vpop.f32.mrb[18].mxu0 }
 0x2e3   : > { %v3961_v33 = vmax.f32 %v3929_v28, 0.0  ;;  %v22182_v35 = vadd.f32 %v24354_v36, %v20055_v41  ;;  %v3417_v3 = vpop.f32.mrb[19].mxu0 }
 0x2e4   : > { %v3960_v9 = vmax.f32 %v3928_v39, 0.0  ;;  %v22183_v29 = vadd.f32 %v24356_v37, %v3417_v3 }
 0x2e5   : > { %3993 = vst.msk [vmem:[#allocation3 + $0x88] sm:$0xff] %vm390_vm1, %v3961_v33  ;;  %v3931_v31 = vadd.f32 %v22182_v35, %v24409_v53 }
 0x2e6   : > { %3992 = vst.msk [vmem:[#allocation3 + $0x80] sm:$0xff] %vm390_vm1, %v3960_v9  ;;  %v3930_v30 = vadd.f32 %v22183_v29, %v24409_v53  ;;  %v20058_v61 = vpop.f32.mrb[20].mxu0 }
 0x2e7   : > { %v3963_v59 = vmax.f32 %v3931_v31, 0.0  ;;  %v22184_v60 = vadd.f32 %v24364_v40, %v20058_v61  ;;  %v3427_v62 = vpop.f32.mrb[21].mxu0 }
 0x2e8   : > { %v3962_v0 = vmax.f32 %v3930_v30, 0.0  ;;  %v22185_v36 = vadd.f32 %v24366_v42, %v3427_v62 }
 0x2e9   : > { %3995 = vst.msk [vmem:[#allocation3 + $0x98] sm:$0xff] %vm390_vm1, %v3963_v59  ;;  %v3933_v37 = vadd.f32 %v22184_v60, %v24409_v53 }
 0x2ea   : > { %3994 = vst.msk [vmem:[#allocation3 + $0x90] sm:$0xff] %vm390_vm1, %v3962_v0  ;;  %v3932_v1 = vadd.f32 %v22185_v36, %v24409_v53  ;;  %v20061_v5 = vpop.f32.mrb[22].mxu0 }
 0x2eb   : > { %v3965_v44 = vmax.f32 %v3933_v37, 0.0  ;;  %v22186_v45 = vadd.f32 %v24368_v6, %v20061_v5  ;;  %v3437_v46 = vpop.f32.mrb[23].mxu0 }
 0x2ec   : > { %v3964_v47 = vmax.f32 %v3932_v1, 0.0  ;;  %v22187_v40 = vadd.f32 %v24370_v7, %v3437_v46  ;;  %v4042_v46 = vld [vmem:[%s27786_s3 + $0x10] sm:$0xff] }
 0x2ed   : > { %3997 = vst.msk [vmem:[#allocation3 + $0xa8] sm:$0xff] %vm390_vm1, %v3965_v44  ;;  %v3935_v42 = vadd.f32 %v22186_v45, %v24409_v53 }
 0x2ee   : > { %3996 = vst.msk [vmem:[#allocation3 + $0xa0] sm:$0xff] %vm390_vm1, %v3964_v47  ;;  %v3934_v48 = vadd.f32 %v22187_v40, %v24409_v53  ;;  %v20064_v49 = vpop.f32.mrb[24].mxu0  ;;  %v4043_v47 = vld [vmem:[%s27786_s3 + $0x18] sm:$0xff] }
 0x2ef   : > { %v3967_v50 = vmax.f32 %v3935_v42, 0.0  ;;  %v22188_v51 = vadd.f32 %v24372_v2, %v20064_v49  ;;  %v3447_v52 = vpop.f32.mrb[25].mxu0  ;;  %v21882_v49 = vpack.c.bf16 %v4043_v47, %v4042_v46  ;;  %v24707_v46 = vld [vmem:[#allocation3 + $0x78] sm:$0xff]  ;;  %v24711_v47 = vld [vmem:[#allocation3 + $0x80] sm:$0xff] }
 0x2f0   : > { %v3966_v54 = vmax.f32 %v3934_v48, 0.0  ;;  %v22189_v6 = vadd.f32 %v24374_v4, %v3447_v52  ;;  %v17272_v52 = vld [vmem:[%s27786_s3 + $0x50] sm:$0xff] }
 0x2f1   : > { %3999 = vst.msk [vmem:[#allocation3 + $0xb8] sm:$0xff] %vm390_vm1, %v3967_v50  ;;  %v3937_v7 = vadd.f32 %v22188_v51, %v24409_v53 }
 0x2f2   : > { %3998 = vst.msk [vmem:[#allocation3 + $0xb0] sm:$0xff] %vm390_vm1, %v3966_v54  ;;  %v3936_v55 = vadd.f32 %v22189_v6, %v24409_v53  ;;  %v20067_v56 = vpop.f32.mrb[26].mxu0 }
 0x2f3   : > { %v3969_v57 = vmax.f32 %v3937_v7, 0.0  ;;  %v22190_v11 = vadd.f32 %v24376_v8, %v20067_v56  ;;  %v3457_v12 = vpop.f32.mrb[27].mxu0 }
 0x2f4   : > { %v3968_v13 = vmax.f32 %v3936_v55, 0.0  ;;  %v22191_v2 = vadd.f32 %v24378_v32, %v3457_v12  ;;  %v24542_v12 = vld [vmem:[#allocation3 + $0x49] sm:$0xff] }
 0x2f5   : > { %4001 = vst.msk [vmem:[#allocation3 + $0xc8] sm:$0xff] %vm390_vm1, %v3969_v57  ;;  %v3939_v4 = vadd.f32 %v22190_v11, %v24409_v53  ;;  %v24538_v11 = vld [vmem:[#allocation3 + $0x41] sm:$0xff] }
 0x2f6   : > { %4000 = vst.msk [vmem:[#allocation3 + $0xc0] sm:$0xff] %vm390_vm1, %v3968_v13  ;;  %v3938_v14 = vadd.f32 %v22191_v2, %v24409_v53  ;;  %v20070_v15 = vpop.f32.mrb[28].mxu0  ;;  %v24546_v13 = vld [vmem:[#allocation3 + $0x51] sm:$0xff]  ;;  %v24550_v2 = vld [vmem:[#allocation3 + $0x59] sm:$0xff] }
 0x2f7   : > { %v3971_v16 = vmax.f32 %v3939_v4, 0.0  ;;  %v22192_v17 = vadd.f32 %v24386_v43, %v20070_v15  ;;  %v3467_v18 = vpop.f32.mrb[29].mxu0  ;;  %v24554_v4 = vld [vmem:[#allocation3 + $0x61] sm:$0xff]  ;;  %v24562_v15 = vld [vmem:[#allocation3 + $0x71] sm:$0xff] }
 0x2f8   : > { %v3970_v19 = vmax.f32 %v3938_v14, 0.0  ;;  %v22193_v8 = vadd.f32 %v24388_v34, %v3467_v18  ;;  %v24558_v14 = vld [vmem:[#allocation3 + $0x69] sm:$0xff] }
 0x2f9   : > { %4003 = vst.msk [vmem:[#allocation3 + $0xd8] sm:$0xff] %vm390_vm1, %v3971_v16  ;;  %v3941_v32 = vadd.f32 %v22192_v17, %v24409_v53  ;;  %v24566_v16 = vld [vmem:[#allocation3 + $0x79] sm:$0xff]  ;;  %v24570_v17 = vld [vmem:[#allocation3 + $0x81] sm:$0xff]  ;;  %v24574_v18 = vld [vmem:[#allocation3 + $0x89] sm:$0xff] }
 0x2fa   : > { %4002 = vst.msk [vmem:[#allocation3 + $0xd0] sm:$0xff] %vm390_vm1, %v3970_v19  ;;  %v3940_v20 = vadd.f32 %v22193_v8, %v24409_v53  ;;  %v20073_v22 = vpop.f32.mrb[30].mxu0  ;;  %v24578_v19 = vld [vmem:[#allocation3 + $0x91] sm:$0xff]  ;;  %v24582_v8 = vld [vmem:[#allocation3 + $0x99] sm:$0xff] }
 0x2fb   : > { %v3973_v23 = vmax.f32 %v3941_v32, 0.0  ;;  %v22194_v24 = vadd.f32 %v24390_v10, %v20073_v22  ;;  %v3477_v25 = vpop.f32.mrb[31].mxu0  ;;  %v24586_v32 = vld [vmem:[#allocation3 + $0xa1] sm:$0xff]  ;;  %v24594_v22 = vld [vmem:[#allocation3 + $0xb1] sm:$0xff] }
 0x2fc   : > { %v3972_v26 = vmax.f32 %v3940_v20, 0.0  ;;  %v22195_v43 = vadd.f32 %v24392_v63, %v3477_v25  ;;  %v24590_v20 = vld [vmem:[#allocation3 + $0xa9] sm:$0xff] }
 0x2fd   : > { %4005 = vst.msk [vmem:[#allocation3 + $0xe8] sm:$0xff] %vm390_vm1, %v3973_v23  ;;  %v3943_v34 = vadd.f32 %v22194_v24, %v24409_v53  ;;  %v24598_v23 = vld [vmem:[#allocation3 + $0xb9] sm:$0xff]  ;;  %v24602_v24 = vld [vmem:[#allocation3 + $0xc1] sm:$0xff] }
 0x2fe   : > { %4004 = vst.msk [vmem:[#allocation3 + $0xe0] sm:$0xff] %vm390_vm1, %v3972_v26  ;;  %v3942_v38 = vadd.f32 %v22195_v43, %v24409_v53  ;;  %v20078_v27 = vpop.f32.mrb[0].mxu0 }
 0x2ff   : > { %v3975_v28 = vmax.f32 %v3943_v34, 0.0  ;;  %v3913_v39 = vadd.f32 %v20078_v27, %v24409_v53  ;;  %v3714_v41 = vpop.f32.mrb[1].mxu0 }
 0x300   : > { %v3974_v33 = vmax.f32 %v3942_v38, 0.0  ;;  %v3912_v10 = vadd.f32 %v24409_v53, %v3714_v41  ;;  %v17275_v41 = vld [vmem:[%s27786_s3 + $0x68] sm:$0xff] }
 0x301   : > { %4007 = vst.msk [vmem:[#allocation3 + $0xf8] sm:$0xff] %vm390_vm1, %v3975_v28  ;;  %v3945_v35 = vmax.f32 %v3913_v39, 0.0  ;;  %v24606_v25 = vld [vmem:[#allocation3 + $0xc9] sm:$0xff]  ;;  %v24610_v26 = vld [vmem:[#allocation3 + $0xd1] sm:$0xff] }
 0x302   : > { %4006 = vst.msk [vmem:[#allocation3 + $0xf0] sm:$0xff] %vm390_vm1, %v3974_v33  ;;  %v3944_v63 = vmax.f32 %v3912_v10, 0.0  ;;  %v20081_v3 = vpop.f32.mrb[2].mxu0  ;;  %v17274_v39 = vld [vmem:[%s27786_s3 + $0x60] sm:$0xff] }
 0x303   : > { %3977 = vst.msk [vmem:[#allocation3 + $0x8] sm:$0xff] %vm390_vm1, %v3945_v35  ;;  %v3915_v9 = vadd.f32 %v20081_v3, %v24409_v53  ;;  %v3724_v29 = vpop.f32.mrb[3].mxu0  ;;  %v21890_v10 = vpack.c.bf16 %v17275_v41, %v17274_v39  ;;  %v17276_v3 = vld [vmem:[%s27786_s3 + $0x70] sm:$0xff]  ;;  %v24751_v39 = vld [vmem:[#allocation3 + $0xd0] sm:$0xff]  ;;  %v24755_v41 = vld [vmem:[#allocation3 + $0xd8] sm:$0xff] }
 0x304   : > { %3976 = vst.msk [vmem:[#allocation3] sm:$0xff] %vm390_vm1, %v3944_v63  ;;  %v3914_v31 = vadd.f32 %v24409_v53, %v3724_v29  ;;  %v17309_v29 = vld [vmem:[%s27786_s3 + $0x78] sm:$0xff] }
 0x305   : > { %v3947_v30 = vmax.f32 %v3915_v9, 0.0  ;;  %v24614_v43 = vld [vmem:[#allocation3 + $0xd9] sm:$0xff]  ;;  %v24618_v34 = vld [vmem:[#allocation3 + $0xe1] sm:$0xff] }
 0x306   : > { %v3946_v61 = vmax.f32 %v3914_v31, 0.0  ;;  %v20084_v59 = vpop.f32.mrb[4].mxu0  ;;  %28130 = vst [vmem:[#allocation24_spill] sm:$0xff] %v24614_v43  ;;  %28131 = vst [vmem:[#allocation25_spill] sm:$0xff] %v24618_v34  ;;  %v17310_v31 = vld [vmem:[%s27786_s3 + $0x80] sm:$0xff] }
 0x307   : > { %3979 = vst.msk [vmem:[#allocation3 + $0x18] sm:$0xff] %vm390_vm1, %v3947_v30  ;;  %v3917_v60 = vadd.f32 %v20084_v59, %v24409_v53  ;;  %v3734_v62 = vpop.f32.mrb[5].mxu0 }
 0x308   : > { %3978 = vst.msk [vmem:[#allocation3 + $0x10] sm:$0xff] %vm390_vm1, %v3946_v61  ;;  %v3916_v0 = vadd.f32 %v24409_v53, %v3734_v62  ;;  %v24630_v28 = vld [vmem:[#allocation3 + $0xf9] sm:$0xff]  ;;  %v24664_v61 = vpack.c.bf16 %v17310_v31, %v17309_v29  ;;  %v17312_v31 = vld [vmem:[%s27786_s3 + $0x90] sm:$0xff] }
 0x309   : > { %v3949_v36 = vmax.f32 %v3917_v60, 0.0  ;;  %v24622_v38 = vld [vmem:[#allocation3 + $0xe9] sm:$0xff]  ;;  %v24626_v27 = vld [vmem:[#allocation3 + $0xf1] sm:$0xff]  ;;  %28134 = vst [vmem:[#allocation36_spill] sm:$0xff] %v24630_v28  ;;  %v17311_v29 = vld [vmem:[%s27786_s3 + $0x88] sm:$0xff] }
 0x30a   : > { %v3948_v37 = vmax.f32 %v3916_v0, 0.0  ;;  %v20087_v1 = vpop.f32.mrb[6].mxu0  ;;  %28132 = vst [vmem:[#allocation34_spill] sm:$0xff] %v24622_v38  ;;  %28133 = vst [vmem:[#allocation35_spill] sm:$0xff] %v24626_v27  ;;  %v4009_v35 = vld [vmem:[#allocation3 + $0x8] sm:$0xff]  ;;  %v24679_v0 = vld [vmem:[#allocation3 + $0x40] sm:$0xff] }
 0x30b   : > { %3981 = vst.msk [vmem:[#allocation3 + $0x28] sm:$0xff] %vm390_vm1, %v3949_v36  ;;  %v3919_v5 = vadd.f32 %v20087_v1, %v24409_v53  ;;  %v3744_v44 = vpop.f32.mrb[7].mxu0  ;;  %v4045_v45 = vld [vmem:[#allocation3 + $0x1] sm:$0xff]  ;;  %v24691_v1 = vld [vmem:[#allocation3 + $0x58] sm:$0xff] }
 0x30c   : > { %3980 = vst.msk [vmem:[#allocation3 + $0x20] sm:$0xff] %vm390_vm1, %v3948_v37  ;;  %v3918_v40 = vadd.f32 %v24409_v53, %v3744_v44  ;;  %20134 = vmatprep.mubr.msk.f32.mxu1 %vm390_vm1, %v4045_v45  ;;  %v4044_v53 = vld [vmem:[%s27786_s3 + $0x20] sm:$0xff]  ;;  %v4008_v33 = vld [vmem:[#allocation3] sm:$0xff]  ;;  %v24683_v36 = vld [vmem:[#allocation3 + $0x48] sm:$0xff] }
 0x30d   : > { %v3951_v42 = vmax.f32 %v3919_v5, 0.0  ;;  %v24687_v37 = vld [vmem:[#allocation3 + $0x50] sm:$0xff]  ;;  %v24695_v5 = vld [vmem:[#allocation3 + $0x60] sm:$0xff]  ;;  %v24699_v44 = vld [vmem:[#allocation3 + $0x68] sm:$0xff] }
 0x30e   : > { %v3950_v48 = vmax.f32 %v3918_v40, 0.0  ;;  %v24650_v9 = vld [vmem:[#allocation3 + $0x18] sm:$0xff]  ;;  %v24703_v45 = vld [vmem:[#allocation3 + $0x70] sm:$0xff]  ;;  %v24715_v40 = vld [vmem:[#allocation3 + $0x88] sm:$0xff] }
 0x30f   : > { %3983 = vst.msk [vmem:[#allocation3 + $0x38] sm:$0xff] %vm390_vm1, %v3951_v42  ;;  %v4046_v50 = vld [vmem:[#allocation3 + $0x9] sm:$0xff]  ;;  %v24499_v51 = vld [vmem:[#allocation3 + $0x11] sm:$0xff] }
 0x310   : > { %3982 = vst.msk [vmem:[#allocation3 + $0x30] sm:$0xff] %vm390_vm1, %v3950_v48  ;;  %20135 = vmatmul.mubr.msk.f32.vlgmr.msra.gmra.mrb[24].mxu1 %vm390_vm1, %v4046_v50  ;;  %v24642_v63 = vld [vmem:[#allocation3 + $0x10] sm:$0xff]  ;;  %v24723_v48 = vld [vmem:[#allocation3 + $0x98] sm:$0xff]  ;;  %v24731_v50 = vld [vmem:[#allocation3 + $0xa8] sm:$0xff] }
 0x311   : > { %21881 = vmatpush3.bf16.msra.mxu1 %v24403_v58  ;;  %20137 = vmatprep.mubr.msk.f32.mxu1 %vm390_vm1, %v24499_v51  ;;  %v17273_v58 = vld [vmem:[%s27786_s3 + $0x58] sm:$0xff]  ;;  %v4725_v21 = vld [vmem:[#allocation3 + $0x2] sm:$0xff] }
 0x312   : > { %21883 = vmatprep.subr.bf16.mxu1 %v21882_v49  ;;  %v24523_v7 = vpack.c.bf16 %v17273_v58, %v17272_v52  ;;  %v24666_v59 = vld [vmem:[#allocation3 + $0x28] sm:$0xff]  ;;  %v24719_v42 = vld [vmem:[#allocation3 + $0x90] sm:$0xff]  ;;  %v24739_v52 = vld [vmem:[#allocation3 + $0xb8] sm:$0xff] }
 0x313   : > { %v24512_v54 = vld [vmem:[#allocation3 + $0x19] sm:$0xff]  ;;  %v24514_v6 = vld [vmem:[#allocation3 + $0x21] sm:$0xff] }
 0x314   : > { %20138 = vmatmul.mubr.msk.f32.gmra.mrb[26].mxu1 %vm390_vm1, %v24512_v54  ;;  %v24660_v30 = vld [vmem:[#allocation3 + $0x20] sm:$0xff] }
 0x315   : > { %20140 = vmatprep.mubr.msk.f32.mxu1 %vm390_vm1, %v24514_v6  ;;  %21885 = vmatpush3.bf16.msra.mxu1 %v21882_v49  ;;  %v24727_v49 = vld [vmem:[#allocation3 + $0xa0] sm:$0xff] }
 0x316   : > { %20190 = vmatprep.subr.mxu1 %v4044_v53  ;;  %v24534_v57 = vld [vmem:[#allocation3 + $0x39] sm:$0xff] }
 0x317   : > { %v24525_v55 = vld [vmem:[#allocation3 + $0x29] sm:$0xff]  ;;  %v24527_v56 = vld [vmem:[#allocation3 + $0x31] sm:$0xff]  ;;  %v24743_v58 = vld [vmem:[#allocation3 + $0xc0] sm:$0xff] }
 0x318   : > { %20141 = vmatmul.mubr.msk.f32.gmra.mrb[28].mxu1 %vm390_vm1, %v24525_v55  ;;  %v24670_v60 = vld [vmem:[#allocation3 + $0x30] sm:$0xff]  ;;  %v24675_v62 = vld [vmem:[#allocation3 + $0x38] sm:$0xff] }
 0x319   : > { %20143 = vmatprep.mubr.msk.f32.mxu1 %vm390_vm1, %v24527_v56  ;;  %20191 = vmatpush3.msra.mxu1 %v4044_v53  ;;  %v24735_v53 = vld [vmem:[#allocation3 + $0xb0] sm:$0xff] }
 0x31a   : > { %21887 = vmatprep.subr.bf16.mxu1 %v24523_v7 }
 0x31c   : > { %20144 = vmatmul.mubr.msk.f32.gmra.mrb[30].mxu1 %vm390_vm1, %v24534_v57 }
 0x31d   : > { %20146 = vmatprep.mubr.msk.f32.mxu1 %vm390_vm1, %v24538_v11 }
 0x320   : > { %20147 = vmatmul.mubr.msk.f32.gmra.mrb[32].mxu1 %vm390_vm1, %v24542_v12 }
 0x321   : > { %20149 = vmatprep.mubr.msk.f32.mxu1 %vm390_vm1, %v24546_v13 }
 0x324   : > { %20150 = vmatmul.mubr.msk.f32.gmra.mrb[34].mxu1 %vm390_vm1, %v24550_v2 }
 0x325   : > { %20152 = vmatprep.mubr.msk.f32.mxu1 %vm390_vm1, %v24554_v4 }
 0x328   : > { %20153 = vmatmul.mubr.msk.f32.gmra.mrb[36].mxu1 %vm390_vm1, %v24558_v14 }
 0x329   : > { %20155 = vmatprep.mubr.msk.f32.mxu1 %vm390_vm1, %v24562_v15 }
 0x32c   : > { %20156 = vmatmul.mubr.msk.f32.gmra.mrb[38].mxu1 %vm390_vm1, %v24566_v16 }
 0x32d   : > { %20158 = vmatprep.mubr.msk.f32.mxu1 %vm390_vm1, %v24570_v17 }
 0x330   : > { %20159 = vmatmul.mubr.msk.f32.gmra.mrb[40].mxu1 %vm390_vm1, %v24574_v18 }
 0x331   : > { %20161 = vmatprep.mubr.msk.f32.mxu1 %vm390_vm1, %v24578_v19 }
 0x334   : > { %20162 = vmatmul.mubr.msk.f32.gmra.mrb[42].mxu1 %vm390_vm1, %v24582_v8 }
 0x335   : > { %20164 = vmatprep.mubr.msk.f32.mxu1 %vm390_vm1, %v24586_v32 }
 0x338   : > { %20165 = vmatmul.mubr.msk.f32.gmra.mrb[44].mxu1 %vm390_vm1, %v24590_v20 }
 0x339   : > { %20167 = vmatprep.mubr.msk.f32.mxu1 %vm390_vm1, %v24594_v22 }
 0x33c   : > { %20168 = vmatmul.mubr.msk.f32.gmra.mrb[46].mxu1 %vm390_vm1, %v24598_v23 }
 0x33d   : > { %20170 = vmatprep.mubr.msk.f32.mxu1 %vm390_vm1, %v24602_v24 }
 0x340   : > { %20171 = vmatmul.mubr.msk.f32.gmra.mrb[48].mxu1 %vm390_vm1, %v24606_v25 }
 0x341   : > { %20173 = vmatprep.mubr.msk.f32.mxu1 %vm390_vm1, %v24610_v26 }
 0x344   : > { %20174 = vmatmul.mubr.msk.f32.gmra.mrb[50].mxu1 %vm390_vm1, %v24614_v43  ;;  %v17313_v43 = vld [vmem:[%s27786_s3 + $0x98] sm:$0xff] }
 0x345   : > { %20176 = vmatprep.mubr.msk.f32.mxu1 %vm390_vm1, %v24618_v34  ;;  %v24788_v34 = vld [vmem:[#allocation3 + $0x1a] sm:$0xff] }
 0x346   : > { %28136 = vst [vmem:[#allocation38_spill] sm:$0xff] %v24788_v34 }
 0x348   : > { %20177 = vmatmul.mubr.msk.f32.gmra.mrb[52].mxu1 %vm390_vm1, %v24622_v38  ;;  %v24783_v38 = vld [vmem:[#allocation3 + $0x12] sm:$0xff] }
 0x349   : > { %20179 = vmatprep.mubr.msk.f32.mxu1 %vm390_vm1, %v24626_v27  ;;  %v4726_v27 = vld [vmem:[#allocation3 + $0xa] sm:$0xff]  ;;  %28135 = vst [vmem:[#allocation37_spill] sm:$0xff] %v24783_v38 }
 0x34c   : > { %20180 = vmatmul.mubr.msk.f32.gmra.mrb[54].mxu1 %vm390_vm1, %v24630_v28  ;;  %v21898_v28 = vpack.c.bf16 %v17312_v31, %v17311_v29  ;;  %v24805_v31 = vld [vmem:[#allocation3 + $0x2a] sm:$0xff] }
 0x34d   : > { %20192 = vmatprep.mubr.msk.f32.mxu1 %vm390_vm1, %v4008_v33  ;;  %v24759_v33 = vld [vmem:[#allocation3 + $0xe0] sm:$0xff] }
 0x350   : > { %20193 = vmatmul.mubr.msk.f32.vlgmr.msra.gmra.mrb[24].mxu1 %vm390_vm1, %v4009_v35  ;;  %v24767_v35 = vld [vmem:[#allocation3 + $0xf0] sm:$0xff] }
 0x351   : > { %21889 = vmatpush3.bf16.msra.mxu1 %v24523_v7  ;;  %20195 = vmatprep.mubr.msk.f32.mxu1 %vm390_vm1, %v24642_v63  ;;  %v24747_v7 = vld [vmem:[#allocation3 + $0xc8] sm:$0xff] }
 0x352   : > { %21891 = vmatprep.subr.bf16.mxu1 %v21890_v10 }
 0x354   : > { %20196 = vmatmul.mubr.msk.f32.gmra.mrb[26].mxu1 %vm390_vm1, %v24650_v9 }
 0x355   : > { %20198 = vmatprep.mubr.msk.f32.mxu1 %vm390_vm1, %v24660_v30  ;;  %21893 = vmatpush3.bf16.msra.mxu1 %v21890_v10  ;;  %v24763_v10 = vld [vmem:[#allocation3 + $0xe8] sm:$0xff] }
 0x356   : > { %20248 = vmatprep.subr.mxu1 %v17276_v3 }
 0x358   : > { %20199 = vmatmul.mubr.msk.f32.gmra.mrb[28].mxu1 %vm390_vm1, %v24666_v59 }
 0x359   : > { %20201 = vmatprep.mubr.msk.f32.mxu1 %vm390_vm1, %v24670_v60  ;;  %20249 = vmatpush3.msra.mxu1 %v17276_v3  ;;  %v24771_v3 = vld [vmem:[#allocation3 + $0xf8] sm:$0xff] }
 0x35a   : > { %21895 = vmatprep.subr.bf16.mxu1 %v24664_v61 }
 0x35c   : > { %20202 = vmatmul.mubr.msk.f32.gmra.mrb[30].mxu1 %vm390_vm1, %v24675_v62 }
 0x35d   : > { %20204 = vmatprep.mubr.msk.f32.mxu1 %vm390_vm1, %v24679_v0 }
 0x360   : > { %20205 = vmatmul.mubr.msk.f32.gmra.mrb[32].mxu1 %vm390_vm1, %v24683_v36 }
 0x361   : > { %20207 = vmatprep.mubr.msk.f32.mxu1 %vm390_vm1, %v24687_v37 }
 0x364   : > { %20208 = vmatmul.mubr.msk.f32.gmra.mrb[34].mxu1 %vm390_vm1, %v24691_v1 }
 0x365   : > { %20210 = vmatprep.mubr.msk.f32.mxu1 %vm390_vm1, %v24695_v5 }
 0x368   : > { %20211 = vmatmul.mubr.msk.f32.gmra.mrb[36].mxu1 %vm390_vm1, %v24699_v44 }
 0x369   : > { %20213 = vmatprep.mubr.msk.f32.mxu1 %vm390_vm1, %v24703_v45 }
 0x36c   : > { %20214 = vmatmul.mubr.msk.f32.gmra.mrb[38].mxu1 %vm390_vm1, %v24707_v46 }
 0x36d   : > { %20216 = vmatprep.mubr.msk.f32.mxu1 %vm390_vm1, %v24711_v47 }
 0x370   : > { %20217 = vmatmul.mubr.msk.f32.gmra.mrb[40].mxu1 %vm390_vm1, %v24715_v40 }
 0x371   : > { %20219 = vmatprep.mubr.msk.f32.mxu1 %vm390_vm1, %v24719_v42 }
 0x374   : > { %20220 = vmatmul.mubr.msk.f32.gmra.mrb[42].mxu1 %vm390_vm1, %v24723_v48 }
 0x375   : > { %20222 = vmatprep.mubr.msk.f32.mxu1 %vm390_vm1, %v24727_v49 }
 0x378   : > { %20223 = vmatmul.mubr.msk.f32.gmra.mrb[44].mxu1 %vm390_vm1, %v24731_v50 }
 0x379   : > { %20225 = vmatprep.mubr.msk.f32.mxu1 %vm390_vm1, %v24735_v53 }
 0x37c   : > { %20226 = vmatmul.mubr.msk.f32.gmra.mrb[46].mxu1 %vm390_vm1, %v24739_v52 }
 0x37d   : > { %20228 = vmatprep.mubr.msk.f32.mxu1 %vm390_vm1, %v24743_v58 }
 0x380   : > { %20229 = vmatmul.mubr.msk.f32.gmra.mrb[48].mxu1 %vm390_vm1, %v24747_v7 }
 0x381   : > { %20231 = vmatprep.mubr.msk.f32.mxu1 %vm390_vm1, %v24751_v39 }
 0x384   : > { %20232 = vmatmul.mubr.msk.f32.gmra.mrb[50].mxu1 %vm390_vm1, %v24755_v41 }
 0x385   : > { %20234 = vmatprep.mubr.msk.f32.mxu1 %vm390_vm1, %v24759_v33 }
 0x388   : > { %20235 = vmatmul.mubr.msk.f32.gmra.mrb[52].mxu1 %vm390_vm1, %v24763_v10 }
 0x389   : > { %20237 = vmatprep.mubr.msk.f32.mxu1 %vm390_vm1, %v24767_v35 }
 0x38c   : > { %20238 = vmatmul.mubr.msk.f32.gmra.mrb[54].mxu1 %vm390_vm1, %v24771_v3 }
 0x38d   : > { %20250 = vmatprep.mubr.msk.f32.mxu1 %vm390_vm1, %v4725_v21  ;;  %v17346_v21 = vld [vmem:[%s27786_s3 + $0xa0] sm:$0xff] }
 0x390   : > { %20251 = vmatmul.mubr.msk.f32.vlgmr.msra.gmra.mrb[24].mxu1 %vm390_vm1, %v4726_v27  ;;  %v17347_v27 = vld [vmem:[%s27786_s3 + $0xa8] sm:$0xff] }
 0x391   : > { %21897 = vmatpush3.bf16.msra.mxu1 %v24664_v61  ;;  %20253 = vmatprep.mubr.msk.f32.mxu1 %vm390_vm1, %v24783_v38  ;;  %v24801_v61 = vld [vmem:[#allocation3 + $0x22] sm:$0xff]  ;;  %v21902_v29 = vpack.c.bf16 %v17347_v27, %v17346_v21  ;;  %v24809_v38 = vld [vmem:[#allocation3 + $0x32] sm:$0xff]  ;;  %v24821_v21 = vld [vmem:[#allocation3 + $0x4a] sm:$0xff] }
 0x392   : > { %21899 = vmatprep.subr.bf16.mxu1 %v21898_v28  ;;  %28139 = vst [vmem:[#allocation33_spill] sm:$0xff] %v24821_v21  ;;  %v24825_v27 = vld [vmem:[#allocation3 + $0x52] sm:$0xff] }
 0x393   : > { %28140 = vst [vmem:[#allocation41_spill] sm:$0xff] %v24825_v27 }
 0x394   : > { %20254 = vmatmul.mubr.msk.f32.gmra.mrb[26].mxu1 %vm390_vm1, %v24788_v34  ;;  %v24813_v34 = vld [vmem:[#allocation3 + $0x3a] sm:$0xff] }
 0x395   : > { %20256 = vmatprep.mubr.msk.f32.mxu1 %vm390_vm1, %v24801_v61  ;;  %21901 = vmatpush3.bf16.msra.mxu1 %v21898_v28  ;;  %28137 = vst [vmem:[#allocation39_spill] sm:$0xff] %v24813_v34  ;;  %v24817_v28 = vld [vmem:[#allocation3 + $0x42] sm:$0xff] }
 0x396   : > { %20306 = vmatprep.subr.mxu1 %v17313_v43  ;;  %28138 = vst [vmem:[#allocation40_spill] sm:$0xff] %v24817_v28 }
 0x398   : > { %20257 = vmatmul.mubr.msk.f32.gmra.mrb[28].mxu1 %vm390_vm1, %v24805_v31 }
 0x399   : > { %20259 = vmatprep.mubr.msk.f32.mxu1 %vm390_vm1, %v24809_v38  ;;  %20307 = vmatpush3.msra.mxu1 %v17313_v43  ;;  %v24829_v43 = vld [vmem:[#allocation3 + $0x5a] sm:$0xff] }
 0x39a   : > { %21903 = vmatprep.subr.bf16.mxu1 %v21902_v29  ;;  %28141 = vst [vmem:[#allocation12_spill] sm:$0xff] %v24829_v43 }
 0x39c   : > { %20260 = vmatmul.mubr.msk.f32.gmra.mrb[30].mxu1 %vm390_vm1, %v24813_v34  ;;  %v24833_v34 = vld [vmem:[#allocation3 + $0x62] sm:$0xff] }
 0x39d   : > { %20262 = vmatprep.mubr.msk.f32.mxu1 %vm390_vm1, %v24817_v28  ;;  %28142 = vst [vmem:[#allocation42_spill] sm:$0xff] %v24833_v34  ;;  %v24837_v28 = vld [vmem:[#allocation3 + $0x6a] sm:$0xff] }
 0x39e   : > { %28143 = vst [vmem:[#allocation43_spill] sm:$0xff] %v24837_v28 }
 0x3a0   : > { %20263 = vmatmul.mubr.msk.f32.gmra.mrb[32].mxu1 %vm390_vm1, %v24821_v21  ;;  %v24841_v21 = vld [vmem:[#allocation3 + $0x72] sm:$0xff] }
 0x3a1   : > { %20265 = vmatprep.mubr.msk.f32.mxu1 %vm390_vm1, %v24825_v27  ;;  %28144 = vst [vmem:[#allocation44_spill] sm:$0xff] %v24841_v21  ;;  %v24845_v27 = vld [vmem:[#allocation3 + $0x7a] sm:$0xff] }
 0x3a2   : > { %28145 = vst [vmem:[#allocation45_spill] sm:$0xff] %v24845_v27 }
 0x3a4   : > { %20266 = vmatmul.mubr.msk.f32.gmra.mrb[34].mxu1 %vm390_vm1, %v24829_v43  ;;  %v24849_v43 = vld [vmem:[#allocation3 + $0x82] sm:$0xff] }
 0x3a5   : > { %20268 = vmatprep.mubr.msk.f32.mxu1 %vm390_vm1, %v24833_v34  ;;  %28146 = vst [vmem:[#allocation46_spill] sm:$0xff] %v24849_v43  ;;  %v24853_v34 = vld [vmem:[#allocation3 + $0x8a] sm:$0xff] }
 0x3a6   : > { %28147 = vst [vmem:[#allocation13_spill] sm:$0xff] %v24853_v34 }
 0x3a8   : > { %20269 = vmatmul.mubr.msk.f32.gmra.mrb[36].mxu1 %vm390_vm1, %v24837_v28  ;;  %v24857_v28 = vld [vmem:[#allocation3 + $0x92] sm:$0xff] }
 0x3a9   : > { %20271 = vmatprep.mubr.msk.f32.mxu1 %vm390_vm1, %v24841_v21  ;;  %28148 = vst [vmem:[#allocation14_spill] sm:$0xff] %v24857_v28  ;;  %v24861_v21 = vld [vmem:[#allocation3 + $0x9a] sm:$0xff] }
 0x3aa   : > { %28149 = vst [vmem:[#allocation15_spill] sm:$0xff] %v24861_v21 }
 0x3ac   : > { %20272 = vmatmul.mubr.msk.f32.gmra.mrb[38].mxu1 %vm390_vm1, %v24845_v27  ;;  %v24865_v27 = vld [vmem:[#allocation3 + $0xa2] sm:$0xff] }
 0x3ad   : > { %20274 = vmatprep.mubr.msk.f32.mxu1 %vm390_vm1, %v24849_v43  ;;  %28150 = vst [vmem:[#allocation16_spill] sm:$0xff] %v24865_v27  ;;  %v24869_v43 = vld [vmem:[#allocation3 + $0xaa] sm:$0xff] }
 0x3ae   : > { %28151 = vst [vmem:[#allocation17_spill] sm:$0xff] %v24869_v43 }
 0x3b0   : > { %20275 = vmatmul.mubr.msk.f32.gmra.mrb[40].mxu1 %vm390_vm1, %v24853_v34  ;;  %v24873_v34 = vld [vmem:[#allocation3 + $0xb2] sm:$0xff] }
 0x3b1   : > { %20277 = vmatprep.mubr.msk.f32.mxu1 %vm390_vm1, %v24857_v28  ;;  %28152 = vst [vmem:[#allocation18_spill] sm:$0xff] %v24873_v34  ;;  %v24877_v28 = vld [vmem:[#allocation3 + $0xba] sm:$0xff] }
 0x3b2   : > { %28153 = vst [vmem:[#allocation19_spill] sm:$0xff] %v24877_v28 }
 0x3b4   : > { %20278 = vmatmul.mubr.msk.f32.gmra.mrb[42].mxu1 %vm390_vm1, %v24861_v21  ;;  %v24881_v21 = vld [vmem:[#allocation3 + $0xc2] sm:$0xff] }
 0x3b5   : > { %20280 = vmatprep.mubr.msk.f32.mxu1 %vm390_vm1, %v24865_v27  ;;  %28154 = vst [vmem:[#allocation20_spill] sm:$0xff] %v24881_v21  ;;  %v24885_v27 = vld [vmem:[#allocation3 + $0xca] sm:$0xff] }
 0x3b6   : > { %28155 = vst [vmem:[#allocation21_spill] sm:$0xff] %v24885_v27 }
 0x3b8   : > { %20281 = vmatmul.mubr.msk.f32.gmra.mrb[44].mxu1 %vm390_vm1, %v24869_v43  ;;  %v24889_v43 = vld [vmem:[#allocation3 + $0xd2] sm:$0xff] }
 0x3b9   : > { %20283 = vmatprep.mubr.msk.f32.mxu1 %vm390_vm1, %v24873_v34  ;;  %28156 = vst [vmem:[#allocation22_spill] sm:$0xff] %v24889_v43  ;;  %v24893_v34 = vld [vmem:[#allocation3 + $0xda] sm:$0xff] }
 0x3ba   : > { %28157 = vst [vmem:[#allocation23_spill] sm:$0xff] %v24893_v34 }
 0x3bc   : > { %20284 = vmatmul.mubr.msk.f32.gmra.mrb[46].mxu1 %vm390_vm1, %v24877_v28  ;;  %v24897_v28 = vld [vmem:[#allocation3 + $0xe2] sm:$0xff] }
 0x3bd   : > { %20286 = vmatprep.mubr.msk.f32.mxu1 %vm390_vm1, %v24881_v21  ;;  %28158 = vst [vmem:[#allocation47_spill] sm:$0xff] %v24897_v28  ;;  %v24901_v21 = vld [vmem:[#allocation3 + $0xea] sm:$0xff] }
 0x3be   : > { %28159 = vst [vmem:[#allocation48_spill] sm:$0xff] %v24901_v21 }
 0x3c0   : > { %20287 = vmatmul.mubr.msk.f32.gmra.mrb[48].mxu1 %vm390_vm1, %v24885_v27  ;;  %v24905_v27 = vld [vmem:[#allocation3 + $0xf2] sm:$0xff] }
 0x3c1   : > { %20289 = vmatprep.mubr.msk.f32.mxu1 %vm390_vm1, %v24889_v43  ;;  %28160 = vst [vmem:[#allocation26_spill] sm:$0xff] %v24905_v27  ;;  %v24909_v43 = vld [vmem:[#allocation3 + $0xfa] sm:$0xff] }
 0x3c2   : > { %28161 = vst [vmem:[#allocation27_spill] sm:$0xff] %v24909_v43 }
 0x3c4   : > { %20290 = vmatmul.mubr.msk.f32.gmra.mrb[50].mxu1 %vm390_vm1, %v24893_v34  ;;  %v17348_v34 = vld [vmem:[%s27786_s3 + $0xb0] sm:$0xff] }
 0x3c5   : > { %20292 = vmatprep.mubr.msk.f32.mxu1 %vm390_vm1, %v24897_v28  ;;  %v17349_v28 = vld [vmem:[%s27786_s3 + $0xb8] sm:$0xff] }
 0x3c8   : > { %20293 = vmatmul.mubr.msk.f32.gmra.mrb[52].mxu1 %vm390_vm1, %v24901_v21  ;;  %v21906_v21 = vpack.c.bf16 %v17349_v28, %v17348_v34  ;;  %v17384_v34 = vld [vmem:[%s27786_s3 + $0xd0] sm:$0xff]  ;;  %v17385_v28 = vld [vmem:[%s27786_s3 + $0xd8] sm:$0xff] }
 0x3c9   : > { %20295 = vmatprep.mubr.msk.f32.mxu1 %vm390_vm1, %v24905_v27  ;;  %v17350_v27 = vld [vmem:[%s27786_s3 + $0xc0] sm:$0xff] }
 0x3cc   : > { %20296 = vmatmul.mubr.msk.f32.gmra.mrb[54].mxu1 %vm390_vm1, %v24909_v43  ;;  %v17383_v43 = vld [vmem:[%s27786_s3 + $0xc8] sm:$0xff] }
 0x3cd   : > { %20308 = vmatprep.mubr.msk.f32.mxu1 %vm390_vm1, %v24642_v63  ;;  %v21910_v63 = vpack.c.bf16 %v17384_v34, %v17383_v43  ;;  %v17387_v43 = vld [vmem:[%s27786_s3 + $0xe8] sm:$0xff]  ;;  %v17420_v34 = vld [vmem:[%s27786_s3 + $0xf0] sm:$0xff] }
 0x3d0   : > { %20309 = vmatmul.mubr.msk.f32.vlgmr.msra.gmra.mrb[24].mxu1 %vm390_vm1, %v24650_v9  ;;  %v24986_v9 = vld [vmem:[#allocation3 + $0x100] sm:$0xff] }
 0x3d1   : > { %21905 = vmatpush3.bf16.msra.mxu1 %v21902_v29  ;;  %20311 = vmatprep.mubr.msk.f32.mxu1 %vm390_vm1, %v24660_v30  ;;  %v24992_v29 = vld [vmem:[#allocation3 + $0x108] sm:$0xff] }
 0x3d2   : > { %21907 = vmatprep.subr.bf16.mxu1 %v21906_v21 }
 0x3d4   : > { %20312 = vmatmul.mubr.msk.f32.gmra.mrb[26].mxu1 %vm390_vm1, %v24666_v59 }
 0x3d5   : > { %20314 = vmatprep.mubr.msk.f32.mxu1 %vm390_vm1, %v24670_v60  ;;  %21909 = vmatpush3.bf16.msra.mxu1 %v21906_v21  ;;  %v17386_v21 = vld [vmem:[%s27786_s3 + $0xe0] sm:$0xff] }
 0x3d6   : > { %20364 = vmatprep.subr.mxu1 %v17350_v27 }
 0x3d8   : > { %20315 = vmatmul.mubr.msk.f32.gmra.mrb[28].mxu1 %vm390_vm1, %v24675_v62 }
 0x3d9   : > { %20317 = vmatprep.mubr.msk.f32.mxu1 %vm390_vm1, %v24679_v0  ;;  %20365 = vmatpush3.msra.mxu1 %v17350_v27  ;;  %v21914_v27 = vpack.c.bf16 %v17386_v21, %v17385_v28  ;;  %v28177_v28 = vld [vmem:[#allocation45_spill] sm:$0xff]  ;;  %v28178_v21 = vld [vmem:[#allocation46_spill] sm:$0xff] }
 0x3da   : > { %21911 = vmatprep.subr.bf16.mxu1 %v21910_v63 }
 0x3dc   : > { %20318 = vmatmul.mubr.msk.f32.gmra.mrb[30].mxu1 %vm390_vm1, %v24683_v36 }
 0x3dd   : > { %20320 = vmatprep.mubr.msk.f32.mxu1 %vm390_vm1, %v24687_v37 }
 0x3e0   : > { %20321 = vmatmul.mubr.msk.f32.gmra.mrb[32].mxu1 %vm390_vm1, %v24691_v1 }
 0x3e1   : > { %20323 = vmatprep.mubr.msk.f32.mxu1 %vm390_vm1, %v24695_v5 }
 0x3e4   : > { %20324 = vmatmul.mubr.msk.f32.gmra.mrb[34].mxu1 %vm390_vm1, %v24699_v44 }
 0x3e5   : > { %20326 = vmatprep.mubr.msk.f32.mxu1 %vm390_vm1, %v24703_v45 }
 0x3e8   : > { %20327 = vmatmul.mubr.msk.f32.gmra.mrb[36].mxu1 %vm390_vm1, %v24707_v46 }
 0x3e9   : > { %20329 = vmatprep.mubr.msk.f32.mxu1 %vm390_vm1, %v24711_v47 }
 0x3ec   : > { %20330 = vmatmul.mubr.msk.f32.gmra.mrb[38].mxu1 %vm390_vm1, %v24715_v40 }
 0x3ed   : > { %20332 = vmatprep.mubr.msk.f32.mxu1 %vm390_vm1, %v24719_v42 }
 0x3f0   : > { %20333 = vmatmul.mubr.msk.f32.gmra.mrb[40].mxu1 %vm390_vm1, %v24723_v48 }
 0x3f1   : > { %20335 = vmatprep.mubr.msk.f32.mxu1 %vm390_vm1, %v24727_v49 }
 0x3f4   : > { %20336 = vmatmul.mubr.msk.f32.gmra.mrb[42].mxu1 %vm390_vm1, %v24731_v50 }
 0x3f5   : > { %20338 = vmatprep.mubr.msk.f32.mxu1 %vm390_vm1, %v24735_v53 }
 0x3f8   : > { %20339 = vmatmul.mubr.msk.f32.gmra.mrb[44].mxu1 %vm390_vm1, %v24739_v52 }
 0x3f9   : > { %20341 = vmatprep.mubr.msk.f32.mxu1 %vm390_vm1, %v24743_v58 }
 0x3fc   : > { %20342 = vmatmul.mubr.msk.f32.gmra.mrb[46].mxu1 %vm390_vm1, %v24747_v7 }
 0x3fd   : > { %20344 = vmatprep.mubr.msk.f32.mxu1 %vm390_vm1, %v24751_v39 }
 0x400   : > { %20345 = vmatmul.mubr.msk.f32.gmra.mrb[48].mxu1 %vm390_vm1, %v24755_v41 }
 0x401   : > { %20347 = vmatprep.mubr.msk.f32.mxu1 %vm390_vm1, %v24759_v33 }
 0x404   : > { %20348 = vmatmul.mubr.msk.f32.gmra.mrb[50].mxu1 %vm390_vm1, %v24763_v10 }
 0x405   : > { %20350 = vmatprep.mubr.msk.f32.mxu1 %vm390_vm1, %v24767_v35 }
 0x408   : > { %20351 = vmatmul.mubr.msk.f32.gmra.mrb[52].mxu1 %vm390_vm1, %v24771_v3 }
 0x409   : > { %20353 = vmatprep.mubr.msk.f32.mxu1 %vm390_vm1, %v24986_v9 }
 0x40c   : > { %20354 = vmatmul.mubr.msk.f32.gmra.mrb[54].mxu1 %vm390_vm1, %v24992_v29 }
 0x40d   : > { %20366 = vmatprep.mubr.msk.f32.mxu1 %vm390_vm1, %v24499_v51  ;;  %v17421_v51 = vld [vmem:[%s27786_s3 + $0xf8] sm:$0xff] }
 0x410   : > { %20367 = vmatmul.mubr.msk.f32.vlgmr.msra.gmra.mrb[24].mxu1 %vm390_vm1, %v24512_v54  ;;  %v21918_v54 = vpack.c.bf16 %v17421_v51, %v17420_v34  ;;  %v28181_v34 = vld [vmem:[#allocation15_spill] sm:$0xff]  ;;  %v28182_v51 = vld [vmem:[#allocation16_spill] sm:$0xff] }
 0x411   : > { %21913 = vmatpush3.bf16.msra.mxu1 %v21910_v63  ;;  %20369 = vmatprep.mubr.msk.f32.mxu1 %vm390_vm1, %v24514_v6  ;;  %v28162_v6 = vld [vmem:[#allocation24_spill] sm:$0xff] }
 0x412   : > { %21915 = vmatprep.subr.bf16.mxu1 %v21914_v27  ;;  %v28176_v63 = vld [vmem:[#allocation44_spill] sm:$0xff] }
 0x414   : > { %20370 = vmatmul.mubr.msk.f32.gmra.mrb[26].mxu1 %vm390_vm1, %v24525_v55  ;;  %v28163_v55 = vld [vmem:[#allocation25_spill] sm:$0xff] }
 0x415   : > { %20372 = vmatprep.mubr.msk.f32.mxu1 %vm390_vm1, %v24527_v56  ;;  %21917 = vmatpush3.bf16.msra.mxu1 %v21914_v27  ;;  %v28164_v56 = vld [vmem:[#allocation34_spill] sm:$0xff]  ;;  %v28179_v27 = vld [vmem:[#allocation13_spill] sm:$0xff] }
 0x416   : > { %20422 = vmatprep.subr.mxu1 %v17387_v43 }
 0x418   : > { %20373 = vmatmul.mubr.msk.f32.gmra.mrb[28].mxu1 %vm390_vm1, %v24534_v57  ;;  %v28165_v57 = vld [vmem:[#allocation35_spill] sm:$0xff] }
 0x419   : > { %20375 = vmatprep.mubr.msk.f32.mxu1 %vm390_vm1, %v24538_v11  ;;  %20423 = vmatpush3.msra.mxu1 %v17387_v43  ;;  %v25069_v11 = vld [vmem:[#allocation3 + $0x101] sm:$0xff] }
 0x41a   : > { %21919 = vmatprep.subr.bf16.mxu1 %v21918_v54  ;;  %v28180_v43 = vld [vmem:[#allocation14_spill] sm:$0xff] }
 0x41c   : > { %20376 = vmatmul.mubr.msk.f32.gmra.mrb[30].mxu1 %vm390_vm1, %v24542_v12  ;;  %v28166_v12 = vld [vmem:[#allocation36_spill] sm:$0xff] }
 0x41d   : > { %20378 = vmatprep.mubr.msk.f32.mxu1 %vm390_vm1, %v24546_v13  ;;  %v25075_v13 = vld [vmem:[#allocation3 + $0x109] sm:$0xff] }
 0x420   : > { %20379 = vmatmul.mubr.msk.f32.gmra.mrb[32].mxu1 %vm390_vm1, %v24550_v2  ;;  %v17422_v2 = vld [vmem:[%s27786_s3 + $0x100] sm:$0xff] }
 0x421   : > { %20381 = vmatprep.mubr.msk.f32.mxu1 %vm390_vm1, %v24554_v4  ;;  %v17423_v4 = vld [vmem:[%s27786_s3 + $0x108] sm:$0xff] }
 0x424   : > { %20382 = vmatmul.mubr.msk.f32.gmra.mrb[34].mxu1 %vm390_vm1, %v24558_v14  ;;  %v28167_v14 = vld [vmem:[#allocation37_spill] sm:$0xff] }
 0x425   : > { %20384 = vmatprep.mubr.msk.f32.mxu1 %vm390_vm1, %v24562_v15  ;;  %v21922_v15 = vpack.c.bf16 %v17423_v4, %v17422_v2  ;;  %v28189_v2 = vld [vmem:[#allocation23_spill] sm:$0xff] }
 0x426   : > { %v28190_v4 = vld [vmem:[#allocation47_spill] sm:$0xff] }
 0x428   : > { %20385 = vmatmul.mubr.msk.f32.gmra.mrb[36].mxu1 %vm390_vm1, %v24566_v16  ;;  %v28168_v16 = vld [vmem:[#allocation38_spill] sm:$0xff] }
 0x429   : > { %20387 = vmatprep.mubr.msk.f32.mxu1 %vm390_vm1, %v24570_v17  ;;  %v17424_v17 = vld [vmem:[%s27786_s3 + $0x110] sm:$0xff] }
 0x42c   : > { %20388 = vmatmul.mubr.msk.f32.gmra.mrb[38].mxu1 %vm390_vm1, %v24574_v18  ;;  %v17457_v18 = vld [vmem:[%s27786_s3 + $0x118] sm:$0xff] }
 0x42d   : > { %20390 = vmatprep.mubr.msk.f32.mxu1 %vm390_vm1, %v24578_v19  ;;  %v17458_v19 = vld [vmem:[%s27786_s3 + $0x120] sm:$0xff] }
 0x430   : > { %20391 = vmatmul.mubr.msk.f32.gmra.mrb[40].mxu1 %vm390_vm1, %v24582_v8  ;;  %v21926_v8 = vpack.c.bf16 %v17458_v19, %v17457_v18  ;;  %v25158_v18 = vld [vmem:[#allocation3 + $0x10a] sm:$0xff]  ;;  %v17459_v19 = vld [vmem:[%s27786_s3 + $0x128] sm:$0xff] }
 0x431   : > { %20393 = vmatprep.mubr.msk.f32.mxu1 %vm390_vm1, %v24586_v32  ;;  %v28169_v32 = vld [vmem:[#allocation39_spill] sm:$0xff]  ;;  %28195 = vst [vmem:[#allocation29_spill] sm:$0xff] %v25158_v18 }
 0x434   : > { %20394 = vmatmul.mubr.msk.f32.gmra.mrb[42].mxu1 %vm390_vm1, %v24590_v20  ;;  %v28170_v20 = vld [vmem:[#allocation40_spill] sm:$0xff] }
 0x435   : > { %20396 = vmatprep.mubr.msk.f32.mxu1 %vm390_vm1, %v24594_v22  ;;  %v28171_v22 = vld [vmem:[#allocation33_spill] sm:$0xff] }
 0x438   : > { %20397 = vmatmul.mubr.msk.f32.gmra.mrb[44].mxu1 %vm390_vm1, %v24598_v23  ;;  %v28172_v23 = vld [vmem:[#allocation41_spill] sm:$0xff] }
 0x439   : > { %20399 = vmatprep.mubr.msk.f32.mxu1 %vm390_vm1, %v24602_v24  ;;  %v28173_v24 = vld [vmem:[#allocation12_spill] sm:$0xff] }
 0x43c   : > { %20400 = vmatmul.mubr.msk.f32.gmra.mrb[46].mxu1 %vm390_vm1, %v24606_v25  ;;  %v28174_v25 = vld [vmem:[#allocation42_spill] sm:$0xff] }
 0x43d   : > { %20402 = vmatprep.mubr.msk.f32.mxu1 %vm390_vm1, %v24610_v26  ;;  %v28175_v26 = vld [vmem:[#allocation43_spill] sm:$0xff] }
 0x440   : > { %20403 = vmatmul.mubr.msk.f32.gmra.mrb[48].mxu1 %vm390_vm1, %v28162_v6  ;;  %v28184_v6 = vld [vmem:[#allocation18_spill] sm:$0xff] }
 0x441   : > { %20405 = vmatprep.mubr.msk.f32.mxu1 %vm390_vm1, %v28163_v55  ;;  %v28185_v55 = vld [vmem:[#allocation19_spill] sm:$0xff] }
 0x444   : > { %20406 = vmatmul.mubr.msk.f32.gmra.mrb[50].mxu1 %vm390_vm1, %v28164_v56  ;;  %v28186_v56 = vld [vmem:[#allocation20_spill] sm:$0xff] }
 0x445   : > { %20408 = vmatprep.mubr.msk.f32.mxu1 %vm390_vm1, %v28165_v57  ;;  %v28187_v57 = vld [vmem:[#allocation21_spill] sm:$0xff] }
 0x448   : > { %20409 = vmatmul.mubr.msk.f32.gmra.mrb[52].mxu1 %vm390_vm1, %v28166_v12  ;;  %v28188_v12 = vld [vmem:[#allocation22_spill] sm:$0xff] }
 0x449   : > { %20411 = vmatprep.mubr.msk.f32.mxu1 %vm390_vm1, %v25069_v11 }
 0x44c   : > { %20412 = vmatmul.mubr.msk.f32.gmra.mrb[54].mxu1 %vm390_vm1, %v25075_v13 }
 0x44d   : > { %20424 = vmatprep.mubr.msk.f32.mxu1 %vm390_vm1, %v28167_v14  ;;  %v28191_v14 = vld [vmem:[#allocation48_spill] sm:$0xff] }
 0x450   : > { %20425 = vmatmul.mubr.msk.f32.vlgmr.msra.gmra.mrb[24].mxu1 %vm390_vm1, %v28168_v16  ;;  %v25152_v16 = vld [vmem:[#allocation3 + $0x102] sm:$0xff] }
 0x451   : > { %21921 = vmatpush3.bf16.msra.mxu1 %v21918_v54  ;;  %20427 = vmatprep.mubr.msk.f32.mxu1 %vm390_vm1, %v24801_v61  ;;  %v28183_v54 = vld [vmem:[#allocation17_spill] sm:$0xff]  ;;  %28193 = vst [vmem:[#allocation28_spill] sm:$0xff] %v25152_v16 }
 0x452   : > { %21923 = vmatprep.subr.bf16.mxu1 %v21922_v15 }
 0x454   : > { %20428 = vmatmul.mubr.msk.f32.gmra.mrb[26].mxu1 %vm390_vm1, %v24805_v31 }
 0x455   : > { %20430 = vmatprep.mubr.msk.f32.mxu1 %vm390_vm1, %v24809_v38  ;;  %21925 = vmatpush3.bf16.msra.mxu1 %v21922_v15  ;;  %v28192_v15 = vld [vmem:[#allocation26_spill] sm:$0xff] }
 0x456   : > { %20480 = vmatprep.subr.mxu1 %v17424_v17 }
 0x458   : > { %20431 = vmatmul.mubr.msk.f32.gmra.mrb[28].mxu1 %vm390_vm1, %v28169_v32 }
 0x459   : > { %20433 = vmatprep.mubr.msk.f32.mxu1 %vm390_vm1, %v28170_v20  ;;  %20481 = vmatpush3.msra.mxu1 %v17424_v17  ;;  %v28194_v17 = vld [vmem:[#allocation27_spill] sm:$0xff] }
 0x45a   : > { %21927 = vmatprep.subr.bf16.mxu1 %v21926_v8 }
 0x45c   : > { %20434 = vmatmul.mubr.msk.f32.gmra.mrb[30].mxu1 %vm390_vm1, %v28171_v22 }
 0x45d   : > { %20436 = vmatprep.mubr.msk.f32.mxu1 %vm390_vm1, %v28172_v23 }
 0x460   : > { %20437 = vmatmul.mubr.msk.f32.gmra.mrb[32].mxu1 %vm390_vm1, %v28173_v24 }
 0x461   : > { %20439 = vmatprep.mubr.msk.f32.mxu1 %vm390_vm1, %v28174_v25 }
 0x464   : > { %20440 = vmatmul.mubr.msk.f32.gmra.mrb[34].mxu1 %vm390_vm1, %v28175_v26 }
 0x465   : > { %20442 = vmatprep.mubr.msk.f32.mxu1 %vm390_vm1, %v28176_v63 }
 0x468   : > { %20443 = vmatmul.mubr.msk.f32.gmra.mrb[36].mxu1 %vm390_vm1, %v28177_v28 }
 0x469   : > { %20445 = vmatprep.mubr.msk.f32.mxu1 %vm390_vm1, %v28178_v21 }
 0x46c   : > { %20446 = vmatmul.mubr.msk.f32.gmra.mrb[38].mxu1 %vm390_vm1, %v28179_v27 }
 0x46d   : > { %20448 = vmatprep.mubr.msk.f32.mxu1 %vm390_vm1, %v28180_v43 }
 0x470   : > { %20449 = vmatmul.mubr.msk.f32.gmra.mrb[40].mxu1 %vm390_vm1, %v28181_v34 }
 0x471   : > { %20451 = vmatprep.mubr.msk.f32.mxu1 %vm390_vm1, %v28182_v51 }
 0x474   : > { %20452 = vmatmul.mubr.msk.f32.gmra.mrb[42].mxu1 %vm390_vm1, %v28183_v54 }
 0x475   : > { %20454 = vmatprep.mubr.msk.f32.mxu1 %vm390_vm1, %v28184_v6 }
 0x478   : > { %20455 = vmatmul.mubr.msk.f32.gmra.mrb[44].mxu1 %vm390_vm1, %v28185_v55 }
 0x479   : > { %20457 = vmatprep.mubr.msk.f32.mxu1 %vm390_vm1, %v28186_v56 }
 0x47c   : > { %20458 = vmatmul.mubr.msk.f32.gmra.mrb[46].mxu1 %vm390_vm1, %v28187_v57 }
 0x47d   : > { %20460 = vmatprep.mubr.msk.f32.mxu1 %vm390_vm1, %v28188_v12 }
 0x480   : > { %20461 = vmatmul.mubr.msk.f32.gmra.mrb[48].mxu1 %vm390_vm1, %v28189_v2 }
 0x481   : > { %20463 = vmatprep.mubr.msk.f32.mxu1 %vm390_vm1, %v28190_v4 }
 0x484   : > { %20464 = vmatmul.mubr.msk.f32.gmra.mrb[50].mxu1 %vm390_vm1, %v28191_v14  ;;  %v17460_v14 = vld [vmem:[%s27786_s3 + $0x130] sm:$0xff] }
 0x485   : > { %20466 = vmatprep.mubr.msk.f32.mxu1 %vm390_vm1, %v28192_v15 }
 0x488   : > { %20467 = vmatmul.mubr.msk.f32.gmra.mrb[52].mxu1 %vm390_vm1, %v28194_v17  ;;  %v21930_v17 = vpack.c.bf16 %v17460_v14, %v17459_v19  ;;  %v6702_v14 = vld [vmem:[#allocation3 + $0xd1] sm:$0xff] }
 0x489   : > { %20469 = vmatprep.mubr.msk.f32.mxu1 %vm390_vm1, %v25152_v16  ;;  %v17461_v16 = vld [vmem:[%s27786_s3 + $0x138] sm:$0xff] }
 0x48a   : > { %v6706_v19 = vld [vmem:[#allocation3 + $0xf1] sm:$0xff] }
 0x48c   : > { %20470 = vmatmul.mubr.msk.f32.gmra.mrb[54].mxu1 %vm390_vm1, %v25158_v18  ;;  %v17494_v18 = vld [vmem:[%s27786_s3 + $0x140] sm:$0xff] }
 0x48d   : > { %20482 = vmatprep.mubr.msk.f32.mxu1 %vm390_vm1, %v24660_v30  ;;  %v17495_v30 = vld [vmem:[%s27786_s3 + $0x148] sm:$0xff] }
 0x490   : > { %20483 = vmatmul.mubr.msk.f32.vlgmr.msra.gmra.mrb[24].mxu1 %vm390_vm1, %v24666_v59  ;;  %v21934_v59 = vpack.c.bf16 %v17495_v30, %v17494_v18  ;;  %v6705_v18 = vld [vmem:[#allocation3 + $0xe9] sm:$0xff]  ;;  %v6707_v30 = vld [vmem:[#allocation3 + $0xf9] sm:$0xff] }
 0x491   : > { %21929 = vmatpush3.bf16.msra.mxu1 %v21926_v8  ;;  %20485 = vmatprep.mubr.msk.f32.mxu1 %vm390_vm1, %v24670_v60  ;;  %v6319_v60 = vld [vmem:[#allocation3 + $0x110] sm:$0xff] }
 0x492   : > { %21931 = vmatprep.subr.bf16.mxu1 %v21930_v17  ;;  %v6701_v8 = vld [vmem:[#allocation3 + $0xc9] sm:$0xff] }
 0x494   : > { %20486 = vmatmul.mubr.msk.f32.gmra.mrb[26].mxu1 %vm390_vm1, %v24675_v62  ;;  %v6320_v62 = vld [vmem:[#allocation3 + $0x118] sm:$0xff] }
 0x495   : > { %20488 = vmatprep.mubr.msk.f32.mxu1 %vm390_vm1, %v24679_v0  ;;  %21933 = vmatpush3.bf16.msra.mxu1 %v21930_v17  ;;  %v17496_v0 = vld [vmem:[%s27786_s3 + $0x150] sm:$0xff] }
 0x496   : > { %20538 = vmatprep.subr.mxu1 %v17461_v16  ;;  %v6704_v17 = vld [vmem:[#allocation3 + $0xe1] sm:$0xff] }
 0x498   : > { %20489 = vmatmul.mubr.msk.f32.gmra.mrb[28].mxu1 %vm390_vm1, %v24683_v36  ;;  %v17497_v36 = vld [vmem:[%s27786_s3 + $0x158] sm:$0xff] }
 0x499   : > { %20491 = vmatprep.mubr.msk.f32.mxu1 %vm390_vm1, %v24687_v37  ;;  %20539 = vmatpush3.msra.mxu1 %v17461_v16  ;;  %v6680_v37 = vld [vmem:[#allocation3 + $0x21] sm:$0xff]  ;;  %v6703_v16 = vld [vmem:[#allocation3 + $0xd9] sm:$0xff] }
 0x49a   : > { %21935 = vmatprep.subr.bf16.mxu1 %v21934_v59 }
 0x49c   : > { %20492 = vmatmul.mubr.msk.f32.gmra.mrb[30].mxu1 %vm390_vm1, %v24691_v1  ;;  %v28196_v1 = vmov 0.0  }
 0x49d   : > { %20494 = vmatprep.mubr.msk.f32.mxu1 %vm390_vm1, %v24695_v5  ;;  %397 = vst.msk [vmem:[#allocation4 + $0x100] sm:$0xff] %vm396_vm2, %v28196_v1  ;;  %398 = vst.msk [vmem:[#allocation4 + $0x108] sm:$0xff] %vm396_vm2, %v28196_v1  ;;  %v21938_v5 = vpack.c.bf16 %v17497_v36, %v17496_v0 }
 0x49e   : > { %399 = vst.msk [vmem:[#allocation4 + $0x110] sm:$0xff] %vm396_vm2, %v28196_v1  ;;  %400 = vst.msk [vmem:[#allocation4 + $0x118] sm:$0xff] %vm396_vm2, %v28196_v1 }
 0x49f   : > { %401 = vst.msk [vmem:[#allocation4 + $0x120] sm:$0xff] %vm396_vm2, %v28196_v1  ;;  %402 = vst.msk [vmem:[#allocation5 + $0x100] sm:$0xff] %vm396_vm2, %v28196_v1 }
 0x4a0   : > { %20495 = vmatmul.mubr.msk.f32.gmra.mrb[32].mxu1 %vm390_vm1, %v24699_v44  ;;  %403 = vst.msk [vmem:[#allocation5 + $0x108] sm:$0xff] %vm396_vm2, %v28196_v1  ;;  %404 = vst.msk [vmem:[#allocation5 + $0x110] sm:$0xff] %vm396_vm2, %v28196_v1  ;;  %v6681_v44 = vld [vmem:[#allocation3 + $0x29] sm:$0xff] }
 0x4a1   : > { %20497 = vmatprep.mubr.msk.f32.mxu1 %vm390_vm1, %v24703_v45  ;;  %405 = vst.msk [vmem:[#allocation5 + $0x118] sm:$0xff] %vm396_vm2, %v28196_v1  ;;  %406 = vst.msk [vmem:[#allocation5 + $0x120] sm:$0xff] %vm396_vm2, %v28196_v1  ;;  %v6682_v45 = vld [vmem:[#allocation3 + $0x31] sm:$0xff]  ;;  %v17649_v1 = vld [vmem:[%s27788_s5 + $0xc8] sm:$0xff] }
 0x4a4   : > { %20498 = vmatmul.mubr.msk.f32.gmra.mrb[34].mxu1 %vm390_vm1, %v24707_v46  ;;  %v6683_v46 = vld [vmem:[#allocation3 + $0x39] sm:$0xff] }
 0x4a5   : > { %20500 = vmatprep.mubr.msk.f32.mxu1 %vm390_vm1, %v24711_v47  ;;  %v17498_v47 = vld [vmem:[%s27786_s3 + $0x160] sm:$0xff] }
 0x4a8   : > { %20501 = vmatmul.mubr.msk.f32.gmra.mrb[36].mxu1 %vm390_vm1, %v24715_v40  ;;  %v6684_v40 = vld [vmem:[#allocation3 + $0x41] sm:$0xff] }
 0x4a9   : > { %20503 = vmatprep.mubr.msk.f32.mxu1 %vm390_vm1, %v24719_v42  ;;  %v6685_v42 = vld [vmem:[#allocation3 + $0x49] sm:$0xff] }
 0x4ac   : > { %20504 = vmatmul.mubr.msk.f32.gmra.mrb[38].mxu1 %vm390_vm1, %v24723_v48  ;;  %v6686_v48 = vld [vmem:[#allocation3 + $0x51] sm:$0xff] }
 0x4ad   : > { %20506 = vmatprep.mubr.msk.f32.mxu1 %vm390_vm1, %v24727_v49  ;;  %v6687_v49 = vld [vmem:[#allocation3 + $0x59] sm:$0xff] }
 0x4b0   : > { %20507 = vmatmul.mubr.msk.f32.gmra.mrb[40].mxu1 %vm390_vm1, %v24731_v50  ;;  %v6688_v50 = vld [vmem:[#allocation3 + $0x61] sm:$0xff] }
 0x4b1   : > { %20509 = vmatprep.mubr.msk.f32.mxu1 %vm390_vm1, %v24735_v53  ;;  %v6689_v53 = vld [vmem:[#allocation3 + $0x69] sm:$0xff] }
 0x4b4   : > { %20510 = vmatmul.mubr.msk.f32.gmra.mrb[42].mxu1 %vm390_vm1, %v24739_v52  ;;  %v6690_v52 = vld [vmem:[#allocation3 + $0x71] sm:$0xff] }
 0x4b5   : > { %20512 = vmatprep.mubr.msk.f32.mxu1 %vm390_vm1, %v24743_v58  ;;  %v6691_v58 = vld [vmem:[#allocation3 + $0x79] sm:$0xff] }
 0x4b8   : > { %20513 = vmatmul.mubr.msk.f32.gmra.mrb[44].mxu1 %vm390_vm1, %v24747_v7  ;;  %v6692_v7 = vld [vmem:[#allocation3 + $0x81] sm:$0xff] }
 0x4b9   : > { %20515 = vmatprep.mubr.msk.f32.mxu1 %vm390_vm1, %v24751_v39  ;;  %v6693_v39 = vld [vmem:[#allocation3 + $0x89] sm:$0xff] }
 0x4bc   : > { %20516 = vmatmul.mubr.msk.f32.gmra.mrb[46].mxu1 %vm390_vm1, %v24755_v41  ;;  %v6694_v41 = vld [vmem:[#allocation3 + $0x91] sm:$0xff] }
 0x4bd   : > { %20518 = vmatprep.mubr.msk.f32.mxu1 %vm390_vm1, %v24759_v33  ;;  %v6695_v33 = vld [vmem:[#allocation3 + $0x99] sm:$0xff] }
 0x4c0   : > { %20519 = vmatmul.mubr.msk.f32.gmra.mrb[48].mxu1 %vm390_vm1, %v24763_v10  ;;  %v6696_v10 = vld [vmem:[#allocation3 + $0xa1] sm:$0xff] }
 0x4c1   : > { %20521 = vmatprep.mubr.msk.f32.mxu1 %vm390_vm1, %v24767_v35  ;;  %v6697_v35 = vld [vmem:[#allocation3 + $0xa9] sm:$0xff] }
 0x4c4   : > { %20522 = vmatmul.mubr.msk.f32.gmra.mrb[50].mxu1 %vm390_vm1, %v24771_v3  ;;  %v6698_v3 = vld [vmem:[#allocation3 + $0xb1] sm:$0xff] }
 0x4c5   : > { %20524 = vmatprep.mubr.msk.f32.mxu1 %vm390_vm1, %v24986_v9  ;;  %v6699_v9 = vld [vmem:[#allocation3 + $0xb9] sm:$0xff] }
 0x4c8   : > { %20525 = vmatmul.mubr.msk.f32.gmra.mrb[52].mxu1 %vm390_vm1, %v24992_v29  ;;  %v6700_v29 = vld [vmem:[#allocation3 + $0xc1] sm:$0xff] }
 0x4c9   : > { %20527 = vmatprep.mubr.msk.f32.mxu1 %vm390_vm1, %v6319_v60  ;;  %v6711_v60 = vld [vmem:[#allocation3 + $0x119] sm:$0xff] }
 0x4cc   : > { %20528 = vmatmul.mubr.msk.f32.gmra.mrb[54].mxu1 %vm390_vm1, %v6320_v62 }
 0x4cd   : > { %20540 = vmatprep.mubr.msk.f32.mxu1 %vm390_vm1, %v6680_v37 }
 0x4d0   : > { %20541 = vmatmul.mubr.msk.f32.vlgmr.msra.gmra.mrb[24].mxu1 %vm390_vm1, %v6681_v44 }
 0x4d1   : > { %21937 = vmatpush3.bf16.msra.mxu1 %v21934_v59  ;;  %20543 = vmatprep.mubr.msk.f32.mxu1 %vm390_vm1, %v6682_v45  ;;  %v6710_v59 = vld [vmem:[#allocation3 + $0x111] sm:$0xff] }
 0x4d2   : > { %21939 = vmatprep.subr.bf16.mxu1 %v21938_v5 }
 0x4d4   : > { %20544 = vmatmul.mubr.msk.f32.gmra.mrb[26].mxu1 %vm390_vm1, %v6683_v46 }
 0x4d5   : > { %20546 = vmatprep.mubr.msk.f32.mxu1 %vm390_vm1, %v6684_v40  ;;  %21941 = vmatpush3.bf16.msra.mxu1 %v21938_v5 }
 0x4d6   : > { %20596 = vmatprep.subr.mxu1 %v17498_v47 }
 0x4d8   : > { %20547 = vmatmul.mubr.msk.f32.gmra.mrb[28].mxu1 %vm390_vm1, %v6685_v42 }
 0x4d9   : > { %20549 = vmatprep.mubr.msk.f32.mxu1 %vm390_vm1, %v6686_v48  ;;  %20597 = vmatpush3.msra.mxu1 %v17498_v47 }
 0x4dc   : > { %20550 = vmatmul.mubr.msk.f32.gmra.mrb[30].mxu1 %vm390_vm1, %v6687_v49 }
 0x4dd   : > { %20552 = vmatprep.mubr.msk.f32.mxu1 %vm390_vm1, %v6688_v50 }
 0x4e0   : > { %20553 = vmatmul.mubr.msk.f32.gmra.mrb[32].mxu1 %vm390_vm1, %v6689_v53 }
 0x4e1   : > { %20555 = vmatprep.mubr.msk.f32.mxu1 %vm390_vm1, %v6690_v52 }
 0x4e4   : > { %20556 = vmatmul.mubr.msk.f32.gmra.mrb[34].mxu1 %vm390_vm1, %v6691_v58 }
 0x4e5   : > { %20558 = vmatprep.mubr.msk.f32.mxu1 %vm390_vm1, %v6692_v7 }
 0x4e8   : > { %20559 = vmatmul.mubr.msk.f32.gmra.mrb[36].mxu1 %vm390_vm1, %v6693_v39 }
 0x4e9   : > { %20561 = vmatprep.mubr.msk.f32.mxu1 %vm390_vm1, %v6694_v41 }
 0x4ec   : > { %20562 = vmatmul.mubr.msk.f32.gmra.mrb[38].mxu1 %vm390_vm1, %v6695_v33 }
 0x4ed   : > { %20564 = vmatprep.mubr.msk.f32.mxu1 %vm390_vm1, %v6696_v10 }
 0x4f0   : > { %20565 = vmatmul.mubr.msk.f32.gmra.mrb[40].mxu1 %vm390_vm1, %v6697_v35 }
 0x4f1   : > { %20567 = vmatprep.mubr.msk.f32.mxu1 %vm390_vm1, %v6698_v3 }
 0x4f4   : > { %20568 = vmatmul.mubr.msk.f32.gmra.mrb[42].mxu1 %vm390_vm1, %v6699_v9 }
 0x4f5   : > { %20570 = vmatprep.mubr.msk.f32.mxu1 %vm390_vm1, %v6700_v29 }
 0x4f8   : > { %20571 = vmatmul.mubr.msk.f32.gmra.mrb[44].mxu1 %vm390_vm1, %v6701_v8 }
 0x4f9   : > { %20573 = vmatprep.mubr.msk.f32.mxu1 %vm390_vm1, %v6702_v14 }
 0x4fc   : > { %20574 = vmatmul.mubr.msk.f32.gmra.mrb[46].mxu1 %vm390_vm1, %v6703_v16 }
 0x4fd   : > { %20576 = vmatprep.mubr.msk.f32.mxu1 %vm390_vm1, %v6704_v17 }
 0x500   : > { %20577 = vmatmul.mubr.msk.f32.gmra.mrb[48].mxu1 %vm390_vm1, %v6705_v18 }
 0x501   : > { %20579 = vmatprep.mubr.msk.f32.mxu1 %vm390_vm1, %v6706_v19 }
 0x504   : > { %20580 = vmatmul.mubr.msk.f32.gmra.mrb[50].mxu1 %vm390_vm1, %v6707_v30 }
 0x505   : > { %20582 = vmatprep.mubr.msk.f32.mxu1 %vm390_vm1, %v25069_v11  ;;  %v7101_v11 = vld [vmem:[#allocation3 + $0x112] sm:$0xff] }
 0x508   : > { %20583 = vmatmul.mubr.msk.f32.gmra.mrb[52].mxu1 %vm390_vm1, %v25075_v13  ;;  %v28200_v13 = vld [vmem:[#allocation29_spill] sm:$0xff] }
 0x509   : > { %20585 = vmatprep.mubr.msk.f32.mxu1 %vm390_vm1, %v6710_v59 }
 0x50c   : > { %20586 = vmatmul.mubr.msk.f32.gmra.mrb[54].mxu1 %vm390_vm1, %v6711_v60 }
 0x50d   : > { %20598 = vmatprep.mubr.msk.f32.mxu1 %vm390_vm1, %v24801_v61  ;;  %v28198_v61 = vld [vmem:[#allocation27_spill] sm:$0xff] }
 0x510   : > { %20599 = vmatmul.mubr.msk.f32.vlgmr.msra.gmra.mrb[24].mxu1 %vm390_vm1, %v24805_v31  ;;  %v28199_v31 = vld [vmem:[#allocation28_spill] sm:$0xff] }
 0x511   : > { %20601 = vmatprep.mubr.msk.f32.mxu1 %vm390_vm1, %v24809_v38  ;;  %v28197_v38 = vld [vmem:[#allocation48_spill] sm:$0xff] }
 0x514   : > { %20602 = vmatmul.mubr.msk.f32.gmra.mrb[26].mxu1 %vm390_vm1, %v28169_v32  ;;  %v7102_v32 = vld [vmem:[#allocation3 + $0x11a] sm:$0xff] }
 0x515   : > { %20604 = vmatprep.mubr.msk.f32.mxu1 %vm390_vm1, %v28170_v20  ;;  %v17532_v20 = vld [vmem:[%s27788_s5 + $0x38] sm:$0xff] }
 0x518   : > { %20605 = vmatmul.mubr.msk.f32.gmra.mrb[28].mxu1 %vm390_vm1, %v28171_v22  ;;  %v17533_v22 = vld [vmem:[%s27788_s5 + $0x40] sm:$0xff] }
 0x519   : > { %20607 = vmatprep.mubr.msk.f32.mxu1 %vm390_vm1, %v28172_v23  ;;  %v21942_v23 = vpack.c.bf16 %v17533_v22, %v17532_v20 }
 0x51b   : > { %21943 = vmatprep.subr.bf16.mxu0 %v21942_v23 }
 0x51c   : > { %20608 = vmatmul.mubr.msk.f32.gmra.mrb[30].mxu1 %vm390_vm1, %v28173_v24  ;;  %21945 = vmatpush3.bf16.msra.mxu0 %v21942_v23  ;;  %v17534_v24 = vld [vmem:[%s27788_s5 + $0x48] sm:$0xff] }
 0x51d   : > { %20610 = vmatprep.mubr.msk.f32.mxu1 %vm390_vm1, %v28174_v25  ;;  %v17535_v25 = vld [vmem:[%s27788_s5 + $0x50] sm:$0xff] }
 0x520   : > { %20611 = vmatmul.mubr.msk.f32.gmra.mrb[32].mxu1 %vm390_vm1, %v28175_v26  ;;  %v21946_v26 = vpack.c.bf16 %v17535_v25, %v17534_v24 }
 0x521   : > { %20613 = vmatprep.mubr.msk.f32.mxu1 %vm390_vm1, %v28176_v63  ;;  %v17536_v63 = vld [vmem:[%s27788_s5 + $0x58] sm:$0xff] }
 0x522   : > { %21947 = vmatprep.subr.bf16.mxu0 %v21946_v26 }
 0x523   : > { %21949 = vmatpush3.bf16.msra.mxu0 %v21946_v26 }
 0x524   : > { %20614 = vmatmul.mubr.msk.f32.gmra.mrb[34].mxu1 %vm390_vm1, %v28177_v28  ;;  %v17537_v28 = vld [vmem:[%s27788_s5 + $0x60] sm:$0xff] }
 0x525   : > { %20616 = vmatprep.mubr.msk.f32.mxu1 %vm390_vm1, %v28178_v21  ;;  %v21950_v21 = vpack.c.bf16 %v17537_v28, %v17536_v63 }
 0x527   : > { %21951 = vmatprep.subr.bf16.mxu0 %v21950_v21 }
 0x528   : > { %20617 = vmatmul.mubr.msk.f32.gmra.mrb[36].mxu1 %vm390_vm1, %v28179_v27  ;;  %21953 = vmatpush3.bf16.msra.mxu0 %v21950_v21  ;;  %v17538_v27 = vld [vmem:[%s27788_s5 + $0x68] sm:$0x3] }
 0x529   : > { %20619 = vmatprep.mubr.msk.f32.mxu1 %vm390_vm1, %v28180_v43  ;;  %20658 = vmatprep.subr.msk.mxu0 %vm8136_vm3, %v17538_v27  ;;  %v7993_v43 = vld [vmem:[%s27788_s5] sm:$0xff] }
 0x52c   : > { %20620 = vmatmul.mubr.msk.f32.gmra.mrb[38].mxu1 %vm390_vm1, %v28181_v34  ;;  %20659 = vmatpush3.msk.msra.mxu0 %vm8136_vm3, %v17538_v27  ;;  %v7994_v34 = vld [vmem:[%s27788_s5 + $0x8] sm:$0xff]  ;;  %v7995_v27 = vld [vmem:[%s27788_s5 + $0x10] sm:$0xff] }
 0x52d   : > { %20622 = vmatprep.mubr.msk.f32.mxu1 %vm390_vm1, %v28182_v51  ;;  %v25393_v51 = vpack.c.bf16 %v7994_v34, %v7993_v43  ;;  %v7996_v43 = vld [vmem:[%s27788_s5 + $0x18] sm:$0xff] }
 0x52f   : > { %21955 = vmatprep.subr.bf16.mxu0 %v25393_v51 }
 0x530   : > { %20623 = vmatmul.mubr.msk.f32.gmra.mrb[40].mxu1 %vm390_vm1, %v28183_v54  ;;  %v25399_v54 = vld [vmem:[%s27787_s4] ss:$0 sm:$0xff] }
 0x531   : > { %20625 = vmatprep.mubr.msk.f32.mxu1 %vm390_vm1, %v28184_v6 }
 0x534   : > { %20626 = vmatmul.mubr.msk.f32.gmra.mrb[42].mxu1 %vm390_vm1, %v28185_v55 }
 0x535   : > { %20628 = vmatprep.mubr.msk.f32.mxu1 %vm390_vm1, %v28186_v56 }
 0x538   : > { %20629 = vmatmul.mubr.msk.f32.gmra.mrb[44].mxu1 %vm390_vm1, %v28187_v57 }
 0x539   : > { %20631 = vmatprep.mubr.msk.f32.mxu1 %vm390_vm1, %v28188_v12 }
 0x53c   : > { %20632 = vmatmul.mubr.msk.f32.gmra.mrb[46].mxu1 %vm390_vm1, %v28189_v2 }
 0x53d   : > { %20634 = vmatprep.mubr.msk.f32.mxu1 %vm390_vm1, %v28190_v4 }
 0x540   : > { %20635 = vmatmul.mubr.msk.f32.gmra.mrb[48].mxu1 %vm390_vm1, %v28197_v38 }
 0x541   : > { %20637 = vmatprep.mubr.msk.f32.mxu1 %vm390_vm1, %v28192_v15 }
 0x544   : > { %20638 = vmatmul.mubr.msk.f32.gmra.mrb[50].mxu1 %vm390_vm1, %v28198_v61 }
 0x545   : > { %20640 = vmatprep.mubr.msk.f32.mxu1 %vm390_vm1, %v28199_v31 }
 0x548   : > { %20641 = vmatmul.mubr.msk.f32.gmra.mrb[52].mxu1 %vm390_vm1, %v28200_v13 }
 0x549   : > { %20643 = vmatprep.mubr.msk.f32.mxu1 %vm390_vm1, %v7101_v11 }
 0x54c   : > { %20644 = vmatmul.mubr.msk.f32.gmra.mrb[54].mxu1 %vm390_vm1, %v7102_v32 }
 0x5e3   : > { %v20600_v6 = vpop.f32.mrb[24].mxu1 }
 0x5e4   : > { %v7470_v55 = vadd.f32 %v20600_v6, %v25399_v54  ;;  %v7271_v56 = vpop.f32.mrb[25].mxu1 }
 0x5e5   : > { %v7469_v57 = vadd.f32 %v25399_v54, %v7271_v56 }
 0x5e6   : > { %v7502_v12 = vmax.f32 %v7470_v55, 0.0 }
 0x5e7   : > { %v7501_v2 = vmax.f32 %v7469_v57, 0.0  ;;  %v20603_v4 = vpop.f32.mrb[26].mxu1 }
 0x5e8   : > { %7534 = vst.msk [vmem:[#allocation4 + $0x8] sm:$0xff] %vm396_vm2, %v7502_v12  ;;  %v7472_v15 = vadd.f32 %v20603_v4, %v25399_v54  ;;  %v7281_v62 = vpop.f32.mrb[27].mxu1 }
 0x5e9   : > { %7533 = vst.msk [vmem:[#allocation4] sm:$0xff] %vm396_vm2, %v7501_v2  ;;  %v7471_v0 = vadd.f32 %v25399_v54, %v7281_v62 }
 0x5ea   : > { %v7504_v36 = vmax.f32 %v7472_v15, 0.0 }
 0x5eb   : > { %v7503_v37 = vmax.f32 %v7471_v0, 0.0  ;;  %v20606_v5 = vpop.f32.mrb[28].mxu1 }
 0x5ec   : > { %7536 = vst.msk [vmem:[#allocation4 + $0x18] sm:$0xff] %vm396_vm2, %v7504_v36  ;;  %v7474_v44 = vadd.f32 %v20606_v5, %v25399_v54  ;;  %v7291_v45 = vpop.f32.mrb[29].mxu1 }
 0x5ed   : > { %7535 = vst.msk [vmem:[#allocation4 + $0x10] sm:$0xff] %vm396_vm2, %v7503_v37  ;;  %v7473_v46 = vadd.f32 %v25399_v54, %v7291_v45 }
 0x5ee   : > { %v7506_v47 = vmax.f32 %v7474_v44, 0.0 }
 0x5ef   : > { %v7505_v40 = vmax.f32 %v7473_v46, 0.0  ;;  %v20609_v42 = vpop.f32.mrb[30].mxu1  ;;  %v7566_v41 = vld [vmem:[#allocation4 + $0x8] sm:$0xff] }
 0x5f0   : > { %v7565_v48 = vld [vmem:[#allocation4] sm:$0xff]  ;;  %7538 = vst.msk [vmem:[#allocation4 + $0x28] sm:$0xff] %vm396_vm2, %v7506_v47  ;;  %v7476_v50 = vadd.f32 %v20609_v42, %v25399_v54  ;;  %v7301_v53 = vpop.f32.mrb[31].mxu1 }
 0x5f1   : > { %v7597_v49 = vld [vmem:[#allocation4 + $0x1] sm:$0xff]  ;;  %7537 = vst.msk [vmem:[#allocation4 + $0x20] sm:$0xff] %vm396_vm2, %v7505_v40  ;;  %v7475_v58 = vadd.f32 %v25399_v54, %v7301_v53  ;;  %v25431_v40 = vpack.c.bf16 %v7996_v43, %v7995_v27 }
 0x5f2   : > { %v7629_v52 = vmax.f32 %v7565_v48, %v7597_v49  ;;  %v7661_v7 = vld [vmem:[#allocation4 + $0x2] sm:$0xff]  ;;  %v7508_v39 = vmax.f32 %v7476_v50, 0.0 }
 0x5f3   : > { %v7507_v10 = vmax.f32 %v7475_v58, 0.0  ;;  %v20612_v35 = vpop.f32.mrb[32].mxu1  ;;  %v7568_v38 = vld [vmem:[#allocation4 + $0x18] sm:$0xff] }
 0x5f4   : > { %v7693_v33 = vmax.f32 %v7629_v52, %v7661_v7  ;;  %v7567_v3 = vld [vmem:[#allocation4 + $0x10] sm:$0xff]  ;;  %7540 = vst.msk [vmem:[#allocation4 + $0x38] sm:$0xff] %vm396_vm2, %v7508_v39  ;;  %v7478_v8 = vadd.f32 %v20612_v35, %v25399_v54  ;;  %v7311_v14 = vpop.f32.mrb[33].mxu1 }
 0x5f5   : > { %v7598_v9 = vld [vmem:[#allocation4 + $0x9] sm:$0xff]  ;;  %v7599_v29 = vld [vmem:[#allocation4 + $0x11] sm:$0xff]  ;;  %7539 = vst.msk [vmem:[#allocation4 + $0x30] sm:$0xff] %vm396_vm2, %v7507_v10  ;;  %v7477_v19 = vadd.f32 %v25399_v54, %v7311_v14 }
 0x5f6   : > { %v7630_v16 = vmax.f32 %v7566_v41, %v7598_v9  ;;  %v7631_v17 = vmax.f32 %v7567_v3, %v7599_v29  ;;  %v7727_v18 = vmax.f32 %v7693_v33, %v7567_v3  ;;  %v7662_v30 = vld [vmem:[#allocation4 + $0xa] sm:$0xff]  ;;  %v7663_v59 = vld [vmem:[#allocation4 + $0x12] sm:$0xff]  ;;  %v7510_v60 = vmax.f32 %v7478_v8, 0.0 }
 0x5f7   : > { %v7509_v13 = vmax.f32 %v7477_v19, 0.0  ;;  %v20615_v32 = vpop.f32.mrb[34].mxu1  ;;  %v7570_v12 = vld [vmem:[#allocation4 + $0x28] sm:$0xff] }
 0x5f8   : > { %v7694_v61 = vmax.f32 %v7630_v16, %v7662_v30  ;;  %v7695_v31 = vmax.f32 %v7631_v17, %v7663_v59  ;;  %v7761_v11 = vmax.f32 %v7727_v18, %v7599_v29  ;;  %v7569_v20 = vld [vmem:[#allocation4 + $0x20] sm:$0xff]  ;;  %7542 = vst.msk [vmem:[#allocation4 + $0x48] sm:$0xff] %vm396_vm2, %v7510_v60  ;;  %v7480_v24 = vadd.f32 %v20615_v32, %v25399_v54  ;;  %v7321_v25 = vpop.f32.mrb[35].mxu1 }
 0x5f9   : > { %v7600_v22 = vld [vmem:[#allocation4 + $0x19] sm:$0xff]  ;;  %v7601_v23 = vld [vmem:[#allocation4 + $0x21] sm:$0xff]  ;;  %7541 = vst.msk [vmem:[#allocation4 + $0x40] sm:$0xff] %vm396_vm2, %v7509_v13  ;;  %v7479_v57 = vadd.f32 %v25399_v54, %v7321_v25 }
 0x5fa   : > { %v7795_v26 = vmax.f32 %v7761_v11, %v7663_v59  ;;  %v7632_v63 = vmax.f32 %v7568_v38, %v7600_v22  ;;  %v7633_v28 = vmax.f32 %v7569_v20, %v7601_v23  ;;  %v7728_v21 = vmax.f32 %v7694_v61, %v7568_v38  ;;  %v7664_v34 = vld [vmem:[#allocation4 + $0x1a] sm:$0xff]  ;;  %v7665_v6 = vld [vmem:[#allocation4 + $0x22] sm:$0xff] }
 0x5fb   : > { %v7729_v55 = vmax.f32 %v7695_v31, %v7569_v20  ;;  %v7512_v56 = vmax.f32 %v7480_v24, 0.0  ;;  %v20618_v0 = vpop.f32.mrb[36].mxu1  ;;  %v7511_v45 = vmax.f32 %v7479_v57, 0.0  ;;  %v7572_v10 = vld [vmem:[#allocation4 + $0x38] sm:$0xff] }
 0x5fc   : > { %v7696_v2 = vmax.f32 %v7632_v63, %v7664_v34  ;;  %v7697_v4 = vmax.f32 %v7633_v28, %v7665_v6  ;;  %v7762_v15 = vmax.f32 %v7728_v21, %v7600_v22  ;;  %v7829_v62 = vmax.f32 %v7795_v26, %v7569_v20  ;;  %v7571_v37 = vld [vmem:[#allocation4 + $0x30] sm:$0xff]  ;;  %v7331_v47 = vpop.f32.mrb[37].mxu1 }
 0x5fd   : > { %v7763_v36 = vmax.f32 %v7729_v55, %v7601_v23  ;;  %v7602_v5 = vld [vmem:[#allocation4 + $0x29] sm:$0xff]  ;;  %v7603_v44 = vld [vmem:[#allocation4 + $0x31] sm:$0xff]  ;;  %7544 = vst.msk [vmem:[#allocation4 + $0x58] sm:$0xff] %vm396_vm2, %v7512_v56  ;;  %v7482_v46 = vadd.f32 %v20618_v0, %v25399_v54  ;;  %7543 = vst.msk [vmem:[#allocation4 + $0x50] sm:$0xff] %vm396_vm2, %v7511_v45  ;;  %v7481_v30 = vadd.f32 %v25399_v54, %v7331_v47 }
 0x5fe   : > { %v7730_v42 = vmax.f32 %v7696_v2, %v7570_v12  ;;  %v7796_v48 = vmax.f32 %v7762_v15, %v7664_v34  ;;  %v7863_v49 = vmax.f32 %v7829_v62, %v7601_v23  ;;  %v7634_v50 = vmax.f32 %v7570_v12, %v7602_v5  ;;  %v7666_v58 = vld [vmem:[#allocation4 + $0x2a] sm:$0xff]  ;;  %v7667_v35 = vld [vmem:[#allocation4 + $0x32] sm:$0xff] }
 0x5ff   : > { %v7797_v53 = vmax.f32 %v7763_v36, %v7665_v6  ;;  %v7635_v52 = vmax.f32 %v7571_v37, %v7603_v44  ;;  %v7731_v7 = vmax.f32 %v7697_v4, %v7571_v37  ;;  %v7514_v39 = vmax.f32 %v7482_v46, 0.0  ;;  %v20621_v29 = vpop.f32.mrb[38].mxu1  ;;  %v7574_v27 = vld [vmem:[#allocation4 + $0x48] sm:$0xff] }
 0x600   : > { %v7830_v41 = vmax.f32 %v7796_v48, %v7570_v12  ;;  %v7897_v33 = vmax.f32 %v7863_v49, %v7665_v6  ;;  %v7698_v3 = vmax.f32 %v7634_v50, %v7666_v58  ;;  %v7764_v9 = vmax.f32 %v7730_v42, %v7602_v5  ;;  %v7573_v17 = vld [vmem:[#allocation4 + $0x40] sm:$0xff]  ;;  %v7341_v59 = vpop.f32.mrb[39].mxu1 }
 0x601   : > { %v7699_v8 = vmax.f32 %v7635_v52, %v7667_v35  ;;  %v7765_v14 = vmax.f32 %v7731_v7, %v7603_v44  ;;  %v7831_v16 = vmax.f32 %v7797_v53, %v7571_v37  ;;  %v7604_v18 = vld [vmem:[#allocation4 + $0x39] sm:$0xff]  ;;  %v7605_v19 = vld [vmem:[#allocation4 + $0x41] sm:$0xff]  ;;  %7546 = vst.msk [vmem:[#allocation4 + $0x68] sm:$0xff] %vm396_vm2, %v7514_v39  ;;  %v7513_v15 = vmax.f32 %v7481_v30, 0.0  ;;  %v7997_v30 = vld [vmem:[%s27788_s5 + $0x20] sm:$0xff] }
 0x602   : > { %7929 = vst.msk [vmem:[#allocation5] sm:$0xff] %vm396_vm2, %v7897_v33  ;;  %v7798_v60 = vmax.f32 %v7764_v9, %v7666_v58  ;;  %v7864_v38 = vmax.f32 %v7830_v41, %v7602_v5  ;;  %v7636_v61 = vmax.f32 %v7572_v10, %v7604_v18  ;;  %v7637_v31 = vmax.f32 %v7573_v17, %v7605_v19  ;;  %v7668_v32 = vld [vmem:[#allocation4 + $0x3a] sm:$0xff]  ;;  %v7669_v20 = vld [vmem:[#allocation4 + $0x42] sm:$0xff] }
 0x603   : > { %v7799_v11 = vmax.f32 %v7765_v14, %v7667_v35  ;;  %v7865_v13 = vmax.f32 %v7831_v16, %v7603_v44  ;;  %v7732_v22 = vmax.f32 %v7698_v3, %v7572_v10  ;;  %v7733_v23 = vmax.f32 %v7699_v8, %v7573_v17  ;;  %v20624_v28 = vpop.f32.mrb[40].mxu1  ;;  %7545 = vst.msk [vmem:[#allocation4 + $0x60] sm:$0xff] %vm396_vm2, %v7513_v15 }
 0x604   : > { %v7898_v24 = vmax.f32 %v7864_v38, %v7666_v58  ;;  %v7700_v25 = vmax.f32 %v7636_v61, %v7668_v32  ;;  %v7701_v26 = vmax.f32 %v7637_v31, %v7669_v20  ;;  %v7832_v63 = vmax.f32 %v7798_v60, %v7572_v10  ;;  %v7351_v55 = vpop.f32.mrb[41].mxu1  ;;  %v7575_v57 = vld [vmem:[#allocation4 + $0x50] sm:$0xff]  ;;  %v7576_v39 = vld [vmem:[#allocation4 + $0x58] sm:$0xff] }
 0x605   : > { %v7899_v21 = vmax.f32 %v7865_v13, %v7667_v35  ;;  %v7766_v43 = vmax.f32 %v7732_v22, %v7604_v18  ;;  %v7767_v34 = vmax.f32 %v7733_v23, %v7605_v19  ;;  %v7833_v6 = vmax.f32 %v7799_v11, %v7573_v17  ;;  %v7606_v12 = vld [vmem:[#allocation4 + $0x49] sm:$0xff]  ;;  %v7607_v2 = vld [vmem:[#allocation4 + $0x51] sm:$0xff] }
 0x606   : > { %7930 = vst.msk [vmem:[#allocation5 + $0x8] sm:$0xff] %vm396_vm2, %v7898_v24  ;;  %v7866_v56 = vmax.f32 %v7832_v63, %v7604_v18  ;;  %v7734_v4 = vmax.f32 %v7700_v25, %v7574_v27  ;;  %v7484_v62 = vadd.f32 %v20621_v29, %v25399_v54  ;;  %v7638_v5 = vmax.f32 %v7574_v27, %v7606_v12  ;;  %v7670_v46 = vld [vmem:[#allocation4 + $0x4a] sm:$0xff]  ;;  %v7671_v50 = vld [vmem:[#allocation4 + $0x52] sm:$0xff] }
 0x607   : > { %7931 = vst.msk [vmem:[#allocation5 + $0x10] sm:$0xff] %vm396_vm2, %v7899_v21  ;;  %v7800_v0 = vmax.f32 %v7766_v43, %v7668_v32  ;;  %v7801_v36 = vmax.f32 %v7767_v34, %v7669_v20  ;;  %v7867_v37 = vmax.f32 %v7833_v6, %v7605_v19  ;;  %v7639_v45 = vmax.f32 %v7575_v57, %v7607_v2  ;;  %v20627_v48 = vpop.f32.mrb[42].mxu1  ;;  %v7998_v60 = vld [vmem:[%s27788_s5 + $0x28] sm:$0xff] }
 0x608   : > { %v7900_v44 = vmax.f32 %v7866_v56, %v7668_v32  ;;  %v7735_v47 = vmax.f32 %v7701_v26, %v7575_v57  ;;  %v7768_v42 = vmax.f32 %v7734_v4, %v7606_v12  ;;  %v7702_v53 = vmax.f32 %v7638_v5, %v7670_v46  ;;  %v7361_v7 = vpop.f32.mrb[43].mxu1 }
 0x609   : > { %v7901_v49 = vmax.f32 %v7867_v37, %v7669_v20  ;;  %v7834_v52 = vmax.f32 %v7800_v0, %v7574_v27  ;;  %v7835_v58 = vmax.f32 %v7801_v36, %v7575_v57  ;;  %v7703_v41 = vmax.f32 %v7639_v45, %v7671_v50 }
 0x60a   : > { %7932 = vst.msk [vmem:[#allocation5 + $0x18] sm:$0xff] %vm396_vm2, %v7900_v44  ;;  %v7769_v33 = vmax.f32 %v7735_v47, %v7607_v2  ;;  %v7802_v10 = vmax.f32 %v7768_v42, %v7670_v46  ;;  %v7516_v35 = vmax.f32 %v7484_v62, 0.0  ;;  %v7736_v29 = vmax.f32 %v7702_v53, %v7576_v39  ;;  %v7577_v25 = vld [vmem:[#allocation4 + $0x60] sm:$0xff]  ;;  %v17606_v53 = vld [vmem:[%s27788_s5 + $0x78] sm:$0xff] }
 0x60b   : > { %7933 = vst.msk [vmem:[#allocation5 + $0x20] sm:$0xff] %vm396_vm2, %v7901_v49  ;;  %v7868_v3 = vmax.f32 %v7834_v52, %v7606_v12  ;;  %v7869_v9 = vmax.f32 %v7835_v58, %v7607_v2  ;;  %v7483_v8 = vadd.f32 %v25399_v54, %v7341_v59  ;;  %v7486_v17 = vadd.f32 %v20624_v28, %v25399_v54  ;;  %v20630_v19 = vpop.f32.mrb[44].mxu1  ;;  %v7608_v26 = vld [vmem:[#allocation4 + $0x59] sm:$0xff]  ;;  %v7609_v63 = vld [vmem:[#allocation4 + $0x61] sm:$0xff] }
 0x60c   : > { %v7803_v14 = vmax.f32 %v7769_v33, %v7671_v50  ;;  %v7836_v16 = vmax.f32 %v7802_v10, %v7576_v39  ;;  %7548 = vst.msk [vmem:[#allocation4 + $0x78] sm:$0xff] %vm396_vm2, %v7516_v35  ;;  %v7485_v18 = vadd.f32 %v25399_v54, %v7351_v55  ;;  %v7488_v31 = vadd.f32 %v20627_v48, %v25399_v54  ;;  %v7371_v11 = vpop.f32.mrb[45].mxu1  ;;  %v7672_v57 = vld [vmem:[#allocation4 + $0x5a] sm:$0xff]  ;;  %v7673_v12 = vld [vmem:[#allocation4 + $0x62] sm:$0xff] }
 0x60d   : > { %v7902_v38 = vmax.f32 %v7868_v3, %v7670_v46  ;;  %v7903_v61 = vmax.f32 %v7869_v9, %v7671_v50  ;;  %v7515_v59 = vmax.f32 %v7483_v8, 0.0  ;;  %v8000_v13 = vld [vmem:[#allocation5 + $0x1] sm:$0xff]  ;;  %v7518_v32 = vmax.f32 %v7486_v17, 0.0  ;;  %v17605_v50 = vld [vmem:[%s27788_s5 + $0x70] sm:$0xff] }
 0x60e   : > { %v7517_v20 = vmax.f32 %v7485_v18, 0.0  ;;  %v7487_v22 = vadd.f32 %v25399_v54, %v7361_v7  ;;  %v7490_v23 = vadd.f32 %v20630_v19, %v25399_v54  ;;  %20660 = vmatprep.mubr.msk.f32.mxu0 %vm396_vm2, %v8000_v13  ;;  %v8001_v24 = vld [vmem:[#allocation5 + $0x9] sm:$0xff]  ;;  %v7520_v28 = vmax.f32 %v7488_v31, 0.0  ;;  %v7578_v46 = vld [vmem:[#allocation4 + $0x68] sm:$0xff]  ;;  %v7999_v9 = vld [vmem:[%s27788_s5 + $0x30] sm:$0x3] }
 0x60f   : > { %7934 = vst.msk [vmem:[#allocation5 + $0x28] sm:$0xff] %vm396_vm2, %v7902_v38  ;;  %7935 = vst.msk [vmem:[#allocation5 + $0x30] sm:$0xff] %vm396_vm2, %v7903_v61  ;;  %v7489_v21 = vadd.f32 %v25399_v54, %v7371_v11  ;;  %20661 = vmatmul.mubr.msk.f32.vlgmr.msra.gmra.mrb[32].mxu0 %vm396_vm2, %v8001_v24  ;;  %v25462_v27 = vpack.c.bf16 %v7998_v60, %v7997_v30  ;;  %v7640_v43 = vmax.f32 %v7576_v39, %v7608_v26  ;;  %v20633_v56 = vpop.f32.mrb[46].mxu1 }
 0x610   : > { %7547 = vst.msk [vmem:[#allocation4 + $0x70] sm:$0xff] %vm396_vm2, %v7515_v59  ;;  %v7641_v34 = vmax.f32 %v7577_v25, %v7609_v63  ;;  %v7737_v6 = vmax.f32 %v7703_v41, %v7577_v25  ;;  %v7770_v55 = vmax.f32 %v7736_v29, %v7608_v26  ;;  %7550 = vst.msk [vmem:[#allocation4 + $0x88] sm:$0xff] %vm396_vm2, %v7518_v32  ;;  %21957 = vmatpush3.bf16.msra.mxu0 %v25393_v51  ;;  %v7381_v0 = vpop.f32.mrb[47].mxu1 }
 0x611   : > { %7549 = vst.msk [vmem:[#allocation4 + $0x80] sm:$0xff] %vm396_vm2, %v7517_v20  ;;  %v7837_v2 = vmax.f32 %v7803_v14, %v7577_v25  ;;  %v7870_v4 = vmax.f32 %v7836_v16, %v7608_v26  ;;  %7552 = vst.msk [vmem:[#allocation4 + $0x98] sm:$0xff] %vm396_vm2, %v7520_v28  ;;  %v7519_v15 = vmax.f32 %v7487_v22, 0.0  ;;  %v7522_v62 = vmax.f32 %v7490_v23, 0.0  ;;  %v8002_v36 = vld [vmem:[#allocation5 + $0x11] sm:$0xff]  ;;  %21959 = vmatprep.subr.bf16.mxu0 %v25431_v40 }
 0x612   : > { %v7704_v37 = vmax.f32 %v7640_v43, %v7672_v57  ;;  %v7705_v5 = vmax.f32 %v7641_v34, %v7673_v12  ;;  %v7771_v44 = vmax.f32 %v7737_v6, %v7609_v63  ;;  %v7804_v45 = vmax.f32 %v7770_v55, %v7672_v57  ;;  %20663 = vmatprep.mubr.msk.f32.mxu0 %vm396_vm2, %v8002_v36  ;;  %v8003_v51 = vld [vmem:[#allocation5 + $0x19] sm:$0xff] }
 0x613   : > { %v7871_v47 = vmax.f32 %v7837_v2, %v7609_v63  ;;  %v7904_v42 = vmax.f32 %v7870_v4, %v7672_v57  ;;  %7551 = vst.msk [vmem:[#allocation4 + $0x90] sm:$0xff] %vm396_vm2, %v7519_v15  ;;  %7554 = vst.msk [vmem:[#allocation4 + $0xa8] sm:$0xff] %vm396_vm2, %v7522_v62  ;;  %v7521_v48 = vmax.f32 %v7489_v21, 0.0  ;;  %v7492_v49 = vadd.f32 %v20633_v56, %v25399_v54  ;;  %v20636_v41 = vpop.f32.mrb[48].mxu1  ;;  %v7580_v24 = vld [vmem:[#allocation4 + $0x78] sm:$0xff] }
 0x614   : > { %20664 = vmatmul.mubr.msk.f32.gmra.mrb[34].mxu0 %vm396_vm2, %v8003_v51  ;;  %v7805_v52 = vmax.f32 %v7771_v44, %v7673_v12  ;;  %v7738_v58 = vmax.f32 %v7704_v37, %v7578_v46  ;;  %v7838_v7 = vmax.f32 %v7804_v45, %v7578_v46  ;;  %v7491_v39 = vadd.f32 %v25399_v54, %v7381_v0  ;;  %v7391_v3 = vpop.f32.mrb[49].mxu1 }
 0x615   : > { %21961 = vmatpush3.bf16.msra.mxu0 %v25431_v40  ;;  %v7905_v33 = vmax.f32 %v7871_v47, %v7673_v12  ;;  %7936 = vst.msk [vmem:[#allocation5 + $0x38] sm:$0xff] %vm396_vm2, %v7904_v42  ;;  %7553 = vst.msk [vmem:[#allocation4 + $0xa0] sm:$0xff] %vm396_vm2, %v7521_v48  ;;  %v7524_v10 = vmax.f32 %v7492_v49, 0.0  ;;  %v7494_v35 = vadd.f32 %v20636_v41, %v25399_v54 }
 0x616   : > { %21963 = vmatprep.subr.bf16.mxu0 %v25462_v27  ;;  %v7523_v16 = vmax.f32 %v7491_v39, 0.0  ;;  %v7493_v40 = vadd.f32 %v25399_v54, %v7391_v3  ;;  %v25490_v17 = vpack.c.bf16 %v17606_v53, %v17605_v50 }
 0x617   : > { %v7579_v29 = vld [vmem:[#allocation4 + $0x70] sm:$0xff]  ;;  %7937 = vst.msk [vmem:[#allocation5 + $0x40] sm:$0xff] %vm396_vm2, %v7905_v33  ;;  %7556 = vst.msk [vmem:[#allocation4 + $0xb8] sm:$0xff] %vm396_vm2, %v7524_v10  ;;  %v7526_v20 = vmax.f32 %v7494_v35, 0.0  ;;  %v25497_v23 = vpop.f32.mrb[50].mxu1  ;;  %v7582_v6 = vld [vmem:[#allocation4 + $0x88] sm:$0xff] }
 0x618   : > { %v7610_v8 = vld [vmem:[#allocation4 + $0x69] sm:$0xff]  ;;  %v7611_v14 = vld [vmem:[#allocation4 + $0x71] sm:$0xff]  ;;  %v7739_v38 = vmax.f32 %v7705_v5, %v7579_v29  ;;  %v7839_v59 = vmax.f32 %v7805_v52, %v7579_v29  ;;  %v7581_v11 = vld [vmem:[#allocation4 + $0x80] sm:$0xff]  ;;  %7555 = vst.msk [vmem:[#allocation4 + $0xb0] sm:$0xff] %vm396_vm2, %v7523_v16  ;;  %v7525_v22 = vmax.f32 %v7493_v40, 0.0  ;;  %v25500_v21 = vpop.f32.mrb[51].mxu1 }
 0x619   : > { %v7642_v18 = vmax.f32 %v7578_v46, %v7610_v8  ;;  %v7643_v19 = vmax.f32 %v7579_v29, %v7611_v14  ;;  %v7674_v30 = vld [vmem:[#allocation4 + $0x6a] sm:$0xff]  ;;  %v7675_v60 = vld [vmem:[#allocation4 + $0x72] sm:$0xff]  ;;  %v7772_v61 = vmax.f32 %v7738_v58, %v7610_v8  ;;  %v7872_v31 = vmax.f32 %v7838_v7, %v7610_v8  ;;  %v25494_v32 = vld [vmem:[#allocation4 + $0x81] sm:$0xff]  ;;  %21965 = vmatpush3.bf16.msra.mxu0 %v25462_v27 }
 0x61a   : > { %v7612_v13 = vld [vmem:[#allocation4 + $0x79] sm:$0xff]  ;;  %v7773_v63 = vmax.f32 %v7739_v38, %v7611_v14  ;;  %20720 = vmatprep.subr.msk.mxu0 %vm8136_vm3, %v7999_v9  ;;  %v7873_v43 = vmax.f32 %v7839_v59, %v7611_v14  ;;  %v7645_v56 = vmax.f32 %v7581_v11, %v25494_v32  ;;  %v25504_v12 = vld [vmem:[#allocation4 + $0x89] sm:$0xff]  ;;  %7558 = vst.msk [vmem:[#allocation4 + $0xc8] sm:$0xff] %vm396_vm2, %v7526_v20  ;;  %7557 = vst.msk [vmem:[#allocation4 + $0xc0] sm:$0xff] %vm396_vm2, %v7525_v22 }
 0x61b   : > { %v7706_v25 = vmax.f32 %v7642_v18, %v7674_v30  ;;  %v7707_v26 = vmax.f32 %v7643_v19, %v7675_v60  ;;  %v7806_v28 = vmax.f32 %v7772_v61, %v7674_v30  ;;  %v7906_v34 = vmax.f32 %v7872_v31, %v7674_v30  ;;  %v7676_v57 = vld [vmem:[#allocation4 + $0x7a] sm:$0xff]  ;;  %v7677_v2 = vld [vmem:[#allocation4 + $0x82] sm:$0xff]  ;;  %v7583_v0 = vld [vmem:[#allocation4 + $0x90] sm:$0xff]  ;;  %v25514_v46 = vpop.f32.mrb[52].mxu1 }
 0x61c   : > { %v7644_v55 = vmax.f32 %v7580_v24, %v7612_v13  ;;  %v7807_v27 = vmax.f32 %v7773_v63, %v7675_v60  ;;  %v25508_v36 = vld [vmem:[#allocation4 + $0x91] sm:$0xff]  ;;  %v7907_v37 = vmax.f32 %v7873_v43, %v7675_v60  ;;  %v7709_v44 = vmax.f32 %v7645_v56, %v7677_v2  ;;  %v7585_v50 = vld [vmem:[#allocation4 + $0xa0] sm:$0xff]  ;;  %v8004_v52 = vld [vmem:[#allocation5 + $0x21] sm:$0xff]  ;;  %v25520_v58 = vpop.f32.mrb[53].mxu1 }
 0x61d   : > { %v7740_v4 = vmax.f32 %v7706_v25, %v7580_v24  ;;  %v7741_v15 = vmax.f32 %v7707_v26, %v7581_v11  ;;  %v7840_v62 = vmax.f32 %v7806_v28, %v7580_v24  ;;  %7938 = vst.msk [vmem:[#allocation5 + $0x48] sm:$0xff] %vm396_vm2, %v7906_v34  ;;  %v7646_v45 = vmax.f32 %v7582_v6, %v25504_v12  ;;  %v25512_v51 = vld [vmem:[#allocation4 + $0x8a] sm:$0xff]  ;;  %v25518_v53 = vld [vmem:[#allocation4 + $0x99] sm:$0xff]  ;;  %v25526_v10 = vld [vmem:[#allocation4 + $0xa1] sm:$0xff] }
 0x61e   : > { %v7708_v5 = vmax.f32 %v7644_v55, %v7676_v57  ;;  %20721 = vmatpush3.msk.msra.mxu0 %vm8136_vm3, %v7999_v9  ;;  %v7841_v48 = vmax.f32 %v7807_v27, %v7581_v11  ;;  %7939 = vst.msk [vmem:[#allocation5 + $0x50] sm:$0xff] %vm396_vm2, %v7907_v37  ;;  %v7647_v7 = vmax.f32 %v7583_v0, %v25508_v36  ;;  %v25529_v35 = vld [vmem:[#allocation5 + $0x29] sm:$0xff]  ;;  %v25531_v3 = vld [vmem:[#allocation5 + $0x31] sm:$0xff]  ;;  %v25541_v38 = vld [vmem:[#allocation5 + $0x39] sm:$0xff] }
 0x61f   : > { %v7774_v47 = vmax.f32 %v7740_v4, %v7612_v13  ;;  %v7775_v42 = vmax.f32 %v7741_v15, %v25494_v32  ;;  %v7874_v49 = vmax.f32 %v7840_v62, %v7612_v13  ;;  %21967 = vmatprep.subr.bf16.mxu0 %v25490_v17  ;;  %v7710_v39 = vmax.f32 %v7646_v45, %v25512_v51  ;;  %v7584_v16 = vld [vmem:[#allocation4 + $0x98] sm:$0xff]  ;;  %v25543_v61 = vpop.f32.mrb[54].mxu1  ;;  %v7618_v20 = vld [vmem:[#allocation4 + $0xa9] sm:$0xff] }
 0x620   : > { %v7742_v41 = vmax.f32 %v7708_v5, %v7582_v6  ;;  %v7743_v33 = vmax.f32 %v7709_v44, %v7583_v0  ;;  %20666 = vmatprep.mubr.msk.f32.mxu0 %vm396_vm2, %v8004_v52  ;;  %v7875_v8 = vmax.f32 %v7841_v48, %v25494_v32  ;;  %v7679_v40 = vld [vmem:[#allocation4 + $0x92] sm:$0xff]  ;;  %v7648_v60 = vmax.f32 %v7584_v16, %v25518_v53  ;;  %v7680_v32 = vld [vmem:[#allocation4 + $0x9a] sm:$0xff]  ;;  %v25547_v22 = vpop.f32.mrb[55].mxu1  ;;  %v7681_v26 = vld [vmem:[#allocation4 + $0xa2] sm:$0xff] }
 0x621   : > { %v7808_v9 = vmax.f32 %v7774_v47, %v7676_v57  ;;  %v7809_v29 = vmax.f32 %v7775_v42, %v7677_v2  ;;  %v7908_v14 = vmax.f32 %v7874_v49, %v7676_v57  ;;  %20667 = vmatmul.mubr.msk.f32.gmra.mrb[36].mxu0 %vm396_vm2, %v25529_v35  ;;  %v7711_v18 = vmax.f32 %v7647_v7, %v7679_v40  ;;  %v7587_v43 = vld [vmem:[#allocation4 + $0xb0] sm:$0xff]  ;;  %v7586_v56 = vld [vmem:[#allocation4 + $0xa8] sm:$0xff] }
 0x622   : > { %v7776_v19 = vmax.f32 %v7742_v41, %v25504_v12  ;;  %v7777_v30 = vmax.f32 %v7743_v33, %v25508_v36  ;;  %20669 = vmatprep.mubr.msk.f32.mxu0 %vm396_vm2, %v25531_v3  ;;  %v7909_v59 = vmax.f32 %v7875_v8, %v7677_v2  ;;  %v7649_v13 = vmax.f32 %v7585_v50, %v25526_v10  ;;  %v7619_v34 = vld [vmem:[#allocation4 + $0xb1] sm:$0xff] }
 0x623   : > { %7940 = vst.msk [vmem:[#allocation5 + $0x58] sm:$0xff] %vm396_vm2, %v7908_v14  ;;  %v7842_v31 = vmax.f32 %v7808_v9, %v7582_v6  ;;  %v7843_v11 = vmax.f32 %v7809_v29, %v7583_v0  ;;  %v7712_v63 = vmax.f32 %v7648_v60, %v7680_v32  ;;  %v7744_v28 = vmax.f32 %v7710_v39, %v7584_v16  ;;  %v7682_v44 = vld [vmem:[#allocation4 + $0xaa] sm:$0xff]  ;;  %v7683_v52 = vld [vmem:[#allocation4 + $0xb2] sm:$0xff] }
 0x624   : > { %v7810_v24 = vmax.f32 %v7776_v19, %v25512_v51  ;;  %v7811_v25 = vmax.f32 %v7777_v30, %v7679_v40  ;;  %7941 = vst.msk [vmem:[#allocation5 + $0x60] sm:$0xff] %vm396_vm2, %v7909_v59  ;;  %v7713_v57 = vmax.f32 %v7649_v13, %v7681_v26  ;;  %v7745_v27 = vmax.f32 %v7711_v18, %v7585_v50  ;;  %v25555_v2 = vld [vmem:[#allocation5 + $0x41] sm:$0xff] }
 0x625   : > { %v7876_v55 = vmax.f32 %v7842_v31, %v25504_v12  ;;  %v7877_v6 = vmax.f32 %v7843_v11, %v25508_v36  ;;  %20670 = vmatmul.mubr.msk.f32.gmra.mrb[38].mxu0 %vm396_vm2, %v25541_v38  ;;  %v7778_v4 = vmax.f32 %v7744_v28, %v25518_v53  ;;  %v7650_v0 = vmax.f32 %v7586_v56, %v7618_v20  ;;  %v25562_v45 = vld [vmem:[#allocation5 + $0x49] sm:$0xff]  ;;  %v7621_v11 = vld [vmem:[#allocation4 + $0xc1] sm:$0xff] }
 0x626   : > { %v7844_v15 = vmax.f32 %v7810_v24, %v7584_v16  ;;  %v7845_v62 = vmax.f32 %v7811_v25, %v7585_v50  ;;  %20672 = vmatprep.mubr.msk.f32.mxu0 %vm396_vm2, %v25555_v2  ;;  %v7779_v36 = vmax.f32 %v7745_v27, %v25526_v10  ;;  %v7651_v5 = vmax.f32 %v7587_v43, %v7619_v34  ;;  %v7589_v16 = vld [vmem:[#allocation4 + $0xc0] sm:$0xff] }
 0x627   : > { %v7910_v12 = vmax.f32 %v7876_v55, %v25512_v51  ;;  %v7911_v37 = vmax.f32 %v7877_v6, %v7679_v40  ;;  %v7812_v47 = vmax.f32 %v7778_v4, %v7680_v32  ;;  %v7714_v49 = vmax.f32 %v7650_v0, %v7682_v44  ;;  %v7620_v40 = vld [vmem:[#allocation4 + $0xb9] sm:$0xff] }
 0x628   : > { %v7878_v42 = vmax.f32 %v7844_v15, %v25518_v53  ;;  %v7879_v48 = vmax.f32 %v7845_v62, %v25526_v10  ;;  %v7813_v50 = vmax.f32 %v7779_v36, %v7681_v26  ;;  %v7746_v51 = vmax.f32 %v7712_v63, %v7586_v56  ;;  %v7588_v53 = vld [vmem:[#allocation4 + $0xb8] sm:$0xff] }
 0x629   : > { %7942 = vst.msk [vmem:[#allocation5 + $0x68] sm:$0xff] %vm396_vm2, %v7910_v12  ;;  %7943 = vst.msk [vmem:[#allocation5 + $0x70] sm:$0xff] %vm396_vm2, %v7911_v37  ;;  %v7747_v7 = vmax.f32 %v7713_v57, %v7587_v43  ;;  %20673 = vmatmul.mubr.msk.f32.gmra.mrb[40].mxu0 %vm396_vm2, %v25562_v45  ;;  %v7715_v33 = vmax.f32 %v7651_v5, %v7683_v52  ;;  %v7846_v9 = vmax.f32 %v7812_v47, %v7586_v56  ;;  %v7684_v57 = vld [vmem:[#allocation4 + $0xba] sm:$0xff] }
 0x62a   : > { %v7912_v39 = vmax.f32 %v7878_v42, %v7680_v32  ;;  %v7913_v41 = vmax.f32 %v7879_v48, %v7681_v26  ;;  %v25570_v29 = vld [vmem:[#allocation5 + $0x51] sm:$0xff]  ;;  %v7780_v10 = vmax.f32 %v7746_v51, %v7618_v20  ;;  %v7847_v14 = vmax.f32 %v7813_v50, %v7587_v43 }
 0x62b   : > { %v7781_v8 = vmax.f32 %v7747_v7, %v7619_v34  ;;  %20675 = vmatprep.mubr.msk.f32.mxu0 %vm396_vm2, %v25570_v29  ;;  %v7880_v18 = vmax.f32 %v7846_v9, %v7618_v20  ;;  %v7748_v19 = vmax.f32 %v7714_v49, %v7588_v53  ;;  %v25576_v30 = vld [vmem:[#allocation5 + $0x59] sm:$0xff]  ;;  %v7652_v32 = vmax.f32 %v7588_v53, %v7620_v40 }
 0x62c   : > { %7944 = vst.msk [vmem:[#allocation5 + $0x78] sm:$0xff] %vm396_vm2, %v7912_v39  ;;  %7945 = vst.msk [vmem:[#allocation5 + $0x80] sm:$0xff] %vm396_vm2, %v7913_v41  ;;  %v7814_v60 = vmax.f32 %v7780_v10, %v7682_v44  ;;  %v7881_v31 = vmax.f32 %v7847_v14, %v7619_v34  ;;  %v7749_v24 = vmax.f32 %v7715_v33, %v7589_v16 }
 0x62d   : > { %v7815_v59 = vmax.f32 %v7781_v8, %v7683_v52  ;;  %20676 = vmatmul.mubr.msk.f32.gmra.mrb[42].mxu0 %vm396_vm2, %v25576_v30  ;;  %v7914_v13 = vmax.f32 %v7880_v18, %v7682_v44  ;;  %v7496_v25 = vadd.f32 %v25497_v23, %v25399_v54  ;;  %v7495_v20 = vadd.f32 %v25399_v54, %v25500_v21  ;;  %v7685_v21 = vld [vmem:[#allocation4 + $0xc2] sm:$0xff] }
 0x62e   : > { %v7915_v26 = vmax.f32 %v7881_v31, %v7683_v52  ;;  %v7848_v63 = vmax.f32 %v7814_v60, %v7588_v53  ;;  %v7653_v43 = vmax.f32 %v7589_v16, %v7621_v11  ;;  %v7782_v34 = vmax.f32 %v7748_v19, %v7620_v40 }
 0x62f   : > { %v7849_v28 = vmax.f32 %v7815_v59, %v7589_v16  ;;  %7946 = vst.msk [vmem:[#allocation5 + $0x88] sm:$0xff] %vm396_vm2, %v7914_v13  ;;  %v7528_v55 = vmax.f32 %v7496_v25, 0.0  ;;  %v7527_v4 = vmax.f32 %v7495_v20, 0.0  ;;  %v7498_v15 = vadd.f32 %v25514_v46, %v25399_v54 }
 0x630   : > { %v25585_v6 = vld [vmem:[#allocation5 + $0x61] sm:$0xff]  ;;  %v25587_v56 = vld [vmem:[#allocation5 + $0x69] sm:$0xff]  ;;  %7947 = vst.msk [vmem:[#allocation5 + $0x90] sm:$0xff] %vm396_vm2, %v7915_v26  ;;  %v7882_v27 = vmax.f32 %v7848_v63, %v7620_v40  ;;  %v7716_v62 = vmax.f32 %v7652_v32, %v7684_v57  ;;  %v7497_v0 = vadd.f32 %v25399_v54, %v25520_v58  ;;  %v7500_v12 = vadd.f32 %v25543_v61, %v25399_v54 }
 0x631   : > { %v7883_v23 = vmax.f32 %v7849_v28, %v7621_v11  ;;  %20678 = vmatprep.mubr.msk.f32.mxu0 %vm396_vm2, %v25585_v6  ;;  %7560 = vst.msk [vmem:[#allocation4 + $0xd8] sm:$0xff] %vm396_vm2, %v7528_v55  ;;  %v7499_v37 = vadd.f32 %v25399_v54, %v25547_v22  ;;  %v7783_v46 = vmax.f32 %v7749_v24, %v7621_v11  ;;  %7559 = vst.msk [vmem:[#allocation4 + $0xd0] sm:$0xff] %vm396_vm2, %v7527_v4  ;;  %v7590_v54 = vld [vmem:[#allocation4 + $0xc8] sm:$0xff] }
 0x632   : > { %20679 = vmatmul.mubr.msk.f32.gmra.mrb[44].mxu0 %vm396_vm2, %v25587_v56  ;;  %v7916_v36 = vmax.f32 %v7882_v27, %v7684_v57  ;;  %v7530_v44 = vmax.f32 %v7498_v15, 0.0  ;;  %v7816_v58 = vmax.f32 %v7782_v34, %v7684_v57  ;;  %v7529_v48 = vmax.f32 %v7497_v0, 0.0 }
 0x633   : > { %v7917_v5 = vmax.f32 %v7883_v23, %v7685_v21  ;;  %v25604_v47 = vld [vmem:[#allocation5 + $0x71] sm:$0xff]  ;;  %v25606_v42 = vld [vmem:[#allocation5 + $0x79] sm:$0xff]  ;;  %v7532_v49 = vmax.f32 %v7500_v12, 0.0  ;;  %v7531_v61 = vmax.f32 %v7499_v37, 0.0  ;;  %v7717_v22 = vmax.f32 %v7653_v43, %v7685_v21 }
 0x634   : > { %20681 = vmatprep.mubr.msk.f32.mxu0 %vm396_vm2, %v25604_v47  ;;  %7948 = vst.msk [vmem:[#allocation5 + $0x98] sm:$0xff] %vm396_vm2, %v7916_v36  ;;  %7562 = vst.msk [vmem:[#allocation4 + $0xe8] sm:$0xff] %vm396_vm2, %v7530_v44  ;;  %v7750_v50 = vmax.f32 %v7716_v62, %v7590_v54  ;;  %v7817_v51 = vmax.f32 %v7783_v46, %v7685_v21  ;;  %v7850_v7 = vmax.f32 %v7816_v58, %v7590_v54 }
 0x635   : > { %7949 = vst.msk [vmem:[#allocation5 + $0xa0] sm:$0xff] %vm396_vm2, %v7917_v5  ;;  %7561 = vst.msk [vmem:[#allocation4 + $0xe0] sm:$0xff] %vm396_vm2, %v7529_v48 }
 0x636   : > { %7564 = vst.msk [vmem:[#allocation4 + $0xf8] sm:$0xff] %vm396_vm2, %v7532_v49  ;;  %7563 = vst.msk [vmem:[#allocation4 + $0xf0] sm:$0xff] %vm396_vm2, %v7531_v61  ;;  %20682 = vmatmul.mubr.msk.f32.gmra.mrb[46].mxu0 %vm396_vm2, %v25606_v42  ;;  %v25618_v52 = vld [vmem:[#allocation5 + $0x81] sm:$0xff] }
 0x637   : > { %20684 = vmatprep.mubr.msk.f32.mxu0 %vm396_vm2, %v25618_v52  ;;  %v25622_v39 = vld [vmem:[#allocation5 + $0x89] sm:$0xff] }
 0x638   : > { %v7591_v41 = vld [vmem:[#allocation4 + $0xd0] sm:$0xff]  ;;  %v7592_v53 = vld [vmem:[#allocation4 + $0xd8] sm:$0xff] }
 0x639   : > { %v7622_v33 = vld [vmem:[#allocation4 + $0xc9] sm:$0xff]  ;;  %v7623_v9 = vld [vmem:[#allocation4 + $0xd1] sm:$0xff]  ;;  %v7751_v16 = vmax.f32 %v7717_v22, %v7591_v41  ;;  %v7851_v19 = vmax.f32 %v7817_v51, %v7591_v41 }
 0x63a   : > { %20685 = vmatmul.mubr.msk.f32.gmra.mrb[48].mxu0 %vm396_vm2, %v25622_v39  ;;  %v7654_v10 = vmax.f32 %v7590_v54, %v7622_v33  ;;  %v7655_v8 = vmax.f32 %v7591_v41, %v7623_v9  ;;  %v7686_v14 = vld [vmem:[#allocation4 + $0xca] sm:$0xff]  ;;  %v7784_v40 = vmax.f32 %v7750_v50, %v7622_v33  ;;  %v7687_v18 = vld [vmem:[#allocation4 + $0xd2] sm:$0xff]  ;;  %v7884_v60 = vmax.f32 %v7850_v7, %v7622_v33  ;;  %v7725_v33 = vld [vmem:[#allocation4 + $0x100] sm:$0xff] }
 0x63b   : > { %v25626_v59 = vld [vmem:[#allocation5 + $0x91] sm:$0xff]  ;;  %v7785_v32 = vmax.f32 %v7751_v16, %v7623_v9  ;;  %v7885_v28 = vmax.f32 %v7851_v19, %v7623_v9  ;;  %v7594_v58 = vld [vmem:[#allocation4 + $0xe8] sm:$0xff] }
 0x63c   : > { %v25628_v31 = vld [vmem:[#allocation5 + $0x99] sm:$0xff]  ;;  %v7718_v11 = vmax.f32 %v7654_v10, %v7686_v14  ;;  %v7719_v13 = vmax.f32 %v7655_v8, %v7687_v18  ;;  %v7818_v24 = vmax.f32 %v7784_v40, %v7686_v14  ;;  %v7624_v26 = vld [vmem:[#allocation4 + $0xd9] sm:$0xff]  ;;  %20687 = vmatprep.mubr.msk.f32.mxu0 %vm396_vm2, %v25626_v59  ;;  %v7918_v20 = vmax.f32 %v7884_v60, %v7686_v14 }
 0x63d   : > { %v7593_v25 = vld [vmem:[#allocation4 + $0xe0] sm:$0xff]  ;;  %v7656_v43 = vmax.f32 %v7592_v53, %v7624_v26  ;;  %v25632_v57 = vld [vmem:[#allocation4 + $0xf8] sm:$0xff]  ;;  %v7819_v27 = vmax.f32 %v7785_v32, %v7687_v18  ;;  %v7595_v0 = vld [vmem:[#allocation4 + $0xf0] sm:$0xff]  ;;  %v7919_v12 = vmax.f32 %v7885_v28, %v7687_v18 }
 0x63e   : > { %v7625_v63 = vld [vmem:[#allocation4 + $0xe1] sm:$0xff]  ;;  %20688 = vmatmul.mubr.msk.f32.gmra.mrb[50].mxu0 %vm396_vm2, %v25628_v31  ;;  %v7752_v4 = vmax.f32 %v7718_v11, %v7592_v53  ;;  %v7753_v15 = vmax.f32 %v7719_v13, %v7593_v25  ;;  %v7852_v21 = vmax.f32 %v7818_v24, %v7592_v53  ;;  %v25636_v62 = vld [vmem:[#allocation4 + $0xf9] sm:$0xff]  ;;  %7950 = vst.msk [vmem:[#allocation5 + $0xa8] sm:$0xff] %vm396_vm2, %v7918_v20  ;;  %v7626_v5 = vld [vmem:[#allocation4 + $0xe9] sm:$0xff] }
 0x63f   : > { %v7657_v34 = vmax.f32 %v7593_v25, %v7625_v63  ;;  %v7688_v55 = vld [vmem:[#allocation4 + $0xda] sm:$0xff]  ;;  %v7689_v23 = vld [vmem:[#allocation4 + $0xe2] sm:$0xff]  ;;  %v7660_v36 = vmax.f32 %v25632_v57, %v25636_v62  ;;  %v7627_v44 = vld [vmem:[#allocation4 + $0xf1] sm:$0xff]  ;;  %v7853_v61 = vmax.f32 %v7819_v27, %v7593_v25  ;;  %7951 = vst.msk [vmem:[#allocation5 + $0xb0] sm:$0xff] %vm396_vm2, %v7919_v12  ;;  %v7658_v7 = vmax.f32 %v7594_v58, %v7626_v5 }
 0x640   : > { %v7720_v37 = vmax.f32 %v7656_v43, %v7688_v55  ;;  %v7786_v48 = vmax.f32 %v7752_v4, %v7624_v26  ;;  %v7787_v49 = vmax.f32 %v7753_v15, %v7625_v63  ;;  %v7886_v54 = vmax.f32 %v7852_v21, %v7624_v26  ;;  %v25641_v22 = vld [vmem:[#allocation4 + $0xfa] sm:$0xff]  ;;  %v7726_v50 = vld [vmem:[#allocation4 + $0x108] sm:$0xff]  ;;  %v7691_v40 = vld [vmem:[#allocation4 + $0xf2] sm:$0xff] }
 0x641   : > { %v7721_v46 = vmax.f32 %v7657_v34, %v7689_v23  ;;  %v7724_v51 = vmax.f32 %v7660_v36, %v25641_v22  ;;  %v7659_v41 = vmax.f32 %v7595_v0, %v7627_v44  ;;  %v7887_v8 = vmax.f32 %v7853_v61, %v7625_v63  ;;  %v7690_v16 = vld [vmem:[#allocation4 + $0xea] sm:$0xff]  ;;  %v7759_v28 = vld [vmem:[#allocation4 + $0x101] sm:$0xff]  ;;  %v7828_v12 = vld [vmem:[#allocation4 + $0x118] sm:$0xff] }
 0x642   : > { %v7754_v9 = vmax.f32 %v7720_v37, %v7594_v58  ;;  %v7820_v53 = vmax.f32 %v7786_v48, %v7688_v55  ;;  %v7821_v10 = vmax.f32 %v7787_v49, %v7689_v23  ;;  %v7920_v14 = vmax.f32 %v7886_v54, %v7688_v55  ;;  %v7760_v18 = vld [vmem:[#allocation4 + $0x109] sm:$0xff] }
 0x643   : > { %v7758_v19 = vmax.f32 %v7724_v51, %v7726_v50  ;;  %v7722_v60 = vmax.f32 %v7658_v7, %v7690_v16  ;;  %v7723_v11 = vmax.f32 %v7659_v41, %v7691_v40  ;;  %v7755_v13 = vmax.f32 %v7721_v46, %v7595_v0  ;;  %v7794_v20 = vld [vmem:[#allocation4 + $0x10a] sm:$0xff] }
 0x644   : > { %v7921_v32 = vmax.f32 %v7887_v8, %v7689_v23  ;;  %7952 = vst.msk [vmem:[#allocation5 + $0xb8] sm:$0xff] %vm396_vm2, %v7920_v14  ;;  %v7788_v24 = vmax.f32 %v7754_v9, %v7626_v5  ;;  %v7854_v25 = vmax.f32 %v7820_v53, %v7594_v58  ;;  %v7855_v26 = vmax.f32 %v7821_v10, %v7595_v0  ;;  %v7793_v23 = vld [vmem:[#allocation4 + $0x102] sm:$0xff]  ;;  %v7861_v9 = vld [vmem:[#allocation4 + $0x111] sm:$0xff]  ;;  %v7896_v53 = vld [vmem:[#allocation4 + $0x11a] sm:$0xff] }
 0x645   : > { %v7756_v43 = vmax.f32 %v7722_v60, %v25632_v57  ;;  %v7757_v34 = vmax.f32 %v7723_v11, %v7725_v33  ;;  %v7789_v63 = vmax.f32 %v7755_v13, %v7627_v44  ;;  %v7792_v55 = vmax.f32 %v7758_v19, %v7760_v18  ;;  %v25648_v21 = vld [vmem:[#allocation5 + $0xa1] sm:$0xff]  ;;  %v7895_v19 = vld [vmem:[#allocation4 + $0x112] sm:$0xff] }
 0x646   : > { %7953 = vst.msk [vmem:[#allocation5 + $0xc0] sm:$0xff] %vm396_vm2, %v7921_v32  ;;  %v7822_v27 = vmax.f32 %v7788_v24, %v7690_v16  ;;  %v7888_v4 = vmax.f32 %v7854_v25, %v7626_v5  ;;  %v7889_v15 = vmax.f32 %v7855_v26, %v7627_v44  ;;  %20690 = vmatprep.mubr.msk.f32.mxu0 %vm396_vm2, %v25648_v21  ;;  %v25654_v61 = vld [vmem:[#allocation5 + $0xa9] sm:$0xff]  ;;  %v7862_v44 = vld [vmem:[#allocation4 + $0x119] sm:$0xff] }
 0x647   : > { %v7790_v37 = vmax.f32 %v7756_v43, %v25636_v62  ;;  %v7823_v46 = vmax.f32 %v7789_v63, %v7691_v40  ;;  %v7791_v0 = vmax.f32 %v7757_v34, %v7759_v28  ;;  %v7826_v36 = vmax.f32 %v7792_v55, %v7794_v20  ;;  %v7827_v5 = vld [vmem:[#allocation4 + $0x110] sm:$0xff]  ;;  %20691 = vmatmul.mubr.msk.f32.gmra.mrb[52].mxu0 %vm396_vm2, %v25654_v61  ;;  %v17608_v55 = vld [vmem:[%s27788_s5 + $0x88] sm:$0xff] }
 0x648   : > { %v7856_v58 = vmax.f32 %v7822_v27, %v25632_v57  ;;  %v7922_v48 = vmax.f32 %v7888_v4, %v7690_v16  ;;  %v7923_v49 = vmax.f32 %v7889_v15, %v7691_v40  ;;  %v17607_v63 = vld [vmem:[%s27788_s5 + $0x80] sm:$0xff]  ;;  %v7961_v27 = vld [vmem:[#allocation5] sm:$0xff] }
 0x649   : > { %v7824_v54 = vmax.f32 %v7790_v37, %v25641_v22  ;;  %v7857_v51 = vmax.f32 %v7823_v46, %v7725_v33  ;;  %v7825_v7 = vmax.f32 %v7791_v0, %v7793_v23  ;;  %v7860_v41 = vmax.f32 %v7826_v36, %v7828_v12  ;;  %v7962_v15 = vld [vmem:[#allocation5 + $0x8] sm:$0xff]  ;;  %v17610_v12 = vld [vmem:[%s27788_s5 + $0x98] sm:$0xff]  ;;  %v25722_v37 = vld [vmem:[#allocation5 + $0x10] sm:$0xff] }
 0x64a   : > { %7954 = vst.msk [vmem:[#allocation5 + $0xc8] sm:$0xff] %vm396_vm2, %v7922_v48  ;;  %7955 = vst.msk [vmem:[#allocation5 + $0xd0] sm:$0xff] %vm396_vm2, %v7923_v49  ;;  %v7890_v57 = vmax.f32 %v7856_v58, %v25636_v62  ;;  %v21970_v4 = vpack.c.bf16 %v17608_v55, %v17607_v63  ;;  %v25727_v0 = vld [vmem:[#allocation5 + $0x18] sm:$0xff]  ;;  %v25731_v36 = vld [vmem:[#allocation5 + $0x20] sm:$0xff] }
 0x64b   : > { %v25662_v10 = vld [vmem:[#allocation5 + $0xb1] sm:$0xff]  ;;  %v7891_v8 = vmax.f32 %v7857_v51, %v7759_v28  ;;  %v7858_v14 = vmax.f32 %v7824_v54, %v7726_v50  ;;  %v7859_v16 = vmax.f32 %v7825_v7, %v7827_v5  ;;  %v7894_v40 = vmax.f32 %v7860_v41, %v7862_v44  ;;  %v25738_v58 = vld [vmem:[#allocation5 + $0x28] sm:$0xff]  ;;  %v25757_v51 = vld [vmem:[#allocation5 + $0x40] sm:$0xff] }
 0x64c   : > { %20693 = vmatprep.mubr.msk.f32.mxu0 %vm396_vm2, %v25662_v10  ;;  %v7924_v33 = vmax.f32 %v7890_v57, %v25641_v22  ;;  %v17645_v48 = vld [vmem:[%s27788_s5 + $0xa8] sm:$0xff]  ;;  %v17646_v49 = vld [vmem:[%s27788_s5 + $0xb0] sm:$0xff]  ;;  %v25762_v7 = vld [vmem:[#allocation5 + $0x48] sm:$0xff] }
 0x64d   : > { %v25667_v60 = vld [vmem:[#allocation5 + $0xb9] sm:$0xff]  ;;  %v7925_v11 = vmax.f32 %v7891_v8, %v7793_v23  ;;  %v7892_v13 = vmax.f32 %v7858_v14, %v7760_v18  ;;  %v7893_v32 = vmax.f32 %v7859_v16, %v7861_v9  ;;  %v7928_v62 = vmax.f32 %v7894_v40, %v7896_v53  ;;  %v25748_v5 = vld [vmem:[#allocation5 + $0x30] sm:$0xff]  ;;  %v25778_v53 = vld [vmem:[#allocation5 + $0x68] sm:$0xff] }
 0x64e   : > { %20694 = vmatmul.mubr.msk.f32.gmra.mrb[54].mxu0 %vm396_vm2, %v25667_v60  ;;  %7956 = vst.msk [vmem:[#allocation5 + $0xd8] sm:$0xff] %vm396_vm2, %v7924_v33  ;;  %v17609_v23 = vld [vmem:[%s27788_s5 + $0x90] sm:$0xff]  ;;  %v21978_v44 = vpack.c.bf16 %v17646_v49, %v17645_v48  ;;  %v25766_v41 = vld [vmem:[#allocation5 + $0x50] sm:$0xff]  ;;  %v25774_v9 = vld [vmem:[#allocation5 + $0x60] sm:$0xff] }
 0x64f   : > { %7957 = vst.msk [vmem:[#allocation5 + $0xe0] sm:$0xff] %vm396_vm2, %v7925_v11  ;;  %v7926_v50 = vmax.f32 %v7892_v13, %v7794_v20  ;;  %v7927_v24 = vmax.f32 %v7893_v32, %v7895_v19  ;;  %7960 = vst.msk [vmem:[#allocation5 + $0xf8] sm:$0xff] %vm396_vm2, %v7928_v62  ;;  %v21974_v46 = vpack.c.bf16 %v17610_v12, %v17609_v23  ;;  %v25753_v54 = vld [vmem:[#allocation5 + $0x38] sm:$0xff]  ;;  %v25782_v8 = vld [vmem:[#allocation5 + $0x70] sm:$0xff] }
 0x650   : > { %v25770_v57 = vld [vmem:[#allocation5 + $0x58] sm:$0xff]  ;;  %v25790_v16 = vld [vmem:[#allocation5 + $0x80] sm:$0xff]  ;;  %v25794_v40 = vld [vmem:[#allocation5 + $0x88] sm:$0xff] }
 0x651   : > { %v25674_v25 = vld [vmem:[#allocation5 + $0xc1] sm:$0xff]  ;;  %v25676_v22 = vld [vmem:[#allocation5 + $0xc9] sm:$0xff]  ;;  %7958 = vst.msk [vmem:[#allocation5 + $0xe8] sm:$0xff] %vm396_vm2, %v7926_v50  ;;  %7959 = vst.msk [vmem:[#allocation5 + $0xf0] sm:$0xff] %vm396_vm2, %v7927_v24 }
 0x652   : > { %20696 = vmatprep.mubr.msk.f32.mxu0 %vm396_vm2, %v25674_v25  ;;  %v25786_v14 = vld [vmem:[#allocation5 + $0x78] sm:$0xff]  ;;  %v25798_v33 = vld [vmem:[#allocation5 + $0x90] sm:$0xff]  ;;  %v25806_v11 = vld [vmem:[#allocation5 + $0xa0] sm:$0xff] }
 0x653   : > { %20697 = vmatmul.mubr.msk.f32.gmra.mrb[56].mxu0 %vm396_vm2, %v25676_v22  ;;  %v25802_v19 = vld [vmem:[#allocation5 + $0x98] sm:$0xff]  ;;  %v25810_v13 = vld [vmem:[#allocation5 + $0xa8] sm:$0xff]  ;;  %v25814_v32 = vld [vmem:[#allocation5 + $0xb0] sm:$0xff] }
 0x654   : > { %v25818_v62 = vld [vmem:[#allocation5 + $0xb8] sm:$0xff]  ;;  %v25822_v50 = vld [vmem:[#allocation5 + $0xc0] sm:$0xff]  ;;  %v25826_v24 = vld [vmem:[#allocation5 + $0xc8] sm:$0xff] }
 0x655   : > { %v25684_v18 = vld [vmem:[#allocation5 + $0xd1] sm:$0xff]  ;;  %v17647_v12 = vld [vmem:[%s27788_s5 + $0xb8] sm:$0xff] }
 0x656   : > { %20699 = vmatprep.mubr.msk.f32.mxu0 %vm396_vm2, %v25684_v18  ;;  %v25688_v26 = vld [vmem:[#allocation5 + $0xd9] sm:$0xff]  ;;  %v25830_v63 = vld [vmem:[#allocation5 + $0xd0] sm:$0xff] }
 0x657   : > { %20700 = vmatmul.mubr.msk.f32.gmra.mrb[58].mxu0 %vm396_vm2, %v25688_v26  ;;  %v25704_v34 = vld [vmem:[#allocation5 + $0xf9] sm:$0xff]  ;;  %v8690_v49 = vld [vmem:[#allocation5 + $0xa] sm:$0xff] }
 0x658   : > { %v25692_v28 = vld [vmem:[#allocation5 + $0xe1] sm:$0xff]  ;;  %v25694_v20 = vld [vmem:[#allocation5 + $0xe9] sm:$0xff]  ;;  %v25700_v43 = vld [vmem:[#allocation5 + $0xf1] sm:$0xff]  ;;  %28202 = vst [vmem:[#allocation31_spill] sm:$0xff] %v25704_v34 }
 0x659   : > { %20702 = vmatprep.mubr.msk.f32.mxu0 %vm396_vm2, %v25692_v28  ;;  %28201 = vst [vmem:[#allocation30_spill] sm:$0xff] %v25700_v43  ;;  %v25834_v55 = vld [vmem:[#allocation5 + $0xd8] sm:$0xff] }
 0x65a   : > { %v25850_v23 = vld [vmem:[#allocation5 + $0xf8] sm:$0xff] }
 0x65b   : > { %20703 = vmatmul.mubr.msk.f32.gmra.mrb[60].mxu0 %vm396_vm2, %v25694_v20  ;;  %28203 = vst [vmem:[#allocation32_spill] sm:$0xff] %v25850_v23 }
 0x65c   : > { %20705 = vmatprep.mubr.msk.f32.mxu0 %vm396_vm2, %v25700_v43  ;;  %v25868_v43 = vld [vmem:[#allocation5 + $0x12] sm:$0xff] }
 0x65d   : > { %28204 = vst [vmem:[#allocation24_spill] sm:$0xff] %v25868_v43 }
 0x65f   : > { %20706 = vmatmul.mubr.msk.f32.gmra.mrb[62].mxu0 %vm396_vm2, %v25704_v34  ;;  %v17650_v34 = vld [vmem:[%s27788_s5 + $0xd0] sm:$0xff] }
 0x660   : > { %20722 = vmatprep.mubr.msk.f32.mxu0 %vm396_vm2, %v7961_v27  ;;  %v25838_v27 = vld [vmem:[#allocation5 + $0xe0] sm:$0xff] }
 0x663   : > { %20723 = vmatmul.mubr.msk.f32.vlgmr.msra.gmra.mrb[32].mxu0 %vm396_vm2, %v7962_v15  ;;  %v25846_v15 = vld [vmem:[#allocation5 + $0xf0] sm:$0xff] }
 0x664   : > { %21969 = vmatpush3.bf16.msra.mxu0 %v25490_v17  ;;  %20725 = vmatprep.mubr.msk.f32.mxu0 %vm396_vm2, %v25722_v37  ;;  %v17611_v17 = vld [vmem:[%s27788_s5 + $0xa0] sm:$0x3] }
 0x665   : > { %21971 = vmatprep.subr.bf16.mxu0 %v21970_v4 }
 0x667   : > { %20726 = vmatmul.mubr.msk.f32.gmra.mrb[34].mxu0 %vm396_vm2, %v25727_v0 }
 0x668   : > { %20728 = vmatprep.mubr.msk.f32.mxu0 %vm396_vm2, %v25731_v36  ;;  %21973 = vmatpush3.bf16.msra.mxu0 %v21970_v4  ;;  %v25842_v4 = vld [vmem:[#allocation5 + $0xe8] sm:$0xff] }
 0x669   : > { %21975 = vmatprep.subr.bf16.mxu0 %v21974_v46 }
 0x66b   : > { %20729 = vmatmul.mubr.msk.f32.gmra.mrb[36].mxu0 %vm396_vm2, %v25738_v58 }
 0x66c   : > { %20731 = vmatprep.mubr.msk.f32.mxu0 %vm396_vm2, %v25748_v5  ;;  %21977 = vmatpush3.bf16.msra.mxu0 %v21974_v46  ;;  %v17648_v46 = vld [vmem:[%s27788_s5 + $0xc0] sm:$0xff] }
 0x66d   : > { %20782 = vmatprep.subr.msk.mxu0 %vm8136_vm3, %v17611_v17  ;;  %v21982_v48 = vpack.c.bf16 %v17648_v46, %v17647_v12  ;;  %v25872_v12 = vld [vmem:[#allocation5 + $0x1a] sm:$0xff]  ;;  %v25876_v46 = vld [vmem:[#allocation5 + $0x22] sm:$0xff] }
 0x66e   : > { %28205 = vst [vmem:[#allocation25_spill] sm:$0xff] %v25872_v12  ;;  %28206 = vst [vmem:[#allocation34_spill] sm:$0xff] %v25876_v46 }
 0x66f   : > { %20732 = vmatmul.mubr.msk.f32.gmra.mrb[38].mxu0 %vm396_vm2, %v25753_v54 }
 0x670   : > { %20734 = vmatprep.mubr.msk.f32.mxu0 %vm396_vm2, %v25757_v51  ;;  %20783 = vmatpush3.msk.msra.mxu0 %vm8136_vm3, %v17611_v17  ;;  %v8689_v17 = vld [vmem:[#allocation5 + $0x2] sm:$0xff] }
 0x671   : > { %21979 = vmatprep.subr.bf16.mxu0 %v21978_v44 }
 0x673   : > { %20735 = vmatmul.mubr.msk.f32.gmra.mrb[40].mxu0 %vm396_vm2, %v25762_v7 }
 0x674   : > { %20737 = vmatprep.mubr.msk.f32.mxu0 %vm396_vm2, %v25766_v41 }
 0x677   : > { %20738 = vmatmul.mubr.msk.f32.gmra.mrb[42].mxu0 %vm396_vm2, %v25770_v57 }
 0x678   : > { %20740 = vmatprep.mubr.msk.f32.mxu0 %vm396_vm2, %v25774_v9 }
 0x67b   : > { %20741 = vmatmul.mubr.msk.f32.gmra.mrb[44].mxu0 %vm396_vm2, %v25778_v53 }
 0x67c   : > { %20743 = vmatprep.mubr.msk.f32.mxu0 %vm396_vm2, %v25782_v8 }
 0x67f   : > { %20744 = vmatmul.mubr.msk.f32.gmra.mrb[46].mxu0 %vm396_vm2, %v25786_v14 }
 0x680   : > { %20746 = vmatprep.mubr.msk.f32.mxu0 %vm396_vm2, %v25790_v16 }
 0x683   : > { %20747 = vmatmul.mubr.msk.f32.gmra.mrb[48].mxu0 %vm396_vm2, %v25794_v40 }
 0x684   : > { %20749 = vmatprep.mubr.msk.f32.mxu0 %vm396_vm2, %v25798_v33 }
 0x687   : > { %20750 = vmatmul.mubr.msk.f32.gmra.mrb[50].mxu0 %vm396_vm2, %v25802_v19 }
 0x688   : > { %20752 = vmatprep.mubr.msk.f32.mxu0 %vm396_vm2, %v25806_v11 }
 0x68b   : > { %20753 = vmatmul.mubr.msk.f32.gmra.mrb[52].mxu0 %vm396_vm2, %v25810_v13 }
 0x68c   : > { %20755 = vmatprep.mubr.msk.f32.mxu0 %vm396_vm2, %v25814_v32 }
 0x68f   : > { %20756 = vmatmul.mubr.msk.f32.gmra.mrb[54].mxu0 %vm396_vm2, %v25818_v62 }
 0x690   : > { %20758 = vmatprep.mubr.msk.f32.mxu0 %vm396_vm2, %v25822_v50 }
 0x693   : > { %20759 = vmatmul.mubr.msk.f32.gmra.mrb[56].mxu0 %vm396_vm2, %v25826_v24 }
 0x694   : > { %20761 = vmatprep.mubr.msk.f32.mxu0 %vm396_vm2, %v25830_v63 }
 0x697   : > { %20762 = vmatmul.mubr.msk.f32.gmra.mrb[58].mxu0 %vm396_vm2, %v25834_v55 }
 0x698   : > { %20764 = vmatprep.mubr.msk.f32.mxu0 %vm396_vm2, %v25838_v27 }
 0x69b   : > { %20765 = vmatmul.mubr.msk.f32.gmra.mrb[60].mxu0 %vm396_vm2, %v25842_v4 }
 0x69c   : > { %20767 = vmatprep.mubr.msk.f32.mxu0 %vm396_vm2, %v25846_v15 }
 0x69f   : > { %20768 = vmatmul.mubr.msk.f32.gmra.mrb[62].mxu0 %vm396_vm2, %v25850_v23 }
 0x6a0   : > { %20784 = vmatprep.mubr.msk.f32.mxu0 %vm396_vm2, %v8689_v17  ;;  %v21986_v17 = vpack.c.bf16 %v17650_v34, %v17649_v1  ;;  %v17685_v1 = vld [vmem:[%s27788_s5 + $0xe0] sm:$0xff]  ;;  %v17686_v34 = vld [vmem:[%s27788_s5 + $0xe8] sm:$0xff] }
 0x6a3   : > { %20785 = vmatmul.mubr.msk.f32.vlgmr.msra.gmra.mrb[32].mxu0 %vm396_vm2, %v8690_v49  ;;  %v25880_v49 = vld [vmem:[#allocation5 + $0x2a] sm:$0xff] }
 0x6a4   : > { %21981 = vmatpush3.bf16.msra.mxu0 %v21978_v44  ;;  %20787 = vmatprep.mubr.msk.f32.mxu0 %vm396_vm2, %v25868_v43  ;;  %28207 = vst [vmem:[#allocation35_spill] sm:$0xff] %v25880_v49  ;;  %v17651_v44 = vld [vmem:[%s27788_s5 + $0xd8] sm:$0x3]  ;;  %v25902_v43 = vld [vmem:[#allocation5 + $0x42] sm:$0xff] }
 0x6a5   : > { %21983 = vmatprep.subr.bf16.mxu0 %v21982_v48  ;;  %28208 = vst [vmem:[#allocation36_spill] sm:$0xff] %v25902_v43 }
 0x6a7   : > { %20788 = vmatmul.mubr.msk.f32.gmra.mrb[34].mxu0 %vm396_vm2, %v25872_v12  ;;  %v25898_v12 = vld [vmem:[#allocation5 + $0x3a] sm:$0xff] }
 0x6a8   : > { %20790 = vmatprep.mubr.msk.f32.mxu0 %vm396_vm2, %v25876_v46  ;;  %21985 = vmatpush3.bf16.msra.mxu0 %v21982_v48  ;;  %v25893_v46 = vld [vmem:[#allocation5 + $0x32] sm:$0xff]  ;;  %v21990_v48 = vpack.c.bf16 %v17686_v34, %v17685_v1  ;;  %v25915_v1 = vld [vmem:[#allocation5 + $0x5a] sm:$0xff]  ;;  %v25919_v34 = vld [vmem:[#allocation5 + $0x62] sm:$0xff] }
 0x6a9   : > { %21987 = vmatprep.subr.bf16.mxu0 %v21986_v17  ;;  %28211 = vst [vmem:[#allocation39_spill] sm:$0xff] %v25915_v1  ;;  %28212 = vst [vmem:[#allocation40_spill] sm:$0xff] %v25919_v34 }
 0x6ab   : > { %20791 = vmatmul.mubr.msk.f32.gmra.mrb[36].mxu0 %vm396_vm2, %v25880_v49  ;;  %v25907_v49 = vld [vmem:[#allocation5 + $0x4a] sm:$0xff] }
 0x6ac   : > { %20793 = vmatprep.mubr.msk.f32.mxu0 %vm396_vm2, %v25893_v46  ;;  %21989 = vmatpush3.bf16.msra.mxu0 %v21986_v17  ;;  %28209 = vst [vmem:[#allocation37_spill] sm:$0xff] %v25907_v49  ;;  %v25911_v17 = vld [vmem:[#allocation5 + $0x52] sm:$0xff] }
 0x6ad   : > { %20844 = vmatprep.subr.msk.mxu0 %vm8136_vm3, %v17651_v44  ;;  %28210 = vst [vmem:[#allocation38_spill] sm:$0xff] %v25911_v17 }
 0x6af   : > { %20794 = vmatmul.mubr.msk.f32.gmra.mrb[38].mxu0 %vm396_vm2, %v25898_v12 }
 0x6b0   : > { %20796 = vmatprep.mubr.msk.f32.mxu0 %vm396_vm2, %v25902_v43  ;;  %20845 = vmatpush3.msk.msra.mxu0 %vm8136_vm3, %v17651_v44  ;;  %v25923_v44 = vld [vmem:[#allocation5 + $0x6a] sm:$0xff] }
 0x6b1   : > { %21991 = vmatprep.subr.bf16.mxu0 %v21990_v48  ;;  %28213 = vst [vmem:[#allocation33_spill] sm:$0xff] %v25923_v44  ;;  %v17690_v43 = vld [vmem:[%s27788_s5 + $0x108] sm:$0xff] }
 0x6b3   : > { %20797 = vmatmul.mubr.msk.f32.gmra.mrb[40].mxu0 %vm396_vm2, %v25907_v49  ;;  %v25927_v49 = vld [vmem:[#allocation5 + $0x72] sm:$0xff] }
 0x6b4   : > { %20799 = vmatprep.mubr.msk.f32.mxu0 %vm396_vm2, %v25911_v17  ;;  %28214 = vst [vmem:[#allocation41_spill] sm:$0xff] %v25927_v49  ;;  %v25931_v17 = vld [vmem:[#allocation5 + $0x7a] sm:$0xff] }
 0x6b5   : > { %28215 = vst [vmem:[#allocation12_spill] sm:$0xff] %v25931_v17 }
 0x6b7   : > { %20800 = vmatmul.mubr.msk.f32.gmra.mrb[42].mxu0 %vm396_vm2, %v25915_v1  ;;  %v25935_v1 = vld [vmem:[#allocation5 + $0x82] sm:$0xff] }
 0x6b8   : > { %20802 = vmatprep.mubr.msk.f32.mxu0 %vm396_vm2, %v25919_v34  ;;  %28216 = vst [vmem:[#allocation42_spill] sm:$0xff] %v25935_v1  ;;  %v25939_v34 = vld [vmem:[#allocation5 + $0x8a] sm:$0xff] }
 0x6b9   : > { %28217 = vst [vmem:[#allocation43_spill] sm:$0xff] %v25939_v34 }
 0x6bb   : > { %20803 = vmatmul.mubr.msk.f32.gmra.mrb[44].mxu0 %vm396_vm2, %v25923_v44  ;;  %v25943_v44 = vld [vmem:[#allocation5 + $0x92] sm:$0xff] }
 0x6bc   : > { %20805 = vmatprep.mubr.msk.f32.mxu0 %vm396_vm2, %v25927_v49  ;;  %28218 = vst [vmem:[#allocation44_spill] sm:$0xff] %v25943_v44  ;;  %v25947_v49 = vld [vmem:[#allocation5 + $0x9a] sm:$0xff] }
 0x6bd   : > { %28219 = vst [vmem:[#allocation45_spill] sm:$0xff] %v25947_v49 }
 0x6bf   : > { %20806 = vmatmul.mubr.msk.f32.gmra.mrb[46].mxu0 %vm396_vm2, %v25931_v17  ;;  %v25951_v17 = vld [vmem:[#allocation5 + $0xa2] sm:$0xff] }
 0x6c0   : > { %20808 = vmatprep.mubr.msk.f32.mxu0 %vm396_vm2, %v25935_v1  ;;  %28220 = vst [vmem:[#allocation46_spill] sm:$0xff] %v25951_v17  ;;  %v25955_v1 = vld [vmem:[#allocation5 + $0xaa] sm:$0xff] }
 0x6c1   : > { %28221 = vst [vmem:[#allocation13_spill] sm:$0xff] %v25955_v1 }
 0x6c3   : > { %20809 = vmatmul.mubr.msk.f32.gmra.mrb[48].mxu0 %vm396_vm2, %v25939_v34  ;;  %v25959_v34 = vld [vmem:[#allocation5 + $0xb2] sm:$0xff] }
 0x6c4   : > { %20811 = vmatprep.mubr.msk.f32.mxu0 %vm396_vm2, %v25943_v44  ;;  %28222 = vst [vmem:[#allocation14_spill] sm:$0xff] %v25959_v34  ;;  %v25963_v44 = vld [vmem:[#allocation5 + $0xba] sm:$0xff] }
 0x6c5   : > { %28223 = vst [vmem:[#allocation15_spill] sm:$0xff] %v25963_v44 }
 0x6c7   : > { %20812 = vmatmul.mubr.msk.f32.gmra.mrb[50].mxu0 %vm396_vm2, %v25947_v49  ;;  %v25967_v49 = vld [vmem:[#allocation5 + $0xc2] sm:$0xff] }
 0x6c8   : > { %20814 = vmatprep.mubr.msk.f32.mxu0 %vm396_vm2, %v25951_v17  ;;  %28224 = vst [vmem:[#allocation16_spill] sm:$0xff] %v25967_v49  ;;  %v25971_v17 = vld [vmem:[#allocation5 + $0xca] sm:$0xff] }
 0x6c9   : > { %28225 = vst [vmem:[#allocation17_spill] sm:$0xff] %v25971_v17 }
 0x6cb   : > { %20815 = vmatmul.mubr.msk.f32.gmra.mrb[52].mxu0 %vm396_vm2, %v25955_v1  ;;  %v25975_v1 = vld [vmem:[#allocation5 + $0xd2] sm:$0xff] }
 0x6cc   : > { %20817 = vmatprep.mubr.msk.f32.mxu0 %vm396_vm2, %v25959_v34  ;;  %28226 = vst [vmem:[#allocation18_spill] sm:$0xff] %v25975_v1  ;;  %v25979_v34 = vld [vmem:[#allocation5 + $0xda] sm:$0xff] }
 0x6cd   : > { %28227 = vst [vmem:[#allocation19_spill] sm:$0xff] %v25979_v34 }
 0x6cf   : > { %20818 = vmatmul.mubr.msk.f32.gmra.mrb[54].mxu0 %vm396_vm2, %v25963_v44  ;;  %v25983_v44 = vld [vmem:[#allocation5 + $0xe2] sm:$0xff] }
 0x6d0   : > { %20820 = vmatprep.mubr.msk.f32.mxu0 %vm396_vm2, %v25967_v49  ;;  %28228 = vst [vmem:[#allocation20_spill] sm:$0xff] %v25983_v44  ;;  %v25987_v49 = vld [vmem:[#allocation5 + $0xea] sm:$0xff] }
 0x6d1   : > { %28229 = vst [vmem:[#allocation21_spill] sm:$0xff] %v25987_v49 }
 0x6d3   : > { %20821 = vmatmul.mubr.msk.f32.gmra.mrb[56].mxu0 %vm396_vm2, %v25971_v17  ;;  %v25991_v17 = vld [vmem:[#allocation5 + $0xf2] sm:$0xff] }
 0x6d4   : > { %20823 = vmatprep.mubr.msk.f32.mxu0 %vm396_vm2, %v25975_v1  ;;  %28230 = vst [vmem:[#allocation22_spill] sm:$0xff] %v25991_v17  ;;  %v25995_v1 = vld [vmem:[#allocation5 + $0xfa] sm:$0xff] }
 0x6d5   : > { %28231 = vst [vmem:[#allocation23_spill] sm:$0xff] %v25995_v1 }
 0x6d7   : > { %20824 = vmatmul.mubr.msk.f32.gmra.mrb[58].mxu0 %vm396_vm2, %v25979_v34  ;;  %v17687_v34 = vld [vmem:[%s27788_s5 + $0xf0] sm:$0xff] }
 0x6d8   : > { %20826 = vmatprep.mubr.msk.f32.mxu0 %vm396_vm2, %v25983_v44  ;;  %v17688_v44 = vld [vmem:[%s27788_s5 + $0xf8] sm:$0xff] }
 0x6db   : > { %20827 = vmatmul.mubr.msk.f32.gmra.mrb[60].mxu0 %vm396_vm2, %v25987_v49  ;;  %v21994_v49 = vpack.c.bf16 %v17688_v44, %v17687_v34  ;;  %v17728_v34 = vld [vmem:[%s27788_s5 + $0x130] sm:$0xff] }
 0x6dc   : > { %20829 = vmatprep.mubr.msk.f32.mxu0 %vm396_vm2, %v25991_v17  ;;  %v17689_v17 = vld [vmem:[%s27788_s5 + $0x100] sm:$0xff]  ;;  %v23269_v44 = vld [vmem:[#allocation5 + $0x11] sm:$0xff] }
 0x6df   : > { %20830 = vmatmul.mubr.msk.f32.gmra.mrb[62].mxu0 %vm396_vm2, %v25995_v1  ;;  %v21998_v1 = vpack.c.bf16 %v17690_v43, %v17689_v17  ;;  %v17726_v43 = vld [vmem:[%s27788_s5 + $0x120] sm:$0xff] }
 0x6e0   : > { %20846 = vmatprep.mubr.msk.f32.mxu0 %vm396_vm2, %v25722_v37  ;;  %v17691_v37 = vld [vmem:[%s27788_s5 + $0x110] sm:$0x3]  ;;  %v26086_v17 = vld [vmem:[#allocation5 + $0x108] sm:$0xff] }
 0x6e1   : > { %28233 = vst [vmem:[#allocation26_spill] sm:$0xff] %v26086_v17 }
 0x6e3   : > { %20847 = vmatmul.mubr.msk.f32.vlgmr.msra.gmra.mrb[32].mxu0 %vm396_vm2, %v25727_v0  ;;  %v17725_v0 = vld [vmem:[%s27788_s5 + $0x118] sm:$0xff] }
 0x6e4   : > { %21993 = vmatpush3.bf16.msra.mxu0 %v21990_v48  ;;  %20849 = vmatprep.mubr.msk.f32.mxu0 %vm396_vm2, %v25731_v36  ;;  %v26080_v48 = vld [vmem:[#allocation5 + $0x100] sm:$0xff] }
 0x6e5   : > { %21995 = vmatprep.subr.bf16.mxu0 %v21994_v49  ;;  %28232 = vst [vmem:[#allocation47_spill] sm:$0xff] %v26080_v48 }
 0x6e7   : > { %20850 = vmatmul.mubr.msk.f32.gmra.mrb[34].mxu0 %vm396_vm2, %v25738_v58 }
 0x6e8   : > { %20852 = vmatprep.mubr.msk.f32.mxu0 %vm396_vm2, %v25748_v5  ;;  %21997 = vmatpush3.bf16.msra.mxu0 %v21994_v49  ;;  %v22002_v49 = vpack.c.bf16 %v17726_v43, %v17725_v0  ;;  %v17729_v0 = vld [vmem:[%s27788_s5 + $0x138] sm:$0xff]  ;;  %v17730_v43 = vld [vmem:[%s27788_s5 + $0x140] sm:$0xff] }
 0x6e9   : > { %21999 = vmatprep.subr.bf16.mxu0 %v21998_v1 }
 0x6eb   : > { %20853 = vmatmul.mubr.msk.f32.gmra.mrb[36].mxu0 %vm396_vm2, %v25753_v54 }
 0x6ec   : > { %20855 = vmatprep.mubr.msk.f32.mxu0 %vm396_vm2, %v25757_v51  ;;  %22001 = vmatpush3.bf16.msra.mxu0 %v21998_v1  ;;  %v17727_v1 = vld [vmem:[%s27788_s5 + $0x128] sm:$0xff] }
 0x6ed   : > { %20906 = vmatprep.subr.msk.mxu0 %vm8136_vm3, %v17691_v37 }
 0x6ef   : > { %20856 = vmatmul.mubr.msk.f32.gmra.mrb[38].mxu0 %vm396_vm2, %v25762_v7 }
 0x6f0   : > { %20858 = vmatprep.mubr.msk.f32.mxu0 %vm396_vm2, %v25766_v41  ;;  %20907 = vmatpush3.msk.msra.mxu0 %vm8136_vm3, %v17691_v37  ;;  %v22006_v37 = vpack.c.bf16 %v17728_v34, %v17727_v1  ;;  %v17731_v1 = vld [vmem:[%s27788_s5 + $0x148] sm:$0x3]  ;;  %v28248_v34 = vld [vmem:[#allocation42_spill] sm:$0xff] }
 0x6f1   : > { %22003 = vmatprep.subr.bf16.mxu0 %v22002_v49 }
 0x6f3   : > { %20859 = vmatmul.mubr.msk.f32.gmra.mrb[40].mxu0 %vm396_vm2, %v25770_v57 }
 0x6f4   : > { %20861 = vmatprep.mubr.msk.f32.mxu0 %vm396_vm2, %v25774_v9 }
 0x6f7   : > { %20862 = vmatmul.mubr.msk.f32.gmra.mrb[42].mxu0 %vm396_vm2, %v25778_v53 }
 0x6f8   : > { %20864 = vmatprep.mubr.msk.f32.mxu0 %vm396_vm2, %v25782_v8 }
 0x6fb   : > { %20865 = vmatmul.mubr.msk.f32.gmra.mrb[44].mxu0 %vm396_vm2, %v25786_v14 }
 0x6fc   : > { %20867 = vmatprep.mubr.msk.f32.mxu0 %vm396_vm2, %v25790_v16 }
 0x6ff   : > { %20868 = vmatmul.mubr.msk.f32.gmra.mrb[46].mxu0 %vm396_vm2, %v25794_v40 }
 0x700   : > { %20870 = vmatprep.mubr.msk.f32.mxu0 %vm396_vm2, %v25798_v33 }
 0x703   : > { %20871 = vmatmul.mubr.msk.f32.gmra.mrb[48].mxu0 %vm396_vm2, %v25802_v19 }
 0x704   : > { %20873 = vmatprep.mubr.msk.f32.mxu0 %vm396_vm2, %v25806_v11 }
 0x707   : > { %20874 = vmatmul.mubr.msk.f32.gmra.mrb[50].mxu0 %vm396_vm2, %v25810_v13 }
 0x708   : > { %20876 = vmatprep.mubr.msk.f32.mxu0 %vm396_vm2, %v25814_v32 }
 0x70b   : > { %20877 = vmatmul.mubr.msk.f32.gmra.mrb[52].mxu0 %vm396_vm2, %v25818_v62 }
 0x70c   : > { %20879 = vmatprep.mubr.msk.f32.mxu0 %vm396_vm2, %v25822_v50 }
 0x70f   : > { %20880 = vmatmul.mubr.msk.f32.gmra.mrb[54].mxu0 %vm396_vm2, %v25826_v24 }
 0x710   : > { %20882 = vmatprep.mubr.msk.f32.mxu0 %vm396_vm2, %v25830_v63 }
 0x713   : > { %20883 = vmatmul.mubr.msk.f32.gmra.mrb[56].mxu0 %vm396_vm2, %v25834_v55 }
 0x714   : > { %20885 = vmatprep.mubr.msk.f32.mxu0 %vm396_vm2, %v25838_v27 }
 0x717   : > { %20886 = vmatmul.mubr.msk.f32.gmra.mrb[58].mxu0 %vm396_vm2, %v25842_v4 }
 0x718   : > { %20888 = vmatprep.mubr.msk.f32.mxu0 %vm396_vm2, %v25846_v15 }
 0x71b   : > { %20889 = vmatmul.mubr.msk.f32.gmra.mrb[60].mxu0 %vm396_vm2, %v25850_v23  ;;  %v23271_v23 = vld [vmem:[#allocation5 + $0x21] sm:$0xff] }
 0x71c   : > { %20891 = vmatprep.mubr.msk.f32.mxu0 %vm396_vm2, %v26080_v48  ;;  %v23270_v48 = vld [vmem:[#allocation5 + $0x19] sm:$0xff] }
 0x71f   : > { %20892 = vmatmul.mubr.msk.f32.gmra.mrb[62].mxu0 %vm396_vm2, %v26086_v17  ;;  %v22010_v17 = vpack.c.bf16 %v17730_v43, %v17729_v0  ;;  %v28251_v0 = vld [vmem:[#allocation45_spill] sm:$0xff]  ;;  %v28252_v43 = vld [vmem:[#allocation46_spill] sm:$0xff] }
 0x720   : > { %20908 = vmatprep.mubr.msk.f32.mxu0 %vm396_vm2, %v23269_v44  ;;  %v28249_v44 = vld [vmem:[#allocation43_spill] sm:$0xff] }
 0x723   : > { %20909 = vmatmul.mubr.msk.f32.vlgmr.msra.gmra.mrb[32].mxu0 %vm396_vm2, %v23270_v48  ;;  %v28246_v48 = vld [vmem:[#allocation41_spill] sm:$0xff] }
 0x724   : > { %22005 = vmatpush3.bf16.msra.mxu0 %v22002_v49  ;;  %20911 = vmatprep.mubr.msk.f32.mxu0 %vm396_vm2, %v23271_v23  ;;  %v17765_v49 = vld [vmem:[%s27788_s5 + $0x150] sm:$0xff]  ;;  %v17766_v23 = vld [vmem:[%s27788_s5 + $0x158] sm:$0xff] }
 0x725   : > { %22007 = vmatprep.subr.bf16.mxu0 %v22006_v37 }
 0x727   : > { %20912 = vmatmul.mubr.msk.f32.gmra.mrb[34].mxu0 %vm396_vm2, %v25529_v35  ;;  %v22014_v35 = vpack.c.bf16 %v17766_v23, %v17765_v49  ;;  %v28254_v49 = vld [vmem:[#allocation14_spill] sm:$0xff]  ;;  %v28255_v23 = vld [vmem:[#allocation15_spill] sm:$0xff] }
 0x728   : > { %20914 = vmatprep.mubr.msk.f32.mxu0 %vm396_vm2, %v25531_v3  ;;  %22009 = vmatpush3.bf16.msra.mxu0 %v22006_v37  ;;  %v28234_v3 = vld [vmem:[#allocation30_spill] sm:$0xff]  ;;  %v28250_v37 = vld [vmem:[#allocation44_spill] sm:$0xff] }
 0x729   : > { %22011 = vmatprep.subr.bf16.mxu0 %v22010_v17 }
 0x72b   : > { %20915 = vmatmul.mubr.msk.f32.gmra.mrb[36].mxu0 %vm396_vm2, %v25541_v38  ;;  %v26168_v38 = vld [vmem:[#allocation5 + $0x101] sm:$0xff] }
 0x72c   : > { %20917 = vmatprep.mubr.msk.f32.mxu0 %vm396_vm2, %v25555_v2  ;;  %22013 = vmatpush3.bf16.msra.mxu0 %v22010_v17  ;;  %v28235_v2 = vld [vmem:[#allocation31_spill] sm:$0xff]  ;;  %v28247_v17 = vld [vmem:[#allocation12_spill] sm:$0xff] }
 0x72d   : > { %20968 = vmatprep.subr.msk.mxu0 %vm8136_vm3, %v17731_v1 }
 0x72f   : > { %20918 = vmatmul.mubr.msk.f32.gmra.mrb[38].mxu0 %vm396_vm2, %v25562_v45  ;;  %v26174_v45 = vld [vmem:[#allocation5 + $0x109] sm:$0xff] }
 0x730   : > { %20920 = vmatprep.mubr.msk.f32.mxu0 %vm396_vm2, %v25570_v29  ;;  %20969 = vmatpush3.msk.msra.mxu0 %vm8136_vm3, %v17731_v1  ;;  %v17767_v29 = vld [vmem:[%s27788_s5 + $0x160] sm:$0xff] }
 0x731   : > { %22015 = vmatprep.subr.bf16.mxu0 %v22014_v35  ;;  %v28253_v1 = vld [vmem:[#allocation13_spill] sm:$0xff] }
 0x733   : > { %20921 = vmatmul.mubr.msk.f32.gmra.mrb[40].mxu0 %vm396_vm2, %v25576_v30  ;;  %v17768_v30 = vld [vmem:[%s27788_s5 + $0x168] sm:$0xff] }
 0x734   : > { %20923 = vmatprep.mubr.msk.f32.mxu0 %vm396_vm2, %v25585_v6  ;;  %v28236_v6 = vld [vmem:[#allocation24_spill] sm:$0xff] }
 0x737   : > { %20924 = vmatmul.mubr.msk.f32.gmra.mrb[42].mxu0 %vm396_vm2, %v25587_v56  ;;  %v22018_v56 = vpack.c.bf16 %v17768_v30, %v17767_v29  ;;  %v28259_v29 = vld [vmem:[#allocation19_spill] sm:$0xff]  ;;  %v28260_v30 = vld [vmem:[#allocation20_spill] sm:$0xff] }
 0x738   : > { %20926 = vmatprep.mubr.msk.f32.mxu0 %vm396_vm2, %v25604_v47  ;;  %v17769_v47 = vld [vmem:[%s27788_s5 + $0x170] sm:$0xff] }
 0x73b   : > { %20927 = vmatmul.mubr.msk.f32.gmra.mrb[44].mxu0 %vm396_vm2, %v25606_v42  ;;  %v17770_v42 = vld [vmem:[%s27788_s5 + $0x178] sm:$0xff] }
 0x73c   : > { %20929 = vmatprep.mubr.msk.f32.mxu0 %vm396_vm2, %v25618_v52  ;;  %v28237_v52 = vld [vmem:[#allocation25_spill] sm:$0xff] }
 0x73f   : > { %20930 = vmatmul.mubr.msk.f32.gmra.mrb[46].mxu0 %vm396_vm2, %v25622_v39  ;;  %v28238_v39 = vld [vmem:[#allocation34_spill] sm:$0xff] }
 0x740   : > { %20932 = vmatprep.mubr.msk.f32.mxu0 %vm396_vm2, %v25626_v59  ;;  %v22022_v59 = vpack.c.bf16 %v17770_v42, %v17769_v47  ;;  %v26259_v47 = vld [vmem:[#allocation5 + $0x102] sm:$0xff]  ;;  %v28264_v42 = vld [vmem:[#allocation23_spill] sm:$0xff] }
 0x741   : > { %28263 = vst [vmem:[#allocation48_spill] sm:$0xff] %v26259_v47 }
 0x743   : > { %20933 = vmatmul.mubr.msk.f32.gmra.mrb[48].mxu0 %vm396_vm2, %v25628_v31  ;;  %v28239_v31 = vld [vmem:[#allocation35_spill] sm:$0xff] }
 0x744   : > { %20935 = vmatprep.mubr.msk.f32.mxu0 %vm396_vm2, %v25648_v21  ;;  %v17771_v21 = vld [vmem:[%s27788_s5 + $0x180] sm:$0x3] }
 0x747   : > { %20936 = vmatmul.mubr.msk.f32.gmra.mrb[50].mxu0 %vm396_vm2, %v25654_v61  ;;  %v17805_v61 = vld [vmem:[%s27788_s5 + $0x188] sm:$0xff] }
 0x748   : > { %20938 = vmatprep.mubr.msk.f32.mxu0 %vm396_vm2, %v25662_v10  ;;  %v17806_v10 = vld [vmem:[%s27788_s5 + $0x190] sm:$0xff] }
 0x74b   : > { %20939 = vmatmul.mubr.msk.f32.gmra.mrb[52].mxu0 %vm396_vm2, %v25667_v60  ;;  %v28240_v60 = vld [vmem:[#allocation36_spill] sm:$0xff] }
 0x74c   : > { %20941 = vmatprep.mubr.msk.f32.mxu0 %vm396_vm2, %v25674_v25  ;;  %v22026_v25 = vpack.c.bf16 %v17806_v10, %v17805_v61  ;;  %v17809_v10 = vld [vmem:[%s27788_s5 + $0x1a8] sm:$0xff] }
 0x74f   : > { %20942 = vmatmul.mubr.msk.f32.gmra.mrb[54].mxu0 %vm396_vm2, %v25676_v22  ;;  %v28241_v22 = vld [vmem:[#allocation37_spill] sm:$0xff] }
 0x750   : > { %20944 = vmatprep.mubr.msk.f32.mxu0 %vm396_vm2, %v25684_v18  ;;  %v28242_v18 = vld [vmem:[#allocation38_spill] sm:$0xff] }
 0x753   : > { %20945 = vmatmul.mubr.msk.f32.gmra.mrb[56].mxu0 %vm396_vm2, %v25688_v26  ;;  %v28243_v26 = vld [vmem:[#allocation39_spill] sm:$0xff] }
 0x754   : > { %20947 = vmatprep.mubr.msk.f32.mxu0 %vm396_vm2, %v25692_v28  ;;  %v28244_v28 = vld [vmem:[#allocation40_spill] sm:$0xff] }
 0x757   : > { %20948 = vmatmul.mubr.msk.f32.gmra.mrb[58].mxu0 %vm396_vm2, %v25694_v20  ;;  %v28245_v20 = vld [vmem:[#allocation33_spill] sm:$0xff] }
 0x758   : > { %20950 = vmatprep.mubr.msk.f32.mxu0 %vm396_vm2, %v28234_v3  ;;  %v28257_v3 = vld [vmem:[#allocation17_spill] sm:$0xff] }
 0x75b   : > { %20951 = vmatmul.mubr.msk.f32.gmra.mrb[60].mxu0 %vm396_vm2, %v28235_v2  ;;  %v28258_v2 = vld [vmem:[#allocation18_spill] sm:$0xff] }
 0x75c   : > { %20953 = vmatprep.mubr.msk.f32.mxu0 %vm396_vm2, %v26168_v38 }
 0x75f   : > { %20954 = vmatmul.mubr.msk.f32.gmra.mrb[62].mxu0 %vm396_vm2, %v26174_v45 }
 0x760   : > { %20970 = vmatprep.mubr.msk.f32.mxu0 %vm396_vm2, %v28236_v6  ;;  %v28261_v6 = vld [vmem:[#allocation21_spill] sm:$0xff] }
 0x763   : > { %20971 = vmatmul.mubr.msk.f32.vlgmr.msra.gmra.mrb[32].mxu0 %vm396_vm2, %v28237_v52  ;;  %v26265_v52 = vld [vmem:[#allocation5 + $0x10a] sm:$0xff] }
 0x764   : > { %22017 = vmatpush3.bf16.msra.mxu0 %v22014_v35  ;;  %20973 = vmatprep.mubr.msk.f32.mxu0 %vm396_vm2, %v28238_v39  ;;  %v28256_v35 = vld [vmem:[#allocation16_spill] sm:$0xff]  ;;  %28265 = vst [vmem:[#allocation27_spill] sm:$0xff] %v26265_v52 }
 0x765   : > { %22019 = vmatprep.subr.bf16.mxu0 %v22018_v56 }
 0x767   : > { %20974 = vmatmul.mubr.msk.f32.gmra.mrb[34].mxu0 %vm396_vm2, %v28239_v31 }
 0x768   : > { %20976 = vmatprep.mubr.msk.f32.mxu0 %vm396_vm2, %v25893_v46  ;;  %22021 = vmatpush3.bf16.msra.mxu0 %v22018_v56  ;;  %v28262_v56 = vld [vmem:[#allocation22_spill] sm:$0xff] }
 0x769   : > { %22023 = vmatprep.subr.bf16.mxu0 %v22022_v59 }
 0x76b   : > { %20977 = vmatmul.mubr.msk.f32.gmra.mrb[36].mxu0 %vm396_vm2, %v25898_v12 }
 0x76c   : > { %20979 = vmatprep.mubr.msk.f32.mxu0 %vm396_vm2, %v28240_v60  ;;  %22025 = vmatpush3.bf16.msra.mxu0 %v22022_v59  ;;  %v17807_v59 = vld [vmem:[%s27788_s5 + $0x198] sm:$0xff] }
 0x76d   : > { %21030 = vmatprep.subr.msk.mxu0 %vm8136_vm3, %v17771_v21 }
 0x76f   : > { %20980 = vmatmul.mubr.msk.f32.gmra.mrb[38].mxu0 %vm396_vm2, %v28241_v22 }
 0x770   : > { %20982 = vmatprep.mubr.msk.f32.mxu0 %vm396_vm2, %v28242_v18  ;;  %21031 = vmatpush3.msk.msra.mxu0 %vm8136_vm3, %v17771_v21  ;;  %v17808_v21 = vld [vmem:[%s27788_s5 + $0x1a0] sm:$0xff] }
 0x771   : > { %22027 = vmatprep.subr.bf16.mxu0 %v22026_v25  ;;  %v22030_v61 = vpack.c.bf16 %v17808_v21, %v17807_v59  ;;  %v10676_v59 = vld [vmem:[#allocation5 + $0x59] sm:$0xff]  ;;  %v10677_v21 = vld [vmem:[#allocation5 + $0x61] sm:$0xff] }
 0x773   : > { %20983 = vmatmul.mubr.msk.f32.gmra.mrb[40].mxu0 %vm396_vm2, %v28243_v26 }
 0x774   : > { %20985 = vmatprep.mubr.msk.f32.mxu0 %vm396_vm2, %v28244_v28 }
 0x777   : > { %20986 = vmatmul.mubr.msk.f32.gmra.mrb[42].mxu0 %vm396_vm2, %v28245_v20 }
 0x778   : > { %20988 = vmatprep.mubr.msk.f32.mxu0 %vm396_vm2, %v28246_v48 }
 0x77b   : > { %20989 = vmatmul.mubr.msk.f32.gmra.mrb[44].mxu0 %vm396_vm2, %v28247_v17 }
 0x77c   : > { %20991 = vmatprep.mubr.msk.f32.mxu0 %vm396_vm2, %v28248_v34 }
 0x77f   : > { %20992 = vmatmul.mubr.msk.f32.gmra.mrb[46].mxu0 %vm396_vm2, %v28249_v44 }
 0x780   : > { %20994 = vmatprep.mubr.msk.f32.mxu0 %vm396_vm2, %v28250_v37 }
 0x783   : > { %20995 = vmatmul.mubr.msk.f32.gmra.mrb[48].mxu0 %vm396_vm2, %v28251_v0 }
 0x784   : > { %20997 = vmatprep.mubr.msk.f32.mxu0 %vm396_vm2, %v28252_v43 }
 0x787   : > { %20998 = vmatmul.mubr.msk.f32.gmra.mrb[50].mxu0 %vm396_vm2, %v28253_v1 }
 0x788   : > { %21000 = vmatprep.mubr.msk.f32.mxu0 %vm396_vm2, %v28254_v49 }
 0x78b   : > { %21001 = vmatmul.mubr.msk.f32.gmra.mrb[52].mxu0 %vm396_vm2, %v28255_v23 }
 0x78c   : > { %21003 = vmatprep.mubr.msk.f32.mxu0 %vm396_vm2, %v28256_v35 }
 0x78f   : > { %21004 = vmatmul.mubr.msk.f32.gmra.mrb[54].mxu0 %vm396_vm2, %v28257_v3 }
 0x790   : > { %21006 = vmatprep.mubr.msk.f32.mxu0 %vm396_vm2, %v28258_v2 }
 0x793   : > { %21007 = vmatmul.mubr.msk.f32.gmra.mrb[56].mxu0 %vm396_vm2, %v28259_v29 }
 0x794   : > { %21009 = vmatprep.mubr.msk.f32.mxu0 %vm396_vm2, %v28260_v30 }
 0x797   : > { %21010 = vmatmul.mubr.msk.f32.gmra.mrb[58].mxu0 %vm396_vm2, %v28261_v6 }
 0x798   : > { %21012 = vmatprep.mubr.msk.f32.mxu0 %vm396_vm2, %v28262_v56 }
 0x79b   : > { %21013 = vmatmul.mubr.msk.f32.gmra.mrb[60].mxu0 %vm396_vm2, %v28264_v42 }
 0x79c   : > { %21015 = vmatprep.mubr.msk.f32.mxu0 %vm396_vm2, %v26259_v47  ;;  %v17810_v47 = vld [vmem:[%s27788_s5 + $0x1b0] sm:$0xff] }
 0x79f   : > { %21016 = vmatmul.mubr.msk.f32.gmra.mrb[62].mxu0 %vm396_vm2, %v26265_v52  ;;  %v22034_v52 = vpack.c.bf16 %v17810_v47, %v17809_v10  ;;  %v17851_v47 = vld [vmem:[%s27788_s5 + $0x1f0] sm:$0x3] }
 0x7a0   : > { %21032 = vmatprep.mubr.msk.f32.mxu0 %vm396_vm2, %v25731_v36  ;;  %v17811_v36 = vld [vmem:[%s27788_s5 + $0x1b8] sm:$0x3]  ;;  %v10679_v10 = vld [vmem:[#allocation5 + $0x71] sm:$0xff] }
 0x7a3   : > { %21033 = vmatmul.mubr.msk.f32.vlgmr.msra.gmra.mrb[32].mxu0 %vm396_vm2, %v25738_v58  ;;  %v17845_v58 = vld [vmem:[%s27788_s5 + $0x1c0] sm:$0xff] }
 0x7a4   : > { %22029 = vmatpush3.bf16.msra.mxu0 %v22026_v25  ;;  %21035 = vmatprep.mubr.msk.f32.mxu0 %vm396_vm2, %v25748_v5  ;;  %v17846_v5 = vld [vmem:[%s27788_s5 + $0x1c8] sm:$0xff] }
 0x7a5   : > { %22031 = vmatprep.subr.bf16.mxu0 %v22030_v61  ;;  %v10674_v25 = vld [vmem:[#allocation5 + $0x49] sm:$0xff] }
 0x7a7   : > { %21036 = vmatmul.mubr.msk.f32.gmra.mrb[34].mxu0 %vm396_vm2, %v25753_v54  ;;  %v22038_v54 = vpack.c.bf16 %v17846_v5, %v17845_v58  ;;  %v10681_v58 = vld [vmem:[#allocation5 + $0x81] sm:$0xff]  ;;  %v10682_v5 = vld [vmem:[#allocation5 + $0x89] sm:$0xff] }
 0x7a8   : > { %21038 = vmatprep.mubr.msk.f32.mxu0 %vm396_vm2, %v25757_v51  ;;  %22033 = vmatpush3.bf16.msra.mxu0 %v22030_v61  ;;  %v28266_v51 = vld [vmem:[#allocation32_spill] sm:$0xff] }
 0x7a9   : > { %22035 = vmatprep.subr.bf16.mxu0 %v22034_v52  ;;  %v10678_v61 = vld [vmem:[#allocation5 + $0x69] sm:$0xff] }
 0x7ab   : > { %21039 = vmatmul.mubr.msk.f32.gmra.mrb[36].mxu0 %vm396_vm2, %v25762_v7  ;;  %v28267_v7 = vld [vmem:[#allocation47_spill] sm:$0xff] }
 0x7ac   : > { %21041 = vmatprep.mubr.msk.f32.mxu0 %vm396_vm2, %v25766_v41  ;;  %22037 = vmatpush3.bf16.msra.mxu0 %v22034_v52  ;;  %v10303_v41 = vld [vmem:[#allocation5 + $0x110] sm:$0xff] }
 0x7ad   : > { %21092 = vmatprep.subr.msk.mxu0 %vm8136_vm3, %v17811_v36  ;;  %v10675_v52 = vld [vmem:[#allocation5 + $0x51] sm:$0xff] }
 0x7af   : > { %21042 = vmatmul.mubr.msk.f32.gmra.mrb[38].mxu0 %vm396_vm2, %v25770_v57  ;;  %v28268_v57 = vld [vmem:[#allocation26_spill] sm:$0xff] }
 0x7b0   : > { %21044 = vmatprep.mubr.msk.f32.mxu0 %vm396_vm2, %v25774_v9  ;;  %21093 = vmatpush3.msk.msra.mxu0 %vm8136_vm3, %v17811_v36  ;;  %v10304_v9 = vld [vmem:[#allocation5 + $0x118] sm:$0xff] }
 0x7b1   : > { %22039 = vmatprep.subr.bf16.mxu0 %v22038_v54  ;;  %v10680_v36 = vld [vmem:[#allocation5 + $0x79] sm:$0xff] }
 0x7b3   : > { %21045 = vmatmul.mubr.msk.f32.gmra.mrb[40].mxu0 %vm396_vm2, %v25778_v53  ;;  %v10669_v53 = vld [vmem:[#allocation5 + $0x21] sm:$0xff] }
 0x7b4   : > { %21047 = vmatprep.mubr.msk.f32.mxu0 %vm396_vm2, %v25782_v8  ;;  %v17847_v8 = vld [vmem:[%s27788_s5 + $0x1d0] sm:$0xff] }
 0x7b7   : > { %21048 = vmatmul.mubr.msk.f32.gmra.mrb[42].mxu0 %vm396_vm2, %v25786_v14  ;;  %v17848_v14 = vld [vmem:[%s27788_s5 + $0x1d8] sm:$0xff] }
 0x7b8   : > { %21050 = vmatprep.mubr.msk.f32.mxu0 %vm396_vm2, %v25790_v16  ;;  %v17886_v16 = vld [vmem:[%s27790_s7 + $0x28] sm:$0xff] }
 0x7bb   : > { %21051 = vmatmul.mubr.msk.f32.gmra.mrb[44].mxu0 %vm396_vm2, %v25794_v40  ;;  %v17887_v40 = vld [vmem:[%s27790_s7 + $0x30] sm:$0xff] }
 0x7bc   : > { %21053 = vmatprep.mubr.msk.f32.mxu0 %vm396_vm2, %v25798_v33  ;;  %v17888_v33 = vld [vmem:[%s27790_s7 + $0x38] sm:$0xff] }
 0x7bf   : > { %21054 = vmatmul.mubr.msk.f32.gmra.mrb[46].mxu0 %vm396_vm2, %v25802_v19  ;;  %v22050_v19 = vpack.c.bf16 %v17887_v40, %v17886_v16  ;;  %v10692_v16 = vld [vmem:[#allocation5 + $0xd9] sm:$0xff]  ;;  %v10693_v40 = vld [vmem:[#allocation5 + $0xe1] sm:$0xff] }
 0x7c0   : > { %21056 = vmatprep.mubr.msk.f32.mxu0 %vm396_vm2, %v25806_v11  ;;  %v17889_v11 = vld [vmem:[%s27790_s7 + $0x40] sm:$0xff] }
 0x7c1   : > { %22051 = vmatprep.subr.bf16.mxu1 %v22050_v19 }
 0x7c2   : > { %22053 = vmatpush3.bf16.msra.mxu1 %v22050_v19  ;;  %v10695_v19 = vld [vmem:[#allocation5 + $0xf1] sm:$0xff] }
 0x7c3   : > { %21057 = vmatmul.mubr.msk.f32.gmra.mrb[48].mxu0 %vm396_vm2, %v25810_v13  ;;  %v22042_v13 = vpack.c.bf16 %v17848_v14, %v17847_v8  ;;  %v10690_v8 = vld [vmem:[#allocation5 + $0xc9] sm:$0xff]  ;;  %v10691_v14 = vld [vmem:[#allocation5 + $0xd1] sm:$0xff] }
 0x7c4   : > { %21059 = vmatprep.mubr.msk.f32.mxu0 %vm396_vm2, %v25814_v32  ;;  %v22054_v32 = vpack.c.bf16 %v17889_v11, %v17888_v33  ;;  %v10694_v33 = vld [vmem:[#allocation5 + $0xe9] sm:$0xff]  ;;  %v10696_v11 = vld [vmem:[#allocation5 + $0xf9] sm:$0xff] }
 0x7c6   : > { %22055 = vmatprep.subr.bf16.mxu1 %v22054_v32 }
 0x7c7   : > { %21060 = vmatmul.mubr.msk.f32.gmra.mrb[50].mxu0 %vm396_vm2, %v25818_v62  ;;  %v10670_v62 = vld [vmem:[#allocation5 + $0x29] sm:$0xff]  ;;  %22057 = vmatpush3.bf16.msra.mxu1 %v22054_v32  ;;  %v10700_v32 = vld [vmem:[#allocation5 + $0x119] sm:$0xff] }
 0x7c8   : > { %21062 = vmatprep.mubr.msk.f32.mxu0 %vm396_vm2, %v25822_v50  ;;  %v17849_v50 = vld [vmem:[%s27788_s5 + $0x1e0] sm:$0xff] }
 0x7cb   : > { %21063 = vmatmul.mubr.msk.f32.gmra.mrb[52].mxu0 %vm396_vm2, %v25826_v24  ;;  %v17850_v24 = vld [vmem:[%s27788_s5 + $0x1e8] sm:$0xff] }
 0x7cc   : > { %21065 = vmatprep.mubr.msk.f32.mxu0 %vm396_vm2, %v25830_v63  ;;  %v10671_v63 = vld [vmem:[#allocation5 + $0x31] sm:$0xff] }
 0x7cf   : > { %21066 = vmatmul.mubr.msk.f32.gmra.mrb[54].mxu0 %vm396_vm2, %v25834_v55  ;;  %v22046_v55 = vpack.c.bf16 %v17850_v24, %v17849_v50  ;;  %v11599_v50 = vld [vmem:[%s27790_s7 + $0x18] sm:$0xff] }
 0x7d0   : > { %21068 = vmatprep.mubr.msk.f32.mxu0 %vm396_vm2, %v25838_v27  ;;  %v10672_v27 = vld [vmem:[#allocation5 + $0x39] sm:$0xff] }
 0x7d3   : > { %21069 = vmatmul.mubr.msk.f32.gmra.mrb[56].mxu0 %vm396_vm2, %v25842_v4  ;;  %v17890_v4 = vld [vmem:[%s27790_s7 + $0x48] sm:$0xff] }
 0x7d4   : > { %21071 = vmatprep.mubr.msk.f32.mxu0 %vm396_vm2, %v25846_v15  ;;  %v10673_v15 = vld [vmem:[#allocation5 + $0x41] sm:$0xff]  ;;  %21212 = vmatprep.subr.mxu1 %v17890_v4 }
 0x7d5   : > { %21213 = vmatpush3.msra.mxu1 %v17890_v4 }
 0x7d7   : > { %21072 = vmatmul.mubr.msk.f32.gmra.mrb[58].mxu0 %vm396_vm2, %v28266_v51  ;;  %v10684_v51 = vld [vmem:[#allocation5 + $0x99] sm:$0xff] }
 0x7d8   : > { %21074 = vmatprep.mubr.msk.f32.mxu0 %vm396_vm2, %v28267_v7  ;;  %v10685_v7 = vld [vmem:[#allocation5 + $0xa1] sm:$0xff] }
 0x7db   : > { %21075 = vmatmul.mubr.msk.f32.gmra.mrb[60].mxu0 %vm396_vm2, %v28268_v57  ;;  %v10687_v57 = vld [vmem:[#allocation5 + $0xb1] sm:$0xff] }
 0x7dc   : > { %21077 = vmatprep.mubr.msk.f32.mxu0 %vm396_vm2, %v10303_v41  ;;  %v10686_v41 = vld [vmem:[#allocation5 + $0xa9] sm:$0xff] }
 0x7df   : > { %21078 = vmatmul.mubr.msk.f32.gmra.mrb[62].mxu0 %vm396_vm2, %v10304_v9  ;;  %v10688_v9 = vld [vmem:[#allocation5 + $0xb9] sm:$0xff] }
 0x7e0   : > { %21094 = vmatprep.mubr.msk.f32.mxu0 %vm396_vm2, %v10669_v53  ;;  %v10689_v53 = vld [vmem:[#allocation5 + $0xc1] sm:$0xff] }
 0x7e3   : > { %21095 = vmatmul.mubr.msk.f32.vlgmr.msra.gmra.mrb[32].mxu0 %vm396_vm2, %v10670_v62  ;;  %v11598_v62 = vld [vmem:[%s27790_s7 + $0x10] sm:$0xff] }
 0x7e4   : > { %22041 = vmatpush3.bf16.msra.mxu0 %v22038_v54  ;;  %21097 = vmatprep.mubr.msk.f32.mxu0 %vm396_vm2, %v10671_v63  ;;  %v10683_v54 = vld [vmem:[#allocation5 + $0x91] sm:$0xff]  ;;  %v22062_v4 = vpack.c.bf16 %v11599_v50, %v11598_v62 }
 0x7e5   : > { %22043 = vmatprep.subr.bf16.mxu0 %v22042_v13 }
 0x7e7   : > { %21098 = vmatmul.mubr.msk.f32.gmra.mrb[34].mxu0 %vm396_vm2, %v10672_v27 }
 0x7e8   : > { %21100 = vmatprep.mubr.msk.f32.mxu0 %vm396_vm2, %v10673_v15  ;;  %22045 = vmatpush3.bf16.msra.mxu0 %v22042_v13  ;;  %v10699_v13 = vld [vmem:[#allocation5 + $0x111] sm:$0xff] }
 0x7e9   : > { %22047 = vmatprep.subr.bf16.mxu0 %v22046_v55 }
 0x7eb   : > { %21101 = vmatmul.mubr.msk.f32.gmra.mrb[36].mxu0 %vm396_vm2, %v10674_v25 }
 0x7ec   : > { %21103 = vmatprep.mubr.msk.f32.mxu0 %vm396_vm2, %v10675_v52  ;;  %22049 = vmatpush3.bf16.msra.mxu0 %v22046_v55 }
 0x7ed   : > { %21154 = vmatprep.subr.msk.mxu0 %vm8136_vm3, %v17851_v47 }
 0x7ef   : > { %21104 = vmatmul.mubr.msk.f32.gmra.mrb[38].mxu0 %vm396_vm2, %v10676_v59 }
 0x7f0   : > { %21106 = vmatprep.mubr.msk.f32.mxu0 %vm396_vm2, %v10677_v21  ;;  %21155 = vmatpush3.msk.msra.mxu0 %vm8136_vm3, %v17851_v47 }
 0x7f3   : > { %21107 = vmatmul.mubr.msk.f32.gmra.mrb[40].mxu0 %vm396_vm2, %v10678_v61 }
 0x7f4   : > { %21109 = vmatprep.mubr.msk.f32.mxu0 %vm396_vm2, %v10679_v10 }
 0x7f7   : > { %21110 = vmatmul.mubr.msk.f32.gmra.mrb[42].mxu0 %vm396_vm2, %v10680_v36  ;;  %v11600_v36 = vld [vmem:[%s27790_s7 + $0x20] sm:$0xff] }
 0x7f8   : > { %21112 = vmatprep.mubr.msk.f32.mxu0 %vm396_vm2, %v10681_v58  ;;  %v17955_v58 = vld [vmem:[%s27790_s7 + $0x50] sm:$0xff] }
 0x7fb   : > { %21113 = vmatmul.mubr.msk.f32.gmra.mrb[44].mxu0 %vm396_vm2, %v10682_v5 }
 0x7fc   : > { %21115 = vmatprep.mubr.msk.f32.mxu0 %vm396_vm2, %v10683_v54 }
 0x7ff   : > { %21116 = vmatmul.mubr.msk.f32.gmra.mrb[46].mxu0 %vm396_vm2, %v10684_v51 }
 0x800   : > { %21118 = vmatprep.mubr.msk.f32.mxu0 %vm396_vm2, %v10685_v7 }
 0x803   : > { %21119 = vmatmul.mubr.msk.f32.gmra.mrb[48].mxu0 %vm396_vm2, %v10686_v41  ;;  %v17956_v41 = vld [vmem:[%s27790_s7 + $0x58] sm:$0xff] }
 0x804   : > { %21121 = vmatprep.mubr.msk.f32.mxu0 %vm396_vm2, %v10687_v57 }
 0x807   : > { %21122 = vmatmul.mubr.msk.f32.gmra.mrb[50].mxu0 %vm396_vm2, %v10688_v9 }
 0x808   : > { %21124 = vmatprep.mubr.msk.f32.mxu0 %vm396_vm2, %v10689_v53 }
 0x80b   : > { %21125 = vmatmul.mubr.msk.f32.gmra.mrb[52].mxu0 %vm396_vm2, %v10690_v8 }
 0x80c   : > { %21127 = vmatprep.mubr.msk.f32.mxu0 %vm396_vm2, %v10691_v14  ;;  %v26544_v14 = vpack.c.bf16 %v17956_v41, %v17955_v58 }
 0x80f   : > { %21128 = vmatmul.mubr.msk.f32.gmra.mrb[54].mxu0 %vm396_vm2, %v10692_v16 }
 0x810   : > { %21130 = vmatprep.mubr.msk.f32.mxu0 %vm396_vm2, %v10693_v40 }
 0x813   : > { %21131 = vmatmul.mubr.msk.f32.gmra.mrb[56].mxu0 %vm396_vm2, %v10694_v33 }
 0x814   : > { %21133 = vmatprep.mubr.msk.f32.mxu0 %vm396_vm2, %v10695_v19 }
 0x817   : > { %21134 = vmatmul.mubr.msk.f32.gmra.mrb[58].mxu0 %vm396_vm2, %v10696_v11 }
 0x818   : > { %21136 = vmatprep.mubr.msk.f32.mxu0 %vm396_vm2, %v26168_v38  ;;  %v28270_v38 = vld [vmem:[#allocation27_spill] sm:$0xff] }
 0x81b   : > { %21137 = vmatmul.mubr.msk.f32.gmra.mrb[60].mxu0 %vm396_vm2, %v26174_v45  ;;  %v11096_v45 = vld [vmem:[#allocation5 + $0x11a] sm:$0xff] }
 0x81c   : > { %21139 = vmatprep.mubr.msk.f32.mxu0 %vm396_vm2, %v10699_v13 }
 0x81f   : > { %21140 = vmatmul.mubr.msk.f32.gmra.mrb[62].mxu0 %vm396_vm2, %v10700_v32 }
 0x820   : > { %21156 = vmatprep.mubr.msk.f32.mxu0 %vm396_vm2, %v28238_v39  ;;  %v11596_v39 = vld [vmem:[%s27790_s7] sm:$0xff] }
 0x823   : > { %21157 = vmatmul.mubr.msk.f32.vlgmr.msra.gmra.mrb[32].mxu0 %vm396_vm2, %v28239_v31  ;;  %v11597_v31 = vld [vmem:[%s27790_s7 + $0x8] sm:$0xff] }
 0x824   : > { %21159 = vmatprep.mubr.msk.f32.mxu0 %vm396_vm2, %v25893_v46  ;;  %v11095_v46 = vld [vmem:[#allocation5 + $0x112] sm:$0xff] }
 0x827   : > { %21160 = vmatmul.mubr.msk.f32.gmra.mrb[34].mxu0 %vm396_vm2, %v25898_v12  ;;  %v28269_v12 = vld [vmem:[#allocation48_spill] sm:$0xff] }
 0x828   : > { %21162 = vmatprep.mubr.msk.f32.mxu0 %vm396_vm2, %v28240_v60  ;;  %v22058_v60 = vpack.c.bf16 %v11597_v31, %v11596_v39 }
 0x82a   : > { %22059 = vmatprep.subr.bf16.mxu1 %v22058_v60 }
 0x82b   : > { %21163 = vmatmul.mubr.msk.f32.gmra.mrb[36].mxu0 %vm396_vm2, %v28241_v22  ;;  %v26491_v22 = vld [vmem:[%s27789_s6] ss:$0 sm:$0xff] }
 0x82c   : > { %21165 = vmatprep.mubr.msk.f32.mxu0 %vm396_vm2, %v28242_v18 }
 0x82f   : > { %21166 = vmatmul.mubr.msk.f32.gmra.mrb[38].mxu0 %vm396_vm2, %v28243_v26 }
 0x830   : > { %21168 = vmatprep.mubr.msk.f32.mxu0 %vm396_vm2, %v28244_v28 }
 0x833   : > { %21169 = vmatmul.mubr.msk.f32.gmra.mrb[40].mxu0 %vm396_vm2, %v28245_v20 }
 0x834   : > { %21171 = vmatprep.mubr.msk.f32.mxu0 %vm396_vm2, %v28246_v48 }
 0x837   : > { %21172 = vmatmul.mubr.msk.f32.gmra.mrb[42].mxu0 %vm396_vm2, %v28247_v17 }
 0x838   : > { %21174 = vmatprep.mubr.msk.f32.mxu0 %vm396_vm2, %v28248_v34 }
 0x83b   : > { %21175 = vmatmul.mubr.msk.f32.gmra.mrb[44].mxu0 %vm396_vm2, %v28249_v44 }
 0x83c   : > { %21177 = vmatprep.mubr.msk.f32.mxu0 %vm396_vm2, %v28250_v37 }
 0x83f   : > { %21178 = vmatmul.mubr.msk.f32.gmra.mrb[46].mxu0 %vm396_vm2, %v28251_v0 }
 0x840   : > { %21180 = vmatprep.mubr.msk.f32.mxu0 %vm396_vm2, %v28252_v43 }
 0x843   : > { %21181 = vmatmul.mubr.msk.f32.gmra.mrb[48].mxu0 %vm396_vm2, %v28253_v1 }
 0x844   : > { %21183 = vmatprep.mubr.msk.f32.mxu0 %vm396_vm2, %v28254_v49 }
 0x847   : > { %21184 = vmatmul.mubr.msk.f32.gmra.mrb[50].mxu0 %vm396_vm2, %v28255_v23 }
 0x848   : > { %21186 = vmatprep.mubr.msk.f32.mxu0 %vm396_vm2, %v28256_v35 }
 0x84b   : > { %21187 = vmatmul.mubr.msk.f32.gmra.mrb[52].mxu0 %vm396_vm2, %v28257_v3 }
 0x84c   : > { %21189 = vmatprep.mubr.msk.f32.mxu0 %vm396_vm2, %v28258_v2 }
 0x84f   : > { %21190 = vmatmul.mubr.msk.f32.gmra.mrb[54].mxu0 %vm396_vm2, %v28259_v29 }
 0x850   : > { %21192 = vmatprep.mubr.msk.f32.mxu0 %vm396_vm2, %v28260_v30 }
 0x853   : > { %21193 = vmatmul.mubr.msk.f32.gmra.mrb[56].mxu0 %vm396_vm2, %v28261_v6 }
 0x854   : > { %21195 = vmatprep.mubr.msk.f32.mxu0 %vm396_vm2, %v28262_v56 }
 0x857   : > { %21196 = vmatmul.mubr.msk.f32.gmra.mrb[58].mxu0 %vm396_vm2, %v28264_v42 }
 0x858   : > { %21198 = vmatprep.mubr.msk.f32.mxu0 %vm396_vm2, %v28269_v12 }
 0x85b   : > { %21199 = vmatmul.mubr.msk.f32.gmra.mrb[60].mxu0 %vm396_vm2, %v28270_v38 }
 0x85c   : > { %21201 = vmatprep.mubr.msk.f32.mxu0 %vm396_vm2, %v11095_v46 }
 0x85f   : > { %21202 = vmatmul.mubr.msk.f32.gmra.mrb[62].mxu0 %vm396_vm2, %v11096_v45 }
 0x8f6   : > { %v21158_v18 = vpop.f32.mrb[32].mxu0 }
 0x8f7   : > { %v11469_v26 = vadd.f32 %v21158_v18, %v26491_v22  ;;  %v11270_v28 = vpop.f32.mrb[33].mxu0 }
 0x8f8   : > { %v11468_v20 = vadd.f32 %v26491_v22, %v11270_v28 }
 0x8f9   : > { %v11501_v48 = vmax.f32 %v11469_v26, 0.0 }
 0x8fa   : > { %v11500_v17 = vmax.f32 %v11468_v20, 0.0  ;;  %v21161_v34 = vpop.f32.mrb[34].mxu0 }
 0x8fb   : > { %11533 = vst.msk [vmem:[#allocation6 + $0x8] sm:$0xff] %vm390_vm1, %v11501_v48  ;;  %v11471_v44 = vadd.f32 %v21161_v34, %v26491_v22  ;;  %v11280_v37 = vpop.f32.mrb[35].mxu0 }
 0x8fc   : > { %11532 = vst.msk [vmem:[#allocation6] sm:$0xff] %vm390_vm1, %v11500_v17  ;;  %v11470_v0 = vadd.f32 %v26491_v22, %v11280_v37 }
 0x8fd   : > { %v11503_v43 = vmax.f32 %v11471_v44, 0.0 }
 0x8fe   : > { %v11502_v1 = vmax.f32 %v11470_v0, 0.0  ;;  %v21164_v49 = vpop.f32.mrb[36].mxu0 }
 0x8ff   : > { %11535 = vst.msk [vmem:[#allocation6 + $0x18] sm:$0xff] %vm390_vm1, %v11503_v43  ;;  %v11473_v23 = vadd.f32 %v21164_v49, %v26491_v22  ;;  %v11290_v35 = vpop.f32.mrb[37].mxu0 }
 0x900   : > { %11534 = vst.msk [vmem:[#allocation6 + $0x10] sm:$0xff] %vm390_vm1, %v11502_v1  ;;  %v11472_v3 = vadd.f32 %v26491_v22, %v11290_v35 }
 0x901   : > { %v11505_v2 = vmax.f32 %v11473_v23, 0.0 }
 0x902   : > { %v11504_v29 = vmax.f32 %v11472_v3, 0.0  ;;  %v21167_v30 = vpop.f32.mrb[38].mxu0 }
 0x903   : > { %11537 = vst.msk [vmem:[#allocation6 + $0x28] sm:$0xff] %vm390_vm1, %v11505_v2  ;;  %v11475_v6 = vadd.f32 %v21167_v30, %v26491_v22  ;;  %v11300_v56 = vpop.f32.mrb[39].mxu0  ;;  %v11601_v42 = vld [vmem:[#allocation6 + $0x1] sm:$0xff] }
 0x904   : > { %11536 = vst.msk [vmem:[#allocation6 + $0x20] sm:$0xff] %vm390_vm1, %v11504_v29  ;;  %v11474_v24 = vadd.f32 %v26491_v22, %v11300_v56  ;;  %21214 = vmatprep.mubr.msk.f32.mxu1 %vm390_vm1, %v11601_v42 }
 0x905   : > { %v11507_v63 = vmax.f32 %v11475_v6, 0.0 }
 0x906   : > { %v11506_v55 = vmax.f32 %v11474_v24, 0.0  ;;  %v21170_v27 = vpop.f32.mrb[40].mxu0 }
 0x907   : > { %11539 = vst.msk [vmem:[#allocation6 + $0x38] sm:$0xff] %vm390_vm1, %v11507_v63  ;;  %v11477_v15 = vadd.f32 %v21170_v27, %v26491_v22  ;;  %v11310_v25 = vpop.f32.mrb[41].mxu0  ;;  %v11602_v47 = vld [vmem:[#allocation6 + $0x9] sm:$0xff]  ;;  %v26516_v52 = vld [vmem:[#allocation6 + $0x11] sm:$0xff] }
 0x908   : > { %11538 = vst.msk [vmem:[#allocation6 + $0x30] sm:$0xff] %vm390_vm1, %v11506_v55  ;;  %v11476_v59 = vadd.f32 %v26491_v22, %v11310_v25  ;;  %21215 = vmatmul.mubr.msk.f32.vlgmr.msra.gmra.mrb[56].mxu1 %vm390_vm1, %v11602_v47 }
 0x909   : > { %v11509_v21 = vmax.f32 %v11477_v15, 0.0  ;;  %22061 = vmatpush3.bf16.msra.mxu1 %v22058_v60  ;;  %21217 = vmatprep.mubr.msk.f32.mxu1 %vm390_vm1, %v26516_v52 }
 0x90a   : > { %v11508_v61 = vmax.f32 %v11476_v59, 0.0  ;;  %v21173_v10 = vpop.f32.mrb[42].mxu0  ;;  %22063 = vmatprep.subr.bf16.mxu1 %v22062_v4 }
 0x90b   : > { %11541 = vst.msk [vmem:[#allocation6 + $0x48] sm:$0xff] %vm390_vm1, %v11509_v21  ;;  %v11479_v5 = vadd.f32 %v21173_v10, %v26491_v22  ;;  %v11320_v54 = vpop.f32.mrb[43].mxu0  ;;  %v26531_v51 = vld [vmem:[#allocation6 + $0x19] sm:$0xff]  ;;  %v26533_v7 = vld [vmem:[#allocation6 + $0x21] sm:$0xff] }
 0x90c   : > { %11540 = vst.msk [vmem:[#allocation6 + $0x40] sm:$0xff] %vm390_vm1, %v11508_v61  ;;  %v11478_v57 = vadd.f32 %v26491_v22, %v11320_v54  ;;  %21218 = vmatmul.mubr.msk.f32.gmra.mrb[58].mxu1 %vm390_vm1, %v26531_v51 }
 0x90d   : > { %v11511_v9 = vmax.f32 %v11479_v5, 0.0  ;;  %21220 = vmatprep.mubr.msk.f32.mxu1 %vm390_vm1, %v26533_v7  ;;  %22065 = vmatpush3.bf16.msra.mxu1 %v22062_v4 }
 0x90e   : > { %v11510_v53 = vmax.f32 %v11478_v57, 0.0  ;;  %v21176_v8 = vpop.f32.mrb[44].mxu0  ;;  %21270 = vmatprep.subr.mxu1 %v11600_v36 }
 0x90f   : > { %11543 = vst.msk [vmem:[#allocation6 + $0x58] sm:$0xff] %vm390_vm1, %v11511_v9  ;;  %v11481_v16 = vadd.f32 %v21176_v8, %v26491_v22  ;;  %v11330_v40 = vpop.f32.mrb[45].mxu0  ;;  %v26548_v33 = vld [vmem:[#allocation6 + $0x29] sm:$0xff]  ;;  %v26550_v19 = vld [vmem:[#allocation6 + $0x31] sm:$0xff] }
 0x910   : > { %11542 = vst.msk [vmem:[#allocation6 + $0x50] sm:$0xff] %vm390_vm1, %v11510_v53  ;;  %v11480_v11 = vadd.f32 %v26491_v22, %v11330_v40  ;;  %21221 = vmatmul.mubr.msk.f32.gmra.mrb[60].mxu1 %vm390_vm1, %v26548_v33 }
 0x911   : > { %v11513_v13 = vmax.f32 %v11481_v16, 0.0  ;;  %21223 = vmatprep.mubr.msk.f32.mxu1 %vm390_vm1, %v26550_v19  ;;  %21271 = vmatpush3.msra.mxu1 %v11600_v36 }
 0x912   : > { %v11512_v32 = vmax.f32 %v11480_v11, 0.0  ;;  %v21179_v12 = vpop.f32.mrb[46].mxu0  ;;  %22067 = vmatprep.subr.bf16.mxu1 %v26544_v14 }
 0x913   : > { %11545 = vst.msk [vmem:[#allocation6 + $0x68] sm:$0xff] %vm390_vm1, %v11513_v13  ;;  %v11483_v46 = vadd.f32 %v21179_v12, %v26491_v22  ;;  %v11340_v38 = vpop.f32.mrb[47].mxu0  ;;  %v26561_v45 = vld [vmem:[#allocation6 + $0x39] sm:$0xff]  ;;  %v26563_v39 = vld [vmem:[#allocation6 + $0x41] sm:$0xff] }
 0x914   : > { %11544 = vst.msk [vmem:[#allocation6 + $0x60] sm:$0xff] %vm390_vm1, %v11512_v32  ;;  %v11482_v31 = vadd.f32 %v26491_v22, %v11340_v38  ;;  %21224 = vmatmul.mubr.msk.f32.gmra.mrb[62].mxu1 %vm390_vm1, %v26561_v45 }
 0x915   : > { %v11515_v60 = vmax.f32 %v11483_v46, 0.0  ;;  %21226 = vmatprep.mubr.msk.f32.mxu1 %vm390_vm1, %v26563_v39 }
 0x916   : > { %v11514_v18 = vmax.f32 %v11482_v31, 0.0  ;;  %v21182_v26 = vpop.f32.mrb[48].mxu0 }
 0x917   : > { %11547 = vst.msk [vmem:[#allocation6 + $0x78] sm:$0xff] %vm390_vm1, %v11515_v60  ;;  %v11485_v28 = vadd.f32 %v21182_v26, %v26491_v22  ;;  %v11350_v20 = vpop.f32.mrb[49].mxu0  ;;  %v26573_v48 = vld [vmem:[#allocation6 + $0x49] sm:$0xff]  ;;  %v26575_v17 = vld [vmem:[#allocation6 + $0x51] sm:$0xff] }
 0x918   : > { %11546 = vst.msk [vmem:[#allocation6 + $0x70] sm:$0xff] %vm390_vm1, %v11514_v18  ;;  %v11484_v34 = vadd.f32 %v26491_v22, %v11350_v20  ;;  %21227 = vmatmul.mubr.msk.f32.gmra.mrb[64].mxu1 %vm390_vm1, %v26573_v48 }
 0x919   : > { %v11517_v44 = vmax.f32 %v11485_v28, 0.0  ;;  %21229 = vmatprep.mubr.msk.f32.mxu1 %vm390_vm1, %v26575_v17 }
 0x91a   : > { %v11516_v37 = vmax.f32 %v11484_v34, 0.0  ;;  %v21185_v0 = vpop.f32.mrb[50].mxu0 }
 0x91b   : > { %11549 = vst.msk [vmem:[#allocation6 + $0x88] sm:$0xff] %vm390_vm1, %v11517_v44  ;;  %v11487_v43 = vadd.f32 %v21185_v0, %v26491_v22  ;;  %v11360_v1 = vpop.f32.mrb[51].mxu0  ;;  %v26585_v49 = vld [vmem:[#allocation6 + $0x59] sm:$0xff]  ;;  %v26587_v23 = vld [vmem:[#allocation6 + $0x61] sm:$0xff] }
 0x91c   : > { %11548 = vst.msk [vmem:[#allocation6 + $0x80] sm:$0xff] %vm390_vm1, %v11516_v37  ;;  %v11486_v35 = vadd.f32 %v26491_v22, %v11360_v1  ;;  %21230 = vmatmul.mubr.msk.f32.gmra.mrb[66].mxu1 %vm390_vm1, %v26585_v49 }
 0x91d   : > { %v11519_v3 = vmax.f32 %v11487_v43, 0.0  ;;  %21232 = vmatprep.mubr.msk.f32.mxu1 %vm390_vm1, %v26587_v23 }
 0x91e   : > { %v11518_v2 = vmax.f32 %v11486_v35, 0.0  ;;  %v21188_v29 = vpop.f32.mrb[52].mxu0 }
 0x91f   : > { %11551 = vst.msk [vmem:[#allocation6 + $0x98] sm:$0xff] %vm390_vm1, %v11519_v3  ;;  %v11489_v30 = vadd.f32 %v21188_v29, %v26491_v22  ;;  %v11370_v6 = vpop.f32.mrb[53].mxu0  ;;  %v26597_v56 = vld [vmem:[#allocation6 + $0x69] sm:$0xff]  ;;  %v26599_v42 = vld [vmem:[#allocation6 + $0x71] sm:$0xff] }
 0x920   : > { %11550 = vst.msk [vmem:[#allocation6 + $0x90] sm:$0xff] %vm390_vm1, %v11518_v2  ;;  %v11488_v62 = vadd.f32 %v26491_v22, %v11370_v6  ;;  %21233 = vmatmul.mubr.msk.f32.gmra.mrb[68].mxu1 %vm390_vm1, %v26597_v56 }
 0x921   : > { %v11521_v50 = vmax.f32 %v11489_v30, 0.0  ;;  %21235 = vmatprep.mubr.msk.f32.mxu1 %vm390_vm1, %v26599_v42 }
 0x922   : > { %v11520_v24 = vmax.f32 %v11488_v62, 0.0  ;;  %v21191_v63 = vpop.f32.mrb[54].mxu0  ;;  %v17957_v62 = vld [vmem:[%s27790_s7 + $0x60] sm:$0xff] }
 0x923   : > { %11553 = vst.msk [vmem:[#allocation6 + $0xa8] sm:$0xff] %vm390_vm1, %v11521_v50  ;;  %v11491_v55 = vadd.f32 %v21191_v63, %v26491_v22  ;;  %v11380_v27 = vpop.f32.mrb[55].mxu0  ;;  %v26609_v4 = vld [vmem:[#allocation6 + $0x79] sm:$0xff]  ;;  %v26611_v15 = vld [vmem:[#allocation6 + $0x81] sm:$0xff] }
 0x924   : > { %11552 = vst.msk [vmem:[#allocation6 + $0xa0] sm:$0xff] %vm390_vm1, %v11520_v24  ;;  %v11490_v25 = vadd.f32 %v26491_v22, %v11380_v27  ;;  %21236 = vmatmul.mubr.msk.f32.gmra.mrb[70].mxu1 %vm390_vm1, %v26609_v4  ;;  %v17958_v50 = vld [vmem:[%s27790_s7 + $0x68] sm:$0xff]  ;;  %v11564_v24 = vld [vmem:[#allocation6] sm:$0xff]  ;;  %v26705_v27 = vld [vmem:[#allocation6 + $0x10] sm:$0xff] }
 0x925   : > { %v11523_v47 = vmax.f32 %v11491_v55, 0.0  ;;  %21238 = vmatprep.mubr.msk.f32.mxu1 %vm390_vm1, %v26611_v15  ;;  %v22070_v63 = vpack.c.bf16 %v17958_v50, %v17957_v62  ;;  %v11565_v55 = vld [vmem:[#allocation6 + $0x8] sm:$0xff] }
 0x926   : > { %v11522_v59 = vmax.f32 %v11490_v25, 0.0  ;;  %v21194_v21 = vpop.f32.mrb[56].mxu0  ;;  %v17959_v25 = vld [vmem:[%s27790_s7 + $0x70] sm:$0xff] }
 0x927   : > { %11555 = vst.msk [vmem:[#allocation6 + $0xb8] sm:$0xff] %vm390_vm1, %v11523_v47  ;;  %v11493_v61 = vadd.f32 %v21194_v21, %v26491_v22  ;;  %v11390_v10 = vpop.f32.mrb[57].mxu0  ;;  %v26621_v36 = vld [vmem:[#allocation6 + $0x89] sm:$0xff]  ;;  %v26623_v58 = vld [vmem:[#allocation6 + $0x91] sm:$0xff]  ;;  %v17993_v21 = vld [vmem:[%s27790_s7 + $0x80] sm:$0xff] }
 0x928   : > { %11554 = vst.msk [vmem:[#allocation6 + $0xb0] sm:$0xff] %vm390_vm1, %v11522_v59  ;;  %v11492_v5 = vadd.f32 %v26491_v22, %v11390_v10  ;;  %21239 = vmatmul.mubr.msk.f32.gmra.mrb[72].mxu1 %vm390_vm1, %v26621_v36  ;;  %v26713_v47 = vld [vmem:[#allocation6 + $0x18] sm:$0xff]  ;;  %v26729_v10 = vld [vmem:[#allocation6 + $0x28] sm:$0xff] }
 0x929   : > { %v11525_v54 = vmax.f32 %v11493_v61, 0.0  ;;  %21241 = vmatprep.mubr.msk.f32.mxu1 %vm390_vm1, %v26623_v58  ;;  %v17992_v59 = vld [vmem:[%s27790_s7 + $0x78] sm:$0xff] }
 0x92a   : > { %v11524_v41 = vmax.f32 %v11492_v5, 0.0  ;;  %v21197_v57 = vpop.f32.mrb[58].mxu0  ;;  %v26727_v61 = vpack.c.bf16 %v17993_v21, %v17992_v59  ;;  %v26733_v5 = vld [vmem:[#allocation6 + $0x30] sm:$0xff]  ;;  %v12281_v21 = vld [vmem:[#allocation6 + $0x2] sm:$0xff] }
 0x92b   : > { %11557 = vst.msk [vmem:[#allocation6 + $0xc8] sm:$0xff] %vm390_vm1, %v11525_v54  ;;  %v11495_v9 = vadd.f32 %v21197_v57, %v26491_v22  ;;  %v11400_v53 = vpop.f32.mrb[59].mxu0  ;;  %v26633_v8 = vld [vmem:[#allocation6 + $0x99] sm:$0xff]  ;;  %v26635_v16 = vld [vmem:[#allocation6 + $0xa1] sm:$0xff]  ;;  %v17995_v59 = vld [vmem:[%s27790_s7 + $0x90] sm:$0xff] }
 0x92c   : > { %11556 = vst.msk [vmem:[#allocation6 + $0xc0] sm:$0xff] %vm390_vm1, %v11524_v41  ;;  %v11494_v40 = vadd.f32 %v26491_v22, %v11400_v53  ;;  %21242 = vmatmul.mubr.msk.f32.gmra.mrb[74].mxu1 %vm390_vm1, %v26633_v8  ;;  %v26738_v54 = vld [vmem:[#allocation6 + $0x38] sm:$0xff]  ;;  %v26742_v41 = vld [vmem:[#allocation6 + $0x40] sm:$0xff]  ;;  %v26746_v57 = vld [vmem:[#allocation6 + $0x48] sm:$0xff] }
 0x92d   : > { %v11527_v11 = vmax.f32 %v11495_v9, 0.0  ;;  %21244 = vmatprep.mubr.msk.f32.mxu1 %vm390_vm1, %v26635_v16  ;;  %v26750_v9 = vld [vmem:[#allocation6 + $0x50] sm:$0xff]  ;;  %v26754_v53 = vld [vmem:[#allocation6 + $0x58] sm:$0xff] }
 0x92e   : > { %v11526_v13 = vmax.f32 %v11494_v40, 0.0  ;;  %v21200_v32 = vpop.f32.mrb[60].mxu0  ;;  %v26758_v40 = vld [vmem:[#allocation6 + $0x60] sm:$0xff] }
 0x92f   : > { %11559 = vst.msk [vmem:[#allocation6 + $0xd8] sm:$0xff] %vm390_vm1, %v11527_v11  ;;  %v11497_v12 = vadd.f32 %v21200_v32, %v26491_v22  ;;  %v11410_v46 = vpop.f32.mrb[61].mxu0  ;;  %v26645_v38 = vld [vmem:[#allocation6 + $0xa9] sm:$0xff]  ;;  %v26647_v31 = vld [vmem:[#allocation6 + $0xb1] sm:$0xff] }
 0x930   : > { %11558 = vst.msk [vmem:[#allocation6 + $0xd0] sm:$0xff] %vm390_vm1, %v11526_v13  ;;  %v11496_v60 = vadd.f32 %v26491_v22, %v11410_v46  ;;  %21245 = vmatmul.mubr.msk.f32.gmra.mrb[76].mxu1 %vm390_vm1, %v26645_v38  ;;  %v26762_v11 = vld [vmem:[#allocation6 + $0x68] sm:$0xff]  ;;  %v26766_v13 = vld [vmem:[#allocation6 + $0x70] sm:$0xff]  ;;  %v26770_v32 = vld [vmem:[#allocation6 + $0x78] sm:$0xff] }
 0x931   : > { %v11529_v18 = vmax.f32 %v11497_v12, 0.0  ;;  %21247 = vmatprep.mubr.msk.f32.mxu1 %vm390_vm1, %v26647_v31  ;;  %v26774_v12 = vld [vmem:[#allocation6 + $0x80] sm:$0xff]  ;;  %v26778_v46 = vld [vmem:[#allocation6 + $0x88] sm:$0xff] }
 0x932   : > { %v11528_v26 = vmax.f32 %v11496_v60, 0.0  ;;  %v21203_v28 = vpop.f32.mrb[62].mxu0  ;;  %v26782_v60 = vld [vmem:[#allocation6 + $0x90] sm:$0xff] }
 0x933   : > { %11561 = vst.msk [vmem:[#allocation6 + $0xe8] sm:$0xff] %vm390_vm1, %v11529_v18  ;;  %v11499_v20 = vadd.f32 %v21203_v28, %v26491_v22  ;;  %v11420_v34 = vpop.f32.mrb[63].mxu0  ;;  %v26657_v44 = vld [vmem:[#allocation6 + $0xb9] sm:$0xff]  ;;  %v26659_v37 = vld [vmem:[#allocation6 + $0xc1] sm:$0xff] }
 0x934   : > { %11560 = vst.msk [vmem:[#allocation6 + $0xe0] sm:$0xff] %vm390_vm1, %v11528_v26  ;;  %v11498_v0 = vadd.f32 %v26491_v22, %v11420_v34  ;;  %21248 = vmatmul.mubr.msk.f32.gmra.mrb[78].mxu1 %vm390_vm1, %v26657_v44  ;;  %v26786_v18 = vld [vmem:[#allocation6 + $0x98] sm:$0xff]  ;;  %v26790_v26 = vld [vmem:[#allocation6 + $0xa0] sm:$0xff]  ;;  %v26794_v28 = vld [vmem:[#allocation6 + $0xa8] sm:$0xff] }
 0x935   : > { %v11531_v43 = vmax.f32 %v11499_v20, 0.0  ;;  %21250 = vmatprep.mubr.msk.f32.mxu1 %vm390_vm1, %v26659_v37  ;;  %v26798_v20 = vld [vmem:[#allocation6 + $0xb0] sm:$0xff]  ;;  %v26802_v34 = vld [vmem:[#allocation6 + $0xb8] sm:$0xff] }
 0x936   : > { %v11530_v1 = vmax.f32 %v11498_v0, 0.0  ;;  %v26806_v0 = vld [vmem:[#allocation6 + $0xc0] sm:$0xff]  ;;  %v26818_v62 = vld [vmem:[#allocation6 + $0xd8] sm:$0xff] }
 0x937   : > { %11563 = vst.msk [vmem:[#allocation6 + $0xf8] sm:$0xff] %vm390_vm1, %v11531_v43  ;;  %v26668_v35 = vld [vmem:[#allocation6 + $0xc9] sm:$0xff]  ;;  %v26670_v3 = vld [vmem:[#allocation6 + $0xd1] sm:$0xff] }
 0x938   : > { %11562 = vst.msk [vmem:[#allocation6 + $0xf0] sm:$0xff] %vm390_vm1, %v11530_v1  ;;  %21251 = vmatmul.mubr.msk.f32.gmra.mrb[80].mxu1 %vm390_vm1, %v26668_v35  ;;  %v26810_v43 = vld [vmem:[#allocation6 + $0xc8] sm:$0xff]  ;;  %v26814_v1 = vld [vmem:[#allocation6 + $0xd0] sm:$0xff] }
 0x939   : > { %21253 = vmatprep.mubr.msk.f32.mxu1 %vm390_vm1, %v26670_v3 }
 0x93b   : > { %v26677_v22 = vld [vmem:[#allocation6 + $0xd9] sm:$0xff]  ;;  %v26679_v2 = vld [vmem:[#allocation6 + $0xe1] sm:$0xff] }
 0x93c   : > { %28271 = vst [vmem:[#allocation28_spill] sm:$0xff] %v26677_v22  ;;  %28272 = vst [vmem:[#allocation29_spill] sm:$0xff] %v26679_v2  ;;  %21254 = vmatmul.mubr.msk.f32.gmra.mrb[82].mxu1 %vm390_vm1, %v26677_v22  ;;  %v26822_v50 = vld [vmem:[#allocation6 + $0xe0] sm:$0xff]  ;;  %v17996_v22 = vld [vmem:[%s27790_s7 + $0x98] sm:$0xff] }
 0x93d   : > { %21256 = vmatprep.mubr.msk.f32.mxu1 %vm390_vm1, %v26679_v2  ;;  %v26851_v2 = vld [vmem:[#allocation6 + $0x1a] sm:$0xff] }
 0x93e   : > { %v26693_v6 = vld [vmem:[#allocation6 + $0xf9] sm:$0xff]  ;;  %28277 = vst [vmem:[#allocation34_spill] sm:$0xff] %v26851_v2 }
 0x93f   : > { %v26685_v29 = vld [vmem:[#allocation6 + $0xe9] sm:$0xff]  ;;  %v26687_v30 = vld [vmem:[#allocation6 + $0xf1] sm:$0xff]  ;;  %28275 = vst [vmem:[#allocation24_spill] sm:$0xff] %v26693_v6 }
 0x940   : > { %28273 = vst [vmem:[#allocation30_spill] sm:$0xff] %v26685_v29  ;;  %28274 = vst [vmem:[#allocation31_spill] sm:$0xff] %v26687_v30  ;;  %21257 = vmatmul.mubr.msk.f32.gmra.mrb[84].mxu1 %vm390_vm1, %v26685_v29  ;;  %v26846_v29 = vld [vmem:[#allocation6 + $0x12] sm:$0xff] }
 0x941   : > { %21259 = vmatprep.mubr.msk.f32.mxu1 %vm390_vm1, %v26687_v30  ;;  %v12282_v30 = vld [vmem:[#allocation6 + $0xa] sm:$0xff]  ;;  %28276 = vst [vmem:[#allocation25_spill] sm:$0xff] %v26846_v29 }
 0x944   : > { %21260 = vmatmul.mubr.msk.f32.gmra.mrb[86].mxu1 %vm390_vm1, %v26693_v6 }
 0x945   : > { %21272 = vmatprep.mubr.msk.f32.mxu1 %vm390_vm1, %v11564_v24  ;;  %v26826_v24 = vld [vmem:[#allocation6 + $0xe8] sm:$0xff] }
 0x948   : > { %21273 = vmatmul.mubr.msk.f32.vlgmr.msra.gmra.mrb[56].mxu1 %vm390_vm1, %v11565_v55  ;;  %v26834_v55 = vld [vmem:[#allocation6 + $0xf8] sm:$0xff] }
 0x949   : > { %22069 = vmatpush3.bf16.msra.mxu1 %v26544_v14  ;;  %21275 = vmatprep.mubr.msk.f32.mxu1 %vm390_vm1, %v26705_v27  ;;  %v26723_v14 = vld [vmem:[#allocation6 + $0x20] sm:$0xff] }
 0x94a   : > { %22071 = vmatprep.subr.bf16.mxu1 %v22070_v63 }
 0x94c   : > { %21276 = vmatmul.mubr.msk.f32.gmra.mrb[58].mxu1 %vm390_vm1, %v26713_v47 }
 0x94d   : > { %21278 = vmatprep.mubr.msk.f32.mxu1 %vm390_vm1, %v26723_v14  ;;  %22073 = vmatpush3.bf16.msra.mxu1 %v22070_v63  ;;  %v26830_v63 = vld [vmem:[#allocation6 + $0xf0] sm:$0xff] }
 0x94e   : > { %21328 = vmatprep.subr.mxu1 %v17959_v25 }
 0x950   : > { %21279 = vmatmul.mubr.msk.f32.gmra.mrb[60].mxu1 %vm390_vm1, %v26729_v10 }
 0x951   : > { %21281 = vmatprep.mubr.msk.f32.mxu1 %vm390_vm1, %v26733_v5  ;;  %21329 = vmatpush3.msra.mxu1 %v17959_v25  ;;  %v17994_v25 = vld [vmem:[%s27790_s7 + $0x88] sm:$0xff] }
 0x952   : > { %22075 = vmatprep.subr.bf16.mxu1 %v26727_v61  ;;  %v22078_v6 = vpack.c.bf16 %v17995_v59, %v17994_v25  ;;  %v18029_v25 = vld [vmem:[%s27790_s7 + $0xa0] sm:$0xff] }
 0x954   : > { %21282 = vmatmul.mubr.msk.f32.gmra.mrb[62].mxu1 %vm390_vm1, %v26738_v54 }
 0x955   : > { %21284 = vmatprep.mubr.msk.f32.mxu1 %vm390_vm1, %v26742_v41 }
 0x958   : > { %21285 = vmatmul.mubr.msk.f32.gmra.mrb[64].mxu1 %vm390_vm1, %v26746_v57 }
 0x959   : > { %21287 = vmatprep.mubr.msk.f32.mxu1 %vm390_vm1, %v26750_v9 }
 0x95c   : > { %21288 = vmatmul.mubr.msk.f32.gmra.mrb[66].mxu1 %vm390_vm1, %v26754_v53 }
 0x95d   : > { %21290 = vmatprep.mubr.msk.f32.mxu1 %vm390_vm1, %v26758_v40 }
 0x960   : > { %21291 = vmatmul.mubr.msk.f32.gmra.mrb[68].mxu1 %vm390_vm1, %v26762_v11 }
 0x961   : > { %21293 = vmatprep.mubr.msk.f32.mxu1 %vm390_vm1, %v26766_v13 }
 0x964   : > { %21294 = vmatmul.mubr.msk.f32.gmra.mrb[70].mxu1 %vm390_vm1, %v26770_v32 }
 0x965   : > { %21296 = vmatprep.mubr.msk.f32.mxu1 %vm390_vm1, %v26774_v12 }
 0x968   : > { %21297 = vmatmul.mubr.msk.f32.gmra.mrb[72].mxu1 %vm390_vm1, %v26778_v46 }
 0x969   : > { %21299 = vmatprep.mubr.msk.f32.mxu1 %vm390_vm1, %v26782_v60 }
 0x96c   : > { %21300 = vmatmul.mubr.msk.f32.gmra.mrb[74].mxu1 %vm390_vm1, %v26786_v18 }
 0x96d   : > { %21302 = vmatprep.mubr.msk.f32.mxu1 %vm390_vm1, %v26790_v26 }
 0x970   : > { %21303 = vmatmul.mubr.msk.f32.gmra.mrb[76].mxu1 %vm390_vm1, %v26794_v28 }
 0x971   : > { %21305 = vmatprep.mubr.msk.f32.mxu1 %vm390_vm1, %v26798_v20 }
 0x974   : > { %21306 = vmatmul.mubr.msk.f32.gmra.mrb[78].mxu1 %vm390_vm1, %v26802_v34 }
 0x975   : > { %21308 = vmatprep.mubr.msk.f32.mxu1 %vm390_vm1, %v26806_v0 }
 0x978   : > { %21309 = vmatmul.mubr.msk.f32.gmra.mrb[80].mxu1 %vm390_vm1, %v26810_v43 }
 0x979   : > { %21311 = vmatprep.mubr.msk.f32.mxu1 %vm390_vm1, %v26814_v1 }
 0x97c   : > { %21312 = vmatmul.mubr.msk.f32.gmra.mrb[82].mxu1 %vm390_vm1, %v26818_v62 }
 0x97d   : > { %21314 = vmatprep.mubr.msk.f32.mxu1 %vm390_vm1, %v26822_v50 }
 0x980   : > { %21315 = vmatmul.mubr.msk.f32.gmra.mrb[84].mxu1 %vm390_vm1, %v26826_v24 }
 0x981   : > { %21317 = vmatprep.mubr.msk.f32.mxu1 %vm390_vm1, %v26830_v63 }
 0x984   : > { %21318 = vmatmul.mubr.msk.f32.gmra.mrb[86].mxu1 %vm390_vm1, %v26834_v55 }
 0x985   : > { %21330 = vmatprep.mubr.msk.f32.mxu1 %vm390_vm1, %v12281_v21  ;;  %v26868_v21 = vld [vmem:[#allocation6 + $0x2a] sm:$0xff] }
 0x988   : > { %21331 = vmatmul.mubr.msk.f32.vlgmr.msra.gmra.mrb[56].mxu1 %vm390_vm1, %v12282_v30  ;;  %v18030_v30 = vld [vmem:[%s27790_s7 + $0xa8] sm:$0xff] }
 0x989   : > { %22077 = vmatpush3.bf16.msra.mxu1 %v26727_v61  ;;  %21333 = vmatprep.mubr.msk.f32.mxu1 %vm390_vm1, %v26846_v29  ;;  %v26864_v61 = vld [vmem:[#allocation6 + $0x22] sm:$0xff]  ;;  %v22082_v59 = vpack.c.bf16 %v18030_v30, %v18029_v25  ;;  %v26872_v29 = vld [vmem:[#allocation6 + $0x32] sm:$0xff]  ;;  %v26884_v25 = vld [vmem:[#allocation6 + $0x4a] sm:$0xff] }
 0x98a   : > { %22079 = vmatprep.subr.bf16.mxu1 %v22078_v6  ;;  %28280 = vst [vmem:[#allocation37_spill] sm:$0xff] %v26884_v25  ;;  %v26888_v30 = vld [vmem:[#allocation6 + $0x52] sm:$0xff] }
 0x98b   : > { %28281 = vst [vmem:[#allocation38_spill] sm:$0xff] %v26888_v30 }
 0x98c   : > { %21334 = vmatmul.mubr.msk.f32.gmra.mrb[58].mxu1 %vm390_vm1, %v26851_v2  ;;  %v26876_v2 = vld [vmem:[#allocation6 + $0x3a] sm:$0xff] }
 0x98d   : > { %21336 = vmatprep.mubr.msk.f32.mxu1 %vm390_vm1, %v26864_v61  ;;  %22081 = vmatpush3.bf16.msra.mxu1 %v22078_v6  ;;  %28278 = vst [vmem:[#allocation35_spill] sm:$0xff] %v26876_v2  ;;  %v26880_v6 = vld [vmem:[#allocation6 + $0x42] sm:$0xff] }
 0x98e   : > { %21386 = vmatprep.subr.mxu1 %v17996_v22  ;;  %28279 = vst [vmem:[#allocation36_spill] sm:$0xff] %v26880_v6 }
 0x990   : > { %21337 = vmatmul.mubr.msk.f32.gmra.mrb[60].mxu1 %vm390_vm1, %v26868_v21 }
 0x991   : > { %21339 = vmatprep.mubr.msk.f32.mxu1 %vm390_vm1, %v26872_v29  ;;  %21387 = vmatpush3.msra.mxu1 %v17996_v22  ;;  %v26892_v22 = vld [vmem:[#allocation6 + $0x5a] sm:$0xff] }
 0x992   : > { %22083 = vmatprep.subr.bf16.mxu1 %v22082_v59  ;;  %28282 = vst [vmem:[#allocation39_spill] sm:$0xff] %v26892_v22 }
 0x994   : > { %21340 = vmatmul.mubr.msk.f32.gmra.mrb[62].mxu1 %vm390_vm1, %v26876_v2  ;;  %v26896_v2 = vld [vmem:[#allocation6 + $0x62] sm:$0xff] }
 0x995   : > { %21342 = vmatprep.mubr.msk.f32.mxu1 %vm390_vm1, %v26880_v6  ;;  %28283 = vst [vmem:[#allocation40_spill] sm:$0xff] %v26896_v2  ;;  %v26900_v6 = vld [vmem:[#allocation6 + $0x6a] sm:$0xff] }
 0x996   : > { %28284 = vst [vmem:[#allocation33_spill] sm:$0xff] %v26900_v6 }
 0x998   : > { %21343 = vmatmul.mubr.msk.f32.gmra.mrb[64].mxu1 %vm390_vm1, %v26884_v25  ;;  %v26904_v25 = vld [vmem:[#allocation6 + $0x72] sm:$0xff] }
 0x999   : > { %21345 = vmatprep.mubr.msk.f32.mxu1 %vm390_vm1, %v26888_v30  ;;  %28285 = vst [vmem:[#allocation41_spill] sm:$0xff] %v26904_v25  ;;  %v26908_v30 = vld [vmem:[#allocation6 + $0x7a] sm:$0xff] }
 0x99a   : > { %28286 = vst [vmem:[#allocation12_spill] sm:$0xff] %v26908_v30 }
 0x99c   : > { %21346 = vmatmul.mubr.msk.f32.gmra.mrb[66].mxu1 %vm390_vm1, %v26892_v22  ;;  %v26912_v22 = vld [vmem:[#allocation6 + $0x82] sm:$0xff] }
 0x99d   : > { %21348 = vmatprep.mubr.msk.f32.mxu1 %vm390_vm1, %v26896_v2  ;;  %28287 = vst [vmem:[#allocation42_spill] sm:$0xff] %v26912_v22  ;;  %v26916_v2 = vld [vmem:[#allocation6 + $0x8a] sm:$0xff] }
 0x99e   : > { %28288 = vst [vmem:[#allocation43_spill] sm:$0xff] %v26916_v2 }
 0x9a0   : > { %21349 = vmatmul.mubr.msk.f32.gmra.mrb[68].mxu1 %vm390_vm1, %v26900_v6  ;;  %v26920_v6 = vld [vmem:[#allocation6 + $0x92] sm:$0xff] }
 0x9a1   : > { %21351 = vmatprep.mubr.msk.f32.mxu1 %vm390_vm1, %v26904_v25  ;;  %28289 = vst [vmem:[#allocation44_spill] sm:$0xff] %v26920_v6  ;;  %v26924_v25 = vld [vmem:[#allocation6 + $0x9a] sm:$0xff] }
 0x9a2   : > { %28290 = vst [vmem:[#allocation45_spill] sm:$0xff] %v26924_v25 }
 0x9a4   : > { %21352 = vmatmul.mubr.msk.f32.gmra.mrb[70].mxu1 %vm390_vm1, %v26908_v30  ;;  %v26928_v30 = vld [vmem:[#allocation6 + $0xa2] sm:$0xff] }
 0x9a5   : > { %21354 = vmatprep.mubr.msk.f32.mxu1 %vm390_vm1, %v26912_v22  ;;  %28291 = vst [vmem:[#allocation46_spill] sm:$0xff] %v26928_v30  ;;  %v26932_v22 = vld [vmem:[#allocation6 + $0xaa] sm:$0xff] }
 0x9a6   : > { %28292 = vst [vmem:[#allocation13_spill] sm:$0xff] %v26932_v22 }
 0x9a8   : > { %21355 = vmatmul.mubr.msk.f32.gmra.mrb[72].mxu1 %vm390_vm1, %v26916_v2  ;;  %v26936_v2 = vld [vmem:[#allocation6 + $0xb2] sm:$0xff] }
 0x9a9   : > { %21357 = vmatprep.mubr.msk.f32.mxu1 %vm390_vm1, %v26920_v6  ;;  %28293 = vst [vmem:[#allocation14_spill] sm:$0xff] %v26936_v2  ;;  %v26940_v6 = vld [vmem:[#allocation6 + $0xba] sm:$0xff] }
 0x9aa   : > { %28294 = vst [vmem:[#allocation15_spill] sm:$0xff] %v26940_v6 }
 0x9ac   : > { %21358 = vmatmul.mubr.msk.f32.gmra.mrb[74].mxu1 %vm390_vm1, %v26924_v25  ;;  %v26944_v25 = vld [vmem:[#allocation6 + $0xc2] sm:$0xff] }
 0x9ad   : > { %21360 = vmatprep.mubr.msk.f32.mxu1 %vm390_vm1, %v26928_v30  ;;  %28295 = vst [vmem:[#allocation16_spill] sm:$0xff] %v26944_v25  ;;  %v26948_v30 = vld [vmem:[#allocation6 + $0xca] sm:$0xff] }
 0x9ae   : > { %28296 = vst [vmem:[#allocation17_spill] sm:$0xff] %v26948_v30 }
 0x9b0   : > { %21361 = vmatmul.mubr.msk.f32.gmra.mrb[76].mxu1 %vm390_vm1, %v26932_v22  ;;  %v26952_v22 = vld [vmem:[#allocation6 + $0xd2] sm:$0xff] }
 0x9b1   : > { %21363 = vmatprep.mubr.msk.f32.mxu1 %vm390_vm1, %v26936_v2  ;;  %28297 = vst [vmem:[#allocation18_spill] sm:$0xff] %v26952_v22  ;;  %v26956_v2 = vld [vmem:[#allocation6 + $0xda] sm:$0xff] }
 0x9b2   : > { %28298 = vst [vmem:[#allocation19_spill] sm:$0xff] %v26956_v2 }
 0x9b4   : > { %21364 = vmatmul.mubr.msk.f32.gmra.mrb[78].mxu1 %vm390_vm1, %v26940_v6  ;;  %v26960_v6 = vld [vmem:[#allocation6 + $0xe2] sm:$0xff] }
 0x9b5   : > { %21366 = vmatprep.mubr.msk.f32.mxu1 %vm390_vm1, %v26944_v25  ;;  %28299 = vst [vmem:[#allocation20_spill] sm:$0xff] %v26960_v6  ;;  %v26964_v25 = vld [vmem:[#allocation6 + $0xea] sm:$0xff] }
 0x9b6   : > { %28300 = vst [vmem:[#allocation21_spill] sm:$0xff] %v26964_v25 }
 0x9b8   : > { %21367 = vmatmul.mubr.msk.f32.gmra.mrb[80].mxu1 %vm390_vm1, %v26948_v30  ;;  %v26968_v30 = vld [vmem:[#allocation6 + $0xf2] sm:$0xff] }
 0x9b9   : > { %21369 = vmatprep.mubr.msk.f32.mxu1 %vm390_vm1, %v26952_v22  ;;  %28301 = vst [vmem:[#allocation22_spill] sm:$0xff] %v26968_v30  ;;  %v26972_v22 = vld [vmem:[#allocation6 + $0xfa] sm:$0xff] }
 0x9ba   : > { %28302 = vst [vmem:[#allocation23_spill] sm:$0xff] %v26972_v22 }
 0x9bc   : > { %21370 = vmatmul.mubr.msk.f32.gmra.mrb[82].mxu1 %vm390_vm1, %v26956_v2  ;;  %v18031_v2 = vld [vmem:[%s27790_s7 + $0xb0] sm:$0xff] }
 0x9bd   : > { %21372 = vmatprep.mubr.msk.f32.mxu1 %vm390_vm1, %v26960_v6  ;;  %v18032_v6 = vld [vmem:[%s27790_s7 + $0xb8] sm:$0xff] }
 0x9c0   : > { %21373 = vmatmul.mubr.msk.f32.gmra.mrb[84].mxu1 %vm390_vm1, %v26964_v25  ;;  %v22086_v25 = vpack.c.bf16 %v18032_v6, %v18031_v2  ;;  %v18067_v2 = vld [vmem:[%s27790_s7 + $0xd0] sm:$0xff]  ;;  %v18068_v6 = vld [vmem:[%s27790_s7 + $0xd8] sm:$0xff] }
 0x9c1   : > { %21375 = vmatprep.mubr.msk.f32.mxu1 %vm390_vm1, %v26968_v30  ;;  %v18033_v30 = vld [vmem:[%s27790_s7 + $0xc0] sm:$0xff] }
 0x9c4   : > { %21376 = vmatmul.mubr.msk.f32.gmra.mrb[86].mxu1 %vm390_vm1, %v26972_v22  ;;  %v18066_v22 = vld [vmem:[%s27790_s7 + $0xc8] sm:$0xff] }
 0x9c5   : > { %21388 = vmatprep.mubr.msk.f32.mxu1 %vm390_vm1, %v26705_v27  ;;  %v22090_v27 = vpack.c.bf16 %v18067_v2, %v18066_v22  ;;  %v18070_v22 = vld [vmem:[%s27790_s7 + $0xe8] sm:$0xff]  ;;  %v18103_v2 = vld [vmem:[%s27790_s7 + $0xf0] sm:$0xff] }
 0x9c8   : > { %21389 = vmatmul.mubr.msk.f32.vlgmr.msra.gmra.mrb[56].mxu1 %vm390_vm1, %v26713_v47  ;;  %v27049_v47 = vld [vmem:[#allocation6 + $0x100] sm:$0xff] }
 0x9c9   : > { %22085 = vmatpush3.bf16.msra.mxu1 %v22082_v59  ;;  %21391 = vmatprep.mubr.msk.f32.mxu1 %vm390_vm1, %v26723_v14  ;;  %v27055_v59 = vld [vmem:[#allocation6 + $0x108] sm:$0xff] }
 0x9ca   : > { %22087 = vmatprep.subr.bf16.mxu1 %v22086_v25 }
 0x9cc   : > { %21392 = vmatmul.mubr.msk.f32.gmra.mrb[58].mxu1 %vm390_vm1, %v26729_v10 }
 0x9cd   : > { %21394 = vmatprep.mubr.msk.f32.mxu1 %vm390_vm1, %v26733_v5  ;;  %22089 = vmatpush3.bf16.msra.mxu1 %v22086_v25  ;;  %v18069_v25 = vld [vmem:[%s27790_s7 + $0xe0] sm:$0xff] }
 0x9ce   : > { %21444 = vmatprep.subr.mxu1 %v18033_v30 }
 0x9d0   : > { %21395 = vmatmul.mubr.msk.f32.gmra.mrb[60].mxu1 %vm390_vm1, %v26738_v54 }
 0x9d1   : > { %21397 = vmatprep.mubr.msk.f32.mxu1 %vm390_vm1, %v26742_v41  ;;  %21445 = vmatpush3.msra.mxu1 %v18033_v30  ;;  %v22094_v30 = vpack.c.bf16 %v18069_v25, %v18068_v6  ;;  %v28318_v6 = vld [vmem:[#allocation12_spill] sm:$0xff]  ;;  %v28319_v25 = vld [vmem:[#allocation42_spill] sm:$0xff] }
 0x9d2   : > { %22091 = vmatprep.subr.bf16.mxu1 %v22090_v27 }
 0x9d4   : > { %21398 = vmatmul.mubr.msk.f32.gmra.mrb[62].mxu1 %vm390_vm1, %v26746_v57 }
 0x9d5   : > { %21400 = vmatprep.mubr.msk.f32.mxu1 %vm390_vm1, %v26750_v9 }
 0x9d8   : > { %21401 = vmatmul.mubr.msk.f32.gmra.mrb[64].mxu1 %vm390_vm1, %v26754_v53 }
 0x9d9   : > { %21403 = vmatprep.mubr.msk.f32.mxu1 %vm390_vm1, %v26758_v40 }
 0x9dc   : > { %21404 = vmatmul.mubr.msk.f32.gmra.mrb[66].mxu1 %vm390_vm1, %v26762_v11 }
 0x9dd   : > { %21406 = vmatprep.mubr.msk.f32.mxu1 %vm390_vm1, %v26766_v13 }
 0x9e0   : > { %21407 = vmatmul.mubr.msk.f32.gmra.mrb[68].mxu1 %vm390_vm1, %v26770_v32 }
 0x9e1   : > { %21409 = vmatprep.mubr.msk.f32.mxu1 %vm390_vm1, %v26774_v12 }
 0x9e4   : > { %21410 = vmatmul.mubr.msk.f32.gmra.mrb[70].mxu1 %vm390_vm1, %v26778_v46 }
 0x9e5   : > { %21412 = vmatprep.mubr.msk.f32.mxu1 %vm390_vm1, %v26782_v60 }
 0x9e8   : > { %21413 = vmatmul.mubr.msk.f32.gmra.mrb[72].mxu1 %vm390_vm1, %v26786_v18 }
 0x9e9   : > { %21415 = vmatprep.mubr.msk.f32.mxu1 %vm390_vm1, %v26790_v26 }
 0x9ec   : > { %21416 = vmatmul.mubr.msk.f32.gmra.mrb[74].mxu1 %vm390_vm1, %v26794_v28 }
 0x9ed   : > { %21418 = vmatprep.mubr.msk.f32.mxu1 %vm390_vm1, %v26798_v20 }
 0x9f0   : > { %21419 = vmatmul.mubr.msk.f32.gmra.mrb[76].mxu1 %vm390_vm1, %v26802_v34 }
 0x9f1   : > { %21421 = vmatprep.mubr.msk.f32.mxu1 %vm390_vm1, %v26806_v0 }
 0x9f4   : > { %21422 = vmatmul.mubr.msk.f32.gmra.mrb[78].mxu1 %vm390_vm1, %v26810_v43 }
 0x9f5   : > { %21424 = vmatprep.mubr.msk.f32.mxu1 %vm390_vm1, %v26814_v1 }
 0x9f8   : > { %21425 = vmatmul.mubr.msk.f32.gmra.mrb[80].mxu1 %vm390_vm1, %v26818_v62 }
 0x9f9   : > { %21427 = vmatprep.mubr.msk.f32.mxu1 %vm390_vm1, %v26822_v50 }
 0x9fc   : > { %21428 = vmatmul.mubr.msk.f32.gmra.mrb[82].mxu1 %vm390_vm1, %v26826_v24 }
 0x9fd   : > { %21430 = vmatprep.mubr.msk.f32.mxu1 %vm390_vm1, %v26830_v63 }
 0xa00   : > { %21431 = vmatmul.mubr.msk.f32.gmra.mrb[84].mxu1 %vm390_vm1, %v26834_v55 }
 0xa01   : > { %21433 = vmatprep.mubr.msk.f32.mxu1 %vm390_vm1, %v27049_v47 }
 0xa04   : > { %21434 = vmatmul.mubr.msk.f32.gmra.mrb[86].mxu1 %vm390_vm1, %v27055_v59 }
 0xa05   : > { %21446 = vmatprep.mubr.msk.f32.mxu1 %vm390_vm1, %v26516_v52  ;;  %v18104_v52 = vld [vmem:[%s27790_s7 + $0xf8] sm:$0xff] }
 0xa08   : > { %21447 = vmatmul.mubr.msk.f32.vlgmr.msra.gmra.mrb[56].mxu1 %vm390_vm1, %v26531_v51  ;;  %v22098_v51 = vpack.c.bf16 %v18104_v52, %v18103_v2  ;;  %v28322_v2 = vld [vmem:[#allocation45_spill] sm:$0xff]  ;;  %v28323_v52 = vld [vmem:[#allocation46_spill] sm:$0xff] }
 0xa09   : > { %22093 = vmatpush3.bf16.msra.mxu1 %v22090_v27  ;;  %21449 = vmatprep.mubr.msk.f32.mxu1 %vm390_vm1, %v26533_v7  ;;  %v28303_v7 = vld [vmem:[#allocation28_spill] sm:$0xff]  ;;  %v28317_v27 = vld [vmem:[#allocation41_spill] sm:$0xff] }
 0xa0a   : > { %22095 = vmatprep.subr.bf16.mxu1 %v22094_v30 }
 0xa0c   : > { %21450 = vmatmul.mubr.msk.f32.gmra.mrb[58].mxu1 %vm390_vm1, %v26548_v33  ;;  %v28304_v33 = vld [vmem:[#allocation29_spill] sm:$0xff] }
 0xa0d   : > { %21452 = vmatprep.mubr.msk.f32.mxu1 %vm390_vm1, %v26550_v19  ;;  %22097 = vmatpush3.bf16.msra.mxu1 %v22094_v30  ;;  %v28305_v19 = vld [vmem:[#allocation30_spill] sm:$0xff]  ;;  %v28320_v30 = vld [vmem:[#allocation43_spill] sm:$0xff] }
 0xa0e   : > { %21502 = vmatprep.subr.mxu1 %v18070_v22 }
 0xa10   : > { %21453 = vmatmul.mubr.msk.f32.gmra.mrb[60].mxu1 %vm390_vm1, %v26561_v45  ;;  %v28306_v45 = vld [vmem:[#allocation31_spill] sm:$0xff] }
 0xa11   : > { %21455 = vmatprep.mubr.msk.f32.mxu1 %vm390_vm1, %v26563_v39  ;;  %21503 = vmatpush3.msra.mxu1 %v18070_v22  ;;  %v27132_v39 = vld [vmem:[#allocation6 + $0x101] sm:$0xff] }
 0xa12   : > { %22099 = vmatprep.subr.bf16.mxu1 %v22098_v51  ;;  %v28321_v22 = vld [vmem:[#allocation44_spill] sm:$0xff] }
 0xa14   : > { %21456 = vmatmul.mubr.msk.f32.gmra.mrb[62].mxu1 %vm390_vm1, %v26573_v48  ;;  %v28307_v48 = vld [vmem:[#allocation24_spill] sm:$0xff] }
 0xa15   : > { %21458 = vmatprep.mubr.msk.f32.mxu1 %vm390_vm1, %v26575_v17  ;;  %v27138_v17 = vld [vmem:[#allocation6 + $0x109] sm:$0xff] }
 0xa18   : > { %21459 = vmatmul.mubr.msk.f32.gmra.mrb[64].mxu1 %vm390_vm1, %v26585_v49  ;;  %v18105_v49 = vld [vmem:[%s27790_s7 + $0x100] sm:$0xff] }
 0xa19   : > { %21461 = vmatprep.mubr.msk.f32.mxu1 %vm390_vm1, %v26587_v23  ;;  %v18106_v23 = vld [vmem:[%s27790_s7 + $0x108] sm:$0xff] }
 0xa1c   : > { %21462 = vmatmul.mubr.msk.f32.gmra.mrb[66].mxu1 %vm390_vm1, %v26597_v56  ;;  %v28308_v56 = vld [vmem:[#allocation25_spill] sm:$0xff] }
 0xa1d   : > { %21464 = vmatprep.mubr.msk.f32.mxu1 %vm390_vm1, %v26599_v42  ;;  %v22102_v42 = vpack.c.bf16 %v18106_v23, %v18105_v49  ;;  %v28330_v49 = vld [vmem:[#allocation19_spill] sm:$0xff]  ;;  %v28331_v23 = vld [vmem:[#allocation20_spill] sm:$0xff] }
 0xa20   : > { %21465 = vmatmul.mubr.msk.f32.gmra.mrb[68].mxu1 %vm390_vm1, %v26609_v4  ;;  %v28309_v4 = vld [vmem:[#allocation34_spill] sm:$0xff] }
 0xa21   : > { %21467 = vmatprep.mubr.msk.f32.mxu1 %vm390_vm1, %v26611_v15  ;;  %v18107_v15 = vld [vmem:[%s27790_s7 + $0x110] sm:$0xff] }
 0xa24   : > { %21468 = vmatmul.mubr.msk.f32.gmra.mrb[70].mxu1 %vm390_vm1, %v26621_v36  ;;  %v18140_v36 = vld [vmem:[%s27790_s7 + $0x118] sm:$0xff] }
 0xa25   : > { %21470 = vmatprep.mubr.msk.f32.mxu1 %vm390_vm1, %v26623_v58  ;;  %v18141_v58 = vld [vmem:[%s27790_s7 + $0x120] sm:$0xff] }
 0xa28   : > { %21471 = vmatmul.mubr.msk.f32.gmra.mrb[72].mxu1 %vm390_vm1, %v26633_v8  ;;  %v22106_v8 = vpack.c.bf16 %v18141_v58, %v18140_v36  ;;  %v27221_v36 = vld [vmem:[#allocation6 + $0x10a] sm:$0xff] }
 0xa29   : > { %21473 = vmatprep.mubr.msk.f32.mxu1 %vm390_vm1, %v26635_v16  ;;  %v28310_v16 = vld [vmem:[#allocation35_spill] sm:$0xff]  ;;  %28336 = vst [vmem:[#allocation47_spill] sm:$0xff] %v27221_v36  ;;  %v18142_v58 = vld [vmem:[%s27790_s7 + $0x128] sm:$0xff] }
 0xa2c   : > { %21474 = vmatmul.mubr.msk.f32.gmra.mrb[74].mxu1 %vm390_vm1, %v26645_v38  ;;  %v28311_v38 = vld [vmem:[#allocation36_spill] sm:$0xff] }
 0xa2d   : > { %21476 = vmatprep.mubr.msk.f32.mxu1 %vm390_vm1, %v26647_v31  ;;  %v28312_v31 = vld [vmem:[#allocation37_spill] sm:$0xff] }
 0xa30   : > { %21477 = vmatmul.mubr.msk.f32.gmra.mrb[76].mxu1 %vm390_vm1, %v26657_v44  ;;  %v28313_v44 = vld [vmem:[#allocation38_spill] sm:$0xff] }
 0xa31   : > { %21479 = vmatprep.mubr.msk.f32.mxu1 %vm390_vm1, %v26659_v37  ;;  %v28314_v37 = vld [vmem:[#allocation39_spill] sm:$0xff] }
 0xa34   : > { %21480 = vmatmul.mubr.msk.f32.gmra.mrb[78].mxu1 %vm390_vm1, %v26668_v35  ;;  %v28315_v35 = vld [vmem:[#allocation40_spill] sm:$0xff] }
 0xa35   : > { %21482 = vmatprep.mubr.msk.f32.mxu1 %vm390_vm1, %v26670_v3  ;;  %v28316_v3 = vld [vmem:[#allocation33_spill] sm:$0xff] }
 0xa38   : > { %21483 = vmatmul.mubr.msk.f32.gmra.mrb[80].mxu1 %vm390_vm1, %v28303_v7  ;;  %v28325_v7 = vld [vmem:[#allocation14_spill] sm:$0xff] }
 0xa39   : > { %21485 = vmatprep.mubr.msk.f32.mxu1 %vm390_vm1, %v28304_v33  ;;  %v28326_v33 = vld [vmem:[#allocation15_spill] sm:$0xff] }
 0xa3c   : > { %21486 = vmatmul.mubr.msk.f32.gmra.mrb[82].mxu1 %vm390_vm1, %v28305_v19  ;;  %v28327_v19 = vld [vmem:[#allocation16_spill] sm:$0xff] }
 0xa3d   : > { %21488 = vmatprep.mubr.msk.f32.mxu1 %vm390_vm1, %v28306_v45  ;;  %v28328_v45 = vld [vmem:[#allocation17_spill] sm:$0xff] }
 0xa40   : > { %21489 = vmatmul.mubr.msk.f32.gmra.mrb[84].mxu1 %vm390_vm1, %v28307_v48  ;;  %v28329_v48 = vld [vmem:[#allocation18_spill] sm:$0xff] }
 0xa41   : > { %21491 = vmatprep.mubr.msk.f32.mxu1 %vm390_vm1, %v27132_v39 }
 0xa44   : > { %21492 = vmatmul.mubr.msk.f32.gmra.mrb[86].mxu1 %vm390_vm1, %v27138_v17 }
 0xa45   : > { %21504 = vmatprep.mubr.msk.f32.mxu1 %vm390_vm1, %v28308_v56  ;;  %v28332_v56 = vld [vmem:[#allocation21_spill] sm:$0xff] }
 0xa48   : > { %21505 = vmatmul.mubr.msk.f32.vlgmr.msra.gmra.mrb[56].mxu1 %vm390_vm1, %v28309_v4  ;;  %v27215_v4 = vld [vmem:[#allocation6 + $0x102] sm:$0xff] }
 0xa49   : > { %22101 = vmatpush3.bf16.msra.mxu1 %v22098_v51  ;;  %21507 = vmatprep.mubr.msk.f32.mxu1 %vm390_vm1, %v26864_v61  ;;  %v28324_v51 = vld [vmem:[#allocation13_spill] sm:$0xff]  ;;  %28334 = vst [vmem:[#allocation32_spill] sm:$0xff] %v27215_v4 }
 0xa4a   : > { %22103 = vmatprep.subr.bf16.mxu1 %v22102_v42 }
 0xa4c   : > { %21508 = vmatmul.mubr.msk.f32.gmra.mrb[58].mxu1 %vm390_vm1, %v26868_v21 }
 0xa4d   : > { %21510 = vmatprep.mubr.msk.f32.mxu1 %vm390_vm1, %v26872_v29  ;;  %22105 = vmatpush3.bf16.msra.mxu1 %v22102_v42  ;;  %v28333_v42 = vld [vmem:[#allocation22_spill] sm:$0xff] }
 0xa4e   : > { %21560 = vmatprep.subr.mxu1 %v18107_v15 }
 0xa50   : > { %21511 = vmatmul.mubr.msk.f32.gmra.mrb[60].mxu1 %vm390_vm1, %v28310_v16 }
 0xa51   : > { %21513 = vmatprep.mubr.msk.f32.mxu1 %vm390_vm1, %v28311_v38  ;;  %21561 = vmatpush3.msra.mxu1 %v18107_v15  ;;  %v28335_v15 = vld [vmem:[#allocation23_spill] sm:$0xff] }
 0xa52   : > { %22107 = vmatprep.subr.bf16.mxu1 %v22106_v8 }
 0xa54   : > { %21514 = vmatmul.mubr.msk.f32.gmra.mrb[62].mxu1 %vm390_vm1, %v28312_v31 }
 0xa55   : > { %21516 = vmatprep.mubr.msk.f32.mxu1 %vm390_vm1, %v28313_v44 }
 0xa58   : > { %21517 = vmatmul.mubr.msk.f32.gmra.mrb[64].mxu1 %vm390_vm1, %v28314_v37 }
 0xa59   : > { %21519 = vmatprep.mubr.msk.f32.mxu1 %vm390_vm1, %v28315_v35 }
 0xa5c   : > { %21520 = vmatmul.mubr.msk.f32.gmra.mrb[66].mxu1 %vm390_vm1, %v28316_v3 }
 0xa5d   : > { %21522 = vmatprep.mubr.msk.f32.mxu1 %vm390_vm1, %v28317_v27 }
 0xa60   : > { %21523 = vmatmul.mubr.msk.f32.gmra.mrb[68].mxu1 %vm390_vm1, %v28318_v6 }
 0xa61   : > { %21525 = vmatprep.mubr.msk.f32.mxu1 %vm390_vm1, %v28319_v25 }
 0xa64   : > { %21526 = vmatmul.mubr.msk.f32.gmra.mrb[70].mxu1 %vm390_vm1, %v28320_v30 }
 0xa65   : > { %21528 = vmatprep.mubr.msk.f32.mxu1 %vm390_vm1, %v28321_v22 }
 0xa68   : > { %21529 = vmatmul.mubr.msk.f32.gmra.mrb[72].mxu1 %vm390_vm1, %v28322_v2 }
 0xa69   : > { %21531 = vmatprep.mubr.msk.f32.mxu1 %vm390_vm1, %v28323_v52 }
 0xa6c   : > { %21532 = vmatmul.mubr.msk.f32.gmra.mrb[74].mxu1 %vm390_vm1, %v28324_v51 }
 0xa6d   : > { %21534 = vmatprep.mubr.msk.f32.mxu1 %vm390_vm1, %v28325_v7 }
 0xa70   : > { %21535 = vmatmul.mubr.msk.f32.gmra.mrb[76].mxu1 %vm390_vm1, %v28326_v33 }
 0xa71   : > { %21537 = vmatprep.mubr.msk.f32.mxu1 %vm390_vm1, %v28327_v19 }
 0xa74   : > { %21538 = vmatmul.mubr.msk.f32.gmra.mrb[78].mxu1 %vm390_vm1, %v28328_v45 }
 0xa75   : > { %21540 = vmatprep.mubr.msk.f32.mxu1 %vm390_vm1, %v28329_v48 }
 0xa78   : > { %21541 = vmatmul.mubr.msk.f32.gmra.mrb[80].mxu1 %vm390_vm1, %v28330_v49 }
 0xa79   : > { %21543 = vmatprep.mubr.msk.f32.mxu1 %vm390_vm1, %v28331_v23 }
 0xa7c   : > { %21544 = vmatmul.mubr.msk.f32.gmra.mrb[82].mxu1 %vm390_vm1, %v28332_v56  ;;  %v18143_v56 = vld [vmem:[%s27790_s7 + $0x130] sm:$0xff] }
 0xa7d   : > { %21546 = vmatprep.mubr.msk.f32.mxu1 %vm390_vm1, %v28333_v42 }
 0xa80   : > { %21547 = vmatmul.mubr.msk.f32.gmra.mrb[84].mxu1 %vm390_vm1, %v28335_v15  ;;  %v22110_v15 = vpack.c.bf16 %v18143_v56, %v18142_v58  ;;  %v14254_v56 = vld [vmem:[#allocation6 + $0xb1] sm:$0xff] }
 0xa81   : > { %21549 = vmatprep.mubr.msk.f32.mxu1 %vm390_vm1, %v27215_v4  ;;  %v18144_v4 = vld [vmem:[%s27790_s7 + $0x138] sm:$0xff] }
 0xa82   : > { %v14258_v58 = vld [vmem:[#allocation6 + $0xd1] sm:$0xff] }
 0xa84   : > { %21550 = vmatmul.mubr.msk.f32.gmra.mrb[86].mxu1 %vm390_vm1, %v27221_v36  ;;  %v18177_v36 = vld [vmem:[%s27790_s7 + $0x140] sm:$0xff] }
 0xa85   : > { %21562 = vmatprep.mubr.msk.f32.mxu1 %vm390_vm1, %v26723_v14  ;;  %v18178_v14 = vld [vmem:[%s27790_s7 + $0x148] sm:$0xff] }
 0xa88   : > { %21563 = vmatmul.mubr.msk.f32.vlgmr.msra.gmra.mrb[56].mxu1 %vm390_vm1, %v26729_v10  ;;  %v22114_v10 = vpack.c.bf16 %v18178_v14, %v18177_v36  ;;  %v14257_v36 = vld [vmem:[#allocation6 + $0xc9] sm:$0xff]  ;;  %v14259_v14 = vld [vmem:[#allocation6 + $0xd9] sm:$0xff] }
 0xa89   : > { %22109 = vmatpush3.bf16.msra.mxu1 %v22106_v8  ;;  %21565 = vmatprep.mubr.msk.f32.mxu1 %vm390_vm1, %v26733_v5  ;;  %v13875_v5 = vld [vmem:[#allocation6 + $0x110] sm:$0xff] }
 0xa8a   : > { %22111 = vmatprep.subr.bf16.mxu1 %v22110_v15  ;;  %v14253_v8 = vld [vmem:[#allocation6 + $0xa9] sm:$0xff] }
 0xa8c   : > { %21566 = vmatmul.mubr.msk.f32.gmra.mrb[58].mxu1 %vm390_vm1, %v26738_v54  ;;  %v13876_v54 = vld [vmem:[#allocation6 + $0x118] sm:$0xff] }
 0xa8d   : > { %21568 = vmatprep.mubr.msk.f32.mxu1 %vm390_vm1, %v26742_v41  ;;  %22113 = vmatpush3.bf16.msra.mxu1 %v22110_v15  ;;  %v18179_v41 = vld [vmem:[%s27790_s7 + $0x150] sm:$0xff]  ;;  %v14256_v15 = vld [vmem:[#allocation6 + $0xc1] sm:$0xff] }
 0xa8e   : > { %21618 = vmatprep.subr.mxu1 %v18144_v4 }
 0xa90   : > { %21569 = vmatmul.mubr.msk.f32.gmra.mrb[60].mxu1 %vm390_vm1, %v26746_v57  ;;  %v18180_v57 = vld [vmem:[%s27790_s7 + $0x158] sm:$0xff] }
 0xa91   : > { %21571 = vmatprep.mubr.msk.f32.mxu1 %vm390_vm1, %v26750_v9  ;;  %21619 = vmatpush3.msra.mxu1 %v18144_v4  ;;  %v14236_v9 = vld [vmem:[#allocation6 + $0x21] sm:$0xff]  ;;  %v14255_v4 = vld [vmem:[#allocation6 + $0xb9] sm:$0xff] }
 0xa92   : > { %22115 = vmatprep.subr.bf16.mxu1 %v22114_v10 }
 0xa94   : > { %21572 = vmatmul.mubr.msk.f32.gmra.mrb[62].mxu1 %vm390_vm1, %v26754_v53  ;;  %v15519_v53 = vld [vmem:[%s27792_s9] sm:$0xff] }
 0xa95   : > { %21574 = vmatprep.mubr.msk.f32.mxu1 %vm390_vm1, %v26758_v40  ;;  %v15520_v40 = vld [vmem:[%s27792_s9 + $0x8] sm:$0xff] }
 0xa98   : > { %21575 = vmatmul.mubr.msk.f32.gmra.mrb[64].mxu1 %vm390_vm1, %v26762_v11  ;;  %v23337_v11 = vmov 0.0|0.0  }
 0xa99   : > { %21577 = vmatprep.mubr.msk.f32.mxu1 %vm390_vm1, %v26766_v13  ;;  %22122 = vmatprep.subr.bf16.mxu0 %v23337_v11  ;;  %v22123_v13 = vpack.c.bf16 %v15520_v40, %v15519_v53 }
 0xa9b   : > { %22124 = vmatpush3.bf16.msra.mxu0 %v22123_v13 }
 0xa9c   : > { %21578 = vmatmul.mubr.msk.f32.gmra.mrb[66].mxu1 %vm390_vm1, %v26770_v32  ;;  %v28337_v32 = vmov 0.0  }
 0xa9d   : > { %21580 = vmatprep.mubr.msk.f32.mxu1 %vm390_vm1, %v26774_v12  ;;  %413 = vst.msk [vmem:[#allocation7 + $0x100] sm:$0xff] %vm412_vm4, %v28337_v32  ;;  %414 = vst.msk [vmem:[#allocation7 + $0x108] sm:$0xff] %vm412_vm4, %v28337_v32  ;;  %v22118_v12 = vpack.c.bf16 %v18180_v57, %v18179_v41  ;;  %21730 = vmatprep.subr.mxu0 %v28337_v32  ;;  %v14263_v41 = vld [vmem:[#allocation6 + $0xf9] sm:$0xff]  ;;  %v14266_v57 = vld [vmem:[#allocation6 + $0x111] sm:$0xff] }
 0xa9e   : > { %415 = vst.msk [vmem:[#allocation7 + $0x110] sm:$0xff] %vm412_vm4, %v28337_v32  ;;  %416 = vst.msk [vmem:[#allocation7 + $0x118] sm:$0xff] %vm412_vm4, %v28337_v32  ;;  %21732 = vmatprep.mubr.msk.f32.mxu0 %vm23338_vm6, %v28337_v32 }
 0xa9f   : > { %417 = vst.msk [vmem:[#allocation7 + $0x120] sm:$0xff] %vm412_vm4, %v28337_v32 }
 0xaa0   : > { %21581 = vmatmul.mubr.msk.f32.gmra.mrb[68].mxu1 %vm390_vm1, %v26778_v46  ;;  %v14237_v46 = vld [vmem:[#allocation6 + $0x29] sm:$0xff] }
 0xaa1   : > { %21583 = vmatprep.mubr.msk.f32.mxu1 %vm390_vm1, %v26782_v60  ;;  %v14238_v60 = vld [vmem:[#allocation6 + $0x31] sm:$0xff] }
 0xaa4   : > { %21584 = vmatmul.mubr.msk.f32.gmra.mrb[70].mxu1 %vm390_vm1, %v26786_v18  ;;  %v14239_v18 = vld [vmem:[#allocation6 + $0x39] sm:$0xff] }
 0xaa5   : > { %21586 = vmatprep.mubr.msk.f32.mxu1 %vm390_vm1, %v26790_v26  ;;  %v18181_v26 = vld [vmem:[%s27790_s7 + $0x160] sm:$0xff] }
 0xaa8   : > { %21587 = vmatmul.mubr.msk.f32.gmra.mrb[72].mxu1 %vm390_vm1, %v26794_v28  ;;  %v14240_v28 = vld [vmem:[#allocation6 + $0x41] sm:$0xff] }
 0xaa9   : > { %21589 = vmatprep.mubr.msk.f32.mxu1 %vm390_vm1, %v26798_v20  ;;  %v14241_v20 = vld [vmem:[#allocation6 + $0x49] sm:$0xff] }
 0xaac   : > { %21590 = vmatmul.mubr.msk.f32.gmra.mrb[74].mxu1 %vm390_vm1, %v26802_v34  ;;  %v14242_v34 = vld [vmem:[#allocation6 + $0x51] sm:$0xff] }
 0xaad   : > { %21592 = vmatprep.mubr.msk.f32.mxu1 %vm390_vm1, %v26806_v0  ;;  %v14243_v0 = vld [vmem:[#allocation6 + $0x59] sm:$0xff] }
 0xab0   : > { %21593 = vmatmul.mubr.msk.f32.gmra.mrb[76].mxu1 %vm390_vm1, %v26810_v43  ;;  %v14244_v43 = vld [vmem:[#allocation6 + $0x61] sm:$0xff] }
 0xab1   : > { %21595 = vmatprep.mubr.msk.f32.mxu1 %vm390_vm1, %v26814_v1  ;;  %v14245_v1 = vld [vmem:[#allocation6 + $0x69] sm:$0xff] }
 0xab4   : > { %21596 = vmatmul.mubr.msk.f32.gmra.mrb[78].mxu1 %vm390_vm1, %v26818_v62  ;;  %v14246_v62 = vld [vmem:[#allocation6 + $0x71] sm:$0xff] }
 0xab5   : > { %21598 = vmatprep.mubr.msk.f32.mxu1 %vm390_vm1, %v26822_v50  ;;  %v14247_v50 = vld [vmem:[#allocation6 + $0x79] sm:$0xff] }
 0xab8   : > { %21599 = vmatmul.mubr.msk.f32.gmra.mrb[80].mxu1 %vm390_vm1, %v26826_v24  ;;  %v14248_v24 = vld [vmem:[#allocation6 + $0x81] sm:$0xff] }
 0xab9   : > { %21601 = vmatprep.mubr.msk.f32.mxu1 %vm390_vm1, %v26830_v63  ;;  %v14249_v63 = vld [vmem:[#allocation6 + $0x89] sm:$0xff] }
 0xabc   : > { %21602 = vmatmul.mubr.msk.f32.gmra.mrb[82].mxu1 %vm390_vm1, %v26834_v55  ;;  %v14250_v55 = vld [vmem:[#allocation6 + $0x91] sm:$0xff] }
 0xabd   : > { %21604 = vmatprep.mubr.msk.f32.mxu1 %vm390_vm1, %v27049_v47  ;;  %v14251_v47 = vld [vmem:[#allocation6 + $0x99] sm:$0xff] }
 0xac0   : > { %21605 = vmatmul.mubr.msk.f32.gmra.mrb[84].mxu1 %vm390_vm1, %v27055_v59  ;;  %v14252_v59 = vld [vmem:[#allocation6 + $0xa1] sm:$0xff] }
 0xac1   : > { %21607 = vmatprep.mubr.msk.f32.mxu1 %vm390_vm1, %v13875_v5  ;;  %v14261_v5 = vld [vmem:[#allocation6 + $0xe9] sm:$0xff] }
 0xac4   : > { %21608 = vmatmul.mubr.msk.f32.gmra.mrb[86].mxu1 %vm390_vm1, %v13876_v54  ;;  %v14262_v54 = vld [vmem:[#allocation6 + $0xf1] sm:$0xff] }
 0xac5   : > { %21620 = vmatprep.mubr.msk.f32.mxu1 %vm390_vm1, %v14236_v9  ;;  %v14267_v9 = vld [vmem:[#allocation6 + $0x119] sm:$0xff] }
 0xac8   : > { %21621 = vmatmul.mubr.msk.f32.vlgmr.msra.gmra.mrb[56].mxu1 %vm390_vm1, %v14237_v46 }
 0xac9   : > { %22117 = vmatpush3.bf16.msra.mxu1 %v22114_v10  ;;  %21623 = vmatprep.mubr.msk.f32.mxu1 %vm390_vm1, %v14238_v60  ;;  %v14260_v10 = vld [vmem:[#allocation6 + $0xe1] sm:$0xff] }
 0xaca   : > { %22119 = vmatprep.subr.bf16.mxu1 %v22118_v12 }
 0xacc   : > { %21624 = vmatmul.mubr.msk.f32.gmra.mrb[58].mxu1 %vm390_vm1, %v14239_v18 }
 0xacd   : > { %21626 = vmatprep.mubr.msk.f32.mxu1 %vm390_vm1, %v14240_v28  ;;  %22121 = vmatpush3.bf16.msra.mxu1 %v22118_v12 }
 0xace   : > { %21676 = vmatprep.subr.mxu1 %v18181_v26 }
 0xad0   : > { %21627 = vmatmul.mubr.msk.f32.gmra.mrb[60].mxu1 %vm390_vm1, %v14241_v20 }
 0xad1   : > { %21629 = vmatprep.mubr.msk.f32.mxu1 %vm390_vm1, %v14242_v34  ;;  %21677 = vmatpush3.msra.mxu1 %v18181_v26 }
 0xad4   : > { %21630 = vmatmul.mubr.msk.f32.gmra.mrb[62].mxu1 %vm390_vm1, %v14243_v0 }
 0xad5   : > { %21632 = vmatprep.mubr.msk.f32.mxu1 %vm390_vm1, %v14244_v43 }
 0xad8   : > { %21633 = vmatmul.mubr.msk.f32.gmra.mrb[64].mxu1 %vm390_vm1, %v14245_v1 }
 0xad9   : > { %21635 = vmatprep.mubr.msk.f32.mxu1 %vm390_vm1, %v14246_v62 }
 0xadc   : > { %21636 = vmatmul.mubr.msk.f32.gmra.mrb[66].mxu1 %vm390_vm1, %v14247_v50 }
 0xadd   : > { %21638 = vmatprep.mubr.msk.f32.mxu1 %vm390_vm1, %v14248_v24 }
 0xae0   : > { %21639 = vmatmul.mubr.msk.f32.gmra.mrb[68].mxu1 %vm390_vm1, %v14249_v63 }
 0xae1   : > { %21641 = vmatprep.mubr.msk.f32.mxu1 %vm390_vm1, %v14250_v55 }
 0xae4   : > { %21642 = vmatmul.mubr.msk.f32.gmra.mrb[70].mxu1 %vm390_vm1, %v14251_v47 }
 0xae5   : > { %21644 = vmatprep.mubr.msk.f32.mxu1 %vm390_vm1, %v14252_v59 }
 0xae8   : > { %21645 = vmatmul.mubr.msk.f32.gmra.mrb[72].mxu1 %vm390_vm1, %v14253_v8 }
 0xae9   : > { %21647 = vmatprep.mubr.msk.f32.mxu1 %vm390_vm1, %v14254_v56 }
 0xaec   : > { %21648 = vmatmul.mubr.msk.f32.gmra.mrb[74].mxu1 %vm390_vm1, %v14255_v4 }
 0xaed   : > { %21650 = vmatprep.mubr.msk.f32.mxu1 %vm390_vm1, %v14256_v15 }
 0xaf0   : > { %21651 = vmatmul.mubr.msk.f32.gmra.mrb[76].mxu1 %vm390_vm1, %v14257_v36 }
 0xaf1   : > { %21653 = vmatprep.mubr.msk.f32.mxu1 %vm390_vm1, %v14258_v58 }
 0xaf4   : > { %21654 = vmatmul.mubr.msk.f32.gmra.mrb[78].mxu1 %vm390_vm1, %v14259_v14 }
 0xaf5   : > { %21656 = vmatprep.mubr.msk.f32.mxu1 %vm390_vm1, %v14260_v10 }
 0xaf8   : > { %21657 = vmatmul.mubr.msk.f32.gmra.mrb[80].mxu1 %vm390_vm1, %v14261_v5  ;;  %v27461_v5 = vld [vmem:[%s27792_s9 + $0x18] sm:$0xff] }
 0xaf9   : > { %21659 = vmatprep.mubr.msk.f32.mxu1 %vm390_vm1, %v14262_v54  ;;  %v18218_v54 = vld [vmem:[%s27792_s9 + $0x20] sm:$0xff] }
 0xafc   : > { %21660 = vmatmul.mubr.msk.f32.gmra.mrb[82].mxu1 %vm390_vm1, %v14263_v41 }
 0xafd   : > { %21662 = vmatprep.mubr.msk.f32.mxu1 %vm390_vm1, %v27132_v39  ;;  %v14657_v39 = vld [vmem:[#allocation6 + $0x112] sm:$0xff] }
 0xb00   : > { %21663 = vmatmul.mubr.msk.f32.gmra.mrb[84].mxu1 %vm390_vm1, %v27138_v17  ;;  %v28341_v17 = vld [vmem:[#allocation47_spill] sm:$0xff] }
 0xb01   : > { %21665 = vmatprep.mubr.msk.f32.mxu1 %vm390_vm1, %v14266_v57 }
 0xb04   : > { %21666 = vmatmul.mubr.msk.f32.gmra.mrb[86].mxu1 %vm390_vm1, %v14267_v9 }
 0xb05   : > { %21678 = vmatprep.mubr.msk.f32.mxu1 %vm390_vm1, %v26864_v61  ;;  %v28339_v61 = vld [vmem:[#allocation23_spill] sm:$0xff] }
 0xb08   : > { %21679 = vmatmul.mubr.msk.f32.vlgmr.msra.gmra.mrb[56].mxu1 %vm390_vm1, %v26868_v21  ;;  %v28340_v21 = vld [vmem:[#allocation32_spill] sm:$0xff] }
 0xb09   : > { %21681 = vmatprep.mubr.msk.f32.mxu1 %vm390_vm1, %v26872_v29  ;;  %v28338_v29 = vld [vmem:[#allocation21_spill] sm:$0xff] }
 0xb0c   : > { %21682 = vmatmul.mubr.msk.f32.gmra.mrb[58].mxu1 %vm390_vm1, %v28310_v16  ;;  %v14658_v16 = vld [vmem:[#allocation6 + $0x11a] sm:$0xff] }
 0xb0d   : > { %21684 = vmatprep.mubr.msk.f32.mxu1 %vm390_vm1, %v28311_v38  ;;  %v15521_v38 = vld [vmem:[%s27792_s9 + $0x10] sm:$0xf] }
 0xb0e   : > { %21731 = vmatpush3.msk.msra.mxu0 %vm15525_vm5, %v15521_v38 }
 0xb0f   : > { %22125 = vmatprep.subr.bf16.mxu0 %v23337_v11 }
 0xb10   : > { %21685 = vmatmul.mubr.msk.f32.gmra.mrb[60].mxu1 %vm390_vm1, %v28312_v31  ;;  %v27435_v31 = vld [vmem:[%s27791_s8] ss:$0 sm:$0xff] }
 0xb11   : > { %21687 = vmatprep.mubr.msk.f32.mxu1 %vm390_vm1, %v28313_v44 }
 0xb14   : > { %21688 = vmatmul.mubr.msk.f32.gmra.mrb[62].mxu1 %vm390_vm1, %v28314_v37 }
 0xb15   : > { %21690 = vmatprep.mubr.msk.f32.mxu1 %vm390_vm1, %v28315_v35 }
 0xb18   : > { %21691 = vmatmul.mubr.msk.f32.gmra.mrb[64].mxu1 %vm390_vm1, %v28316_v3 }
 0xb19   : > { %21693 = vmatprep.mubr.msk.f32.mxu1 %vm390_vm1, %v28317_v27 }
 0xb1c   : > { %21694 = vmatmul.mubr.msk.f32.gmra.mrb[66].mxu1 %vm390_vm1, %v28318_v6 }
 0xb1d   : > { %21696 = vmatprep.mubr.msk.f32.mxu1 %vm390_vm1, %v28319_v25 }
 0xb20   : > { %21697 = vmatmul.mubr.msk.f32.gmra.mrb[68].mxu1 %vm390_vm1, %v28320_v30 }
 0xb21   : > { %21699 = vmatprep.mubr.msk.f32.mxu1 %vm390_vm1, %v28321_v22 }
 0xb24   : > { %21700 = vmatmul.mubr.msk.f32.gmra.mrb[70].mxu1 %vm390_vm1, %v28322_v2 }
 0xb25   : > { %21702 = vmatprep.mubr.msk.f32.mxu1 %vm390_vm1, %v28323_v52 }
 0xb28   : > { %21703 = vmatmul.mubr.msk.f32.gmra.mrb[72].mxu1 %vm390_vm1, %v28324_v51 }
 0xb29   : > { %21705 = vmatprep.mubr.msk.f32.mxu1 %vm390_vm1, %v28325_v7 }
 0xb2c   : > { %21706 = vmatmul.mubr.msk.f32.gmra.mrb[74].mxu1 %vm390_vm1, %v28326_v33 }
 0xb2d   : > { %21708 = vmatprep.mubr.msk.f32.mxu1 %vm390_vm1, %v28327_v19 }
 0xb30   : > { %21709 = vmatmul.mubr.msk.f32.gmra.mrb[76].mxu1 %vm390_vm1, %v28328_v45 }
 0xb31   : > { %21711 = vmatprep.mubr.msk.f32.mxu1 %vm390_vm1, %v28329_v48 }
 0xb34   : > { %21712 = vmatmul.mubr.msk.f32.gmra.mrb[78].mxu1 %vm390_vm1, %v28330_v49 }
 0xb35   : > { %21714 = vmatprep.mubr.msk.f32.mxu1 %vm390_vm1, %v28331_v23 }
 0xb38   : > { %21715 = vmatmul.mubr.msk.f32.gmra.mrb[80].mxu1 %vm390_vm1, %v28338_v29 }
 0xb39   : > { %21717 = vmatprep.mubr.msk.f32.mxu1 %vm390_vm1, %v28333_v42 }
 0xb3c   : > { %21718 = vmatmul.mubr.msk.f32.gmra.mrb[82].mxu1 %vm390_vm1, %v28339_v61 }
 0xb3d   : > { %21720 = vmatprep.mubr.msk.f32.mxu1 %vm390_vm1, %v28340_v21 }
 0xb40   : > { %21721 = vmatmul.mubr.msk.f32.gmra.mrb[84].mxu1 %vm390_vm1, %v28341_v17 }
 0xb41   : > { %21723 = vmatprep.mubr.msk.f32.mxu1 %vm390_vm1, %v14657_v39 }
 0xb44   : > { %21724 = vmatmul.mubr.msk.f32.gmra.mrb[86].mxu1 %vm390_vm1, %v14658_v16 }
 0xbdb   : > { %v21680_v44 = vpop.f32.mrb[56].mxu1 }
 0xbdc   : > { %v15026_v37 = vadd.f32 %v21680_v44, %v27435_v31  ;;  %v14827_v35 = vpop.f32.mrb[57].mxu1 }
 0xbdd   : > { %v15025_v3 = vadd.f32 %v27435_v31, %v14827_v35 }
 0xbde   : > { %v15058_v27 = vmax.f32 %v15026_v37, 0.0 }
 0xbdf   : > { %v15057_v6 = vmax.f32 %v15025_v3, 0.0  ;;  %v21683_v25 = vpop.f32.mrb[58].mxu1  ;;  %v22126_v3 = vpack.c.bf16 %v18218_v54, %v27461_v5 }
 0xbe0   : > { %15090 = vst.msk [vmem:[#allocation7 + $0x8] sm:$0xff] %vm412_vm4, %v15058_v27  ;;  %v15028_v30 = vadd.f32 %v21683_v25, %v27435_v31  ;;  %v14837_v22 = vpop.f32.mrb[59].mxu1 }
 0xbe1   : > { %15089 = vst.msk [vmem:[#allocation7] sm:$0xff] %vm412_vm4, %v15057_v6  ;;  %v15027_v2 = vadd.f32 %v27435_v31, %v14837_v22 }
 0xbe2   : > { %v15060_v52 = vmax.f32 %v15028_v30, 0.0 }
 0xbe3   : > { %v15059_v51 = vmax.f32 %v15027_v2, 0.0  ;;  %v21686_v7 = vpop.f32.mrb[60].mxu1 }
 0xbe4   : > { %15092 = vst.msk [vmem:[#allocation7 + $0x18] sm:$0xff] %vm412_vm4, %v15060_v52  ;;  %v15030_v33 = vadd.f32 %v21686_v7, %v27435_v31  ;;  %v14847_v19 = vpop.f32.mrb[61].mxu1 }
 0xbe5   : > { %15091 = vst.msk [vmem:[#allocation7 + $0x10] sm:$0xff] %vm412_vm4, %v15059_v51  ;;  %v15029_v45 = vadd.f32 %v27435_v31, %v14847_v19 }
 0xbe6   : > { %v15062_v48 = vmax.f32 %v15030_v33, 0.0 }
 0xbe7   : > { %v15061_v49 = vmax.f32 %v15029_v45, 0.0  ;;  %v21689_v23 = vpop.f32.mrb[62].mxu1 }
 0xbe8   : > { %v15121_v42 = vld [vmem:[#allocation7] sm:$0xff]  ;;  %15094 = vst.msk [vmem:[#allocation7 + $0x28] sm:$0xff] %vm412_vm4, %v15062_v48  ;;  %v15032_v40 = vadd.f32 %v21689_v23, %v27435_v31  ;;  %v14857_v13 = vpop.f32.mrb[63].mxu1 }
 0xbe9   : > { %v15153_v53 = vld [vmem:[#allocation7 + $0x1] sm:$0xff]  ;;  %15093 = vst.msk [vmem:[#allocation7 + $0x20] sm:$0xff] %vm412_vm4, %v15061_v49  ;;  %v15031_v46 = vadd.f32 %v27435_v31, %v14857_v13 }
 0xbea   : > { %v15185_v12 = vmax.f32 %v15121_v42, %v15153_v53  ;;  %v15217_v60 = vld [vmem:[#allocation7 + $0x2] sm:$0xff]  ;;  %v15064_v18 = vmax.f32 %v15032_v40, 0.0 }
 0xbeb   : > { %v15063_v28 = vmax.f32 %v15031_v46, 0.0  ;;  %v21692_v20 = vpop.f32.mrb[64].mxu1 }
 0xbec   : > { %v15249_v26 = vmax.f32 %v15185_v12, %v15217_v60  ;;  %v15123_v34 = vld [vmem:[#allocation7 + $0x10] sm:$0xff]  ;;  %15096 = vst.msk [vmem:[#allocation7 + $0x38] sm:$0xff] %vm412_vm4, %v15064_v18  ;;  %v15034_v43 = vadd.f32 %v21692_v20, %v27435_v31  ;;  %v14867_v1 = vpop.f32.mrb[65].mxu1 }
 0xbed   : > { %v15155_v0 = vld [vmem:[#allocation7 + $0x11] sm:$0xff]  ;;  %15095 = vst.msk [vmem:[#allocation7 + $0x30] sm:$0xff] %vm412_vm4, %v15063_v28  ;;  %v15033_v24 = vadd.f32 %v27435_v31, %v14867_v1 }
 0xbee   : > { %v15187_v62 = vmax.f32 %v15123_v34, %v15155_v0  ;;  %v15283_v50 = vmax.f32 %v15249_v26, %v15123_v34  ;;  %v15219_v63 = vld [vmem:[#allocation7 + $0x12] sm:$0xff]  ;;  %v15066_v55 = vmax.f32 %v15034_v43, 0.0 }
 0xbef   : > { %v15065_v8 = vmax.f32 %v15033_v24, 0.0  ;;  %v21695_v56 = vpop.f32.mrb[66].mxu1 }
 0xbf0   : > { %v15251_v47 = vmax.f32 %v15187_v62, %v15219_v63  ;;  %v15317_v59 = vmax.f32 %v15283_v50, %v15155_v0  ;;  %v15125_v4 = vld [vmem:[#allocation7 + $0x20] sm:$0xff]  ;;  %15098 = vst.msk [vmem:[#allocation7 + $0x48] sm:$0xff] %vm412_vm4, %v15066_v55  ;;  %v15036_v36 = vadd.f32 %v21695_v56, %v27435_v31  ;;  %v14877_v58 = vpop.f32.mrb[67].mxu1 }
 0xbf1   : > { %v15157_v15 = vld [vmem:[#allocation7 + $0x21] sm:$0xff]  ;;  %15097 = vst.msk [vmem:[#allocation7 + $0x40] sm:$0xff] %vm412_vm4, %v15065_v8  ;;  %v15035_v29 = vadd.f32 %v27435_v31, %v14877_v58 }
 0xbf2   : > { %v15351_v14 = vmax.f32 %v15317_v59, %v15219_v63  ;;  %v15189_v10 = vmax.f32 %v15125_v4, %v15157_v15  ;;  %v15221_v41 = vld [vmem:[#allocation7 + $0x22] sm:$0xff]  ;;  %v15285_v57 = vmax.f32 %v15251_v47, %v15125_v4  ;;  %v15068_v9 = vmax.f32 %v15036_v36, 0.0 }
 0xbf3   : > { %v21698_v39 = vpop.f32.mrb[68].mxu1  ;;  %v15067_v44 = vmax.f32 %v15035_v29, 0.0  ;;  %v18219_v58 = vld [vmem:[%s27792_s9 + $0x28] sm:$0xf] }
 0xbf4   : > { %v15253_v61 = vmax.f32 %v15189_v10, %v15221_v41  ;;  %v15385_v21 = vmax.f32 %v15351_v14, %v15125_v4  ;;  %v15319_v17 = vmax.f32 %v15285_v57, %v15157_v15  ;;  %v15127_v16 = vld [vmem:[#allocation7 + $0x30] sm:$0xff]  ;;  %15100 = vst.msk [vmem:[#allocation7 + $0x58] sm:$0xff] %vm412_vm4, %v15068_v9  ;;  %v15038_v37 = vadd.f32 %v21698_v39, %v27435_v31  ;;  %v14887_v35 = vpop.f32.mrb[69].mxu1  ;;  %v18222_v14 = vld [vmem:[%s27792_s9 + $0x30] sm:$0xff] }
 0xbf5   : > { %v15159_v38 = vld [vmem:[#allocation7 + $0x31] sm:$0xff]  ;;  %15099 = vst.msk [vmem:[#allocation7 + $0x50] sm:$0xff] %vm412_vm4, %v15067_v44  ;;  %v15037_v49 = vadd.f32 %v27435_v31, %v14887_v35 }
 0xbf6   : > { %v15419_v27 = vmax.f32 %v15385_v21, %v15157_v15  ;;  %v15353_v6 = vmax.f32 %v15319_v17, %v15221_v41  ;;  %v15191_v25 = vmax.f32 %v15127_v16, %v15159_v38  ;;  %v15287_v30 = vmax.f32 %v15253_v61, %v15127_v16  ;;  %v15223_v52 = vld [vmem:[#allocation7 + $0x32] sm:$0xff] }
 0xbf7   : > { %v15070_v22 = vmax.f32 %v15038_v37, 0.0  ;;  %v21701_v51 = vpop.f32.mrb[70].mxu1  ;;  %v15069_v34 = vmax.f32 %v15037_v49, 0.0  ;;  %v18223_v10 = vld [vmem:[%s27792_s9 + $0x38] sm:$0xff] }
 0xbf8   : > { %v15453_v2 = vmax.f32 %v15419_v27, %v15221_v41  ;;  %v15255_v7 = vmax.f32 %v15191_v25, %v15223_v52  ;;  %v15321_v33 = vmax.f32 %v15287_v30, %v15159_v38  ;;  %v15387_v19 = vmax.f32 %v15353_v6, %v15127_v16  ;;  %v15129_v45 = vld [vmem:[#allocation7 + $0x40] sm:$0xff]  ;;  %v14897_v23 = vpop.f32.mrb[71].mxu1  ;;  %v18228_v6 = vld [vmem:[%s27792_s9 + $0x50] sm:$0xff] }
 0xbf9   : > { %v15161_v48 = vld [vmem:[#allocation7 + $0x41] sm:$0xff]  ;;  %15102 = vst.msk [vmem:[#allocation7 + $0x68] sm:$0xff] %vm412_vm4, %v15070_v22  ;;  %v15040_v0 = vadd.f32 %v21701_v51, %v27435_v31  ;;  %15101 = vst.msk [vmem:[#allocation7 + $0x60] sm:$0xff] %vm412_vm4, %v15069_v34  ;;  %v15039_v56 = vadd.f32 %v27435_v31, %v14897_v23  ;;  %v22129_v16 = vpack.c.bf16 %v18223_v10, %v18222_v14  ;;  %v18232_v22 = vld [vmem:[%s27792_s9 + $0x60] sm:$0xff] }
 0xbfa   : > { %15485 = vst.msk [vmem:[#allocation8] sm:$0xff] %vm412_vm4, %v15453_v2  ;;  %v15355_v42 = vmax.f32 %v15321_v33, %v15223_v52  ;;  %v15421_v53 = vmax.f32 %v15387_v19, %v15159_v38  ;;  %v15225_v40 = vld [vmem:[#allocation7 + $0x42] sm:$0xff]  ;;  %v15289_v13 = vmax.f32 %v15255_v7, %v15129_v45  ;;  %v18224_v7 = vld [vmem:[%s27792_s9 + $0x40] sm:$0xf] }
 0xbfb   : > { %v21704_v12 = vpop.f32.mrb[72].mxu1  ;;  %v15072_v59 = vmax.f32 %v15040_v0, 0.0  ;;  %v15071_v54 = vmax.f32 %v15039_v56, 0.0  ;;  %v18227_v27 = vld [vmem:[%s27792_s9 + $0x48] sm:$0xff]  ;;  %v18234_v0 = vld [vmem:[%s27792_s9 + $0x70] sm:$0xf] }
 0xbfc   : > { %v15455_v46 = vmax.f32 %v15421_v53, %v15223_v52  ;;  %v15323_v60 = vmax.f32 %v15289_v13, %v15161_v48  ;;  %v15389_v18 = vmax.f32 %v15355_v42, %v15129_v45  ;;  %v14907_v26 = vpop.f32.mrb[73].mxu1  ;;  %v15131_v28 = vld [vmem:[#allocation7 + $0x50] sm:$0xff]  ;;  %v15042_v4 = vadd.f32 %v21704_v12, %v27435_v31  ;;  %v18233_v2 = vld [vmem:[%s27792_s9 + $0x68] sm:$0xff] }
 0xbfd   : > { %v15163_v20 = vld [vmem:[#allocation7 + $0x51] sm:$0xff]  ;;  %15104 = vst.msk [vmem:[#allocation7 + $0x78] sm:$0xff] %vm412_vm4, %v15072_v59  ;;  %v15041_v15 = vadd.f32 %v27435_v31, %v14907_v26  ;;  %15103 = vst.msk [vmem:[#allocation7 + $0x70] sm:$0xff] %vm412_vm4, %v15071_v54  ;;  %v22132_v23 = vpack.c.bf16 %v18228_v6, %v18227_v27  ;;  %v22135_v42 = vpack.c.bf16 %v18233_v2, %v18232_v22 }
 0xbfe   : > { %15487 = vst.msk [vmem:[#allocation8 + $0x10] sm:$0xff] %vm412_vm4, %v15455_v46  ;;  %v15357_v43 = vmax.f32 %v15323_v60, %v15225_v40  ;;  %v15423_v1 = vmax.f32 %v15389_v18, %v15161_v48  ;;  %v15227_v24 = vld [vmem:[#allocation7 + $0x52] sm:$0xff]  ;;  %v15074_v9 = vmax.f32 %v15042_v4, 0.0 }
 0xbff   : > { %v21707_v62 = vpop.f32.mrb[74].mxu1  ;;  %v15073_v29 = vmax.f32 %v15041_v15, 0.0  ;;  %v18229_v18 = vld [vmem:[%s27792_s9 + $0x58] sm:$0xf] }
 0xc00   : > { %v15457_v50 = vmax.f32 %v15423_v1, %v15225_v40  ;;  %v15391_v63 = vmax.f32 %v15357_v43, %v15131_v28  ;;  %v14917_v55 = vpop.f32.mrb[75].mxu1  ;;  %v15044_v41 = vadd.f32 %v21707_v62, %v27435_v31  ;;  %15106 = vst.msk [vmem:[#allocation7 + $0x88] sm:$0xff] %vm412_vm4, %v15074_v9  ;;  %v18237_v43 = vld [vmem:[%s27792_s9 + $0x78] sm:$0xff]  ;;  %v18238_v1 = vld [vmem:[%s27792_s9 + $0x80] sm:$0xff] }
 0xc01   : > { %v15518_v47 = vld [vmem:[#allocation8] sm:$0x1]  ;;  %v15043_v61 = vadd.f32 %v27435_v31, %v14917_v55  ;;  %15105 = vst.msk [vmem:[#allocation7 + $0x80] sm:$0xff] %vm412_vm4, %v15073_v29  ;;  %v15600_v44 = vld [vmem:[#allocation8 + $0x1] sm:$0x1]  ;;  %v22138_v62 = vpack.c.bf16 %v18238_v1, %v18237_v43  ;;  %v18263_v22 = vld [vmem:[%s27792_s9 + $0xf8] sm:$0xff] }
 0xc02   : > { %21733 = vmatmul.mubr.msk.f32.vlgmr.msra.gmra.mrb[64].mxu0 %vm412_vm4, %v15518_v47  ;;  %15489 = vst.msk [vmem:[#allocation8 + $0x20] sm:$0xff] %vm412_vm4, %v15457_v50  ;;  %v15425_v8 = vmax.f32 %v15391_v63, %v15163_v20  ;;  %v15076_v39 = vmax.f32 %v15044_v41, 0.0  ;;  %v15682_v46 = vld [vmem:[#allocation8 + $0x2] sm:$0x1]  ;;  %v15764_v34 = vld [vmem:[#allocation8 + $0x3] sm:$0x1] }
 0xc03   : > { %22127 = vmatpush3.bf16.msra.mxu0 %v22126_v3  ;;  %v21710_v36 = vpop.f32.mrb[76].mxu1  ;;  %21741 = vmatprep.mubr.msk.f32.mxu0 %vm23338_vm6, %v28337_v32  ;;  %v15075_v37 = vmax.f32 %v15043_v61, 0.0  ;;  %v18243_v63 = vld [vmem:[%s27792_s9 + $0x98] sm:$0xff]  ;;  %v18239_v47 = vld [vmem:[%s27792_s9 + $0x88] sm:$0xf]  ;;  %v18248_v29 = vld [vmem:[%s27792_s9 + $0xb0] sm:$0xff] }
 0xc04   : > { %21739 = vmatprep.subr.mxu0 %v28337_v32  ;;  %v15459_v5 = vmax.f32 %v15425_v8, %v15227_v24  ;;  %v14927_v57 = vpop.f32.mrb[77].mxu1  ;;  %v15046_v21 = vadd.f32 %v21710_v36, %v27435_v31  ;;  %15108 = vst.msk [vmem:[#allocation7 + $0x98] sm:$0xff] %vm412_vm4, %v15076_v39  ;;  %v18242_v24 = vld [vmem:[%s27792_s9 + $0x90] sm:$0xff]  ;;  %v18244_v9 = vld [vmem:[%s27792_s9 + $0xa0] sm:$0xf]  ;;  %v18253_v39 = vld [vmem:[%s27792_s9 + $0xc8] sm:$0xff] }
 0xc05   : > { %v15045_v17 = vadd.f32 %v27435_v31, %v14927_v57  ;;  %15107 = vst.msk [vmem:[#allocation7 + $0x90] sm:$0xff] %vm412_vm4, %v15075_v37  ;;  %v15846_v50 = vld [vmem:[#allocation8 + $0x10] sm:$0x1]  ;;  %v22141_v56 = vpack.c.bf16 %v18243_v63, %v18242_v24  ;;  %v18254_v37 = vld [vmem:[%s27792_s9 + $0xd0] sm:$0xf]  ;;  %v18287_v43 = vld [vmem:[%s27792_s9 + $0x168] sm:$0xff] }
 0xc06   : > { %15491 = vst.msk [vmem:[#allocation8 + $0x30] sm:$0xff] %vm412_vm4, %v15459_v5  ;;  %v15078_v35 = vmax.f32 %v15046_v21, 0.0  ;;  %v15928_v5 = vld [vmem:[#allocation8 + $0x11] sm:$0x1]  ;;  %v18288_v1 = vld [vmem:[%s27792_s9 + $0x170] sm:$0xff] }
 0xc07   : > { %21740 = vmatpush3.msk.msra.mxu0 %vm15525_vm5, %v18219_v58  ;;  %v21713_v38 = vpop.f32.mrb[78].mxu1  ;;  %v15077_v25 = vmax.f32 %v15045_v17, 0.0  ;;  %v18252_v21 = vld [vmem:[%s27792_s9 + $0xc0] sm:$0xff]  ;;  %v18289_v24 = vld [vmem:[%s27792_s9 + $0x178] sm:$0xf] }
 0xc08   : > { %22128 = vmatprep.subr.bf16.mxu0 %v23337_v11  ;;  %v14937_v3 = vpop.f32.mrb[79].mxu1  ;;  %15110 = vst.msk [vmem:[#allocation7 + $0xa8] sm:$0xff] %vm412_vm4, %v15078_v35  ;;  %v15048_v30 = vadd.f32 %v21713_v38, %v27435_v31  ;;  %v16010_v17 = vld [vmem:[#allocation8 + $0x12] sm:$0x1]  ;;  %v18249_v38 = vld [vmem:[%s27792_s9 + $0xb8] sm:$0xf] }
 0xc09   : > { %v15047_v52 = vadd.f32 %v27435_v31, %v14937_v3  ;;  %15109 = vst.msk [vmem:[#allocation7 + $0xa0] sm:$0xff] %vm412_vm4, %v15077_v25  ;;  %v18257_v35 = vld [vmem:[%s27792_s9 + $0xd8] sm:$0xff]  ;;  %v18258_v3 = vld [vmem:[%s27792_s9 + $0xe0] sm:$0xff]  ;;  %v16174_v6 = vld [vmem:[#allocation8 + $0x20] sm:$0x1] }
 0xc0a   : > { %21742 = vmatmul.mubr.msk.f32.vlgmr.msra.gmra.mrb[64].mxu0 %vm412_vm4, %v15600_v44  ;;  %v15080_v33 = vmax.f32 %v15048_v30, 0.0  ;;  %v16092_v44 = vld [vmem:[#allocation8 + $0x13] sm:$0x1]  ;;  %v22150_v27 = vpack.c.bf16 %v18258_v3, %v18257_v35  ;;  %v18259_v25 = vld [vmem:[%s27792_s9 + $0xe8] sm:$0xf]  ;;  %v18262_v30 = vld [vmem:[%s27792_s9 + $0xf0] sm:$0xff] }
 0xc0b   : > { %22130 = vmatpush3.bf16.msra.mxu0 %v22129_v16  ;;  %21750 = vmatprep.mubr.msk.f32.mxu0 %vm23338_vm6, %v28337_v32  ;;  %v21716_v51 = vpop.f32.mrb[80].mxu1  ;;  %v15079_v48 = vmax.f32 %v15047_v52, 0.0  ;;  %v22147_v16 = vpack.c.bf16 %v18253_v39, %v18252_v21  ;;  %v22153_v2 = vpack.c.bf16 %v18263_v22, %v18262_v30  ;;  %v16256_v52 = vld [vmem:[#allocation8 + $0x21] sm:$0x1] }
 0xc0c   : > { %21748 = vmatprep.subr.mxu0 %v28337_v32  ;;  %v15050_v19 = vadd.f32 %v21716_v51, %v27435_v31  ;;  %v14947_v45 = vpop.f32.mrb[81].mxu1  ;;  %15112 = vst.msk [vmem:[#allocation7 + $0xb8] sm:$0xff] %vm412_vm4, %v15080_v33  ;;  %v18264_v51 = vld [vmem:[%s27792_s9 + $0x100] sm:$0xf]  ;;  %v18268_v33 = vld [vmem:[%s27792_s9 + $0x110] sm:$0xff] }
 0xc0d   : > { %v15049_v49 = vadd.f32 %v27435_v31, %v14947_v45  ;;  %15111 = vst.msk [vmem:[#allocation7 + $0xb0] sm:$0xff] %vm412_vm4, %v15079_v48  ;;  %v16338_v45 = vld [vmem:[#allocation8 + $0x22] sm:$0x1]  ;;  %v18269_v48 = vld [vmem:[%s27792_s9 + $0x118] sm:$0xf] }
 0xc0e   : > { %v15082_v53 = vmax.f32 %v15050_v19, 0.0  ;;  %v16748_v63 = vld [vmem:[#allocation8 + $0x33] sm:$0x1] }
 0xc0f   : > { %21749 = vmatpush3.msk.msra.mxu0 %vm15525_vm5, %v18224_v7  ;;  %v15081_v40 = vmax.f32 %v15049_v49, 0.0  ;;  %v21719_v13 = vpop.f32.mrb[82].mxu1  ;;  %v18267_v7 = vld [vmem:[%s27792_s9 + $0x108] sm:$0xff]  ;;  %v18272_v49 = vld [vmem:[%s27792_s9 + $0x120] sm:$0xff] }
 0xc10   : > { %22131 = vmatprep.subr.bf16.mxu0 %v23337_v11  ;;  %v14957_v12 = vpop.f32.mrb[83].mxu1  ;;  %15114 = vst.msk [vmem:[#allocation7 + $0xc8] sm:$0xff] %vm412_vm4, %v15082_v53  ;;  %v15052_v55 = vadd.f32 %v21719_v13, %v27435_v31  ;;  %v22156_v19 = vpack.c.bf16 %v18268_v33, %v18267_v7  ;;  %v16420_v53 = vld [vmem:[#allocation8 + $0x23] sm:$0x1]  ;;  %v18277_v13 = vld [vmem:[%s27792_s9 + $0x138] sm:$0xff] }
 0xc11   : > { %15113 = vst.msk [vmem:[#allocation7 + $0xc0] sm:$0xff] %vm412_vm4, %v15081_v40  ;;  %v15051_v59 = vadd.f32 %v27435_v31, %v14957_v12  ;;  %v18274_v40 = vld [vmem:[%s27792_s9 + $0x130] sm:$0xf]  ;;  %v18278_v12 = vld [vmem:[%s27792_s9 + $0x140] sm:$0xff] }
 0xc12   : > { %21751 = vmatmul.mubr.msk.f32.vlgmr.msra.gmra.mrb[64].mxu0 %vm412_vm4, %v15682_v46  ;;  %v15084_v8 = vmax.f32 %v15052_v55, 0.0  ;;  %v22162_v46 = vpack.c.bf16 %v18278_v12, %v18277_v13 }
 0xc13   : > { %22133 = vmatpush3.bf16.msra.mxu0 %v22132_v23  ;;  %v21722_v60 = vpop.f32.mrb[84].mxu1  ;;  %21759 = vmatprep.mubr.msk.f32.mxu0 %vm23338_vm6, %v28337_v32  ;;  %v15083_v4 = vmax.f32 %v15051_v59, 0.0  ;;  %v18273_v23 = vld [vmem:[%s27792_s9 + $0x128] sm:$0xff] }
 0xc14   : > { %21757 = vmatprep.subr.mxu0 %v28337_v32  ;;  %v14967_v26 = vpop.f32.mrb[85].mxu1  ;;  %v15054_v15 = vadd.f32 %v21722_v60, %v27435_v31  ;;  %15116 = vst.msk [vmem:[#allocation7 + $0xd8] sm:$0xff] %vm412_vm4, %v15084_v8  ;;  %v16502_v60 = vld [vmem:[#allocation8 + $0x30] sm:$0x1] }
 0xc15   : > { %v15053_v36 = vadd.f32 %v27435_v31, %v14967_v26  ;;  %15115 = vst.msk [vmem:[#allocation7 + $0xd0] sm:$0xff] %vm412_vm4, %v15083_v4  ;;  %v18282_v26 = vld [vmem:[%s27792_s9 + $0x150] sm:$0xff] }
 0xc16   : > { %v15086_v10 = vmax.f32 %v15054_v15, 0.0 }
 0xc17   : > { %21758 = vmatpush3.msk.msra.mxu0 %vm15525_vm5, %v18229_v18  ;;  %v21725_v28 = vpop.f32.mrb[86].mxu1  ;;  %v15085_v54 = vmax.f32 %v15053_v36, 0.0  ;;  %v18279_v18 = vld [vmem:[%s27792_s9 + $0x148] sm:$0xf] }
 0xc18   : > { %22134 = vmatprep.subr.bf16.mxu0 %v23337_v11  ;;  %v14977_v20 = vpop.f32.mrb[87].mxu1  ;;  %v15056_v58 = vadd.f32 %v21725_v28, %v27435_v31  ;;  %15118 = vst.msk [vmem:[#allocation7 + $0xe8] sm:$0xff] %vm412_vm4, %v15086_v10  ;;  %v18283_v28 = vld [vmem:[%s27792_s9 + $0x158] sm:$0xff] }
 0xc19   : > { %v15055_v14 = vadd.f32 %v27435_v31, %v14977_v20  ;;  %15117 = vst.msk [vmem:[#allocation7 + $0xe0] sm:$0xff] %vm412_vm4, %v15085_v54  ;;  %v18247_v31 = vld [vmem:[%s27792_s9 + $0xa8] sm:$0xff]  ;;  %v22165_v20 = vpack.c.bf16 %v18283_v28, %v18282_v26 }
 0xc1a   : > { %21760 = vmatmul.mubr.msk.f32.vlgmr.msra.gmra.mrb[64].mxu0 %vm412_vm4, %v15764_v34  ;;  %v15088_v41 = vmax.f32 %v15056_v58, 0.0  ;;  %v22144_v61 = vpack.c.bf16 %v18248_v29, %v18247_v31  ;;  %v16584_v34 = vld [vmem:[#allocation8 + $0x31] sm:$0x1] }
 0xc1b   : > { %22136 = vmatpush3.bf16.msra.mxu0 %v22135_v42  ;;  %21768 = vmatprep.mubr.msk.f32.mxu0 %vm23338_vm6, %v28337_v32  ;;  %v15087_v57 = vmax.f32 %v15055_v14, 0.0  ;;  %v22159_v42 = vpack.c.bf16 %v18273_v23, %v18272_v49 }
 0xc1c   : > { %21766 = vmatprep.subr.mxu0 %v28337_v32  ;;  %15120 = vst.msk [vmem:[#allocation7 + $0xf8] sm:$0xff] %vm412_vm4, %v15088_v41 }
 0xc1d   : > { %15119 = vst.msk [vmem:[#allocation7 + $0xf0] sm:$0xff] %vm412_vm4, %v15087_v57 }
 0xc1f   : > { %21767 = vmatpush3.msk.msra.mxu0 %vm15525_vm5, %v18234_v0  ;;  %v18284_v0 = vld [vmem:[%s27792_s9 + $0x160] sm:$0xf] }
 0xc20   : > { %22137 = vmatprep.subr.bf16.mxu0 %v23337_v11 }
 0xc22   : > { %21769 = vmatmul.mubr.msk.f32.vlgmr.msra.gmra.mrb[64].mxu0 %vm412_vm4, %v15846_v50  ;;  %v16666_v50 = vld [vmem:[#allocation8 + $0x32] sm:$0x1] }
 0xc23   : > { %22139 = vmatpush3.bf16.msra.mxu0 %v22138_v62  ;;  %21777 = vmatprep.mubr.msk.f32.mxu0 %vm23338_vm6, %v28337_v32  ;;  %v22168_v62 = vpack.c.bf16 %v18288_v1, %v18287_v43 }
 0xc24   : > { %21775 = vmatprep.subr.mxu0 %v28337_v32 }
 0xc27   : > { %21776 = vmatpush3.msk.msra.mxu0 %vm15525_vm5, %v18239_v47 }
 0xc28   : > { %22140 = vmatprep.subr.bf16.mxu0 %v23337_v11 }
 0xc2a   : > { %21778 = vmatmul.mubr.msk.f32.vlgmr.msra.gmra.mrb[64].mxu0 %vm412_vm4, %v15928_v5 }
 0xc2b   : > { %22142 = vmatpush3.bf16.msra.mxu0 %v22141_v56  ;;  %21786 = vmatprep.mubr.msk.f32.mxu0 %vm23338_vm6, %v28337_v32 }
 0xc2c   : > { %21784 = vmatprep.subr.mxu0 %v28337_v32 }
 0xc2f   : > { %21785 = vmatpush3.msk.msra.mxu0 %vm15525_vm5, %v18244_v9 }
 0xc30   : > { %22143 = vmatprep.subr.bf16.mxu0 %v23337_v11 }
 0xc32   : > { %21787 = vmatmul.mubr.msk.f32.vlgmr.msra.gmra.mrb[64].mxu0 %vm412_vm4, %v16010_v17 }
 0xc33   : > { %22145 = vmatpush3.bf16.msra.mxu0 %v22144_v61  ;;  %21795 = vmatprep.mubr.msk.f32.mxu0 %vm23338_vm6, %v28337_v32 }
 0xc34   : > { %21793 = vmatprep.subr.mxu0 %v28337_v32 }
 0xc37   : > { %21794 = vmatpush3.msk.msra.mxu0 %vm15525_vm5, %v18249_v38 }
 0xc38   : > { %22146 = vmatprep.subr.bf16.mxu0 %v23337_v11 }
 0xc3a   : > { %21796 = vmatmul.mubr.msk.f32.vlgmr.msra.gmra.mrb[64].mxu0 %vm412_vm4, %v16092_v44 }
 0xc3b   : > { %22148 = vmatpush3.bf16.msra.mxu0 %v22147_v16  ;;  %21804 = vmatprep.mubr.msk.f32.mxu0 %vm23338_vm6, %v28337_v32 }
 0xc3c   : > { %21802 = vmatprep.subr.mxu0 %v28337_v32 }
 0xc3f   : > { %21803 = vmatpush3.msk.msra.mxu0 %vm15525_vm5, %v18254_v37 }
 0xc40   : > { %22149 = vmatprep.subr.bf16.mxu0 %v23337_v11 }
 0xc42   : > { %21805 = vmatmul.mubr.msk.f32.vlgmr.msra.gmra.mrb[64].mxu0 %vm412_vm4, %v16174_v6 }
 0xc43   : > { %22151 = vmatpush3.bf16.msra.mxu0 %v22150_v27  ;;  %21813 = vmatprep.mubr.msk.f32.mxu0 %vm23338_vm6, %v28337_v32 }
 0xc44   : > { %21811 = vmatprep.subr.mxu0 %v28337_v32 }
 0xc47   : > { %21812 = vmatpush3.msk.msra.mxu0 %vm15525_vm5, %v18259_v25 }
 0xc48   : > { %22152 = vmatprep.subr.bf16.mxu0 %v23337_v11 }
 0xc4a   : > { %21814 = vmatmul.mubr.msk.f32.vlgmr.msra.gmra.mrb[64].mxu0 %vm412_vm4, %v16256_v52 }
 0xc4b   : > { %22154 = vmatpush3.bf16.msra.mxu0 %v22153_v2  ;;  %21822 = vmatprep.mubr.msk.f32.mxu0 %vm23338_vm6, %v28337_v32 }
 0xc4c   : > { %21820 = vmatprep.subr.mxu0 %v28337_v32 }
 0xc4f   : > { %21821 = vmatpush3.msk.msra.mxu0 %vm15525_vm5, %v18264_v51 }
 0xc50   : > { %22155 = vmatprep.subr.bf16.mxu0 %v23337_v11 }
 0xc52   : > { %21823 = vmatmul.mubr.msk.f32.vlgmr.msra.gmra.mrb[64].mxu0 %vm412_vm4, %v16338_v45 }
 0xc53   : > { %22157 = vmatpush3.bf16.msra.mxu0 %v22156_v19  ;;  %21831 = vmatprep.mubr.msk.f32.mxu0 %vm23338_vm6, %v28337_v32 }
 0xc54   : > { %21829 = vmatprep.subr.mxu0 %v28337_v32 }
 0xc57   : > { %21830 = vmatpush3.msk.msra.mxu0 %vm15525_vm5, %v18269_v48 }
 0xc58   : > { %22158 = vmatprep.subr.bf16.mxu0 %v23337_v11 }
 0xc5a   : > { %21832 = vmatmul.mubr.msk.f32.vlgmr.msra.gmra.mrb[64].mxu0 %vm412_vm4, %v16420_v53 }
 0xc5b   : > { %22160 = vmatpush3.bf16.msra.mxu0 %v22159_v42  ;;  %21840 = vmatprep.mubr.msk.f32.mxu0 %vm23338_vm6, %v28337_v32 }
 0xc5c   : > { %21838 = vmatprep.subr.mxu0 %v28337_v32 }
 0xc5f   : > { %21839 = vmatpush3.msk.msra.mxu0 %vm15525_vm5, %v18274_v40 }
 0xc60   : > { %22161 = vmatprep.subr.bf16.mxu0 %v23337_v11 }
 0xc62   : > { %21841 = vmatmul.mubr.msk.f32.vlgmr.msra.gmra.mrb[64].mxu0 %vm412_vm4, %v16502_v60 }
 0xc63   : > { %22163 = vmatpush3.bf16.msra.mxu0 %v22162_v46  ;;  %21849 = vmatprep.mubr.msk.f32.mxu0 %vm23338_vm6, %v28337_v32 }
 0xc64   : > { %21847 = vmatprep.subr.mxu0 %v28337_v32 }
 0xc67   : > { %21848 = vmatpush3.msk.msra.mxu0 %vm15525_vm5, %v18279_v18 }
 0xc68   : > { %22164 = vmatprep.subr.bf16.mxu0 %v23337_v11 }
 0xc6a   : > { %21850 = vmatmul.mubr.msk.f32.vlgmr.msra.gmra.mrb[64].mxu0 %vm412_vm4, %v16584_v34 }
 0xc6b   : > { %22166 = vmatpush3.bf16.msra.mxu0 %v22165_v20  ;;  %21858 = vmatprep.mubr.msk.f32.mxu0 %vm23338_vm6, %v28337_v32 }
 0xc6c   : > { %21856 = vmatprep.subr.mxu0 %v28337_v32 }
 0xc6f   : > { %21857 = vmatpush3.msk.msra.mxu0 %vm15525_vm5, %v18284_v0 }
 0xc70   : > { %22167 = vmatprep.subr.bf16.mxu0 %v23337_v11  ;;  %v15517_v11 = vld [vmem:[%s27793_s10] sm:$0x1] }
 0xc72   : > { %21859 = vmatmul.mubr.msk.f32.vlgmr.msra.gmra.mrb[64].mxu0 %vm412_vm4, %v16666_v50 }
 0xc73   : > { %22169 = vmatpush3.bf16.msra.mxu0 %v22168_v62  ;;  %21867 = vmatprep.mubr.msk.f32.mxu0 %vm23338_vm6, %v28337_v32 }
 0xc74   : > { %21865 = vmatprep.subr.mxu0 %v28337_v32 }
 0xc77   : > { %21866 = vmatpush3.msk.msra.mxu0 %vm15525_vm5, %v18289_v24 }
 0xc7a   : > { %21868 = vmatmul.mubr.msk.f32.vlgmr.msra.gmra.mrb[64].mxu0 %vm412_vm4, %v16748_v63 }
 0xd4d   : > { %v16825_v55 = vpop.f32.mrb[64].mxu0 }
 0xd4e   : > { %v22196_v32 = vadd.f32 %v16825_v55, %v15517_v11  ;;  %v21869_v47 = vpop.f32.mrb[65].mxu0 }
 0xd50   : > { %16831 = vst.msk [vmem:[%s378_s22] sm:$0x1] %vm16830_vm7, %v22196_v32 }
 0xd51   : > { %23285 = shalt.err (!%p23282_p3)
}
 0xd52   : > { %s23286_s13 = scalar_lea.hbm %s27741_s30, 16  ;;  %s23290_s25 = scalar_lea.hbm %s27794_s11, 32 }
 0xd53   : > { %p23287_p4 = scmp.ne.s32.totalorder %s27741_s30, %s23286_s13  ;;  %p23291_p9 = scmp.lt.u32.totalorder %s27741_s30, %s27794_s11 }
 0xd54   : > { %p23292_p10 = scmp.lt.u32.totalorder %s23290_s25, %s23286_s13  ;;  %p23294_p12 = scmp.lt.u32.totalorder %s23286_s13, %s27741_s30 }
 0xd55   : > { %p23288_p7 = pnand %p23287_p4, %p23438_p5 }
 0xd56   : > { %p23293_p11 = por %p23292_p10, %p23291_p9 }
 0xd57   : > { %p23289_p8 = pneg %p23288_p7 }
 0xd58   : > { %p23295_p13 = por %p23294_p12, %p23293_p11 }
 0xd5a   : > { %p23296_p0 = pnand %p23295_p13, %p23289_p8 }
 0xd5c   : > { %23299 = shalt.err (!%p23296_p0)
}
 0xd5d   : > { %23227 = dma.vmem_to_hbm [thread:$0]  (%p23438_p5), %s27743_s24, 16, %s27741_s30, %s16833_s12  }
 0xd5e PF: > { %p23233_p1 = scmp.ge.s32.totalorder %s23334_s20, 2  ;;  %s16857_s0 = sand.u32 1, %s23322_s17  }
 0xd5f   : > { %s16858_s14 = scalar_lea.sflag [#allocation10], %s16857_s0 }
 0xd60   : > { %p23230_p2 = pnand %p23233_p1, %p23442_p6 }
 0xd62   : > { %23317 = dma.done.wait (!%p23230_p2), %s16858_s14, 16  }
 0xd63   : > { %23319 = vsyncadd (!%p23230_p2), %s16858_s14, 4294967280  ;;  %p21_p3 = scmp.ge.s32.totalorder %s23425_s23, 4   ;;  %s28342_s17 = smov %s23326_s18 }
 0xd64   : > { %s28343_s18 = smov %s23330_s19  ;;  %s28344_s19 = smov %s23436_s26 }
 0xd65   : > { %s28345_s20 = smov %s23425_s23  ;;  %23 = sbr.rel (!%p21_p3) target bundleno = 5 (0x5), region = 146 }
 0xd6c   :  { %16862 = vsyncpa [#allocation10], 1 }
 0xd6d   :  { %16864 = vsyncpa [#allocation10 + $0x1], 1 }

</bundles_post_ra>
